<compile_context>
chip_gen: v5e
topology: v5e:2x2
jax: 0.10.0
libtpu: 0.0.40
codegen_flags: <defaults>
</compile_context>

<pallas_src>
import functools

import jax
import jax.numpy as jnp
from jax.experimental import pallas as pl
from jax.experimental.pallas import tpu as pltpu


# ----------------------------------------------------------------------------
# Single fused kernel (one grid step, all scales unrolled):
#     mean_spatial(x_s)  ->  @ W_s + b_s  ->  (e - min) / (max - min + 1e-5)
# ----------------------------------------------------------------------------
def _fused_all_scales_kernel(*refs, inv_ns):
    """refs = (x_0..x_{S-1}, w_0..w_{S-1}, b_0..b_{S-1}, out_ref).

    x_i : (B, C_i, N_i) f32   feature map, channels-first, spatial flattened
    w_i : (C_i, 768)    bf16  1x1x1 conv weight (pre-transposed; upcast in-kernel)
    b_i : (1, 768)      f32   conv bias
    out : (S, B, 768)   f32   one normalized embedding row per scale
    """
    n_scales = len(inv_ns)
    x_refs = refs[:n_scales]
    w_refs = refs[n_scales:2 * n_scales]
    b_refs = refs[2 * n_scales:3 * n_scales]
    o_ref = refs[3 * n_scales]

    for i in range(n_scales):
        x = x_refs[i][...]                               # (B, C_i, N_i) f32
        m = jnp.sum(x, axis=-1) * inv_ns[i]              # spatial mean (f32 VPU) -> (B, C_i)
        w = w_refs[i][...].astype(jnp.float32)           # bf16 DMA, f32 compute
        e = jnp.dot(m, w,
                    preferred_element_type=jnp.float32) + b_refs[i][...]   # (B, 768)
        mn = jnp.min(e)
        mx = jnp.max(e)
        o_ref[i] = (e - mn) / (mx - mn + 1e-5)           # global min-max normalize


def fused_projection_embeddings(xs, ws, bs):
    """xs: list of (B, C_i, N_i) f32; ws: list of (C_i, 768) bf16; bs: list of (1, 768) f32.

    Returns (S, B, 768) f32 normalized image embeddings, one per scale, in list order.
    Single pallas_call, single grid step, everything resident in VMEM once.
    """
    n_scales = len(xs)
    B = xs[0].shape[0]
    O = ws[0].shape[1]
    inv_ns = tuple(1.0 / float(x.shape[2]) for x in xs)   # powers of two for these shapes
    kernel = functools.partial(_fused_all_scales_kernel, inv_ns=inv_ns)

    # Full-array blocks (satisfy the (8,128) rule via "block == array dims"); constant
    # index maps mean every operand is DMA'd into VMEM exactly once before the single step.
    in_specs = (
        [pl.BlockSpec(tuple(x.shape), lambda i: (0, 0, 0)) for x in xs]
        + [pl.BlockSpec(tuple(w.shape), lambda i: (0, 0)) for w in ws]
        + [pl.BlockSpec(tuple(b.shape), lambda i: (0, 0)) for b in bs]
    )

    return pl.pallas_call(
        kernel,
        out_shape=jax.ShapeDtypeStruct((n_scales, B, O), jnp.float32),
        grid_spec=pltpu.PrefetchScalarGridSpec(
            num_scalar_prefetch=0,
            grid=(1,),                                   # single step: no per-scale pipeline overhead
            in_specs=in_specs,
            out_specs=pl.BlockSpec((n_scales, B, O), lambda i: (0, 0, 0)),
        ),
        compiler_params=pltpu.CompilerParams(
            dimension_semantics=("arbitrary",),
            # vmem_limit_bytes intentionally not set: resident footprint << 16 MiB default.
        ),
    )(*xs, *ws, *bs)


# ----------------------------------------------------------------------------
# Module wrapper (parameter setup + layout glue in plain JAX)
# ----------------------------------------------------------------------------
class FeatureMapTextGeneratorPallas:
    feature_map_channels = (48, 96, 192, 384, 768)
    out_channels = 768  # == 24 * 32

    def __init__(self, key):
        keys = jax.random.split(key, 2 * len(self.feature_map_channels))
        self.weights_t_bf16 = []   # (C_in, 768) bf16 — cast once at init, DMA'd by the kernel
        self.biases_2d = []        # (1, 768) f32
        for i, cin in enumerate(self.feature_map_channels):
            bound = 1.0 / (cin ** 0.5)  # PyTorch Conv default init range
            w = jax.random.uniform(keys[2 * i], (self.out_channels, cin),
                                   jnp.float32, -bound, bound)
            b = jax.random.uniform(keys[2 * i + 1], (self.out_channels,),
                                   jnp.float32, -bound, bound)
            self.weights_t_bf16.append(jnp.transpose(w).astype(jnp.bfloat16))
            self.biases_2d.append(b.reshape(1, self.out_channels))

    def forward(self, feature_maps):
        """feature_maps: list of (B, C_in[i], D, H, W) arrays (NCDHW), fine -> coarse.

        Returns the list of normalized image embeddings (B, 3, 24, 32), one per scale,
        processed coarse -> fine exactly like `for fm in reversed(feature_maps)`.
        """
        n = len(feature_maps)
        B = feature_maps[0].shape[0]

        xs, ws, bs = [], [], []
        for idx in reversed(range(n)):            # coarse -> fine processing order
            fm = feature_maps[idx]
            _, C, D, H, W = fm.shape
            assert C == self.feature_map_channels[idx]
            xs.append(fm.reshape(B, C, D * H * W))   # NCDHW -> (B, C, N); no transpose needed
            ws.append(self.weights_t_bf16[idx])
            bs.append(self.biases_2d[idx])

        emb_all = fused_projection_embeddings(xs, ws, bs)   # (S, B, 768), single launch

        image_embeddings = []
        for s in range(n):
            emb = emb_all[s]                                               # (B, 768)
            # .view(-1,1,24,32).repeat(1,3,1,1): pure layout glue; normalizing before the
            # channel repeat is exact since min/max are global scalars.
            img = jnp.broadcast_to(emb.reshape(B, 1, 24, 32), (B, 3, 24, 32))
            image_embeddings.append(img)
            # TODO(synk): BlipProcessor + BLIP model.generate (beam search) not representable in Pallas.
        return image_embeddings


# ----------------------------------------------------------------------------
# Pure-JAX reference (mirrors the PyTorch math order, using the same bf16 weights)
# ----------------------------------------------------------------------------
def _reference(model, feature_maps):
    outs = []
    n = len(feature_maps)
    for i, fm in enumerate(reversed(feature_maps)):
        idx = n - 1 - i
        B, C, D, H, W = fm.shape
        x = jnp.transpose(fm.reshape(B, C, D * H * W), (0, 2, 1))        # (B, N, C)
        w = model.weights_t_bf16[idx].astype(jnp.float32)                # (C, 768)
        b = model.biases_2d[idx][0]                                      # (768,)
        proj = jnp.einsum("bnc,co->bno", x, w) + b
        emb = proj.mean(axis=1)                                          # (B, 768)
        img = jnp.broadcast_to(emb.reshape(B, 1, 24, 32), (B, 3, 24, 32)).astype(jnp.float32)
        img = (img - img.min()) / (img.max() - img.min() + 1e-5)
        outs.append(img)
    return outs


if __name__ == "__main__":
    key = jax.random.PRNGKey(0)
    model = FeatureMapTextGeneratorPallas(key)

    # Small synthetic "Swin" feature maps, NCDHW, fine -> coarse (channels per the module).
    B = 2
    spatial = [(8, 8, 8), (4, 8, 8), (4, 4, 8), (4, 4, 4), (2, 4, 4)]
    fkeys = jax.random.split(jax.random.PRNGKey(1), len(spatial))
    feature_maps = [
        jax.random.normal(fkeys[i], (B, model.feature_map_channels[i], *spatial[i]),
                          dtype=jnp.float32)
        for i in range(len(spatial))
    ]

    outs = model.forward(feature_maps)
    outs = [jax.block_until_ready(o) for o in outs]

    refs = _reference(model, feature_maps)
    for o, r in zip(outs, refs):
        assert o.shape == (B, 3, 24, 32)
        assert jnp.allclose(o, r, atol=1e-4, rtol=1e-4), "mismatch vs reference"

    print("KERNEL_OK")
</pallas_src>

<mosaic_0001>
module attributes {stable_mosaic.version = 11 : i64} {
  func.func @_fused_all_scales_kernel(%arg0: i32, %arg1: memref<2x768x32xf32, #tpu.memory_space<vmem>>, %arg2: memref<2x384x64xf32, #tpu.memory_space<vmem>>, %arg3: memref<2x192x128xf32, #tpu.memory_space<vmem>>, %arg4: memref<2x96x256xf32, #tpu.memory_space<vmem>>, %arg5: memref<2x48x512xf32, #tpu.memory_space<vmem>>, %arg6: memref<768x768xbf16, #tpu.memory_space<vmem>>, %arg7: memref<384x768xbf16, #tpu.memory_space<vmem>>, %arg8: memref<192x768xbf16, #tpu.memory_space<vmem>>, %arg9: memref<96x768xbf16, #tpu.memory_space<vmem>>, %arg10: memref<48x768xbf16, #tpu.memory_space<vmem>>, %arg11: memref<1x768xf32, #tpu.memory_space<vmem>>, %arg12: memref<1x768xf32, #tpu.memory_space<vmem>>, %arg13: memref<1x768xf32, #tpu.memory_space<vmem>>, %arg14: memref<1x768xf32, #tpu.memory_space<vmem>>, %arg15: memref<1x768xf32, #tpu.memory_space<vmem>>, %arg16: memref<5x2x768xf32, #tpu.memory_space<vmem>>) attributes {dimension_semantics = [#tpu.dimension_semantics<arbitrary>], iteration_bounds = array<i64: 1>, scalar_prefetch = 0 : i64, scratch_operands = 0 : i64, tpu.core_type = #tpu.core_type<tc>, window_params = [{pipeline_mode = #tpu.pipeline_mode<synchronous>, transform_indices = @transform_0, window_bounds = array<i64: 2, 768, 32>}, {pipeline_mode = #tpu.pipeline_mode<synchronous>, transform_indices = @transform_1, window_bounds = array<i64: 2, 384, 64>}, {pipeline_mode = #tpu.pipeline_mode<synchronous>, transform_indices = @transform_2, window_bounds = array<i64: 2, 192, 128>}, {pipeline_mode = #tpu.pipeline_mode<synchronous>, transform_indices = @transform_3, window_bounds = array<i64: 2, 96, 256>}, {pipeline_mode = #tpu.pipeline_mode<synchronous>, transform_indices = @transform_4, window_bounds = array<i64: 2, 48, 512>}, {pipeline_mode = #tpu.pipeline_mode<synchronous>, transform_indices = @transform_5, window_bounds = array<i64: 768, 768>}, {pipeline_mode = #tpu.pipeline_mode<synchronous>, transform_indices = @transform_6, window_bounds = array<i64: 384, 768>}, {pipeline_mode = #tpu.pipeline_mode<synchronous>, transform_indices = @transform_7, window_bounds = array<i64: 192, 768>}, {pipeline_mode = #tpu.pipeline_mode<synchronous>, transform_indices = @transform_8, window_bounds = array<i64: 96, 768>}, {pipeline_mode = #tpu.pipeline_mode<synchronous>, transform_indices = @transform_9, window_bounds = array<i64: 48, 768>}, {pipeline_mode = #tpu.pipeline_mode<synchronous>, transform_indices = @transform_10, window_bounds = array<i64: 1, 768>}, {pipeline_mode = #tpu.pipeline_mode<synchronous>, transform_indices = @transform_11, window_bounds = array<i64: 1, 768>}, {pipeline_mode = #tpu.pipeline_mode<synchronous>, transform_indices = @transform_12, window_bounds = array<i64: 1, 768>}, {pipeline_mode = #tpu.pipeline_mode<synchronous>, transform_indices = @transform_13, window_bounds = array<i64: 1, 768>}, {pipeline_mode = #tpu.pipeline_mode<synchronous>, transform_indices = @transform_14, window_bounds = array<i64: 1, 768>}, {pipeline_mode = #tpu.pipeline_mode<synchronous>, transform_indices = @transform_15, window_bounds = array<i64: 5, 2, 768>}]} {
    %c0 = arith.constant 0 : index
    %c0_0 = arith.constant 0 : index
    %c0_1 = arith.constant 0 : index
    %0 = vector.load %arg1[%c0, %c0_0, %c0_1] : memref<2x768x32xf32, #tpu.memory_space<vmem>>, vector<2x768x32xf32>
    %cst = arith.constant dense<0.000000e+00> : vector<2x768xf32>
    %1 = vector.multi_reduction <add>, %0, %cst [2] : vector<2x768x32xf32> to vector<2x768xf32>
    %cst_2 = arith.constant 3.125000e-02 : f32
    %2 = vector.broadcast %cst_2 : f32 to vector<2x768xf32>
    %3 = arith.mulf %1, %2 : vector<2x768xf32>
    %c0_3 = arith.constant 0 : index
    %c0_4 = arith.constant 0 : index
    %4 = vector.load %arg6[%c0_3, %c0_4] : memref<768x768xbf16, #tpu.memory_space<vmem>>, vector<768x768xbf16>
    %5 = arith.extf %4 : vector<768x768xbf16> to vector<768x768xf32>
    %cst_5 = arith.constant dense<0.000000e+00> : vector<2x768xf32>
    %6 = tpu.matmul %3, %5, %cst_5 {dimension_numbers = #tpu.dot_dimension_numbers<[1], [0], [0], [1], [0, 0, 1, 1], [], []>} : vector<2x768xf32>, vector<768x768xf32>, vector<2x768xf32> -> vector<2x768xf32>
    %c0_6 = arith.constant 0 : index
    %c0_7 = arith.constant 0 : index
    %7 = vector.load %arg11[%c0_6, %c0_7] : memref<1x768xf32, #tpu.memory_space<vmem>>, vector<1x768xf32>
    %8 = vector.broadcast %7 : vector<1x768xf32> to vector<2x768xf32>
    %9 = arith.addf %6, %8 : vector<2x768xf32>
    %10 = vector.shape_cast %9 : vector<2x768xf32> to vector<1x2x768xf32>
    %cst_8 = arith.constant dense<0x7F800000> : vector<1xf32>
    %11 = vector.multi_reduction <minimumf>, %10, %cst_8 [1, 2] : vector<1x2x768xf32> to vector<1xf32>
    %12 = vector.shape_cast %11 : vector<1xf32> to vector<1x1x1xf32>
    %13 = vector.extract %12[0, 0, 0] : f32 from vector<1x1x1xf32>
    %14 = vector.shape_cast %9 : vector<2x768xf32> to vector<1x2x768xf32>
    %cst_9 = arith.constant dense<0xFF800000> : vector<1xf32>
    %15 = vector.multi_reduction <maximumf>, %14, %cst_9 [1, 2] : vector<1x2x768xf32> to vector<1xf32>
    %16 = vector.shape_cast %15 : vector<1xf32> to vector<1x1x1xf32>
    %17 = vector.extract %16[0, 0, 0] : f32 from vector<1x1x1xf32>
    %18 = vector.broadcast %13 : f32 to vector<2x768xf32>
    %19 = arith.subf %9, %18 : vector<2x768xf32>
    %20 = arith.subf %17, %13 : f32
    %cst_10 = arith.constant 9.99999974E-6 : f32
    %21 = arith.addf %20, %cst_10 : f32
    %22 = vector.broadcast %21 : f32 to vector<2x768xf32>
    %23 = arith.divf %19, %22 : vector<2x768xf32>
    %c0_11 = arith.constant 0 : index
    %c0_12 = arith.constant 0 : index
    %c0_13 = arith.constant 0 : index
    %24 = vector.load %arg16[%c0_11, %c0_12, %c0_13] : memref<5x2x768xf32, #tpu.memory_space<vmem>>, vector<1x2x768xf32>
    %25 = vector.shape_cast %24 : vector<1x2x768xf32> to vector<2x768xf32>
    %26 = vector.shape_cast %23 : vector<2x768xf32> to vector<1x2x768xf32>
    tpu.vector_store %arg16[%c0_11, %c0_12, %c0_13], %26 {strides = array<i32>} : memref<5x2x768xf32, #tpu.memory_space<vmem>>, vector<1x2x768xf32>,
    %c0_14 = arith.constant 0 : index
    %c0_15 = arith.constant 0 : index
    %c0_16 = arith.constant 0 : index
    %27 = vector.load %arg2[%c0_14, %c0_15, %c0_16] : memref<2x384x64xf32, #tpu.memory_space<vmem>>, vector<2x384x64xf32>
    %cst_17 = arith.constant dense<0.000000e+00> : vector<2x384xf32>
    %28 = vector.multi_reduction <add>, %27, %cst_17 [2] : vector<2x384x64xf32> to vector<2x384xf32>
    %cst_18 = arith.constant 1.562500e-02 : f32
    %29 = vector.broadcast %cst_18 : f32 to vector<2x384xf32>
    %30 = arith.mulf %28, %29 : vector<2x384xf32>
    %c0_19 = arith.constant 0 : index
    %c0_20 = arith.constant 0 : index
    %31 = vector.load %arg7[%c0_19, %c0_20] : memref<384x768xbf16, #tpu.memory_space<vmem>>, vector<384x768xbf16>
    %32 = arith.extf %31 : vector<384x768xbf16> to vector<384x768xf32>
    %cst_21 = arith.constant dense<0.000000e+00> : vector<2x768xf32>
    %33 = tpu.matmul %30, %32, %cst_21 {dimension_numbers = #tpu.dot_dimension_numbers<[1], [0], [0], [1], [0, 0, 1, 1], [], []>} : vector<2x384xf32>, vector<384x768xf32>, vector<2x768xf32> -> vector<2x768xf32>
    %c0_22 = arith.constant 0 : index
    %c0_23 = arith.constant 0 : index
    %34 = vector.load %arg12[%c0_22, %c0_23] : memref<1x768xf32, #tpu.memory_space<vmem>>, vector<1x768xf32>
    %35 = vector.broadcast %34 : vector<1x768xf32> to vector<2x768xf32>
    %36 = arith.addf %33, %35 : vector<2x768xf32>
    %37 = vector.shape_cast %36 : vector<2x768xf32> to vector<1x2x768xf32>
    %cst_24 = arith.constant dense<0x7F800000> : vector<1xf32>
    %38 = vector.multi_reduction <minimumf>, %37, %cst_24 [1, 2] : vector<1x2x768xf32> to vector<1xf32>
    %39 = vector.shape_cast %38 : vector<1xf32> to vector<1x1x1xf32>
    %40 = vector.extract %39[0, 0, 0] : f32 from vector<1x1x1xf32>
    %41 = vector.shape_cast %36 : vector<2x768xf32> to vector<1x2x768xf32>
    %cst_25 = arith.constant dense<0xFF800000> : vector<1xf32>
    %42 = vector.multi_reduction <maximumf>, %41, %cst_25 [1, 2] : vector<1x2x768xf32> to vector<1xf32>
    %43 = vector.shape_cast %42 : vector<1xf32> to vector<1x1x1xf32>
    %44 = vector.extract %43[0, 0, 0] : f32 from vector<1x1x1xf32>
    %45 = vector.broadcast %40 : f32 to vector<2x768xf32>
    %46 = arith.subf %36, %45 : vector<2x768xf32>
    %47 = arith.subf %44, %40 : f32
    %cst_26 = arith.constant 9.99999974E-6 : f32
    %48 = arith.addf %47, %cst_26 : f32
    %49 = vector.broadcast %48 : f32 to vector<2x768xf32>
    %50 = arith.divf %46, %49 : vector<2x768xf32>
    %c1 = arith.constant 1 : index
    %c0_27 = arith.constant 0 : index
    %c0_28 = arith.constant 0 : index
    %51 = vector.load %arg16[%c1, %c0_27, %c0_28] : memref<5x2x768xf32, #tpu.memory_space<vmem>>, vector<1x2x768xf32>
    %52 = vector.shape_cast %51 : vector<1x2x768xf32> to vector<2x768xf32>
    %53 = vector.shape_cast %50 : vector<2x768xf32> to vector<1x2x768xf32>
    tpu.vector_store %arg16[%c1, %c0_27, %c0_28], %53 {strides = array<i32>} : memref<5x2x768xf32, #tpu.memory_space<vmem>>, vector<1x2x768xf32>,
    %c0_29 = arith.constant 0 : index
    %c0_30 = arith.constant 0 : index
    %c0_31 = arith.constant 0 : index
    %54 = vector.load %arg3[%c0_29, %c0_30, %c0_31] : memref<2x192x128xf32, #tpu.memory_space<vmem>>, vector<2x192x128xf32>
    %cst_32 = arith.constant dense<0.000000e+00> : vector<2x192xf32>
    %55 = vector.multi_reduction <add>, %54, %cst_32 [2] : vector<2x192x128xf32> to vector<2x192xf32>
    %cst_33 = arith.constant 7.812500e-03 : f32
    %56 = vector.broadcast %cst_33 : f32 to vector<2x192xf32>
    %57 = arith.mulf %55, %56 : vector<2x192xf32>
    %c0_34 = arith.constant 0 : index
    %c0_35 = arith.constant 0 : index
    %58 = vector.load %arg8[%c0_34, %c0_35] : memref<192x768xbf16, #tpu.memory_space<vmem>>, vector<192x768xbf16>
    %59 = arith.extf %58 : vector<192x768xbf16> to vector<192x768xf32>
    %cst_36 = arith.constant dense<0.000000e+00> : vector<2x768xf32>
    %60 = tpu.matmul %57, %59, %cst_36 {dimension_numbers = #tpu.dot_dimension_numbers<[1], [0], [0], [1], [0, 0, 1, 1], [], []>} : vector<2x192xf32>, vector<192x768xf32>, vector<2x768xf32> -> vector<2x768xf32>
    %c0_37 = arith.constant 0 : index
    %c0_38 = arith.constant 0 : index
    %61 = vector.load %arg13[%c0_37, %c0_38] : memref<1x768xf32, #tpu.memory_space<vmem>>, vector<1x768xf32>
    %62 = vector.broadcast %61 : vector<1x768xf32> to vector<2x768xf32>
    %63 = arith.addf %60, %62 : vector<2x768xf32>
    %64 = vector.shape_cast %63 : vector<2x768xf32> to vector<1x2x768xf32>
    %cst_39 = arith.constant dense<0x7F800000> : vector<1xf32>
    %65 = vector.multi_reduction <minimumf>, %64, %cst_39 [1, 2] : vector<1x2x768xf32> to vector<1xf32>
    %66 = vector.shape_cast %65 : vector<1xf32> to vector<1x1x1xf32>
    %67 = vector.extract %66[0, 0, 0] : f32 from vector<1x1x1xf32>
    %68 = vector.shape_cast %63 : vector<2x768xf32> to vector<1x2x768xf32>
    %cst_40 = arith.constant dense<0xFF800000> : vector<1xf32>
    %69 = vector.multi_reduction <maximumf>, %68, %cst_40 [1, 2] : vector<1x2x768xf32> to vector<1xf32>
    %70 = vector.shape_cast %69 : vector<1xf32> to vector<1x1x1xf32>
    %71 = vector.extract %70[0, 0, 0] : f32 from vector<1x1x1xf32>
    %72 = vector.broadcast %67 : f32 to vector<2x768xf32>
    %73 = arith.subf %63, %72 : vector<2x768xf32>
    %74 = arith.subf %71, %67 : f32
    %cst_41 = arith.constant 9.99999974E-6 : f32
    %75 = arith.addf %74, %cst_41 : f32
    %76 = vector.broadcast %75 : f32 to vector<2x768xf32>
    %77 = arith.divf %73, %76 : vector<2x768xf32>
    %c2 = arith.constant 2 : index
    %c0_42 = arith.constant 0 : index
    %c0_43 = arith.constant 0 : index
    %78 = vector.load %arg16[%c2, %c0_42, %c0_43] : memref<5x2x768xf32, #tpu.memory_space<vmem>>, vector<1x2x768xf32>
    %79 = vector.shape_cast %78 : vector<1x2x768xf32> to vector<2x768xf32>
    %80 = vector.shape_cast %77 : vector<2x768xf32> to vector<1x2x768xf32>
    tpu.vector_store %arg16[%c2, %c0_42, %c0_43], %80 {strides = array<i32>} : memref<5x2x768xf32, #tpu.memory_space<vmem>>, vector<1x2x768xf32>,
    %c0_44 = arith.constant 0 : index
    %c0_45 = arith.constant 0 : index
    %c0_46 = arith.constant 0 : index
    %81 = vector.load %arg4[%c0_44, %c0_45, %c0_46] : memref<2x96x256xf32, #tpu.memory_space<vmem>>, vector<2x96x256xf32>
    %cst_47 = arith.constant dense<0.000000e+00> : vector<2x96xf32>
    %82 = vector.multi_reduction <add>, %81, %cst_47 [2] : vector<2x96x256xf32> to vector<2x96xf32>
    %cst_48 = arith.constant 3.906250e-03 : f32
    %83 = vector.broadcast %cst_48 : f32 to vector<2x96xf32>
    %84 = arith.mulf %82, %83 : vector<2x96xf32>
    %c0_49 = arith.constant 0 : index
    %c0_50 = arith.constant 0 : index
    %85 = vector.load %arg9[%c0_49, %c0_50] : memref<96x768xbf16, #tpu.memory_space<vmem>>, vector<96x768xbf16>
    %86 = arith.extf %85 : vector<96x768xbf16> to vector<96x768xf32>
    %cst_51 = arith.constant dense<0.000000e+00> : vector<2x768xf32>
    %87 = tpu.matmul %84, %86, %cst_51 {dimension_numbers = #tpu.dot_dimension_numbers<[1], [0], [0], [1], [0, 0, 1, 1], [], []>} : vector<2x96xf32>, vector<96x768xf32>, vector<2x768xf32> -> vector<2x768xf32>
    %c0_52 = arith.constant 0 : index
    %c0_53 = arith.constant 0 : index
    %88 = vector.load %arg14[%c0_52, %c0_53] : memref<1x768xf32, #tpu.memory_space<vmem>>, vector<1x768xf32>
    %89 = vector.broadcast %88 : vector<1x768xf32> to vector<2x768xf32>
    %90 = arith.addf %87, %89 : vector<2x768xf32>
    %91 = vector.shape_cast %90 : vector<2x768xf32> to vector<1x2x768xf32>
    %cst_54 = arith.constant dense<0x7F800000> : vector<1xf32>
    %92 = vector.multi_reduction <minimumf>, %91, %cst_54 [1, 2] : vector<1x2x768xf32> to vector<1xf32>
    %93 = vector.shape_cast %92 : vector<1xf32> to vector<1x1x1xf32>
    %94 = vector.extract %93[0, 0, 0] : f32 from vector<1x1x1xf32>
    %95 = vector.shape_cast %90 : vector<2x768xf32> to vector<1x2x768xf32>
    %cst_55 = arith.constant dense<0xFF800000> : vector<1xf32>
    %96 = vector.multi_reduction <maximumf>, %95, %cst_55 [1, 2] : vector<1x2x768xf32> to vector<1xf32>
    %97 = vector.shape_cast %96 : vector<1xf32> to vector<1x1x1xf32>
    %98 = vector.extract %97[0, 0, 0] : f32 from vector<1x1x1xf32>
    %99 = vector.broadcast %94 : f32 to vector<2x768xf32>
    %100 = arith.subf %90, %99 : vector<2x768xf32>
    %101 = arith.subf %98, %94 : f32
    %cst_56 = arith.constant 9.99999974E-6 : f32
    %102 = arith.addf %101, %cst_56 : f32
    %103 = vector.broadcast %102 : f32 to vector<2x768xf32>
    %104 = arith.divf %100, %103 : vector<2x768xf32>
    %c3 = arith.constant 3 : index
    %c0_57 = arith.constant 0 : index
    %c0_58 = arith.constant 0 : index
    %105 = vector.load %arg16[%c3, %c0_57, %c0_58] : memref<5x2x768xf32, #tpu.memory_space<vmem>>, vector<1x2x768xf32>
    %106 = vector.shape_cast %105 : vector<1x2x768xf32> to vector<2x768xf32>
    %107 = vector.shape_cast %104 : vector<2x768xf32> to vector<1x2x768xf32>
    tpu.vector_store %arg16[%c3, %c0_57, %c0_58], %107 {strides = array<i32>} : memref<5x2x768xf32, #tpu.memory_space<vmem>>, vector<1x2x768xf32>,
    %c0_59 = arith.constant 0 : index
    %c0_60 = arith.constant 0 : index
    %c0_61 = arith.constant 0 : index
    %108 = vector.load %arg5[%c0_59, %c0_60, %c0_61] : memref<2x48x512xf32, #tpu.memory_space<vmem>>, vector<2x48x512xf32>
    %cst_62 = arith.constant dense<0.000000e+00> : vector<2x48xf32>
    %109 = vector.multi_reduction <add>, %108, %cst_62 [2] : vector<2x48x512xf32> to vector<2x48xf32>
    %cst_63 = arith.constant 0.001953125 : f32
    %110 = vector.broadcast %cst_63 : f32 to vector<2x48xf32>
    %111 = arith.mulf %109, %110 : vector<2x48xf32>
    %c0_64 = arith.constant 0 : index
    %c0_65 = arith.constant 0 : index
    %112 = vector.load %arg10[%c0_64, %c0_65] : memref<48x768xbf16, #tpu.memory_space<vmem>>, vector<48x768xbf16>
    %113 = arith.extf %112 : vector<48x768xbf16> to vector<48x768xf32>
    %cst_66 = arith.constant dense<0.000000e+00> : vector<2x768xf32>
    %114 = tpu.matmul %111, %113, %cst_66 {dimension_numbers = #tpu.dot_dimension_numbers<[1], [0], [0], [1], [0, 0, 1, 1], [], []>} : vector<2x48xf32>, vector<48x768xf32>, vector<2x768xf32> -> vector<2x768xf32>
    %c0_67 = arith.constant 0 : index
    %c0_68 = arith.constant 0 : index
    %115 = vector.load %arg15[%c0_67, %c0_68] : memref<1x768xf32, #tpu.memory_space<vmem>>, vector<1x768xf32>
    %116 = vector.broadcast %115 : vector<1x768xf32> to vector<2x768xf32>
    %117 = arith.addf %114, %116 : vector<2x768xf32>
    %118 = vector.shape_cast %117 : vector<2x768xf32> to vector<1x2x768xf32>
    %cst_69 = arith.constant dense<0x7F800000> : vector<1xf32>
    %119 = vector.multi_reduction <minimumf>, %118, %cst_69 [1, 2] : vector<1x2x768xf32> to vector<1xf32>
    %120 = vector.shape_cast %119 : vector<1xf32> to vector<1x1x1xf32>
    %121 = vector.extract %120[0, 0, 0] : f32 from vector<1x1x1xf32>
    %122 = vector.shape_cast %117 : vector<2x768xf32> to vector<1x2x768xf32>
    %cst_70 = arith.constant dense<0xFF800000> : vector<1xf32>
    %123 = vector.multi_reduction <maximumf>, %122, %cst_70 [1, 2] : vector<1x2x768xf32> to vector<1xf32>
    %124 = vector.shape_cast %123 : vector<1xf32> to vector<1x1x1xf32>
    %125 = vector.extract %124[0, 0, 0] : f32 from vector<1x1x1xf32>
    %126 = vector.broadcast %121 : f32 to vector<2x768xf32>
    %127 = arith.subf %117, %126 : vector<2x768xf32>
    %128 = arith.subf %125, %121 : f32
    %cst_71 = arith.constant 9.99999974E-6 : f32
    %129 = arith.addf %128, %cst_71 : f32
    %130 = vector.broadcast %129 : f32 to vector<2x768xf32>
    %131 = arith.divf %127, %130 : vector<2x768xf32>
    %c4 = arith.constant 4 : index
    %c0_72 = arith.constant 0 : index
    %c0_73 = arith.constant 0 : index
    %132 = vector.load %arg16[%c4, %c0_72, %c0_73] : memref<5x2x768xf32, #tpu.memory_space<vmem>>, vector<1x2x768xf32>
    %133 = vector.shape_cast %132 : vector<1x2x768xf32> to vector<2x768xf32>
    %134 = vector.shape_cast %131 : vector<2x768xf32> to vector<1x2x768xf32>
    tpu.vector_store %arg16[%c4, %c0_72, %c0_73], %134 {strides = array<i32>} : memref<5x2x768xf32, #tpu.memory_space<vmem>>, vector<1x2x768xf32>,
    return
  }
  func.func @transform_0(%arg0: i32) -> (i32, i32, i32) {
    %c0_i32 = arith.constant 0 : i32
    %c0_i32_0 = arith.constant 0 : i32
    %c0_i32_1 = arith.constant 0 : i32
    %c0_i32_2 = arith.constant 0 : i32
    return %c0_i32, %c0_i32_0, %c0_i32_1 : i32, i32, i32
  }
  func.func @transform_1(%arg0: i32) -> (i32, i32, i32) {
    %c0_i32 = arith.constant 0 : i32
    %c0_i32_0 = arith.constant 0 : i32
    %c0_i32_1 = arith.constant 0 : i32
    %c0_i32_2 = arith.constant 0 : i32
    return %c0_i32, %c0_i32_0, %c0_i32_1 : i32, i32, i32
  }
  func.func @transform_2(%arg0: i32) -> (i32, i32, i32) {
    %c0_i32 = arith.constant 0 : i32
    %c0_i32_0 = arith.constant 0 : i32
    %c0_i32_1 = arith.constant 0 : i32
    %c0_i32_2 = arith.constant 0 : i32
    return %c0_i32, %c0_i32_0, %c0_i32_1 : i32, i32, i32
  }
  func.func @transform_3(%arg0: i32) -> (i32, i32, i32) {
    %c0_i32 = arith.constant 0 : i32
    %c0_i32_0 = arith.constant 0 : i32
    %c0_i32_1 = arith.constant 0 : i32
    %c0_i32_2 = arith.constant 0 : i32
    return %c0_i32, %c0_i32_0, %c0_i32_1 : i32, i32, i32
  }
  func.func @transform_4(%arg0: i32) -> (i32, i32, i32) {
    %c0_i32 = arith.constant 0 : i32
    %c0_i32_0 = arith.constant 0 : i32
    %c0_i32_1 = arith.constant 0 : i32
    %c0_i32_2 = arith.constant 0 : i32
    return %c0_i32, %c0_i32_0, %c0_i32_1 : i32, i32, i32
  }
  func.func @transform_5(%arg0: i32) -> (i32, i32) {
    %c0_i32 = arith.constant 0 : i32
    %c0_i32_0 = arith.constant 0 : i32
    %c0_i32_1 = arith.constant 0 : i32
    return %c0_i32, %c0_i32_0 : i32, i32
  }
  func.func @transform_6(%arg0: i32) -> (i32, i32) {
    %c0_i32 = arith.constant 0 : i32
    %c0_i32_0 = arith.constant 0 : i32
    %c0_i32_1 = arith.constant 0 : i32
    return %c0_i32, %c0_i32_0 : i32, i32
  }
  func.func @transform_7(%arg0: i32) -> (i32, i32) {
    %c0_i32 = arith.constant 0 : i32
    %c0_i32_0 = arith.constant 0 : i32
    %c0_i32_1 = arith.constant 0 : i32
    return %c0_i32, %c0_i32_0 : i32, i32
  }
  func.func @transform_8(%arg0: i32) -> (i32, i32) {
    %c0_i32 = arith.constant 0 : i32
    %c0_i32_0 = arith.constant 0 : i32
    %c0_i32_1 = arith.constant 0 : i32
    return %c0_i32, %c0_i32_0 : i32, i32
  }
  func.func @transform_9(%arg0: i32) -> (i32, i32) {
    %c0_i32 = arith.constant 0 : i32
    %c0_i32_0 = arith.constant 0 : i32
    %c0_i32_1 = arith.constant 0 : i32
    return %c0_i32, %c0_i32_0 : i32, i32
  }
  func.func @transform_10(%arg0: i32) -> (i32, i32) {
    %c0_i32 = arith.constant 0 : i32
    %c0_i32_0 = arith.constant 0 : i32
    %c0_i32_1 = arith.constant 0 : i32
    return %c0_i32, %c0_i32_0 : i32, i32
  }
  func.func @transform_11(%arg0: i32) -> (i32, i32) {
    %c0_i32 = arith.constant 0 : i32
    %c0_i32_0 = arith.constant 0 : i32
    %c0_i32_1 = arith.constant 0 : i32
    return %c0_i32, %c0_i32_0 : i32, i32
  }
  func.func @transform_12(%arg0: i32) -> (i32, i32) {
    %c0_i32 = arith.constant 0 : i32
    %c0_i32_0 = arith.constant 0 : i32
    %c0_i32_1 = arith.constant 0 : i32
    return %c0_i32, %c0_i32_0 : i32, i32
  }
  func.func @transform_13(%arg0: i32) -> (i32, i32) {
    %c0_i32 = arith.constant 0 : i32
    %c0_i32_0 = arith.constant 0 : i32
    %c0_i32_1 = arith.constant 0 : i32
    return %c0_i32, %c0_i32_0 : i32, i32
  }
  func.func @transform_14(%arg0: i32) -> (i32, i32) {
    %c0_i32 = arith.constant 0 : i32
    %c0_i32_0 = arith.constant 0 : i32
    %c0_i32_1 = arith.constant 0 : i32
    return %c0_i32, %c0_i32_0 : i32, i32
  }
  func.func @transform_15(%arg0: i32) -> (i32, i32, i32) {
    %c0_i32 = arith.constant 0 : i32
    %c0_i32_0 = arith.constant 0 : i32
    %c0_i32_1 = arith.constant 0 : i32
    %c0_i32_2 = arith.constant 0 : i32
    return %c0_i32, %c0_i32_0, %c0_i32_1 : i32, i32, i32
  }
}

</mosaic_0001>

<bundles_post_ra>
// kernel: tpu_custom_call.1
= control target key start
LH: loop header
LB: loop body
LE: loop exit
PB: predicated region body
PF: predicated region fallthrough
CT: control target
= control target key end

     0   :  { %20 = vsyncpa [#allocation3], 0  ;;  %s12824_s0 = inlined_call_operand.vmem [shape: f32[2,768,32], index: 0, kind: input, shape index: {}]   ;;  %s12825_s1 = inlined_call_operand.vmem [shape: f32[2,384,64], index: 1, kind: input, shape index: {}]   ;;  %s12826_s2 = inlined_call_operand.hbm [shape: f32[2,192,128], index: 2, kind: input, shape index: {}]   ;;  %s12827_s3 = inlined_call_operand.hbm [shape: f32[2,96,256], index: 3, kind: input, shape index: {}]   ;;  %s12828_s4 = inlined_call_operand.hbm [shape: f32[2,48,512], index: 4, kind: input, shape index: {}]   ;;  %s12829_s5 = inlined_call_operand.vmem [shape: bf16[768,768], index: 5, kind: input, shape index: {}]   ;;  %s12830_s6 = inlined_call_operand.hbm [shape: bf16[384,768], index: 6, kind: input, shape index: {}]   ;;  %s12831_s7 = inlined_call_operand.vmem [shape: bf16[192,768], index: 7, kind: input, shape index: {}]   ;;  %s12832_s8 = inlined_call_operand.hbm [shape: bf16[96,768], index: 8, kind: input, shape index: {}]   ;;  %s12833_s9 = inlined_call_operand.vmem [shape: bf16[48,768], index: 9, kind: input, shape index: {}]   ;;  %s12834_s10 = inlined_call_operand.vmem [shape: f32[1,768], index: 10, kind: input, shape index: {}]   ;;  %s12835_s11 = inlined_call_operand.vmem [shape: f32[1,768], index: 11, kind: input, shape index: {}]   ;;  %s12836_s12 = inlined_call_operand.vmem [shape: f32[1,768], index: 12, kind: input, shape index: {}]   ;;  %s12837_s13 = inlined_call_operand.vmem [shape: f32[1,768], index: 13, kind: input, shape index: {}]   ;;  %s12838_s14 = inlined_call_operand.vmem [shape: f32[1,768], index: 14, kind: input, shape index: {}]   ;;  %s12839_s15 = inlined_call_operand.hbm [shape: f32[5,2,768], index: 15, kind: output, shape index: {}]  }
   0x1   :  { %21 = vsyncpa [#allocation6], 0 }
   0x2   :  { %22 = vsyncpa [#allocation9], 0  ;;  %s45_s20 = sshll.u32 %s12827_s3, 4  ;;  %s46_s20 = int_to_ptr.hbm [resolvable:$true] %s45_s20 }
   0x3   :  { %23 = vsyncpa [#allocation4], 0  ;;  %s7288_s21 = smov [#allocation5]   ;;  %s73_s25 = sshll.u32 %s12830_s6, 4  ;;  %s74_s25 = int_to_ptr.hbm [resolvable:$true] %s73_s25 }
   0x4   :  { %s47_s22 = sshll.u32 %s7288_s21, 4  ;;  %s7289_s26 = smov 256   ;;  %s48_s22 = int_to_ptr.vmem [resolvable:$true] %s47_s22 }
   0x5   :  { %s7290_s27 = smov 16   ;;  %s7291_s28 = smov [#allocation8]  }
   0x6   :  { %53 = dma.hbm_to_vmem [thread:$0]  %s46_s20, 6144, %s48_s22, [#allocation6], %s7289_s26, %s7289_s26, %s7290_s27  }
   0x7   :  { %s75_s29 = sshll.u32 %s7291_s28, 4  ;;  %s7292_s30 = smov 384   ;;  %s76_s29 = int_to_ptr.vmem [resolvable:$true] %s75_s29 }
   0x8   :  { %s7293_s16 = smov 24   ;;  %s32_s18 = sshll.u32 %s12826_s2, 4  ;;  %s33_s18 = int_to_ptr.hbm [resolvable:$true] %s32_s18 }
   0x9   :  { %81 = dma.hbm_to_vmem [thread:$0]  %s74_s25, 18432, %s76_s29, [#allocation9], %s7292_s30, %s7292_s30, %s7293_s16  }
   0xa   :  { %s7294_s19 = smov [#allocation2]   ;;  %s58_s24 = sshll.u32 %s12828_s4, 4  ;;  %s59_s24 = int_to_ptr.hbm [resolvable:$true] %s58_s24 }
   0xb   :  { %s34_s21 = sshll.u32 %s7294_s19, 4  ;;  %s7295_s20 = smov 128   ;;  %s35_s21 = int_to_ptr.vmem [resolvable:$true] %s34_s21 }
   0xc   :  { %s7296_s22 = smov 8   ;;  %s7297_s26 = smov [#allocation7]  }
   0xd   :  { %40 = dma.hbm_to_vmem [thread:$0]  %s33_s18, 6144, %s35_s21, [#allocation3], %s7295_s20, %s7295_s20, %s7296_s22  }
   0xe   :  { %s60_s27 = sshll.u32 %s7297_s26, 4  ;;  %s7298_s25 = smov 512   ;;  %s61_s27 = int_to_ptr.vmem [resolvable:$true] %s60_s27 }
   0xf   :  { %s7299_s28 = smov 32   ;;  %s88_s3 = sshll.u32 %s12832_s8, 4  ;;  %s89_s3 = int_to_ptr.hbm [resolvable:$true] %s88_s3 }
  0x10   :  { %66 = dma.hbm_to_vmem [thread:$0]  %s59_s24, 6144, %s61_s27, [#allocation6], %s7298_s25, %s7298_s25, %s7299_s28  }
  0x11   :  { %s7300_s17 = smov [#allocation10]  }
  0x12   :  { %s90_s19 = sshll.u32 %s7300_s17, 4  ;;  %s91_s19 = int_to_ptr.vmem [resolvable:$true] %s90_s19 }
  0x13   :  { %96 = dma.hbm_to_vmem [thread:$0]  %s89_s3, 4608, %s91_s19, [#allocation9], %s7292_s30, %s7292_s30, %s7293_s16  }
  0x14   :  { %7280 = dma.done.wait [#allocation3], 6144  }
  0x15   :  { %7281 = vsyncadd [#allocation3], 4294961152 }
  0x16   :  { %7282 = dma.done.wait [#allocation6], 12288  }
  0x17   :  { %7283 = vsyncadd [#allocation6], 4294955008 }
  0x18   :  { %7284 = dma.done.wait [#allocation9], 23040  }
  0x19   :  { %7285 = vsyncadd [#allocation9], 4294944256  ;;  %vm321_vm0 = vcmask 261120   ;;  %v131_v0 = vld [vmem:[%s12824_s0 + $0x10] sm:$0xff]  ;;  %v129_v1 = vld [vmem:[%s12824_s0] sm:$0xff]  ;;  %vm2165_vm1 = vcmask 130112  }
  0x1a   :  { %v133_v2 = vld [vmem:[%s12824_s0 + $0x20] sm:$0xff]  ;;  %v328_v3 = vsel %vm321_vm0, %v131_v0, 0.0  ;;  %v322_v4 = vsel %vm321_vm0, %v129_v1, 0.0  ;;  %v132_v6 = vld [vmem:[%s12824_s0 + $0x18] sm:$0xff]  ;;  %v130_v7 = vld [vmem:[%s12824_s0 + $0x8] sm:$0xff]  ;;  %vm12871_vm2 = vcmask 195712  }
  0x1b   :  { %v334_v5 = vsel %vm321_vm0, %v133_v2, 0.0  ;;  %329 = vadd.xlane.f32.xlu1 %v328_v3  ;;  %323 = vadd.xlane.f32.xlu0 %v322_v4  ;;  %v134_v8 = vld [vmem:[%s12824_s0 + $0x28] sm:$0xff]  ;;  %v331_v9 = vsel %vm321_vm0, %v132_v6, 0.0  ;;  %v325_v10 = vsel %vm321_vm0, %v130_v7, 0.0  ;;  %v136_v12 = vld [vmem:[%s12824_s0 + $0x38] sm:$0xff]  ;;  %v135_v13 = vld [vmem:[%s12824_s0 + $0x30] sm:$0xff] }
  0x1c   :  { %335 = vadd.xlane.f32.xlu2 %v334_v5  ;;  %v337_v11 = vsel %vm321_vm0, %v134_v8, 0.0  ;;  %v137_v14 = vld [vmem:[%s12824_s0 + $0x40] sm:$0xff]  ;;  %v343_v15 = vsel %vm321_vm0, %v136_v12, 0.0  ;;  %v340_v16 = vsel %vm321_vm0, %v135_v13, 0.0  ;;  %v139_v18 = vld [vmem:[%s12824_s0 + $0x50] sm:$0xff]  ;;  %v138_v19 = vld [vmem:[%s12824_s0 + $0x48] sm:$0xff] }
  0x1d   :  { %v346_v17 = vsel %vm321_vm0, %v137_v14, 0.0  ;;  %v140_v20 = vld [vmem:[%s12824_s0 + $0x58] sm:$0xff]  ;;  %v352_v21 = vsel %vm321_vm0, %v139_v18, 0.0  ;;  %v349_v22 = vsel %vm321_vm0, %v138_v19, 0.0  ;;  %v142_v24 = vld [vmem:[%s12824_s0 + $0x68] sm:$0xff]  ;;  %v141_v25 = vld [vmem:[%s12824_s0 + $0x60] sm:$0xff] }
  0x1e   :  { %v355_v23 = vsel %vm321_vm0, %v140_v20, 0.0  ;;  %v143_v26 = vld [vmem:[%s12824_s0 + $0x70] sm:$0xff]  ;;  %v361_v27 = vsel %vm321_vm0, %v142_v24, 0.0  ;;  %v358_v28 = vsel %vm321_vm0, %v141_v25, 0.0  ;;  %v145_v30 = vld [vmem:[%s12824_s0 + $0x80] sm:$0xff]  ;;  %v144_v31 = vld [vmem:[%s12824_s0 + $0x78] sm:$0xff] }
  0x1f   :  { %v364_v29 = vsel %vm321_vm0, %v143_v26, 0.0  ;;  %v146_v32 = vld [vmem:[%s12824_s0 + $0x88] sm:$0xff]  ;;  %v370_v33 = vsel %vm321_vm0, %v145_v30, 0.0  ;;  %v367_v34 = vsel %vm321_vm0, %v144_v31, 0.0  ;;  %v148_v36 = vld [vmem:[%s12824_s0 + $0x98] sm:$0xff]  ;;  %v147_v37 = vld [vmem:[%s12824_s0 + $0x90] sm:$0xff] }
  0x20   :  { %v373_v35 = vsel %vm321_vm0, %v146_v32, 0.0  ;;  %v149_v38 = vld [vmem:[%s12824_s0 + $0xa0] sm:$0xff]  ;;  %v379_v39 = vsel %vm321_vm0, %v148_v36, 0.0  ;;  %v376_v40 = vsel %vm321_vm0, %v147_v37, 0.0  ;;  %v151_v42 = vld [vmem:[%s12824_s0 + $0xb0] sm:$0xff]  ;;  %v150_v43 = vld [vmem:[%s12824_s0 + $0xa8] sm:$0xff] }
  0x21   :  { %v382_v41 = vsel %vm321_vm0, %v149_v38, 0.0  ;;  %v152_v44 = vld [vmem:[%s12824_s0 + $0xb8] sm:$0xff]  ;;  %v388_v45 = vsel %vm321_vm0, %v151_v42, 0.0  ;;  %v385_v46 = vsel %vm321_vm0, %v150_v43, 0.0  ;;  %v154_v48 = vld [vmem:[%s12824_s0 + $0xc8] sm:$0xff]  ;;  %v153_v49 = vld [vmem:[%s12824_s0 + $0xc0] sm:$0xff] }
  0x22   :  { %v391_v47 = vsel %vm321_vm0, %v152_v44, 0.0  ;;  %v155_v50 = vld [vmem:[%s12824_s0 + $0xd0] sm:$0xff]  ;;  %v397_v51 = vsel %vm321_vm0, %v154_v48, 0.0  ;;  %v394_v52 = vsel %vm321_vm0, %v153_v49, 0.0  ;;  %v157_v54 = vld [vmem:[%s12824_s0 + $0xe0] sm:$0xff]  ;;  %v156_v55 = vld [vmem:[%s12824_s0 + $0xd8] sm:$0xff] }
  0x23   :  { %332 = vadd.xlane.f32.xlu1 %v331_v9  ;;  %326 = vadd.xlane.f32.xlu0 %v325_v10  ;;  %v400_v53 = vsel %vm321_vm0, %v155_v50, 0.0  ;;  %v158_v56 = vld [vmem:[%s12824_s0 + $0xe8] sm:$0xff]  ;;  %v406_v57 = vsel %vm321_vm0, %v157_v54, 0.0  ;;  %v403_v58 = vsel %vm321_vm0, %v156_v55, 0.0  ;;  %v160_v60 = vld [vmem:[%s12824_s0 + $0xf8] sm:$0xff]  ;;  %v159_v61 = vld [vmem:[%s12824_s0 + $0xf0] sm:$0xff] }
  0x24   :  { %338 = vadd.xlane.f32.xlu2 %v337_v11  ;;  %v409_v59 = vsel %vm321_vm0, %v158_v56, 0.0  ;;  %v161_v62 = vld [vmem:[%s12824_s0 + $0x100] sm:$0xff]  ;;  %v415_v63 = vsel %vm321_vm0, %v160_v60, 0.0  ;;  %v412_v0 = vsel %vm321_vm0, %v159_v61, 0.0  ;;  %v163_v2 = vld [vmem:[%s12824_s0 + $0x110] sm:$0xff]  ;;  %v162_v3 = vld [vmem:[%s12824_s0 + $0x108] sm:$0xff] }
  0x25   :  { %v418_v1 = vsel %vm321_vm0, %v161_v62, 0.0  ;;  %v164_v4 = vld [vmem:[%s12824_s0 + $0x118] sm:$0xff]  ;;  %v424_v5 = vsel %vm321_vm0, %v163_v2, 0.0  ;;  %v421_v6 = vsel %vm321_vm0, %v162_v3, 0.0  ;;  %v166_v8 = vld [vmem:[%s12824_s0 + $0x128] sm:$0xff]  ;;  %v165_v9 = vld [vmem:[%s12824_s0 + $0x120] sm:$0xff] }
  0x26   :  { %v427_v7 = vsel %vm321_vm0, %v164_v4, 0.0  ;;  %v167_v10 = vld [vmem:[%s12824_s0 + $0x130] sm:$0xff]  ;;  %v433_v11 = vsel %vm321_vm0, %v166_v8, 0.0  ;;  %v430_v12 = vsel %vm321_vm0, %v165_v9, 0.0  ;;  %v169_v14 = vld [vmem:[%s12824_s0 + $0x140] sm:$0xff]  ;;  %v172_v20 = vld [vmem:[%s12824_s0 + $0x158] sm:$0xff] }
  0x27   :  { %v436_v13 = vsel %vm321_vm0, %v167_v10, 0.0  ;;  %v175_v26 = vld [vmem:[%s12824_s0 + $0x170] sm:$0xff]  ;;  %v176_v30 = vld [vmem:[%s12824_s0 + $0x178] sm:$0xff]  ;;  %v177_v36 = vld [vmem:[%s12824_s0 + $0x180] sm:$0xff]  ;;  %vm12870_vm3 = vcmask 261312   ;;  %vm2177_vm4 = vcmask 326912  }
  0x28   :  { %v460_v32 = vsel %vm321_vm0, %v175_v26, 0.0  ;;  %v466_v42 = vsel %vm321_vm0, %v177_v36, 0.0  ;;  %v181_v44 = vld [vmem:[%s12824_s0 + $0x1a0] sm:$0xff]  ;;  %v182_v48 = vld [vmem:[%s12824_s0 + $0x1a8] sm:$0xff]  ;;  %v183_v54 = vld [vmem:[%s12824_s0 + $0x1b0] sm:$0xff]  ;;  %vm2181_vm5 = vcmask 392512  }
  0x29   :  { %v478_v50 = vsel %vm321_vm0, %v181_v44, 0.0  ;;  %v484_v60 = vsel %vm321_vm0, %v183_v54, 0.0  ;;  %v187_v62 = vld [vmem:[%s12824_s0 + $0x1d0] sm:$0xff]  ;;  %v188_v2 = vld [vmem:[%s12824_s0 + $0x1d8] sm:$0xff]  ;;  %v189_v8 = vld [vmem:[%s12824_s0 + $0x1e0] sm:$0xff]  ;;  %vm2185_vm6 = vcmask 458112  }
  0x2a   :  { %v496_v4 = vsel %vm321_vm0, %v187_v62, 0.0  ;;  %v195_v26 = vld [vmem:[%s12824_s0 + $0x210] sm:$0xff]  ;;  %v200_v44 = vld [vmem:[%s12824_s0 + $0x238] sm:$0xff]  ;;  %vm2189_vm7 = vcmask 523712   ;;  %vm2193_vm8 = vcmask 589312   ;;  %vm12845_vm9 = vcmask 654912  }
  0x2b   :  { %344 = vadd.xlane.f32.xlu1 %v343_v15  ;;  %341 = vadd.xlane.f32.xlu0 %v340_v16  ;;  %v168_v15 = vld [vmem:[%s12824_s0 + $0x138] sm:$0xff]  ;;  %v170_v16 = vld [vmem:[%s12824_s0 + $0x148] sm:$0xff]  ;;  %vm2201_vm10 = vcmask 720512   ;;  %vm2205_vm11 = vcmask 786112   ;;  %vm12869_vm12 = vcmask 851712   ;;  %vm12844_vm13 = vcmask 917312  }
  0x2c   :  { %347 = vadd.xlane.f32.xlu2 %v346_v17  ;;  %v442_v17 = vsel %vm321_vm0, %v169_v14, 0.0  ;;  %v439_v18 = vsel %vm321_vm0, %v168_v15, 0.0  ;;  %v445_v19 = vsel %vm321_vm0, %v170_v16, 0.0  ;;  %v502_v14 = vsel %vm321_vm0, %v189_v8, 0.0  ;;  %v193_v16 = vld [vmem:[%s12824_s0 + $0x200] sm:$0xff]  ;;  %s7301_s23 = smov [#allocation11]  }
  0x2d   :  { %vm12868_vm14 = vcmask 982912   ;;  %vm12867_vm15 = vcmask 1048512   ;;  %s6936_s8 = sshll.u32 %s7301_s23, 4  ;;  %s6938_s30 = sshll.u32 %s12839_s15, 4  ;;  %s6937_s8 = int_to_ptr.vmem [resolvable:$true] %s6936_s8  ;;  %s6939_s30 = int_to_ptr.hbm [resolvable:$true] %s6938_s30 }
  0x2e   :  { %s7303_s15 = smov 12  }
  0x33   :  { %353 = vadd.xlane.f32.xlu1 %v352_v21  ;;  %350 = vadd.xlane.f32.xlu0 %v349_v22  ;;  %v171_v21 = vld [vmem:[%s12824_s0 + $0x150] sm:$0xff]  ;;  %v173_v22 = vld [vmem:[%s12824_s0 + $0x160] sm:$0xff] }
  0x34   :  { %356 = vadd.xlane.f32.xlu2 %v355_v23  ;;  %v451_v23 = vsel %vm321_vm0, %v172_v20, 0.0  ;;  %v448_v24 = vsel %vm321_vm0, %v171_v21, 0.0  ;;  %v454_v25 = vsel %vm321_vm0, %v173_v22, 0.0  ;;  %v194_v20 = vld [vmem:[%s12824_s0 + $0x208] sm:$0xff]  ;;  %v514_v22 = vsel %vm321_vm0, %v193_v16, 0.0  ;;  %v207_v16 = vld [vmem:[%s12824_s0 + $0x270] sm:$0xff] }
  0x3b   :  { %362 = vadd.xlane.f32.xlu1 %v361_v27  ;;  %359 = vadd.xlane.f32.xlu0 %v358_v28  ;;  %v174_v27 = vld [vmem:[%s12824_s0 + $0x168] sm:$0xff] }
  0x3c   :  { %365 = vadd.xlane.f32.xlu2 %v364_v29 }
  0x43   :  { %371 = vadd.xlane.f32.xlu1 %v370_v33  ;;  %368 = vadd.xlane.f32.xlu0 %v367_v34  ;;  %v457_v33 = vsel %vm321_vm0, %v174_v27, 0.0  ;;  %v463_v34 = vsel %vm321_vm0, %v176_v30, 0.0 }
  0x44   :  { %374 = vadd.xlane.f32.xlu2 %v373_v35  ;;  %v178_v35 = vld [vmem:[%s12824_s0 + $0x188] sm:$0xff] }
  0x4b   :  { %380 = vadd.xlane.f32.xlu1 %v379_v39  ;;  %377 = vadd.xlane.f32.xlu0 %v376_v40  ;;  %v179_v39 = vld [vmem:[%s12824_s0 + $0x190] sm:$0xff] }
  0x4c   :  { %383 = vadd.xlane.f32.xlu2 %v382_v41  ;;  %v469_v41 = vsel %vm321_vm0, %v178_v35, 0.0  ;;  %v472_v43 = vsel %vm321_vm0, %v179_v39, 0.0  ;;  %v520_v35 = vsel %vm321_vm0, %v195_v26, 0.0  ;;  %v199_v39 = vld [vmem:[%s12824_s0 + $0x230] sm:$0xff] }
  0x53   :  { %389 = vadd.xlane.f32.xlu1 %v388_v45  ;;  %386 = vadd.xlane.f32.xlu0 %v385_v46  ;;  %v180_v45 = vld [vmem:[%s12824_s0 + $0x198] sm:$0xff] }
  0x54   :  { %392 = vadd.xlane.f32.xlu2 %v391_v47 }
  0x5b   :  { %398 = vadd.xlane.f32.xlu1 %v397_v51  ;;  %395 = vadd.xlane.f32.xlu0 %v394_v52  ;;  %v475_v51 = vsel %vm321_vm0, %v180_v45, 0.0  ;;  %v481_v52 = vsel %vm321_vm0, %v182_v48, 0.0  ;;  %v532_v48 = vsel %vm321_vm0, %v199_v39, 0.0  ;;  %v212_v39 = vld [vmem:[%s12824_s0 + $0x298] sm:$0xff] }
  0x5c   :  { %401 = vadd.xlane.f32.xlu2 %v400_v53  ;;  %v184_v53 = vld [vmem:[%s12824_s0 + $0x1b8] sm:$0xff] }
  0x63   :  { %407 = vadd.xlane.f32.xlu1 %v406_v57  ;;  %404 = vadd.xlane.f32.xlu0 %v403_v58  ;;  %v185_v57 = vld [vmem:[%s12824_s0 + $0x1c0] sm:$0xff] }
  0x64   :  { %410 = vadd.xlane.f32.xlu2 %v409_v59  ;;  %v487_v59 = vsel %vm321_vm0, %v184_v53, 0.0  ;;  %v490_v61 = vsel %vm321_vm0, %v185_v57, 0.0  ;;  %v201_v53 = vld [vmem:[%s12824_s0 + $0x240] sm:$0xff] }
  0x65   :  { %v538_v62 = vsel %vm321_vm0, %v201_v53, 0.0 }
  0x6b   :  { %416 = vadd.xlane.f32.xlu1 %v415_v63  ;;  %413 = vadd.xlane.f32.xlu0 %v412_v0  ;;  %v186_v63 = vld [vmem:[%s12824_s0 + $0x1c8] sm:$0xff] }
  0x6c   :  { %419 = vadd.xlane.f32.xlu2 %v418_v1 }
  0x73   :  { %425 = vadd.xlane.f32.xlu1 %v424_v5  ;;  %422 = vadd.xlane.f32.xlu0 %v421_v6  ;;  %v493_v5 = vsel %vm321_vm0, %v186_v63, 0.0  ;;  %v499_v6 = vsel %vm321_vm0, %v188_v2, 0.0  ;;  %v205_v2 = vld [vmem:[%s12824_s0 + $0x260] sm:$0xff] }
  0x74   :  { %428 = vadd.xlane.f32.xlu2 %v427_v7  ;;  %v190_v7 = vld [vmem:[%s12824_s0 + $0x1e8] sm:$0xff] }
  0x7b   :  { %434 = vadd.xlane.f32.xlu1 %v433_v11  ;;  %431 = vadd.xlane.f32.xlu0 %v430_v12  ;;  %v191_v11 = vld [vmem:[%s12824_s0 + $0x1f0] sm:$0xff] }
  0x7c   :  { %437 = vadd.xlane.f32.xlu2 %v436_v13  ;;  %v505_v13 = vsel %vm321_vm0, %v190_v7, 0.0  ;;  %v508_v15 = vsel %vm321_vm0, %v191_v11, 0.0  ;;  %v206_v7 = vld [vmem:[%s12824_s0 + $0x268] sm:$0xff]  ;;  %v550_v11 = vsel %vm321_vm0, %v205_v2, 0.0 }
  0x83   :  { %443 = vadd.xlane.f32.xlu1 %v442_v17  ;;  %440 = vadd.xlane.f32.xlu0 %v439_v18  ;;  %v192_v17 = vld [vmem:[%s12824_s0 + $0x1f8] sm:$0xff] }
  0x84   :  { %446 = vadd.xlane.f32.xlu2 %v445_v19 }
  0x8b   :  { %452 = vadd.xlane.f32.xlu1 %v451_v23  ;;  %449 = vadd.xlane.f32.xlu0 %v448_v24  ;;  %v511_v23 = vsel %vm321_vm0, %v192_v17, 0.0  ;;  %v517_v24 = vsel %vm321_vm0, %v194_v20, 0.0 }
  0x8c   :  { %455 = vadd.xlane.f32.xlu2 %v454_v25  ;;  %v196_v25 = vld [vmem:[%s12824_s0 + $0x218] sm:$0xff] }
  0x8e   :  { %v7585_v28 = vpop.xlane.xlu1 %329  ;;  %v7587_v29 = vpop.xlane.xlu0 %323 }
  0x8f   :  { %v7592_v31 = vpop.xlane.xlu2 %335 }
  0x93   :  { %461 = vadd.xlane.f32.xlu1 %v460_v32  ;;  %458 = vadd.xlane.f32.xlu0 %v457_v33  ;;  %v197_v32 = vld [vmem:[%s12824_s0 + $0x220] sm:$0xff] }
  0x94   :  { %464 = vadd.xlane.f32.xlu2 %v463_v34  ;;  %v523_v34 = vsel %vm321_vm0, %v196_v25, 0.0  ;;  %v526_v36 = vsel %vm321_vm0, %v197_v32, 0.0  ;;  %v556_v25 = vsel %vm321_vm0, %v207_v16, 0.0  ;;  %v211_v32 = vld [vmem:[%s12824_s0 + $0x290] sm:$0xff] }
  0x96   :  { %v7603_v37 = vpop.xlane.xlu1 %332  ;;  %v7605_v38 = vpop.xlane.xlu0 %326 }
  0x97   :  { %v7610_v40 = vpop.xlane.xlu2 %338 }
  0x9b   :  { %470 = vadd.xlane.f32.xlu1 %v469_v41  ;;  %467 = vadd.xlane.f32.xlu0 %v466_v42  ;;  %v198_v41 = vld [vmem:[%s12824_s0 + $0x228] sm:$0xff] }
  0x9c   :  { %473 = vadd.xlane.f32.xlu2 %v472_v43 }
  0x9e   :  { %v7621_v46 = vpop.xlane.xlu1 %344  ;;  %v7623_v47 = vpop.xlane.xlu0 %341 }
  0x9f   :  { %v7628_v49 = vpop.xlane.xlu2 %347 }
  0xa3   :  { %479 = vadd.xlane.f32.xlu1 %v478_v50  ;;  %476 = vadd.xlane.f32.xlu0 %v475_v51  ;;  %v529_v50 = vsel %vm321_vm0, %v198_v41, 0.0  ;;  %v535_v51 = vsel %vm321_vm0, %v200_v44, 0.0  ;;  %v568_v44 = vsel %vm321_vm0, %v211_v32, 0.0  ;;  %v219_v32 = vld [vmem:[%s12824_s0 + $0x2d0] sm:$0xff] }
  0xa4   :  { %482 = vadd.xlane.f32.xlu2 %v481_v52  ;;  %v202_v52 = vld [vmem:[%s12824_s0 + $0x248] sm:$0xff] }
  0xa6   :  { %v7639_v55 = vpop.xlane.xlu1 %353  ;;  %v7641_v56 = vpop.xlane.xlu0 %350 }
  0xa7   :  { %v7646_v58 = vpop.xlane.xlu2 %356 }
  0xab   :  { %488 = vadd.xlane.f32.xlu1 %v487_v59  ;;  %485 = vadd.xlane.f32.xlu0 %v484_v60  ;;  %v203_v59 = vld [vmem:[%s12824_s0 + $0x250] sm:$0xff] }
  0xac   :  { %491 = vadd.xlane.f32.xlu2 %v490_v61  ;;  %v541_v61 = vsel %vm321_vm0, %v202_v52, 0.0  ;;  %v544_v63 = vsel %vm321_vm0, %v203_v59, 0.0  ;;  %v213_v52 = vld [vmem:[%s12824_s0 + $0x2a0] sm:$0xff] }
  0xad   :  { %v574_v2 = vsel %vm321_vm0, %v213_v52, 0.0 }
  0xae   :  { %v7657_v0 = vpop.xlane.xlu1 %362  ;;  %v7659_v1 = vpop.xlane.xlu0 %359 }
  0xaf   :  { %v7664_v3 = vpop.xlane.xlu2 %365 }
  0xb3   :  { %497 = vadd.xlane.f32.xlu1 %v496_v4  ;;  %494 = vadd.xlane.f32.xlu0 %v493_v5  ;;  %v204_v4 = vld [vmem:[%s12824_s0 + $0x258] sm:$0xff] }
  0xb4   :  { %500 = vadd.xlane.f32.xlu2 %v499_v6 }
  0xb6   :  { %v7675_v9 = vpop.xlane.xlu1 %371  ;;  %v7677_v10 = vpop.xlane.xlu0 %368 }
  0xb7   :  { %v7682_v12 = vpop.xlane.xlu2 %374 }
  0xbb   :  { %506 = vadd.xlane.f32.xlu1 %v505_v13  ;;  %503 = vadd.xlane.f32.xlu0 %v502_v14  ;;  %v547_v13 = vsel %vm321_vm0, %v204_v4, 0.0  ;;  %v553_v14 = vsel %vm321_vm0, %v206_v7, 0.0  ;;  %v217_v7 = vld [vmem:[%s12824_s0 + $0x2c0] sm:$0xff] }
  0xbc   :  { %509 = vadd.xlane.f32.xlu2 %v508_v15  ;;  %v208_v15 = vld [vmem:[%s12824_s0 + $0x278] sm:$0xff] }
  0xbe   :  { %v7693_v18 = vpop.xlane.xlu1 %380  ;;  %v7695_v19 = vpop.xlane.xlu0 %377 }
  0xbf   :  { %v7700_v21 = vpop.xlane.xlu2 %383 }
  0xc3   :  { %515 = vadd.xlane.f32.xlu1 %v514_v22  ;;  %512 = vadd.xlane.f32.xlu0 %v511_v23  ;;  %v209_v22 = vld [vmem:[%s12824_s0 + $0x280] sm:$0xff] }
  0xc4   :  { %518 = vadd.xlane.f32.xlu2 %v517_v24  ;;  %v559_v24 = vsel %vm321_vm0, %v208_v15, 0.0  ;;  %v562_v26 = vsel %vm321_vm0, %v209_v22, 0.0  ;;  %v218_v15 = vld [vmem:[%s12824_s0 + $0x2c8] sm:$0xff]  ;;  %v586_v22 = vsel %vm321_vm0, %v217_v7, 0.0  ;;  %v224_v7 = vld [vmem:[%s12824_s0 + $0x2f8] sm:$0xff] }
  0xc6   :  { %v7711_v27 = vpop.xlane.xlu1 %389  ;;  %v7713_v30 = vpop.xlane.xlu0 %386 }
  0xc7   :  { %v7718_v33 = vpop.xlane.xlu2 %392 }
  0xcb   :  { %524 = vadd.xlane.f32.xlu1 %v523_v34  ;;  %521 = vadd.xlane.f32.xlu0 %v520_v35  ;;  %v210_v34 = vld [vmem:[%s12824_s0 + $0x288] sm:$0xff] }
  0xcc   :  { %527 = vadd.xlane.f32.xlu2 %v526_v36 }
  0xce   :  { %v7729_v42 = vpop.xlane.xlu1 %398  ;;  %v7731_v43 = vpop.xlane.xlu0 %395 }
  0xcf   :  { %v7736_v45 = vpop.xlane.xlu2 %401 }
  0xd3   :  { %533 = vadd.xlane.f32.xlu1 %v532_v48  ;;  %530 = vadd.xlane.f32.xlu0 %v529_v50  ;;  %v565_v48 = vsel %vm321_vm0, %v210_v34, 0.0  ;;  %v571_v50 = vsel %vm321_vm0, %v212_v39, 0.0 }
  0xd4   :  { %536 = vadd.xlane.f32.xlu2 %v535_v51  ;;  %v214_v51 = vld [vmem:[%s12824_s0 + $0x2a8] sm:$0xff] }
  0xd6   :  { %v7747_v54 = vpop.xlane.xlu1 %407  ;;  %v7749_v57 = vpop.xlane.xlu0 %404 }
  0xd7   :  { %v7754_v60 = vpop.xlane.xlu2 %410 }
  0xdb   :  { %542 = vadd.xlane.f32.xlu1 %v541_v61  ;;  %539 = vadd.xlane.f32.xlu0 %v538_v62  ;;  %v215_v61 = vld [vmem:[%s12824_s0 + $0x2b0] sm:$0xff] }
  0xdc   :  { %545 = vadd.xlane.f32.xlu2 %v544_v63  ;;  %v577_v63 = vsel %vm321_vm0, %v214_v51, 0.0  ;;  %v580_v4 = vsel %vm321_vm0, %v215_v61, 0.0  ;;  %v592_v51 = vsel %vm321_vm0, %v219_v32, 0.0  ;;  %v223_v61 = vld [vmem:[%s12824_s0 + $0x2f0] sm:$0xff] }
  0xde   :  { %v7765_v5 = vpop.xlane.xlu1 %416  ;;  %v7767_v6 = vpop.xlane.xlu0 %413 }
  0xdf   :  { %v7772_v8 = vpop.xlane.xlu2 %419 }
  0xe3   :  { %551 = vadd.xlane.f32.xlu1 %v550_v11  ;;  %548 = vadd.xlane.f32.xlu0 %v547_v13  ;;  %v216_v11 = vld [vmem:[%s12824_s0 + $0x2b8] sm:$0xff] }
  0xe4   :  { %554 = vadd.xlane.f32.xlu2 %v553_v14 }
  0xe6   :  { %v7783_v17 = vpop.xlane.xlu1 %425  ;;  %v7785_v20 = vpop.xlane.xlu0 %422 }
  0xe7   :  { %12921 = vst [vmem:[#allocation16_spill] sm:$0xff] %v7783_v17  ;;  %v7790_v23 = vpop.xlane.xlu2 %428 }
  0xe8   :  { %12922 = vst [vmem:[#allocation17_spill] sm:$0xff] %v7790_v23 }
  0xeb   :  { %560 = vadd.xlane.f32.xlu1 %v559_v24  ;;  %557 = vadd.xlane.f32.xlu0 %v556_v25  ;;  %v583_v24 = vsel %vm321_vm0, %v216_v11, 0.0  ;;  %v589_v25 = vsel %vm321_vm0, %v218_v15, 0.0  ;;  %v604_v15 = vsel %vm321_vm0, %v223_v61, 0.0 }
  0xec   :  { %563 = vadd.xlane.f32.xlu2 %v562_v26  ;;  %v220_v26 = vld [vmem:[%s12824_s0 + $0x2d8] sm:$0xff] }
  0xee   :  { %v7801_v35 = vpop.xlane.xlu1 %434  ;;  %v7803_v36 = vpop.xlane.xlu0 %431 }
  0xef   :  { %12923 = vst [vmem:[#allocation18_spill] sm:$0xff] %v7801_v35  ;;  %v7808_v41 = vpop.xlane.xlu2 %437 }
  0xf0   :  { %12924 = vst [vmem:[#allocation19_spill] sm:$0xff] %v7803_v36 }
  0xf1   :  { %12925 = vst [vmem:[#allocation20_spill] sm:$0xff] %v7808_v41 }
  0xf3   :  { %569 = vadd.xlane.f32.xlu1 %v568_v44  ;;  %566 = vadd.xlane.f32.xlu0 %v565_v48  ;;  %v221_v44 = vld [vmem:[%s12824_s0 + $0x2e0] sm:$0xff] }
  0xf4   :  { %572 = vadd.xlane.f32.xlu2 %v571_v50  ;;  %v595_v50 = vsel %vm321_vm0, %v220_v26, 0.0  ;;  %v598_v52 = vsel %vm321_vm0, %v221_v44, 0.0  ;;  %v225_v26 = vld [vmem:[%s12824_s0 + $0x300] sm:$0xff] }
  0xf5   :  { %v610_v61 = vsel %vm321_vm0, %v225_v26, 0.0 }
  0xf6   :  { %v7819_v53 = vpop.xlane.xlu1 %443  ;;  %v7821_v59 = vpop.xlane.xlu0 %440 }
  0xf7   :  { %12926 = vst [vmem:[#allocation21_spill] sm:$0xff] %v7819_v53  ;;  %v7826_v62 = vpop.xlane.xlu2 %446 }
  0xf8   :  { %12927 = vst [vmem:[#allocation22_spill] sm:$0xff] %v7821_v59 }
  0xf9   :  { %12928 = vst [vmem:[#allocation23_spill] sm:$0xff] %v7826_v62  ;;  %v901_v62 = vmul.f32 0.03125, %v7603_v37  ;;  %v1102_v37 = vld [vmem:[%s12829_s5 + $0x60] sm:$0xff] }
  0xfb   :  { %578 = vadd.xlane.f32.xlu1 %v577_v63  ;;  %575 = vadd.xlane.f32.xlu0 %v574_v2  ;;  %v222_v63 = vld [vmem:[%s12824_s0 + $0x2e8] sm:$0xff] }
  0xfc   :  { %581 = vadd.xlane.f32.xlu2 %v580_v4 }
  0xfe   :  { %v7837_v13 = vpop.xlane.xlu1 %452  ;;  %v7839_v14 = vpop.xlane.xlu0 %449 }
  0xff   :  { %12929 = vst [vmem:[#allocation24_spill] sm:$0xff] %v7837_v13  ;;  %v7844_v16 = vpop.xlane.xlu2 %455 }
 0x100   :  { %12930 = vst [vmem:[#allocation25_spill] sm:$0xff] %v7839_v14 }
 0x101   :  { %12931 = vst [vmem:[#allocation26_spill] sm:$0xff] %v7844_v16  ;;  %v271_v16 = vld [vmem:[%s12824_s0 + $0x470] sm:$0xff] }
 0x102   :  { %v748_v59 = vsel %vm321_vm0, %v271_v16, 0.0 }
 0x103   :  { %587 = vadd.xlane.f32.xlu1 %v586_v22  ;;  %584 = vadd.xlane.f32.xlu0 %v583_v24  ;;  %v601_v22 = vsel %vm321_vm0, %v222_v63, 0.0  ;;  %v607_v24 = vsel %vm321_vm0, %v224_v7, 0.0  ;;  %v229_v7 = vld [vmem:[%s12824_s0 + $0x320] sm:$0xff] }
 0x104   :  { %590 = vadd.xlane.f32.xlu2 %v589_v25  ;;  %v226_v25 = vld [vmem:[%s12824_s0 + $0x308] sm:$0xff] }
 0x106   :  { %v7855_v34 = vpop.xlane.xlu1 %461  ;;  %v7857_v39 = vpop.xlane.xlu0 %458 }
 0x107   :  { %12932 = vst [vmem:[#allocation27_spill] sm:$0xff] %v7855_v34  ;;  %v7862_v48 = vpop.xlane.xlu2 %464 }
 0x108   :  { %12933 = vst [vmem:[#allocation28_spill] sm:$0xff] %v7857_v39 }
 0x109   :  { %12934 = vst [vmem:[#allocation29_spill] sm:$0xff] %v7862_v48  ;;  %v8193_v48 = vld [vmem:[%s12829_s5 + $0xd8] sm:$0xff] }
 0x10a   :  { %12986 = vst [vmem:[#allocation81_spill] sm:$0xff] %v8193_v48  ;;  %v1432_v34 = vunpack.c.l.bf16 %v8193_v48 }
 0x10b   :  { %596 = vadd.xlane.f32.xlu1 %v595_v50  ;;  %593 = vadd.xlane.f32.xlu0 %v592_v51  ;;  %v227_v50 = vld [vmem:[%s12824_s0 + $0x310] sm:$0xff] }
 0x10c   :  { %599 = vadd.xlane.f32.xlu2 %v598_v52  ;;  %v613_v52 = vsel %vm321_vm0, %v226_v25, 0.0  ;;  %v616_v63 = vsel %vm321_vm0, %v227_v50, 0.0  ;;  %v230_v25 = vld [vmem:[%s12824_s0 + $0x328] sm:$0xff]  ;;  %v622_v50 = vsel %vm321_vm0, %v229_v7, 0.0  ;;  %v233_v7 = vld [vmem:[%s12824_s0 + $0x340] sm:$0xff] }
 0x10e   :  { %v7873_v2 = vpop.xlane.xlu1 %470  ;;  %v7875_v4 = vpop.xlane.xlu0 %467 }
 0x10f   :  { %12935 = vst [vmem:[#allocation30_spill] sm:$0xff] %v7873_v2  ;;  %v7880_v11 = vpop.xlane.xlu2 %473 }
 0x110   :  { %12936 = vst [vmem:[#allocation31_spill] sm:$0xff] %v7875_v4 }
 0x111   :  { %12937 = vst [vmem:[#allocation32_spill] sm:$0xff] %v7880_v11  ;;  %v2160_v11 = vlaneseq }
 0x113   :  { %605 = vadd.xlane.f32.xlu1 %v604_v15  ;;  %602 = vadd.xlane.f32.xlu0 %v601_v22  ;;  %v228_v15 = vld [vmem:[%s12824_s0 + $0x318] sm:$0xff]  ;;  %v8186_v4 = vand.u32 127, %v2160_v11  ;;  %v899_v11 = vmul.f32 0.03125, %v7605_v38 }
 0x114   :  { %608 = vadd.xlane.f32.xlu2 %v607_v24 }
 0x115   :  { %12984 = vst [vmem:[#allocation79_spill] sm:$0xff] %v8186_v4  ;;  %v8232_v14 = vadd.s32 4294967272, %v8186_v4 }
 0x116   :  { %v7891_v32 = vpop.xlane.xlu1 %479  ;;  %v7893_v44 = vpop.xlane.xlu0 %476 }
 0x117   :  { %12938 = vst [vmem:[#allocation33_spill] sm:$0xff] %v7891_v32  ;;  %v7898_v51 = vpop.xlane.xlu2 %482  ;;  %v2172_v48 = vperm.slane %v901_v62, %v8232_v14  ;;  %v8256_v62 = vadd.s32 4294967256, %v8186_v4 }
 0x118   :  { %12939 = vst [vmem:[#allocation34_spill] sm:$0xff] %v7893_v44 }
 0x119   :  { %12940 = vst [vmem:[#allocation35_spill] sm:$0xff] %v7898_v51  ;;  %v8149_v51 = vld [vmem:[%s12829_s5 + $0x138] sm:$0xff] }
 0x11a   :  { %12989 = vst [vmem:[#allocation84_spill] sm:$0xff] %v8232_v14 }
 0x11b   :  { %614 = vadd.xlane.f32.xlu1 %v613_v52  ;;  %611 = vadd.xlane.f32.xlu0 %v610_v61  ;;  %v619_v52 = vsel %vm321_vm0, %v228_v15, 0.0  ;;  %v625_v61 = vsel %vm321_vm0, %v230_v25, 0.0  ;;  %12991 = vst [vmem:[#allocation86_spill] sm:$0xff] %v8256_v62 }
 0x11c   :  { %617 = vadd.xlane.f32.xlu2 %v616_v63  ;;  %v232_v63 = vld [vmem:[%s12824_s0 + $0x338] sm:$0xff] }
 0x11d   :  { %v631_v25 = vsel %vm321_vm0, %v232_v63, 0.0 }
 0x11e   :  { %v7909_v22 = vpop.xlane.xlu1 %488  ;;  %v7911_v24 = vpop.xlane.xlu0 %485 }
 0x11f   :  { %12941 = vst [vmem:[#allocation36_spill] sm:$0xff] %v7909_v22  ;;  %v7916_v26 = vpop.xlane.xlu2 %491  ;;  %v231_v22 = vld [vmem:[%s12824_s0 + $0x330] sm:$0xff] }
 0x120   :  { %12942 = vst [vmem:[#allocation37_spill] sm:$0xff] %v7911_v24 }
 0x121   :  { %12943 = vst [vmem:[#allocation38_spill] sm:$0xff] %v7916_v26 }
 0x123   :  { %623 = vadd.xlane.f32.xlu1 %v622_v50  ;;  %620 = vadd.xlane.f32.xlu0 %v619_v52  ;;  %v628_v50 = vsel %vm321_vm0, %v231_v22, 0.0  ;;  %v634_v52 = vsel %vm321_vm0, %v233_v7, 0.0  ;;  %v236_v22 = vld [vmem:[%s12824_s0 + $0x358] sm:$0xff] }
 0x124   :  { %626 = vadd.xlane.f32.xlu2 %v625_v61  ;;  %v235_v61 = vld [vmem:[%s12824_s0 + $0x350] sm:$0xff] }
 0x125   :  { %v640_v7 = vsel %vm321_vm0, %v235_v61, 0.0 }
 0x126   :  { %v7927_v24 = vpop.xlane.xlu1 %497  ;;  %v7929_v26 = vpop.xlane.xlu0 %494 }
 0x127   :  { %12944 = vst [vmem:[#allocation39_spill] sm:$0xff] %v7927_v24  ;;  %v7934_v15 = vpop.xlane.xlu2 %500  ;;  %v234_v24 = vld [vmem:[%s12824_s0 + $0x348] sm:$0xff] }
 0x128   :  { %12945 = vst [vmem:[#allocation40_spill] sm:$0xff] %v7929_v26 }
 0x129   :  { %12946 = vst [vmem:[#allocation41_spill] sm:$0xff] %v7934_v15 }
 0x12b   :  { %632 = vadd.xlane.f32.xlu1 %v631_v25  ;;  %629 = vadd.xlane.f32.xlu0 %v628_v50  ;;  %v637_v25 = vsel %vm321_vm0, %v234_v24, 0.0  ;;  %v643_v50 = vsel %vm321_vm0, %v236_v22, 0.0  ;;  %v239_v24 = vld [vmem:[%s12824_s0 + $0x370] sm:$0xff] }
 0x12c   :  { %635 = vadd.xlane.f32.xlu2 %v634_v52  ;;  %v238_v52 = vld [vmem:[%s12824_s0 + $0x368] sm:$0xff] }
 0x12d   :  { %v649_v22 = vsel %vm321_vm0, %v238_v52, 0.0 }
 0x12e   :  { %v7945_v26 = vpop.xlane.xlu1 %506  ;;  %v7947_v15 = vpop.xlane.xlu0 %503 }
 0x12f   :  { %12947 = vst [vmem:[#allocation42_spill] sm:$0xff] %v7945_v26  ;;  %v7952_v63 = vpop.xlane.xlu2 %509  ;;  %v237_v26 = vld [vmem:[%s12824_s0 + $0x360] sm:$0xff] }
 0x130   :  { %12948 = vst [vmem:[#allocation43_spill] sm:$0xff] %v7947_v15 }
 0x131   :  { %12949 = vst [vmem:[#allocation44_spill] sm:$0xff] %v7952_v63 }
 0x133   :  { %641 = vadd.xlane.f32.xlu1 %v640_v7  ;;  %638 = vadd.xlane.f32.xlu0 %v637_v25  ;;  %v646_v7 = vsel %vm321_vm0, %v237_v26, 0.0  ;;  %v652_v25 = vsel %vm321_vm0, %v239_v24, 0.0  ;;  %v242_v26 = vld [vmem:[%s12824_s0 + $0x388] sm:$0xff] }
 0x134   :  { %644 = vadd.xlane.f32.xlu2 %v643_v50  ;;  %v241_v50 = vld [vmem:[%s12824_s0 + $0x380] sm:$0xff] }
 0x135   :  { %v658_v24 = vsel %vm321_vm0, %v241_v50, 0.0 }
 0x136   :  { %v7963_v15 = vpop.xlane.xlu1 %515  ;;  %v7965_v63 = vpop.xlane.xlu0 %512 }
 0x137   :  { %12950 = vst [vmem:[#allocation45_spill] sm:$0xff] %v7963_v15  ;;  %v7970_v61 = vpop.xlane.xlu2 %518 }
 0x138   :  { %12951 = vst [vmem:[#allocation46_spill] sm:$0xff] %v7965_v63  ;;  %v240_v63 = vld [vmem:[%s12824_s0 + $0x378] sm:$0xff] }
 0x139   :  { %12952 = vst [vmem:[#allocation47_spill] sm:$0xff] %v7970_v61 }
 0x13b   :  { %650 = vadd.xlane.f32.xlu1 %v649_v22  ;;  %647 = vadd.xlane.f32.xlu0 %v646_v7  ;;  %v655_v22 = vsel %vm321_vm0, %v240_v63, 0.0  ;;  %v661_v7 = vsel %vm321_vm0, %v242_v26, 0.0  ;;  %v245_v63 = vld [vmem:[%s12824_s0 + $0x3a0] sm:$0xff] }
 0x13c   :  { %653 = vadd.xlane.f32.xlu2 %v652_v25  ;;  %v244_v25 = vld [vmem:[%s12824_s0 + $0x398] sm:$0xff] }
 0x13d   :  { %v667_v26 = vsel %vm321_vm0, %v244_v25, 0.0 }
 0x13e   :  { %v7981_v15 = vpop.xlane.xlu1 %524  ;;  %v7983_v61 = vpop.xlane.xlu0 %521 }
 0x13f   :  { %12953 = vst [vmem:[#allocation48_spill] sm:$0xff] %v7981_v15  ;;  %v7988_v52 = vpop.xlane.xlu2 %527  ;;  %v243_v15 = vld [vmem:[%s12824_s0 + $0x390] sm:$0xff] }
 0x140   :  { %12954 = vst [vmem:[#allocation49_spill] sm:$0xff] %v7983_v61 }
 0x141   :  { %12955 = vst [vmem:[#allocation50_spill] sm:$0xff] %v7988_v52 }
 0x143   :  { %659 = vadd.xlane.f32.xlu1 %v658_v24  ;;  %656 = vadd.xlane.f32.xlu0 %v655_v22  ;;  %v664_v24 = vsel %vm321_vm0, %v243_v15, 0.0  ;;  %v670_v22 = vsel %vm321_vm0, %v245_v63, 0.0  ;;  %v248_v15 = vld [vmem:[%s12824_s0 + $0x3b8] sm:$0xff] }
 0x144   :  { %662 = vadd.xlane.f32.xlu2 %v661_v7  ;;  %v247_v7 = vld [vmem:[%s12824_s0 + $0x3b0] sm:$0xff] }
 0x145   :  { %v676_v63 = vsel %vm321_vm0, %v247_v7, 0.0 }
 0x146   :  { %v7999_v61 = vpop.xlane.xlu1 %533  ;;  %v8001_v52 = vpop.xlane.xlu0 %530 }
 0x147   :  { %12956 = vst [vmem:[#allocation51_spill] sm:$0xff] %v7999_v61  ;;  %v8006_v50 = vpop.xlane.xlu2 %536  ;;  %v246_v61 = vld [vmem:[%s12824_s0 + $0x3a8] sm:$0xff] }
 0x148   :  { %12957 = vst [vmem:[#allocation52_spill] sm:$0xff] %v8001_v52 }
 0x149   :  { %12958 = vst [vmem:[#allocation53_spill] sm:$0xff] %v8006_v50 }
 0x14b   :  { %668 = vadd.xlane.f32.xlu1 %v667_v26  ;;  %665 = vadd.xlane.f32.xlu0 %v664_v24  ;;  %v673_v26 = vsel %vm321_vm0, %v246_v61, 0.0  ;;  %v679_v24 = vsel %vm321_vm0, %v248_v15, 0.0  ;;  %v251_v61 = vld [vmem:[%s12824_s0 + $0x3d0] sm:$0xff] }
 0x14c   :  { %671 = vadd.xlane.f32.xlu2 %v670_v22  ;;  %v250_v22 = vld [vmem:[%s12824_s0 + $0x3c8] sm:$0xff] }
 0x14d   :  { %v685_v15 = vsel %vm321_vm0, %v250_v22, 0.0 }
 0x14e   :  { %v8017_v52 = vpop.xlane.xlu1 %542  ;;  %v8019_v50 = vpop.xlane.xlu0 %539 }
 0x14f   :  { %12959 = vst [vmem:[#allocation54_spill] sm:$0xff] %v8017_v52  ;;  %v8024_v25 = vpop.xlane.xlu2 %545  ;;  %v249_v52 = vld [vmem:[%s12824_s0 + $0x3c0] sm:$0xff] }
 0x150   :  { %12960 = vst [vmem:[#allocation55_spill] sm:$0xff] %v8019_v50 }
 0x151   :  { %12961 = vst [vmem:[#allocation56_spill] sm:$0xff] %v8024_v25 }
 0x153   :  { %677 = vadd.xlane.f32.xlu1 %v676_v63  ;;  %674 = vadd.xlane.f32.xlu0 %v673_v26  ;;  %v682_v63 = vsel %vm321_vm0, %v249_v52, 0.0  ;;  %v688_v26 = vsel %vm321_vm0, %v251_v61, 0.0  ;;  %v254_v52 = vld [vmem:[%s12824_s0 + $0x3e8] sm:$0xff] }
 0x154   :  { %680 = vadd.xlane.f32.xlu2 %v679_v24  ;;  %v253_v24 = vld [vmem:[%s12824_s0 + $0x3e0] sm:$0xff] }
 0x155   :  { %v694_v61 = vsel %vm321_vm0, %v253_v24, 0.0 }
 0x156   :  { %v8035_v50 = vpop.xlane.xlu1 %551  ;;  %v8037_v25 = vpop.xlane.xlu0 %548 }
 0x157   :  { %12962 = vst [vmem:[#allocation57_spill] sm:$0xff] %v8035_v50  ;;  %v8042_v7 = vpop.xlane.xlu2 %554  ;;  %v252_v50 = vld [vmem:[%s12824_s0 + $0x3d8] sm:$0xff] }
 0x158   :  { %12963 = vst [vmem:[#allocation58_spill] sm:$0xff] %v8037_v25 }
 0x159   :  { %12964 = vst [vmem:[#allocation59_spill] sm:$0xff] %v8042_v7 }
 0x15b   :  { %686 = vadd.xlane.f32.xlu1 %v685_v15  ;;  %683 = vadd.xlane.f32.xlu0 %v682_v63  ;;  %v691_v15 = vsel %vm321_vm0, %v252_v50, 0.0  ;;  %v697_v63 = vsel %vm321_vm0, %v254_v52, 0.0  ;;  %v257_v50 = vld [vmem:[%s12824_s0 + $0x400] sm:$0xff] }
 0x15c   :  { %689 = vadd.xlane.f32.xlu2 %v688_v26  ;;  %v256_v26 = vld [vmem:[%s12824_s0 + $0x3f8] sm:$0xff] }
 0x15d   :  { %v703_v52 = vsel %vm321_vm0, %v256_v26, 0.0 }
 0x15e   :  { %v8053_v25 = vpop.xlane.xlu1 %560  ;;  %v8055_v7 = vpop.xlane.xlu0 %557 }
 0x15f   :  { %12965 = vst [vmem:[#allocation60_spill] sm:$0xff] %v8053_v25  ;;  %v8060_v22 = vpop.xlane.xlu2 %563  ;;  %v255_v25 = vld [vmem:[%s12824_s0 + $0x3f0] sm:$0xff] }
 0x160   :  { %12966 = vst [vmem:[#allocation61_spill] sm:$0xff] %v8055_v7 }
 0x161   :  { %12967 = vst [vmem:[#allocation62_spill] sm:$0xff] %v8060_v22 }
 0x163   :  { %695 = vadd.xlane.f32.xlu1 %v694_v61  ;;  %692 = vadd.xlane.f32.xlu0 %v691_v15  ;;  %v700_v61 = vsel %vm321_vm0, %v255_v25, 0.0  ;;  %v706_v15 = vsel %vm321_vm0, %v257_v50, 0.0  ;;  %v260_v25 = vld [vmem:[%s12824_s0 + $0x418] sm:$0xff] }
 0x164   :  { %698 = vadd.xlane.f32.xlu2 %v697_v63  ;;  %v259_v63 = vld [vmem:[%s12824_s0 + $0x410] sm:$0xff] }
 0x165   :  { %v712_v50 = vsel %vm321_vm0, %v259_v63, 0.0 }
 0x166   :  { %v8071_v7 = vpop.xlane.xlu1 %569  ;;  %v8073_v22 = vpop.xlane.xlu0 %566 }
 0x167   :  { %12968 = vst [vmem:[#allocation63_spill] sm:$0xff] %v8071_v7  ;;  %v8078_v24 = vpop.xlane.xlu2 %572  ;;  %v258_v7 = vld [vmem:[%s12824_s0 + $0x408] sm:$0xff] }
 0x168   :  { %12969 = vst [vmem:[#allocation64_spill] sm:$0xff] %v8073_v22 }
 0x169   :  { %12970 = vst [vmem:[#allocation65_spill] sm:$0xff] %v8078_v24 }
 0x16b   :  { %704 = vadd.xlane.f32.xlu1 %v703_v52  ;;  %701 = vadd.xlane.f32.xlu0 %v700_v61  ;;  %v709_v52 = vsel %vm321_vm0, %v258_v7, 0.0  ;;  %v715_v61 = vsel %vm321_vm0, %v260_v25, 0.0  ;;  %v263_v7 = vld [vmem:[%s12824_s0 + $0x430] sm:$0xff] }
 0x16c   :  { %707 = vadd.xlane.f32.xlu2 %v706_v15  ;;  %v262_v15 = vld [vmem:[%s12824_s0 + $0x428] sm:$0xff] }
 0x16d   :  { %v721_v25 = vsel %vm321_vm0, %v262_v15, 0.0  ;;  %v8134_v15 = vld [vmem:[%s12829_s5 + $0x150] sm:$0xff] }
 0x16e   :  { %v8089_v22 = vpop.xlane.xlu1 %578  ;;  %v8091_v24 = vpop.xlane.xlu0 %575 }
 0x16f   :  { %12971 = vst [vmem:[#allocation66_spill] sm:$0xff] %v8089_v22  ;;  %v8096_v26 = vpop.xlane.xlu2 %581  ;;  %v261_v22 = vld [vmem:[%s12824_s0 + $0x420] sm:$0xff] }
 0x170   :  { %12972 = vst [vmem:[#allocation67_spill] sm:$0xff] %v8091_v24 }
 0x171   :  { %12973 = vst [vmem:[#allocation68_spill] sm:$0xff] %v8096_v26 }
 0x173   :  { %713 = vadd.xlane.f32.xlu1 %v712_v50  ;;  %710 = vadd.xlane.f32.xlu0 %v709_v52  ;;  %v718_v50 = vsel %vm321_vm0, %v261_v22, 0.0  ;;  %v724_v52 = vsel %vm321_vm0, %v263_v7, 0.0  ;;  %v264_v22 = vld [vmem:[%s12824_s0 + $0x438] sm:$0xff] }
 0x174   :  { %716 = vadd.xlane.f32.xlu2 %v715_v61  ;;  %v8122_v61 = vld [vmem:[%s12829_s5 + $0x168] sm:$0xff] }
 0x176   :  { %v8107_v24 = vpop.xlane.xlu1 %587  ;;  %v8109_v26 = vpop.xlane.xlu0 %584 }
 0x177   :  { %12974 = vst [vmem:[#allocation69_spill] sm:$0xff] %v8107_v24  ;;  %v8114_v63 = vpop.xlane.xlu2 %590  ;;  %v1468_v24 = vunpack.c.l.bf16 %v8122_v61 }
 0x178   :  { %12975 = vst [vmem:[#allocation70_spill] sm:$0xff] %v8109_v26 }
 0x179   :  { %12976 = vst [vmem:[#allocation71_spill] sm:$0xff] %v8114_v63  ;;  %v265_v63 = vld [vmem:[%s12824_s0 + $0x440] sm:$0xff]  ;;  %2577 = vmatpush.msra.mxu0 %v1468_v24 }
 0x17a   :  { %v730_v32 = vsel %vm321_vm0, %v265_v63, 0.0  ;;  %v8158_v24 = vld [vmem:[%s12829_s5 + $0x120] sm:$0xff]  ;;  %v8164_v63 = vld [vmem:[%s12829_s5 + $0x108] sm:$0xff] }
 0x17b   :  { %722 = vadd.xlane.f32.xlu1 %v721_v25  ;;  %719 = vadd.xlane.f32.xlu0 %v718_v50  ;;  %v266_v50 = vld [vmem:[%s12824_s0 + $0x448] sm:$0xff]  ;;  %12980 = vst [vmem:[#allocation75_spill] sm:$0xff] %v8164_v63 }
 0x17c   :  { %725 = vadd.xlane.f32.xlu2 %v724_v52  ;;  %v1462_v52 = vunpack.c.l.bf16 %v8134_v15  ;;  %v733_v44 = vsel %vm321_vm0, %v266_v50, 0.0  ;;  %v268_v50 = vld [vmem:[%s12824_s0 + $0x458] sm:$0xff] }
 0x17e   :  { %v8136_v7 = vpop.xlane.xlu1 %596  ;;  %v8138_v25 = vpop.xlane.xlu0 %593  ;;  %2578 = vmatpush.msra.mxu0 %v1462_v52 }
 0x17f   :  { %12977 = vst [vmem:[#allocation72_spill] sm:$0xff] %v8136_v7  ;;  %v8144_v26 = vpop.xlane.xlu2 %599  ;;  %v727_v7 = vsel %vm321_vm0, %v264_v22, 0.0  ;;  %v1444_v22 = vunpack.c.l.bf16 %v8164_v63 }
 0x180   :  { %12978 = vst [vmem:[#allocation73_spill] sm:$0xff] %v8138_v25  ;;  %v1456_v25 = vunpack.c.l.bf16 %v8149_v51 }
 0x181   :  { %12979 = vst [vmem:[#allocation74_spill] sm:$0xff] %v8144_v26  ;;  %v1450_v26 = vunpack.c.l.bf16 %v8158_v24 }
 0x182   :  { %2579 = vmatpush.msra.mxu0 %v1456_v25  ;;  %v267_v25 = vld [vmem:[%s12824_s0 + $0x450] sm:$0xff] }
 0x183   :  { %731 = vadd.xlane.f32.xlu1 %v730_v32  ;;  %728 = vadd.xlane.f32.xlu0 %v727_v7  ;;  %v8176_v32 = vld [vmem:[%s12829_s5 + $0xf0] sm:$0xff] }
 0x184   :  { %734 = vadd.xlane.f32.xlu2 %v733_v44  ;;  %2580 = vmatpush.msra.mxu0 %v1450_v26  ;;  %12981 = vst [vmem:[#allocation76_spill] sm:$0xff] %v8176_v32  ;;  %v269_v44 = vld [vmem:[%s12824_s0 + $0x460] sm:$0xff]  ;;  %v1438_v26 = vunpack.c.l.bf16 %v8176_v32  ;;  %v904_v32 = vmul.f32 0.03125, %v7623_v47 }
 0x185   :  { %v742_v39 = vsel %vm321_vm0, %v269_v44, 0.0 }
 0x186   :  { %v8178_v7 = vpop.xlane.xlu1 %605  ;;  %v8180_v52 = vpop.xlane.xlu0 %602  ;;  %2581 = vmatpush.msra.mxu0 %v1444_v22  ;;  %v8199_v22 = vadd.s32 4294967288, %v8186_v4 }
 0x187   :  { %12982 = vst [vmem:[#allocation77_spill] sm:$0xff] %v8178_v7  ;;  %v8188_v2 = vpop.xlane.xlu2 %608  ;;  %v739_v7 = vsel %vm321_vm0, %v268_v50, 0.0 }
 0x188   :  { %12983 = vst [vmem:[#allocation78_spill] sm:$0xff] %v8180_v52  ;;  %v736_v52 = vsel %vm321_vm0, %v267_v25, 0.0  ;;  %2582 = vmatpush.msra.mxu0 %v1438_v26  ;;  %v898_v25 = vmul.f32 0.03125, %v7587_v29  ;;  %v1111_v26 = vld [vmem:[%s12829_s5 + $0xa8] sm:$0xff]  ;;  %v2164_v44 = vperm.slane %v899_v11, %v8199_v22  ;;  %v1108_v29 = vld [vmem:[%s12829_s5 + $0x90] sm:$0xff] }
 0x189   :  { %12985 = vst [vmem:[#allocation80_spill] sm:$0xff] %v8188_v2  ;;  %v8206_v2 = vld [vmem:[%s12829_s5 + $0xc0] sm:$0xff]  ;;  %v1420_v38 = vunpack.c.l.bf16 %v1111_v26  ;;  %v1414_v26 = vunpack.c.l.bf16 %v1108_v29 }
 0x18a   :  { %12987 = vst [vmem:[#allocation82_spill] sm:$0xff] %v8206_v2  ;;  %2583 = vmatpush.msra.mxu0 %v1432_v34  ;;  %v1426_v50 = vunpack.c.l.bf16 %v8206_v2  ;;  %v270_v34 = vld [vmem:[%s12824_s0 + $0x468] sm:$0xff]  ;;  %v2162_v13 = vperm.slane %v898_v25, %v8186_v4  ;;  %v1402_v2 = vunpack.c.l.bf16 %v1102_v37 }
 0x18b   :  { %740 = vadd.xlane.f32.xlu1 %v739_v7  ;;  %737 = vadd.xlane.f32.xlu0 %v736_v52  ;;  %v8224_v7 = vadd.s32 4294967280, %v8186_v4  ;;  %v745_v41 = vsel %vm321_vm0, %v270_v34, 0.0 }
 0x18c   :  { %743 = vadd.xlane.f32.xlu2 %v742_v39  ;;  %2584 = vmatpush.msra.mxu0 %v1426_v50  ;;  %v900_v39 = vmul.f32 0.03125, %v7585_v28  ;;  %v272_v50 = vld [vmem:[%s12824_s0 + $0x478] sm:$0xff] }
 0x18d   :  { %12988 = vst [vmem:[#allocation83_spill] sm:$0xff] %v8224_v7  ;;  %v1105_v28 = vld [vmem:[%s12829_s5 + $0x78] sm:$0xff]  ;;  %v751_v25 = vsel %vm321_vm0, %v272_v50, 0.0 }
 0x18e   :  { %v615_v52 = vpop.xlane.xlu1 %614  ;;  %v612_v11 = vpop.xlane.xlu0 %611  ;;  %2585 = vmatpush.msra.mxu0 %v1420_v38  ;;  %v1408_v35 = vunpack.c.l.bf16 %v1105_v28  ;;  %v2166_v38 = vsel %vm2165_vm1, %v2164_v44, %v2162_v13  ;;  %v2168_v29 = vperm.slane %v900_v39, %v8224_v7  ;;  %v1099_v13 = vld [vmem:[%s12829_s5 + $0x48] sm:$0xff]  ;;  %v8251_v44 = vadd.s32 4294967264, %v8186_v4  ;;  %v275_v28 = vld [vmem:[%s12824_s0 + $0x490] sm:$0xff] }
 0x18f   :  { %v618_v53 = vpop.xlane.xlu2 %617  ;;  %v995_v16 = vmul.f32 0.03125, %v615_v52  ;;  %v994_v36 = vmul.f32 0.03125, %v612_v11  ;;  %v902_v39 = vmul.f32 0.03125, %v7592_v31  ;;  %v1096_v52 = vld [vmem:[%s12829_s5 + $0x30] sm:$0xff]  ;;  %v8269_v31 = vadd.s32 4294967248, %v8186_v4 }
 0x190   :  { %2586 = vmatpush.msra.mxu0 %v1414_v26  ;;  %12990 = vst [vmem:[#allocation85_spill] sm:$0xff] %v8251_v44  ;;  %v2170_v34 = vsel %vm12871_vm2, %v2168_v29, %v2166_v38  ;;  %v996_v11 = vmul.f32 0.03125, %v618_v53  ;;  %v1390_v38 = vunpack.c.l.bf16 %v1096_v52  ;;  %v1093_v53 = vld [vmem:[%s12829_s5 + $0x18] sm:$0xff] }
 0x191   :  { %12992 = vst [vmem:[#allocation87_spill] sm:$0xff] %v8269_v31  ;;  %v2379_v37 = vperm.slane %v995_v16, %v8199_v22  ;;  %v2378_v29 = vperm.slane %v994_v36, %v8186_v4  ;;  %v760_v16 = vsel %vm321_vm0, %v275_v28, 0.0  ;;  %v1090_v36 = vld [vmem:[%s12829_s5] sm:$0xff] }
 0x192   :  { %2587 = vmatpush.msra.mxu0 %v1408_v35  ;;  %v1396_v35 = vunpack.c.l.bf16 %v1099_v13  ;;  %v2381_v47 = vperm.slane %v996_v11, %v8224_v7  ;;  %v8299_v11 = vadd.s32 4294967232, %v8186_v4 }
 0x193   :  { %749 = vadd.xlane.f32.xlu1 %v748_v59  ;;  %746 = vadd.xlane.f32.xlu0 %v745_v41  ;;  %v274_v41 = vld [vmem:[%s12824_s0 + $0x488] sm:$0xff]  ;;  %v273_v59 = vld [vmem:[%s12824_s0 + $0x480] sm:$0xff] }
 0x194   :  { %752 = vadd.xlane.f32.xlu2 %v751_v25  ;;  %2588 = vmatpush.msra.mxu0 %v1402_v2  ;;  %v903_v2 = vmul.f32 0.03125, %v7610_v40  ;;  %v2174_v25 = vsel %vm12870_vm3, %v2172_v48, %v2170_v34  ;;  %v757_v23 = vsel %vm321_vm0, %v274_v41, 0.0  ;;  %v754_v63 = vsel %vm321_vm0, %v273_v59, 0.0  ;;  %12994 = vst [vmem:[#allocation89_spill] sm:$0xff] %v8299_v11 }
 0x195   :  { %v2176_v48 = vperm.slane %v902_v39, %v8251_v44  ;;  %v8289_v34 = vadd.s32 4294967240, %v8186_v4  ;;  %v1378_v41 = vunpack.c.l.bf16 %v1090_v36  ;;  %v2380_v39 = vsel %vm2165_vm1, %v2379_v37, %v2378_v29 }
 0x196   :  { %v624_v50 = vpop.xlane.xlu1 %623  ;;  %v621_v26 = vpop.xlane.xlu0 %620  ;;  %2589 = vmatpush.msra.mxu0 %v1396_v35  ;;  %v1384_v35 = vunpack.c.l.bf16 %v1093_v53  ;;  %v2184_v53 = vperm.slane %v904_v32, %v8269_v31 }
 0x197   :  { %v997_v13 = vmul.f32 0.03125, %v621_v26  ;;  %v627_v40 = vpop.xlane.xlu2 %626  ;;  %12993 = vst [vmem:[#allocation88_spill] sm:$0xff] %v8289_v34  ;;  %v998_v52 = vmul.f32 0.03125, %v624_v50  ;;  %v2178_v59 = vsel %vm2177_vm4, %v2176_v48, %v2174_v25  ;;  %v905_v26 = vmul.f32 0.03125, %v7621_v46 }
 0x198   :  { %2590 = vmatpush.msra.mxu0 %v1390_v38  ;;  %v2180_v38 = vperm.slane %v903_v2, %v8256_v62  ;;  %v8302_v50 = vadd.s32 4294967224, %v8186_v4  ;;  %v999_v46 = vmul.f32 0.03125, %v627_v40  ;;  %v906_v2 = vmul.f32 0.03125, %v7628_v49  ;;  %v278_v40 = vld [vmem:[%s12824_s0 + $0x4a8] sm:$0xff] }
 0x199   :  { %v2383_v28 = vperm.slane %v997_v13, %v8232_v14  ;;  %v2382_v25 = vsel %vm12871_vm2, %v2381_v47, %v2380_v39  ;;  %v2385_v37 = vperm.slane %v998_v52, %v8251_v44  ;;  %v907_v48 = vmul.f32 0.03125, %v7641_v56 }
 0x19a   :  { %2591 = vmatpush.msra.mxu0 %v1384_v35  ;;  %12995 = vst [vmem:[#allocation90_spill] sm:$0xff] %v8302_v50  ;;  %v2182_v32 = vsel %vm2181_vm5, %v2180_v38, %v2178_v59  ;;  %v2188_v35 = vperm.slane %v905_v26, %v8289_v34  ;;  %v8324_v59 = vadd.s32 4294967216, %v8186_v4  ;;  %v2387_v39 = vperm.slane %v999_v46, %v8256_v62 }
 0x19b   :  { %758 = vadd.xlane.f32.xlu1 %v757_v23  ;;  %755 = vadd.xlane.f32.xlu0 %v754_v63  ;;  %v276_v23 = vld [vmem:[%s12824_s0 + $0x498] sm:$0xff]  ;;  %v277_v63 = vld [vmem:[%s12824_s0 + $0x4a0] sm:$0xff]  ;;  %v2186_v49 = vsel %vm2185_vm6, %v2184_v53, %v2182_v32  ;;  %v769_v26 = vsel %vm321_vm0, %v278_v40, 0.0  ;;  %v2192_v56 = vperm.slane %v906_v2, %v8299_v11  ;;  %v8335_v32 = vadd.s32 4294967208, %v8186_v4 }
 0x19c   :  { %761 = vadd.xlane.f32.xlu2 %v760_v16  ;;  %2592 = vmatpush.msra.mxu0 %v1378_v41  ;;  %v2384_v16 = vsel %vm12870_vm3, %v2383_v28, %v2382_v25  ;;  %v763_v47 = vsel %vm321_vm0, %v276_v23, 0.0  ;;  %v766_v52 = vsel %vm321_vm0, %v277_v63, 0.0  ;;  %12996 = vst [vmem:[#allocation91_spill] sm:$0xff] %v8324_v59  ;;  %v908_v28 = vmul.f32 0.03125, %v7639_v55  ;;  %v1183_v55 = vld [vmem:[%s12829_s5 + $0x2e8] sm:$0xff]  ;;  %v280_v40 = vld [vmem:[%s12824_s0 + $0x4b8] sm:$0xff] }
 0x19d   :  { %v2386_v25 = vsel %vm2177_vm4, %v2385_v37, %v2384_v16  ;;  %v2190_v23 = vsel %vm2189_vm7, %v2188_v35, %v2186_v49  ;;  %v2196_v63 = vperm.slane %v907_v48, %v8302_v50  ;;  %12997 = vst [vmem:[#allocation92_spill] sm:$0xff] %v8335_v32  ;;  %v909_v46 = vmul.f32 0.03125, %v7646_v58  ;;  %v279_v58 = vld [vmem:[%s12824_s0 + $0x4b0] sm:$0xff] }
 0x19e   :  { %v633_v29 = vpop.xlane.xlu1 %632  ;;  %v630_v13 = vpop.xlane.xlu0 %629  ;;  %v8342_v37 = vadd.s32 4294967200, %v8186_v4  ;;  %v1564_v35 = vunpack.c.l.bf16 %v1183_v55  ;;  %v2194_v48 = vsel %vm2193_vm8, %v2192_v56, %v2190_v23  ;;  %v2200_v16 = vperm.slane %v908_v28, %v8324_v59 }
 0x19f   :  { %v1000_v36 = vmul.f32 0.03125, %v630_v13  ;;  %v636_v41 = vpop.xlane.xlu2 %635  ;;  %v1001_v38 = vmul.f32 0.03125, %v633_v29  ;;  %v2388_v29 = vsel %vm2181_vm5, %v2387_v39, %v2386_v25  ;;  %v1180_v39 = vld [vmem:[%s12829_s5 + $0x2d0] sm:$0xff]  ;;  %v772_v23 = vsel %vm321_vm0, %v279_v58, 0.0 }
 0x1a0   :  { %v1002_v2 = vmul.f32 0.03125, %v636_v41  ;;  %12998 = vst [vmem:[#allocation93_spill] sm:$0xff] %v8342_v37  ;;  %2597 = vmatpush.msra.mxu1 %v1564_v35  ;;  %v775_v55 = vsel %vm321_vm0, %v280_v40, 0.0  ;;  %v911_v58 = vmul.f32 0.03125, %v7657_v0 }
 0x1a1   :  { %v2389_v53 = vperm.slane %v1000_v36, %v8269_v31  ;;  %v2391_v13 = vperm.slane %v1001_v38, %v8289_v34  ;;  %v910_v36 = vmul.f32 0.03125, %v7659_v1  ;;  %v2198_v38 = vsel %vm12845_vm9, %v2196_v63, %v2194_v48 }
 0x1a2   :  { %v1558_v1 = vunpack.c.l.bf16 %v1180_v39  ;;  %v2393_v25 = vperm.slane %v1002_v2, %v8299_v11  ;;  %v2202_v48 = vsel %vm2201_vm10, %v2200_v16, %v2198_v38  ;;  %v8375_v2 = vadd.s32 4294967192, %v8186_v4 }
 0x1a3   :  { %764 = vadd.xlane.f32.xlu0 %v763_v47  ;;  %767 = vadd.xlane.f32.xlu1 %v766_v52  ;;  %v2390_v41 = vsel %vm2185_vm6, %v2389_v53, %v2388_v29  ;;  %v281_v52 = vld [vmem:[%s12824_s0 + $0x4c0] sm:$0xff]  ;;  %v1177_v29 = vld [vmem:[%s12829_s5 + $0x2b8] sm:$0xff]  ;;  %v2208_v40 = vperm.slane %v910_v36, %v8342_v37  ;;  %v912_v16 = vmul.f32 0.03125, %v7664_v3  ;;  %v1171_v36 = vld [vmem:[%s12829_s5 + $0x288] sm:$0xff] }
 0x1a4   :  { %770 = vadd.xlane.f32.xlu2 %v769_v26  ;;  %v2204_v26 = vperm.slane %v909_v46, %v8335_v32  ;;  %v2392_v17 = vsel %vm2189_vm7, %v2391_v13, %v2390_v41  ;;  %v778_v46 = vsel %vm321_vm0, %v281_v52, 0.0  ;;  %2598 = vmatpush.msra.mxu1 %v1558_v1  ;;  %v1552_v35 = vunpack.c.l.bf16 %v1177_v29  ;;  %12999 = vst [vmem:[#allocation94_spill] sm:$0xff] %v8375_v2  ;;  %v283_v3 = vld [vmem:[%s12824_s0 + $0x4d0] sm:$0xff] }
 0x1a5   :  { %v2394_v52 = vsel %vm2193_vm8, %v2393_v25, %v2392_v17  ;;  %v1540_v17 = vunpack.c.l.bf16 %v1171_v36  ;;  %v8402_v25 = vadd.s32 4294967176, %v8186_v4  ;;  %v8419_v36 = vmul.f32 0.03125, %v7675_v9 }
 0x1a6   :  { %v642_v49 = vpop.xlane.xlu1 %641  ;;  %v639_v47 = vpop.xlane.xlu0 %638  ;;  %2599 = vmatpush.msra.mxu1 %v1552_v35  ;;  %v2206_v39 = vsel %vm2205_vm11, %v2204_v26, %v2202_v48 }
 0x1a7   :  { %v1003_v56 = vmul.f32 0.03125, %v639_v47  ;;  %v645_v28 = vpop.xlane.xlu2 %644  ;;  %v1004_v53 = vmul.f32 0.03125, %v642_v49  ;;  %v1174_v49 = vld [vmem:[%s12829_s5 + $0x2a0] sm:$0xff]  ;;  %v8383_v47 = vadd.s32 4294967184, %v8186_v4  ;;  %v2210_v1 = vsel %vm12869_vm12, %v2208_v40, %v2206_v39  ;;  %13001 = vst [vmem:[#allocation96_spill] sm:$0xff] %v8402_v25 }
 0x1a8   :  { %v1005_v13 = vmul.f32 0.03125, %v645_v28  ;;  %v1546_v41 = vunpack.c.l.bf16 %v1174_v49  ;;  %v2212_v28 = vperm.slane %v911_v58, %v8375_v2 }
 0x1a9   :  { %v2395_v63 = vperm.slane %v1003_v56, %v8302_v50  ;;  %13000 = vst [vmem:[#allocation95_spill] sm:$0xff] %v8383_v47  ;;  %v2397_v0 = vperm.slane %v1004_v53, %v8324_v59  ;;  %v282_v56 = vld [vmem:[%s12824_s0 + $0x4c8] sm:$0xff]  ;;  %v2216_v58 = vperm.slane %v912_v16, %v8383_v47 }
 0x1aa   :  { %2600 = vmatpush.msra.mxu1 %v1546_v41  ;;  %v2399_v29 = vperm.slane %v1005_v13, %v8335_v32  ;;  %v781_v49 = vsel %vm321_vm0, %v282_v56, 0.0  ;;  %v1165_v41 = vld [vmem:[%s12829_s5 + $0x258] sm:$0xff]  ;;  %v2214_v16 = vsel %vm12844_vm13, %v2212_v28, %v2210_v1  ;;  %v2223_v1 = vperm.slane %v8419_v36, %v8186_v4 }
 0x1ab   :  { %773 = vadd.xlane.f32.xlu0 %v772_v23  ;;  %776 = vadd.xlane.f32.xlu1 %v775_v55  ;;  %v2396_v38 = vsel %vm12845_vm9, %v2395_v63, %v2394_v52  ;;  %v284_v23 = vld [vmem:[%s12824_s0 + $0x4d8] sm:$0xff]  ;;  %v1168_v55 = vld [vmem:[%s12829_s5 + $0x270] sm:$0xff]  ;;  %v784_v52 = vsel %vm321_vm0, %v283_v3, 0.0  ;;  %v1162_v3 = vld [vmem:[%s12829_s5 + $0x240] sm:$0xff] }
 0x1ac   :  { %779 = vadd.xlane.f32.xlu2 %v778_v46  ;;  %v1534_v48 = vunpack.c.l.bf16 %v1168_v55  ;;  %v2398_v40 = vsel %vm2201_vm10, %v2397_v0, %v2396_v38  ;;  %2601 = vmatpush.msra.mxu1 %v1540_v17  ;;  %v787_v39 = vsel %vm321_vm0, %v284_v23, 0.0  ;;  %v913_v0 = vmul.f32 0.03125, %v7677_v10  ;;  %v1159_v10 = vld [vmem:[%s12829_s5 + $0x228] sm:$0xff]  ;;  %v285_v55 = vld [vmem:[%s12824_s0 + $0x4e0] sm:$0xff] }
 0x1ad   :  { %v915_v38 = vmul.f32 0.03125, %v7682_v12  ;;  %v2400_v9 = vsel %vm2205_vm11, %v2399_v29, %v2398_v40  ;;  %v916_v23 = vmul.f32 0.03125, %v7695_v19  ;;  %v2218_v12 = vsel %vm12868_vm14, %v2216_v58, %v2214_v16  ;;  %v287_v19 = vld [vmem:[%s12824_s0 + $0x4f0] sm:$0xff]  ;;  %v286_v29 = vld [vmem:[%s12824_s0 + $0x4e8] sm:$0xff] }
 0x1ae   :  { %v651_v26 = vpop.xlane.xlu1 %650  ;;  %v648_v53 = vpop.xlane.xlu0 %647  ;;  %2602 = vmatpush.msra.mxu1 %v1534_v48  ;;  %v8451_v48 = vmul.f32 0.03125, %v7693_v18 }
 0x1af   :  { %v1007_v63 = vmul.f32 0.03125, %v651_v26  ;;  %v1006_v46 = vmul.f32 0.03125, %v648_v53  ;;  %v654_v35 = vpop.xlane.xlu2 %653  ;;  %v1528_v26 = vunpack.c.l.bf16 %v1165_v41  ;;  %v1522_v53 = vunpack.c.l.bf16 %v1162_v3  ;;  %v1231_v41 = vld [vmem:[%s12829_s5 + $0x468] sm:$0xff]  ;;  %v1153_v3 = vld [vmem:[%s12829_s5 + $0x1f8] sm:$0xff] }
 0x1b0   :  { %v1008_v56 = vmul.f32 0.03125, %v654_v35  ;;  %v2224_v35 = vperm.slane %v915_v38, %v8199_v22  ;;  %v1660_v18 = vunpack.c.l.bf16 %v1231_v41  ;;  %v2226_v16 = vperm.slane %v916_v23, %v8224_v7  ;;  %v1222_v41 = vld [vmem:[%s12829_s5 + $0x420] sm:$0xff] }
 0x1b1   :  { %v2401_v13 = vperm.slane %v1006_v46, %v8342_v37  ;;  %v2403_v17 = vperm.slane %v1007_v63, %v8375_v2  ;;  %2603 = vmatpush.msra.mxu1 %v1528_v26  ;;  %v1516_v63 = vunpack.c.l.bf16 %v1159_v10  ;;  %v2220_v46 = vperm.slane %v913_v0, %v8402_v25 }
 0x1b2   :  { %v2405_v58 = vperm.slane %v1008_v56, %v8383_v47  ;;  %v790_v0 = vsel %vm321_vm0, %v285_v55, 0.0  ;;  %v796_v38 = vsel %vm321_vm0, %v287_v19, 0.0  ;;  %v793_v56 = vsel %vm321_vm0, %v286_v29, 0.0  ;;  %2617 = vmatpush.msra.mxu2 %v1660_v18  ;;  %v1150_v55 = vld [vmem:[%s12829_s5 + $0x1e0] sm:$0xff]  ;;  %v1225_v19 = vld [vmem:[%s12829_s5 + $0x438] sm:$0xff] }
 0x1b3   :  { %782 = vadd.xlane.f32.xlu0 %v781_v49  ;;  %785 = vadd.xlane.f32.xlu1 %v784_v52  ;;  %v2402_v28 = vsel %vm12869_vm12, %v2401_v13, %v2400_v9  ;;  %v1156_v52 = vld [vmem:[%s12829_s5 + $0x210] sm:$0xff]  ;;  %v8481_v29 = vmul.f32 0.03125, %v7700_v21  ;;  %v1147_v21 = vld [vmem:[%s12829_s5 + $0x1c8] sm:$0xff] }
 0x1b4   :  { %788 = vadd.xlane.f32.xlu2 %v787_v39  ;;  %2604 = vmatpush.msra.mxu1 %v1522_v53  ;;  %v2404_v36 = vsel %vm12844_vm13, %v2403_v17, %v2402_v28  ;;  %v1510_v26 = vunpack.c.l.bf16 %v1156_v52  ;;  %v1228_v9 = vld [vmem:[%s12829_s5 + $0x450] sm:$0xff]  ;;  %vm12866_vm13 = vcmask 1041409   ;;  %v1504_v53 = vunpack.c.l.bf16 %v1153_v3  ;;  %v1219_v3 = vld [vmem:[%s12829_s5 + $0x408] sm:$0xff] }
 0x1b5   :  { %v1654_v23 = vunpack.c.l.bf16 %v1228_v9  ;;  %v2222_v28 = vsel %vm12867_vm15, %v2220_v46, %v2218_v12  ;;  %v2406_v10 = vsel %vm12868_vm14, %v2405_v58, %v2404_v36  ;;  %v1648_v12 = vunpack.c.l.bf16 %v1225_v19  ;;  %v1216_v19 = vld [vmem:[%s12829_s5 + $0x3f0] sm:$0xff] }
 0x1b6   :  { %v660_v40 = vpop.xlane.xlu1 %659  ;;  %v657_v49 = vpop.xlane.xlu0 %656  ;;  %2605 = vmatpush.msra.mxu1 %v1516_v63  ;;  %v2225_v46 = vsel %vm2165_vm1, %v2224_v35, %v2223_v1  ;;  %v2228_v58 = vperm.slane %v8451_v48, %v8232_v14  ;;  %v919_v1 = vmul.f32 0.03125, %v7713_v30  ;;  %v288_v35 = vld [vmem:[%s12824_s0 + $0x4f8] sm:$0xff]  ;;  %v289_v48 = vld [vmem:[%s12824_s0 + $0x500] sm:$0xff]  ;;  %v290_v30 = vld [vmem:[%s12824_s0 + $0x508] sm:$0xff] }
 0x1b7   :  { %v1009_v13 = vmul.f32 0.03125, %v657_v49  ;;  %v663_v39 = vpop.xlane.xlu2 %662  ;;  %v1498_v49 = vunpack.c.l.bf16 %v1150_v55  ;;  %v2227_v36 = vsel %vm12871_vm2, %v2226_v16, %v2225_v46  ;;  %2618 = vmatpush.msra.mxu2 %v1654_v23  ;;  %v1642_v16 = vunpack.c.l.bf16 %v1222_v41  ;;  %v1141_v55 = vld [vmem:[%s12829_s5 + $0x198] sm:$0xff] }
 0x1b8   :  { %2606 = vmatpush.msra.mxu1 %v1510_v26  ;;  %v1010_v26 = vmul.f32 0.03125, %v660_v40  ;;  %v1011_v18 = vmul.f32 0.03125, %v663_v39  ;;  %v2230_v40 = vperm.slane %v8481_v29, %v8251_v44  ;;  %v799_v23 = vsel %vm321_vm0, %v288_v35, 0.0 }
 0x1b9   :  { %v2407_v17 = vperm.slane %v1009_v13, %v8402_v25  ;;  %v1492_v13 = vunpack.c.l.bf16 %v1147_v21  ;;  %2619 = vmatpush.msra.mxu2 %v1648_v12  ;;  %v920_v29 = vmul.f32 0.03125, %v7711_v27  ;;  %v1480_v12 = vunpack.c.l.bf16 %v1141_v55  ;;  %v1213_v27 = vld [vmem:[%s12829_s5 + $0x3d8] sm:$0xff] }
 0x1ba   :  { %2607 = vmatpush.msra.mxu1 %v1504_v53  ;;  %v2229_v53 = vsel %vm12870_vm3, %v2228_v58, %v2227_v36  ;;  %v2409_v46 = vperm.slane %v1010_v26, %v8186_v4  ;;  %v2410_v58 = vperm.slane %v1011_v18, %v8199_v22  ;;  %v1630_v41 = vunpack.c.l.bf16 %v1216_v19  ;;  %v1138_v36 = vld [vmem:[%s12829_s5 + $0x180] sm:$0xff] }
 0x1bb   :  { %v2408_v63 = vsel %vm12867_vm15, %v2407_v17, %v2406_v10  ;;  %791 = vadd.xlane.f32.xlu0 %v790_v0  ;;  %794 = vadd.xlane.f32.xlu1 %v793_v56  ;;  %v1144_v56 = vld [vmem:[%s12829_s5 + $0x1b0] sm:$0xff]  ;;  %v1636_v10 = vunpack.c.l.bf16 %v1219_v3  ;;  %v1474_v35 = vunpack.c.l.bf16 %v1138_v36  ;;  %v1210_v26 = vld [vmem:[%s12829_s5 + $0x3c0] sm:$0xff]  ;;  %v2231_v18 = vsel %vm2177_vm4, %v2230_v40, %v2229_v53  ;;  %v1207_v53 = vld [vmem:[%s12829_s5 + $0x3a8] sm:$0xff] }
 0x1bc   :  { %797 = vadd.xlane.f32.xlu2 %v796_v38  ;;  %v8488_v52 = vsel %vm12866_vm13, %v2408_v63, %v2222_v28  ;;  %2608 = vmatpush.msra.mxu1 %v1498_v49  ;;  %v1486_v17 = vunpack.c.l.bf16 %v1144_v56  ;;  %v802_v28 = vsel %vm321_vm0, %v289_v48, 0.0  ;;  %v2232_v63 = vperm.slane %v919_v1, %v8256_v62 }
 0x1bd   :  { %2593 = vmatmul.f32.vlgmr.msra.gmra.mxu0 %v8488_v52  ;;  %v805_v49 = vsel %vm321_vm0, %v290_v30, 0.0  ;;  %2620 = vmatpush.msra.mxu2 %v1642_v16  ;;  %v921_v48 = vmul.f32 0.03125, %v7718_v33  ;;  %v291_v30 = vld [vmem:[%s12824_s0 + $0x510] sm:$0xff]  ;;  %v292_v33 = vld [vmem:[%s12824_s0 + $0x518] sm:$0xff]  ;;  %v2411_v56 = vsel %vm2165_vm1, %v2410_v58, %v2409_v46 }
 0x1be   :  { %v669_v0 = vpop.xlane.xlu1 %668  ;;  %v666_v38 = vpop.xlane.xlu0 %665  ;;  %2609 = vmatpush.msra.mxu1 %v1492_v13  ;;  %v1624_v13 = vunpack.c.l.bf16 %v1213_v27  ;;  %v2233_v16 = vsel %vm2181_vm5, %v2232_v63, %v2231_v18  ;;  %v811_v63 = vsel %vm321_vm0, %v292_v33, 0.0  ;;  %v295_v33 = vld [vmem:[%s12824_s0 + $0x530] sm:$0xff] }
 0x1bf   :  { %v1012_v39 = vmul.f32 0.03125, %v666_v38  ;;  %v672_v9 = vpop.xlane.xlu2 %671  ;;  %v1013_v21 = vmul.f32 0.03125, %v669_v0  ;;  %2621 = vmatpush.msra.mxu2 %v1636_v10  ;;  %v2234_v0 = vperm.slane %v920_v29, %v8269_v31  ;;  %v2236_v19 = vperm.slane %v921_v48, %v8289_v34 }
 0x1c0   :  { %2610 = vmatpush.msra.mxu1 %v1486_v17  ;;  %v1014_v38 = vmul.f32 0.03125, %v672_v9  ;;  %v293_v9 = vld [vmem:[%s12824_s0 + $0x520] sm:$0xff]  ;;  %v1618_v17 = vunpack.c.l.bf16 %v1210_v26  ;;  %v808_v29 = vsel %vm321_vm0, %v291_v30, 0.0 }
 0x1c1   :  { %v2412_v1 = vperm.slane %v1012_v39, %v8224_v7  ;;  %v2414_v3 = vperm.slane %v1013_v21, %v8232_v14  ;;  %2622 = vmatpush.msra.mxu2 %v1630_v41  ;;  %v2235_v46 = vsel %vm2185_vm6, %v2234_v0, %v2233_v16  ;;  %v814_v21 = vsel %vm321_vm0, %v293_v9, 0.0  ;;  %v1198_v0 = vld [vmem:[%s12829_s5 + $0x360] sm:$0xff]  ;;  %v296_v9 = vld [vmem:[%s12824_s0 + $0x538] sm:$0xff] }
 0x1c2   :  { %2611 = vmatpush.msra.mxu1 %v1480_v12  ;;  %v1204_v12 = vld [vmem:[%s12829_s5 + $0x390] sm:$0xff]  ;;  %v923_v41 = vmul.f32 0.03125, %v7729_v42  ;;  %v294_v42 = vld [vmem:[%s12824_s0 + $0x528] sm:$0xff] }
 0x1c3   :  { %800 = vadd.xlane.f32.xlu0 %v799_v23  ;;  %803 = vadd.xlane.f32.xlu1 %v802_v28  ;;  %v922_v23 = vmul.f32 0.03125, %v7731_v43  ;;  %v2413_v28 = vsel %vm12871_vm2, %v2412_v1, %v2411_v56  ;;  %v2416_v43 = vperm.slane %v1014_v38, %v8251_v44  ;;  %v1606_v1 = vunpack.c.l.bf16 %v1204_v12  ;;  %v1192_v12 = vld [vmem:[%s12829_s5 + $0x330] sm:$0xff] }
 0x1c4   :  { %806 = vadd.xlane.f32.xlu2 %v805_v49  ;;  %2612 = vmatpush.msra.mxu1 %v1474_v35  ;;  %v1612_v49 = vunpack.c.l.bf16 %v1207_v53  ;;  %v2415_v36 = vsel %vm12870_vm3, %v2414_v3, %v2413_v28  ;;  %v1201_v35 = vld [vmem:[%s12829_s5 + $0x378] sm:$0xff]  ;;  %v2237_v38 = vsel %vm2189_vm7, %v2236_v19, %v2235_v46  ;;  %v2240_v16 = vperm.slane %v923_v41, %v8302_v50  ;;  %v1195_v53 = vld [vmem:[%s12829_s5 + $0x348] sm:$0xff] }
 0x1c5   :  { %2623 = vmatpush.msra.mxu2 %v1624_v13  ;;  %v2238_v48 = vperm.slane %v922_v23, %v8299_v11  ;;  %v924_v13 = vmul.f32 0.03125, %v7736_v45  ;;  %v1600_v18 = vunpack.c.l.bf16 %v1201_v35  ;;  %v2417_v30 = vsel %vm2177_vm4, %v2416_v43, %v2415_v36 }
 0x1c6   :  { %v678_v39 = vpop.xlane.xlu1 %677  ;;  %v675_v40 = vpop.xlane.xlu0 %674  ;;  %v925_v56 = vmul.f32 0.03125, %v7749_v57  ;;  %v926_v46 = vmul.f32 0.03125, %v7747_v54 }
 0x1c7   :  { %v1015_v10 = vmul.f32 0.03125, %v675_v40  ;;  %v681_v55 = vpop.xlane.xlu2 %680  ;;  %v1016_v58 = vmul.f32 0.03125, %v678_v39  ;;  %2624 = vmatpush.msra.mxu2 %v1618_v17  ;;  %v1594_v17 = vunpack.c.l.bf16 %v1198_v0  ;;  %v2239_v23 = vsel %vm2193_vm8, %v2238_v48, %v2237_v38 }
 0x1c8   :  { %v1017_v26 = vmul.f32 0.03125, %v681_v55  ;;  %v2242_v28 = vperm.slane %v924_v13, %v8324_v59  ;;  %v817_v55 = vsel %vm321_vm0, %v294_v42, 0.0  ;;  %v2241_v41 = vsel %vm12845_vm9, %v2240_v16, %v2239_v23 }
 0x1c9   :  { %v2418_v27 = vperm.slane %v1015_v10, %v8256_v62  ;;  %2625 = vmatpush.msra.mxu2 %v1612_v49  ;;  %v2420_v45 = vperm.slane %v1016_v58, %v8269_v31  ;;  %v1588_v49 = vunpack.c.l.bf16 %v1195_v53  ;;  %v2244_v36 = vperm.slane %v925_v56, %v8335_v32 }
 0x1ca   :  { %v2422_v19 = vperm.slane %v1017_v26, %v8289_v34  ;;  %v1186_v26 = vld [vmem:[%s12829_s5 + $0x300] sm:$0xff]  ;;  %v2243_v42 = vsel %vm2201_vm10, %v2242_v28, %v2241_v41  ;;  %v927_v0 = vmul.f32 0.03125, %v7754_v60  ;;  %v928_v16 = vmul.f32 0.03125, %v7767_v6  ;;  %v299_v60 = vld [vmem:[%s12824_s0 + $0x550] sm:$0xff] }
 0x1cb   :  { %809 = vadd.xlane.f32.xlu0 %v808_v29  ;;  %812 = vadd.xlane.f32.xlu1 %v811_v63  ;;  %v2419_v3 = vsel %vm2181_vm5, %v2418_v27, %v2417_v30  ;;  %v820_v63 = vsel %vm321_vm0, %v295_v33, 0.0  ;;  %v1582_v27 = vunpack.c.l.bf16 %v1192_v12  ;;  %v297_v30 = vld [vmem:[%s12824_s0 + $0x540] sm:$0xff]  ;;  %v2245_v33 = vsel %vm2205_vm11, %v2244_v36, %v2243_v42 }
 0x1cc   :  { %815 = vadd.xlane.f32.xlu2 %v814_v21  ;;  %2626 = vmatpush.msra.mxu2 %v1606_v1  ;;  %v2421_v43 = vsel %vm2185_vm6, %v2420_v45, %v2419_v3  ;;  %v823_v21 = vsel %vm321_vm0, %v296_v9, 0.0  ;;  %v1189_v1 = vld [vmem:[%s12829_s5 + $0x318] sm:$0xff]  ;;  %v298_v45 = vld [vmem:[%s12824_s0 + $0x548] sm:$0xff]  ;;  %v826_v28 = vsel %vm321_vm0, %v297_v30, 0.0  ;;  %v1469_v6 = vunpack.c.h.bf16 %v8122_v61 }
 0x1cd   :  { %v2423_v54 = vsel %vm2189_vm7, %v2422_v19, %v2421_v43  ;;  %v1576_v13 = vunpack.c.l.bf16 %v1189_v1  ;;  %v930_v36 = vmul.f32 0.03125, %v7772_v8  ;;  %v302_v8 = vld [vmem:[%s12824_s0 + $0x568] sm:$0xff] }
 0x1ce   :  { %v687_v39 = vpop.xlane.xlu1 %686  ;;  %v684_v40 = vpop.xlane.xlu0 %683  ;;  %2627 = vmatpush.msra.mxu2 %v1600_v18  ;;  %v2246_v18 = vperm.slane %v926_v46, %v8342_v37  ;;  %v1463_v46 = vunpack.c.h.bf16 %v8134_v15  ;;  %v300_v15 = vld [vmem:[%s12824_s0 + $0x558] sm:$0xff] }
 0x1cf   :  { %v1018_v10 = vmul.f32 0.03125, %v684_v40  ;;  %v690_v57 = vpop.xlane.xlu2 %689  ;;  %v1019_v29 = vmul.f32 0.03125, %v687_v39  ;;  %v1570_v39 = vunpack.c.l.bf16 %v1186_v26 }
 0x1d0   :  { %2628 = vmatpush.msra.mxu2 %v1594_v17  ;;  %v1020_v35 = vmul.f32 0.03125, %v690_v57  ;;  %v2247_v57 = vsel %vm12869_vm12, %v2246_v18, %v2245_v33 }
 0x1d1   :  { %v2424_v58 = vperm.slane %v1018_v10, %v8299_v11  ;;  %v2426_v48 = vperm.slane %v1019_v29, %v8302_v50  ;;  %v829_v10 = vsel %vm321_vm0, %v298_v45, 0.0  ;;  %v832_v29 = vsel %vm321_vm0, %v299_v60, 0.0 }
 0x1d2   :  { %2629 = vmatpush.msra.mxu2 %v1588_v49  ;;  %v2428_v40 = vperm.slane %v1020_v35, %v8324_v59  ;;  %v2250_v49 = vperm.slane %v928_v16, %v8383_v47  ;;  %v835_v45 = vsel %vm321_vm0, %v300_v15, 0.0  ;;  %v13004_v16 = vld [vmem:[#allocation75_spill] sm:$0xff]  ;;  %v841_v60 = vsel %vm321_vm0, %v302_v8, 0.0  ;;  %v13009_v15 = vld [vmem:[#allocation82_spill] sm:$0xff] }
 0x1d3   :  { %818 = vadd.xlane.f32.xlu0 %v817_v55  ;;  %821 = vadd.xlane.f32.xlu1 %v820_v63  ;;  %v2425_v38 = vsel %vm2193_vm8, %v2424_v58, %v2423_v54  ;;  %v2248_v55 = vperm.slane %v927_v0, %v8375_v2  ;;  %v929_v63 = vmul.f32 0.03125, %v7765_v5  ;;  %v931_v58 = vmul.f32 0.03125, %v7785_v20 }
 0x1d4   :  { %824 = vadd.xlane.f32.xlu2 %v823_v21  ;;  %2630 = vmatpush.msra.mxu2 %v1582_v27  ;;  %v2427_v23 = vsel %vm12845_vm9, %v2426_v48, %v2425_v38  ;;  %v1457_v5 = vunpack.c.h.bf16 %v8149_v51  ;;  %vm13002_vm9 = vcmask 917312   ;;  %v301_v27 = vld [vmem:[%s12824_s0 + $0x560] sm:$0xff]  ;;  %v1451_v48 = vunpack.c.h.bf16 %v8158_v24 }
 0x1d5   :  { %v2429_v43 = vsel %vm2201_vm10, %v2428_v40, %v2427_v23  ;;  %v2249_v41 = vsel %vm13002_vm9, %v2248_v55, %v2247_v57  ;;  %v2252_v20 = vperm.slane %v929_v63, %v8402_v25  ;;  %v2255_v30 = vperm.slane %v931_v58, %v8199_v22  ;;  %v13005_v40 = vld [vmem:[#allocation17_spill] sm:$0xff]  ;;  %v13007_v55 = vld [vmem:[#allocation19_spill] sm:$0xff] }
 0x1d6   :  { %v696_v56 = vpop.xlane.xlu1 %695  ;;  %v693_v3 = vpop.xlane.xlu0 %692  ;;  %2631 = vmatpush.msra.mxu2 %v1576_v13  ;;  %v2251_v1 = vsel %vm12868_vm14, %v2250_v49, %v2249_v41  ;;  %v13003_v13 = vld [vmem:[#allocation16_spill] sm:$0xff]  ;;  %v838_v33 = vsel %vm321_vm0, %v301_v27, 0.0  ;;  %v13008_v63 = vld [vmem:[#allocation81_spill] sm:$0xff]  ;;  %v1427_v27 = vunpack.c.h.bf16 %v13009_v15  ;;  %v1264_v15 = vld [vmem:[%s12829_s5 + $0x570] sm:$0xff] }
 0x1d7   :  { %v1022_v9 = vmul.f32 0.03125, %v696_v56  ;;  %v1021_v17 = vmul.f32 0.03125, %v693_v3  ;;  %v699_v53 = vpop.xlane.xlu2 %698  ;;  %v932_v26 = vmul.f32 0.03125, %v13003_v13  ;;  %v1445_v56 = vunpack.c.h.bf16 %v13004_v16 }
 0x1d8   :  { %v1023_v12 = vmul.f32 0.03125, %v699_v53  ;;  %2632 = vmatpush.msra.mxu2 %v1570_v39  ;;  %v2254_v39 = vperm.slane %v930_v36, %v8186_v4  ;;  %v13006_v53 = vld [vmem:[#allocation76_spill] sm:$0xff]  ;;  %v1433_v49 = vunpack.c.h.bf16 %v13008_v63  ;;  %v306_v63 = vld [vmem:[%s12824_s0 + $0x588] sm:$0xff] }
 0x1d9   :  { %v2430_v19 = vperm.slane %v1021_v17, %v8335_v32  ;;  %v2432_v61 = vperm.slane %v1022_v9, %v8342_v37  ;;  %v933_v9 = vmul.f32 0.03125, %v13005_v40  ;;  %v1439_v23 = vunpack.c.h.bf16 %v13006_v53  ;;  %v305_v36 = vld [vmem:[%s12824_s0 + $0x580] sm:$0xff] }
 0x1da   :  { %2697 = vmatpush.msrb.mxu2 %v1469_v6  ;;  %v2434_v35 = vperm.slane %v1023_v12, %v8375_v2  ;;  %v2256_v57 = vsel %vm2165_vm1, %v2255_v30, %v2254_v39  ;;  %v1279_v12 = vld [vmem:[%s12829_s5 + $0x5e8] sm:$0xff]  ;;  %v1273_v30 = vld [vmem:[%s12829_s5 + $0x5b8] sm:$0xff]  ;;  %v1270_v40 = vld [vmem:[%s12829_s5 + $0x5a0] sm:$0xff] }
 0x1db   :  { %827 = vadd.xlane.f32.xlu0 %v826_v28  ;;  %830 = vadd.xlane.f32.xlu1 %v829_v10  ;;  %v2431_v21 = vsel %vm2205_vm11, %v2430_v19, %v2429_v43  ;;  %v2253_v28 = vsel %vm12867_vm15, %v2252_v20, %v2251_v1  ;;  %v2257_v10 = vperm.slane %v932_v26, %v8224_v7  ;;  %v934_v19 = vmul.f32 0.03125, %v13007_v55  ;;  %v303_v43 = vld [vmem:[%s12824_s0 + $0x570] sm:$0xff]  ;;  %v1267_v55 = vld [vmem:[%s12829_s5 + $0x588] sm:$0xff] }
 0x1dc   :  { %833 = vadd.xlane.f32.xlu2 %v832_v29  ;;  %2698 = vmatpush.msrb.mxu2 %v1463_v46  ;;  %v2433_v42 = vsel %vm12869_vm12, %v2432_v61, %v2431_v21  ;;  %v304_v61 = vld [vmem:[%s12824_s0 + $0x578] sm:$0xff]  ;;  %v1756_v58 = vunpack.c.l.bf16 %v1279_v12  ;;  %v2259_v21 = vperm.slane %v933_v9, %v8232_v14  ;;  %v1276_v20 = vld [vmem:[%s12829_s5 + $0x5d0] sm:$0xff]  ;;  %v844_v26 = vsel %vm321_vm0, %v303_v43, 0.0 }
 0x1dd   :  { %v2435_v17 = vsel %vm13002_vm9, %v2434_v35, %v2433_v42  ;;  %v2258_v1 = vsel %vm12871_vm2, %v2257_v10, %v2256_v57  ;;  %v13010_v35 = vld [vmem:[#allocation18_spill] sm:$0xff]  ;;  %v2261_v13 = vperm.slane %v934_v19, %v8251_v44  ;;  %v847_v42 = vsel %vm321_vm0, %v304_v61, 0.0 }
 0x1de   :  { %v705_v54 = vpop.xlane.xlu1 %704  ;;  %v702_v51 = vpop.xlane.xlu0 %701  ;;  %2699 = vmatpush.msrb.mxu2 %v1457_v5  ;;  %2637 = vmatpush.msra.mxu3 %v1756_v58  ;;  %v1744_v16 = vunpack.c.l.bf16 %v1273_v30  ;;  %v2260_v9 = vsel %vm12870_vm3, %v2259_v21, %v2258_v1  ;;  %v1738_v53 = vunpack.c.l.bf16 %v1270_v40  ;;  %v308_v21 = vld [vmem:[%s12824_s0 + $0x598] sm:$0xff]  ;;  %v1258_v40 = vld [vmem:[%s12829_s5 + $0x540] sm:$0xff]  ;;  %vm13017_vm9 = vcmask 654912  }
 0x1df   :  { %v1025_v18 = vmul.f32 0.03125, %v705_v54  ;;  %v1024_v0 = vmul.f32 0.03125, %v702_v51  ;;  %v708_v38 = vpop.xlane.xlu2 %707  ;;  %v935_v54 = vmul.f32 0.03125, %v13010_v35 }
 0x1e0   :  { %2700 = vmatpush.msrb.mxu2 %v1451_v48  ;;  %v1750_v48 = vunpack.c.l.bf16 %v1276_v20  ;;  %v13013_v20 = vld [vmem:[#allocation21_spill] sm:$0xff] }
 0x1e1   :  { %v2438_v3 = vperm.slane %v1025_v18, %v8402_v25  ;;  %v2436_v24 = vperm.slane %v1024_v0, %v8383_v47  ;;  %v7017_v18 = vld [vmem:[%s12829_s5 + $0xa8] sm:$0xff]  ;;  %v938_v1 = vmul.f32 0.03125, %v13013_v20 }
 0x1e2   :  { %2701 = vmatpush.msrb.mxu2 %v1445_v56  ;;  %v1421_v0 = vunpack.c.h.bf16 %v7017_v18  ;;  %2638 = vmatpush.msra.mxu3 %v1750_v48  ;;  %v13011_v56 = vld [vmem:[#allocation20_spill] sm:$0xff]  ;;  %v853_v48 = vsel %vm321_vm0, %v306_v63, 0.0  ;;  %v310_v63 = vld [vmem:[%s12824_s0 + $0x5a8] sm:$0xff] }
 0x1e3   :  { %v2437_v6 = vsel %vm12868_vm14, %v2436_v24, %v2435_v17  ;;  %836 = vadd.xlane.f32.xlu0 %v835_v45  ;;  %839 = vadd.xlane.f32.xlu1 %v838_v33  ;;  %v1026_v45 = vmul.f32 0.03125, %v708_v38  ;;  %v850_v33 = vsel %vm321_vm0, %v305_v36, 0.0  ;;  %v2263_v38 = vperm.slane %v935_v54, %v8256_v62  ;;  %v1261_v18 = vld [vmem:[%s12829_s5 + $0x558] sm:$0xff] }
 0x1e4   :  { %v2439_v29 = vsel %vm12867_vm15, %v2438_v3, %v2437_v6  ;;  %842 = vadd.xlane.f32.xlu2 %v841_v60  ;;  %2702 = vmatpush.msrb.mxu2 %v1439_v23  ;;  %v936_v3 = vmul.f32 0.03125, %v13011_v56  ;;  %v7018_v60 = vld [vmem:[%s12829_s5 + $0x90] sm:$0xff]  ;;  %v2262_v23 = vsel %vm2177_vm4, %v2261_v13, %v2260_v9  ;;  %v7019_v6 = vld [vmem:[%s12829_s5 + $0x78] sm:$0xff]  ;;  %v1732_v36 = vunpack.c.l.bf16 %v1267_v55 }
 0x1e5   :  { %v8691_v46 = vsel %vm12866_vm13, %v2439_v29, %v2253_v28  ;;  %v1415_v39 = vunpack.c.h.bf16 %v7018_v60  ;;  %v13012_v28 = vld [vmem:[#allocation22_spill] sm:$0xff]  ;;  %v1409_v57 = vunpack.c.h.bf16 %v7019_v6  ;;  %v2440_v19 = vperm.slane %v1026_v45, %v8186_v4  ;;  %2639 = vmatpush.msra.mxu3 %v1744_v16  ;;  %v13014_v16 = vld [vmem:[#allocation23_spill] sm:$0xff]  ;;  %v309_v6 = vld [vmem:[%s12824_s0 + $0x5a0] sm:$0xff] }
 0x1e6   :  { %v714_v5 = vpop.xlane.xlu1 %713  ;;  %2613 = vmatmul.f32.vlgmr.msra.gmra.mxu1 %v8691_v46  ;;  %v711_v41 = vpop.xlane.xlu0 %710  ;;  %2703 = vmatpush.msrb.mxu2 %v1433_v49  ;;  %v937_v10 = vmul.f32 0.03125, %v13012_v28  ;;  %v307_v49 = vld [vmem:[%s12824_s0 + $0x590] sm:$0xff]  ;;  %v2265_v12 = vperm.slane %v936_v3, %v8269_v31  ;;  %v859_v45 = vsel %vm321_vm0, %v308_v21, 0.0  ;;  %v939_v56 = vmul.f32 0.03125, %v13014_v16 }
 0x1e7   :  { %v1027_v51 = vmul.f32 0.03125, %v711_v41  ;;  %v717_v8 = vpop.xlane.xlu2 %716  ;;  %v1028_v24 = vmul.f32 0.03125, %v714_v5  ;;  %v7020_v5 = vld [vmem:[%s12829_s5 + $0x60] sm:$0xff]  ;;  %2640 = vmatpush.msra.mxu3 %v1738_v53  ;;  %v856_v13 = vsel %vm321_vm0, %v307_v49, 0.0  ;;  %v7022_v60 = vld [vmem:[%s12829_s5 + $0x30] sm:$0xff]  ;;  %v1714_v49 = vunpack.c.l.bf16 %v1258_v40 }
 0x1e8   :  { %2704 = vmatpush.msrb.mxu2 %v1427_v27  ;;  %v1029_v29 = vmul.f32 0.03125, %v717_v8  ;;  %v1403_v41 = vunpack.c.h.bf16 %v7020_v5  ;;  %v2264_v27 = vsel %vm2181_vm5, %v2263_v38, %v2262_v23  ;;  %v2267_v8 = vperm.slane %v937_v10, %v8289_v34  ;;  %v1246_v40 = vld [vmem:[%s12829_s5 + $0x4e0] sm:$0xff] }
 0x1e9   :  { %v2441_v17 = vperm.slane %v1027_v51, %v8199_v22  ;;  %v2443_v43 = vperm.slane %v1028_v24, %v8224_v7  ;;  %2641 = vmatpush.msra.mxu3 %v1732_v36  ;;  %v2266_v9 = vsel %vm2185_vm6, %v2265_v12, %v2264_v27  ;;  %v2269_v38 = vperm.slane %v938_v1, %v8299_v11  ;;  %v1255_v12 = vld [vmem:[%s12829_s5 + $0x528] sm:$0xff]  ;;  %v311_v36 = vld [vmem:[%s12824_s0 + $0x5b0] sm:$0xff] }
 0x1ea   :  { %2705 = vmatpush.msrb.mxu2 %v1421_v0  ;;  %v2445_v0 = vperm.slane %v1029_v29, %v8232_v14  ;;  %v1720_v23 = vunpack.c.l.bf16 %v1261_v18  ;;  %v2268_v28 = vsel %vm2189_vm7, %v2267_v8, %v2266_v9  ;;  %v1252_v8 = vld [vmem:[%s12829_s5 + $0x510] sm:$0xff] }
 0x1eb   :  { %845 = vadd.xlane.f32.xlu0 %v844_v26  ;;  %848 = vadd.xlane.f32.xlu1 %v847_v42  ;;  %v2442_v35 = vsel %vm2165_vm1, %v2441_v17, %v2440_v19  ;;  %v7021_v26 = vld [vmem:[%s12829_s5 + $0x48] sm:$0xff]  ;;  %v2270_v20 = vsel %vm2193_vm8, %v2269_v38, %v2268_v28 }
 0x1ec   :  { %851 = vadd.xlane.f32.xlu2 %v850_v33  ;;  %2706 = vmatpush.msrb.mxu2 %v1415_v39  ;;  %v1397_v42 = vunpack.c.h.bf16 %v7021_v26  ;;  %v1726_v33 = vunpack.c.l.bf16 %v1264_v15  ;;  %v2444_v3 = vsel %vm12871_vm2, %v2443_v43, %v2442_v35  ;;  %v1391_v39 = vunpack.c.h.bf16 %v7022_v60  ;;  %v13015_v17 = vld [vmem:[#allocation25_spill] sm:$0xff] }
 0x1ed   :  { %v940_v53 = vmul.f32 0.03125, %v13015_v17  ;;  %v2446_v19 = vsel %vm12870_vm3, %v2445_v0, %v2444_v3  ;;  %v2271_v43 = vperm.slane %v939_v56, %v8302_v50  ;;  %v7024_v15 = vld [vmem:[%s12829_s5] sm:$0xff]  ;;  %v865_v26 = vsel %vm321_vm0, %v310_v63, 0.0  ;;  %v13018_v56 = vld [vmem:[#allocation26_spill] sm:$0xff] }
 0x1ee   :  { %v723_v61 = vpop.xlane.xlu1 %722  ;;  %v720_v58 = vpop.xlane.xlu0 %719  ;;  %2707 = vmatpush.msrb.mxu2 %v1409_v57  ;;  %v7023_v57 = vld [vmem:[%s12829_s5 + $0x18] sm:$0xff]  ;;  %2642 = vmatpush.msra.mxu3 %v1726_v33  ;;  %v1379_v27 = vunpack.c.h.bf16 %v7024_v15  ;;  %v942_v3 = vmul.f32 0.03125, %v13018_v56 }
 0x1ef   :  { %v1030_v54 = vmul.f32 0.03125, %v720_v58  ;;  %v726_v51 = vpop.xlane.xlu2 %725  ;;  %v1031_v30 = vmul.f32 0.03125, %v723_v61  ;;  %v1385_v55 = vunpack.c.h.bf16 %v7023_v57  ;;  %v13016_v61 = vld [vmem:[#allocation24_spill] sm:$0xff]  ;;  %v2273_v1 = vperm.slane %v940_v53, %v8324_v59  ;;  %v1243_v57 = vld [vmem:[%s12829_s5 + $0x4c8] sm:$0xff] }
 0x1f0   :  { %2708 = vmatpush.msrb.mxu2 %v1403_v41  ;;  %v1032_v10 = vmul.f32 0.03125, %v726_v51  ;;  %v941_v58 = vmul.f32 0.03125, %v13016_v61  ;;  %v862_v51 = vsel %vm321_vm0, %v309_v6, 0.0  ;;  %2643 = vmatpush.msra.mxu3 %v1720_v23  ;;  %v2272_v33 = vsel %vm13017_vm9, %v2271_v43, %v2270_v20  ;;  %v13019_v53 = vld [vmem:[#allocation28_spill] sm:$0xff]  ;;  %v13020_v43 = vld [vmem:[#allocation27_spill] sm:$0xff] }
 0x1f1   :  { %v2447_v24 = vperm.slane %v1030_v54, %v8251_v44  ;;  %v2449_v29 = vperm.slane %v1031_v30, %v8256_v62  ;;  %v868_v30 = vsel %vm321_vm0, %v311_v36, 0.0  ;;  %v2274_v60 = vsel %vm2201_vm10, %v2273_v1, %v2272_v33  ;;  %v313_v6 = vld [vmem:[%s12824_s0 + $0x5c0] sm:$0xff]  ;;  %v1240_v36 = vld [vmem:[%s12829_s5 + $0x4b0] sm:$0xff] }
 0x1f2   :  { %2709 = vmatpush.msrb.mxu2 %v1397_v42  ;;  %v1708_v42 = vunpack.c.l.bf16 %v1255_v12  ;;  %2644 = vmatpush.msra.mxu3 %v1714_v49  ;;  %v2275_v16 = vperm.slane %v941_v58, %v8335_v32  ;;  %v943_v23 = vmul.f32 0.03125, %v13019_v53  ;;  %v314_v49 = vld [vmem:[%s12824_s0 + $0x5c8] sm:$0xff]  ;;  %v1690_v12 = vunpack.c.l.bf16 %v1246_v40 }
 0x1f3   :  { %854 = vadd.xlane.f32.xlu0 %v853_v48  ;;  %857 = vadd.xlane.f32.xlu1 %v856_v13  ;;  %v2448_v21 = vsel %vm2177_vm4, %v2447_v24, %v2446_v19  ;;  %v2451_v48 = vperm.slane %v1032_v10, %v8269_v31  ;;  %v1702_v24 = vunpack.c.l.bf16 %v1252_v8  ;;  %v312_v10 = vld [vmem:[%s12824_s0 + $0x5b8] sm:$0xff]  ;;  %v2277_v19 = vperm.slane %v942_v3, %v8342_v37 }
 0x1f4   :  { %860 = vadd.xlane.f32.xlu2 %v859_v45  ;;  %2710 = vmatpush.msrb.mxu2 %v1391_v39  ;;  %v2450_v18 = vsel %vm2181_vm5, %v2449_v29, %v2448_v21  ;;  %v1249_v45 = vld [vmem:[%s12829_s5 + $0x4f8] sm:$0xff]  ;;  %v944_v61 = vmul.f32 0.03125, %v13020_v43  ;;  %v874_v20 = vsel %vm321_vm0, %v313_v6, 0.0  ;;  %v1684_v1 = vunpack.c.l.bf16 %v1243_v57  ;;  %v317_v6 = vld [vmem:[%s12824_s0 + $0x5e0] sm:$0xff]  ;;  %v8900_v43 = vld [vmem:[%s12829_s5 + $0x750] sm:$0xff] }
 0x1f5   :  { %v2452_v9 = vsel %vm2185_vm6, %v2451_v48, %v2450_v18  ;;  %2645 = vmatpush.msra.mxu3 %v1708_v42  ;;  %v1696_v17 = vunpack.c.l.bf16 %v1249_v45  ;;  %v877_v48 = vsel %vm321_vm0, %v314_v49, 0.0  ;;  %v1678_v42 = vunpack.c.l.bf16 %v1240_v36 }
 0x1f6   :  { %v732_v5 = vpop.xlane.xlu1 %731  ;;  %v729_v41 = vpop.xlane.xlu0 %728  ;;  %2711 = vmatpush.msrb.mxu2 %v1385_v55  ;;  %v2276_v55 = vsel %vm2205_vm11, %v2275_v16, %v2274_v60  ;;  %v315_v16 = vld [vmem:[%s12824_s0 + $0x5d0] sm:$0xff]  ;;  %v2281_v3 = vperm.slane %v944_v61, %v8383_v47 }
 0x1f7   :  { %v1033_v35 = vmul.f32 0.03125, %v729_v41  ;;  %v735_v54 = vpop.xlane.xlu2 %734  ;;  %v1034_v13 = vmul.f32 0.03125, %v732_v5  ;;  %2646 = vmatpush.msra.mxu3 %v1702_v24  ;;  %v2278_v45 = vsel %vm12869_vm12, %v2277_v19, %v2276_v55 }
 0x1f8   :  { %2712 = vmatpush.msrb.mxu2 %v1379_v27  ;;  %v1035_v39 = vmul.f32 0.03125, %v735_v54  ;;  %v871_v27 = vsel %vm321_vm0, %v312_v10, 0.0  ;;  %v13021_v54 = vld [vmem:[#allocation29_spill] sm:$0xff] }
 0x1f9   :  { %v2453_v0 = vperm.slane %v1033_v35, %v8289_v34  ;;  %v2455_v38 = vperm.slane %v1034_v13, %v8299_v11  ;;  %2647 = vmatpush.msra.mxu3 %v1696_v17  ;;  %v2279_v35 = vperm.slane %v943_v23, %v8375_v2  ;;  %v1237_v13 = vld [vmem:[%s12829_s5 + $0x498] sm:$0xff] }
 0x1fa   :  { %v2457_v58 = vperm.slane %v1035_v39, %v8302_v50  ;;  %v1672_v56 = vunpack.c.l.bf16 %v1237_v13  ;;  %v13023_v39 = vld [vmem:[#allocation30_spill] sm:$0xff]  ;;  %v13024_v17 = vld [vmem:[#allocation31_spill] sm:$0xff] }
 0x1fb   :  { %863 = vadd.xlane.f32.xlu0 %v862_v51  ;;  %866 = vadd.xlane.f32.xlu1 %v865_v26  ;;  %v2454_v28 = vsel %vm2189_vm7, %v2453_v0, %v2452_v9  ;;  %v8855_v51 = vmul.f32 0.03125, %v13021_v54  ;;  %v8877_v40 = vmul.f32 0.03125, %v13023_v39  ;;  %v316_v9 = vld [vmem:[%s12824_s0 + $0x5d8] sm:$0xff]  ;;  %v8888_v53 = vmul.f32 0.03125, %v13024_v17  ;;  %v13026_v39 = vld [vmem:[#allocation34_spill] sm:$0xff] }
 0x1fc   :  { %869 = vadd.xlane.f32.xlu2 %v868_v30  ;;  %v2456_v15 = vsel %vm2193_vm8, %v2455_v38, %v2454_v28  ;;  %2648 = vmatpush.msra.mxu3 %v1690_v12  ;;  %v1234_v30 = vld [vmem:[%s12829_s5 + $0x480] sm:$0xff]  ;;  %v8885_v38 = vld [vmem:[%s12829_s5 + $0x768] sm:$0xff]  ;;  %v880_v12 = vsel %vm321_vm0, %v315_v16, 0.0  ;;  %v7027_v16 = vld [vmem:[%s12829_s5 + $0x2b8] sm:$0xff] }
 0x1fd   :  { %v2458_v18 = vsel %vm13017_vm9, %v2457_v58, %v2456_v15  ;;  %vm13022_vm9 = vcmask 917312   ;;  %v2283_v60 = vperm.slane %v8855_v51, %v8402_v25  ;;  %v1666_v57 = vunpack.c.l.bf16 %v1234_v30  ;;  %v7026_v51 = vld [vmem:[%s12829_s5 + $0x2d0] sm:$0xff]  ;;  %v8931_v30 = vld [vmem:[%s12829_s5 + $0x720] sm:$0xff]  ;;  %v318_v17 = vld [vmem:[%s12824_s0 + $0x5e8] sm:$0xff] }
 0x1fe   :  { %v741_v29 = vpop.xlane.xlu1 %740  ;;  %v738_v63 = vpop.xlane.xlu0 %737  ;;  %2649 = vmatpush.msra.mxu3 %v1684_v1  ;;  %v2280_v24 = vsel %vm13022_vm9, %v2279_v35, %v2278_v45  ;;  %v1852_v55 = vunpack.c.l.bf16 %v8885_v38  ;;  %v883_v58 = vsel %vm321_vm0, %v316_v9, 0.0  ;;  %v8914_v1 = vld [vmem:[%s12829_s5 + $0x738] sm:$0xff]  ;;  %v2286_v13 = vperm.slane %v8877_v40, %v8199_v22 }
 0x1ff   :  { %v1037_v21 = vmul.f32 0.03125, %v741_v29  ;;  %v1036_v5 = vmul.f32 0.03125, %v738_v63  ;;  %v744_v41 = vpop.xlane.xlu2 %743  ;;  %v2282_v36 = vsel %vm12868_vm14, %v2281_v3, %v2280_v24  ;;  %v1834_v3 = vunpack.c.l.bf16 %v8931_v30 }
 0x200   :  { %v1038_v26 = vmul.f32 0.03125, %v744_v41  ;;  %2650 = vmatpush.msra.mxu3 %v1678_v42  ;;  %2657 = vmatpush.msrb.mxu0 %v1852_v55  ;;  %v1846_v41 = vunpack.c.l.bf16 %v8900_v43  ;;  %v13025_v42 = vld [vmem:[#allocation32_spill] sm:$0xff]  ;;  %v2284_v24 = vsel %vm12867_vm15, %v2283_v60, %v2282_v36  ;;  %v949_v40 = vmul.f32 0.03125, %v13026_v39  ;;  %v9009_v39 = vld [vmem:[%s12829_s5 + $0x6a8] sm:$0xff] }
 0x201   :  { %v2459_v8 = vperm.slane %v1036_v5, %v8324_v59  ;;  %v2461_v0 = vperm.slane %v1037_v21, %v8335_v32  ;;  %v7025_v21 = vld [vmem:[%s12829_s5 + $0x2e8] sm:$0xff] }
 0x202   :  { %v2463_v23 = vperm.slane %v1038_v26, %v8342_v37  ;;  %2651 = vmatpush.msra.mxu3 %v1672_v56  ;;  %v1565_v5 = vunpack.c.h.bf16 %v7025_v21  ;;  %2658 = vmatpush.msrb.mxu0 %v1846_v41  ;;  %v2285_v26 = vperm.slane %v8888_v53, %v8186_v4  ;;  %v1553_v56 = vunpack.c.h.bf16 %v7027_v16  ;;  %v8951_v53 = vld [vmem:[%s12829_s5 + $0x708] sm:$0xff] }
 0x203   :  { %872 = vadd.xlane.f32.xlu0 %v871_v27  ;;  %875 = vadd.xlane.f32.xlu1 %v874_v20  ;;  %v2460_v33 = vsel %vm2201_vm10, %v2459_v8, %v2458_v18  ;;  %v886_v20 = vsel %vm321_vm0, %v317_v6, 0.0  ;;  %v1559_v8 = vunpack.c.h.bf16 %v7026_v51  ;;  %v948_v18 = vmul.f32 0.03125, %v13025_v42  ;;  %v8995_v42 = vld [vmem:[%s12829_s5 + $0x6c0] sm:$0xff] }
 0x204   :  { %878 = vadd.xlane.f32.xlu2 %v877_v48  ;;  %v2462_v19 = vsel %vm2205_vm11, %v2461_v0, %v2460_v33  ;;  %2652 = vmatpush.msra.mxu3 %v1666_v57  ;;  %v1840_v48 = vunpack.c.l.bf16 %v8914_v1  ;;  %v1853_v33 = vunpack.c.h.bf16 %v8885_v38  ;;  %v319_v38 = vld [vmem:[%s12824_s0 + $0x5f0] sm:$0xff]  ;;  %v1847_v6 = vunpack.c.h.bf16 %v8900_v43  ;;  %v7028_v57 = vld [vmem:[%s12829_s5 + $0x2a0] sm:$0xff] }
 0x205   :  { %v2464_v35 = vsel %vm12869_vm12, %v2463_v23, %v2462_v19  ;;  %v1547_v55 = vunpack.c.h.bf16 %v7028_v57  ;;  %v1828_v19 = vunpack.c.l.bf16 %v8951_v53  ;;  %v13027_v43 = vld [vmem:[#allocation33_spill] sm:$0xff]  ;;  %v892_v21 = vsel %vm321_vm0, %v319_v38, 0.0 }
 0x206   :  { %v750_v28 = vpop.xlane.xlu1 %749  ;;  %v747_v10 = vpop.xlane.xlu0 %746  ;;  %2717 = vmatpush.msrb.mxu3 %v1565_v5  ;;  %2659 = vmatpush.msrb.mxu0 %v1840_v48  ;;  %v1841_v5 = vunpack.c.h.bf16 %v8914_v1  ;;  %v2290_v41 = vperm.slane %v949_v40, %v8232_v14  ;;  %v1835_v1 = vunpack.c.h.bf16 %v8931_v30  ;;  %v1829_v30 = vunpack.c.h.bf16 %v8951_v53  ;;  %v13029_v16 = vld [vmem:[#allocation37_spill] sm:$0xff] }
 0x207   :  { %v1040_v29 = vmul.f32 0.03125, %v750_v28  ;;  %v1039_v63 = vmul.f32 0.03125, %v747_v10  ;;  %v753_v49 = vpop.xlane.xlu2 %752  ;;  %v320_v10 = vld [vmem:[%s12824_s0 + $0x5f8] sm:$0xff]  ;;  %s7302_s0 = smov 192  }
 0x208   :  { %v1041_v61 = vmul.f32 0.03125, %v753_v49  ;;  %2718 = vmatpush.msrb.mxu3 %v1559_v8  ;;  %2660 = vmatpush.msrb.mxu0 %v1834_v3  ;;  %v895_v36 = vsel %vm321_vm0, %v320_v10, 0.0  ;;  %v7031_v3 = vld [vmem:[%s12829_s5 + $0x258] sm:$0xff] }
 0x209   :  { %v2467_v15 = vperm.slane %v1040_v29, %v8383_v47  ;;  %v2465_v27 = vperm.slane %v1039_v63, %v8375_v2  ;;  %v2287_v29 = vsel %vm2165_vm1, %v2286_v13, %v2285_v26  ;;  %v2288_v63 = vperm.slane %v948_v18, %v8224_v7  ;;  %v7030_v13 = vld [vmem:[%s12829_s5 + $0x270] sm:$0xff] }
 0x20a   :  { %v2469_v54 = vperm.slane %v1041_v61, %v8402_v25  ;;  %v950_v61 = vmul.f32 0.03125, %v13027_v43  ;;  %2719 = vmatpush.msrb.mxu3 %v1553_v56  ;;  %2661 = vmatpush.msrb.mxu0 %v1828_v19  ;;  %v1535_v26 = vunpack.c.h.bf16 %v7030_v13  ;;  %v952_v56 = vmul.f32 0.03125, %v13029_v16 }
 0x20b   :  { %v2466_v0 = vsel %vm13022_vm9, %v2465_v27, %v2464_v35  ;;  %881 = vadd.xlane.f32.xlu0 %v880_v12  ;;  %884 = vadd.xlane.f32.xlu1 %v883_v58  ;;  %v8970_v12 = vld [vmem:[%s12829_s5 + $0x6f0] sm:$0xff]  ;;  %v889_v58 = vsel %vm321_vm0, %v318_v17, 0.0  ;;  %v8985_v35 = vld [vmem:[%s12829_s5 + $0x6d8] sm:$0xff]  ;;  %v2289_v18 = vsel %vm12871_vm2, %v2288_v63, %v2287_v29  ;;  %vm13035_vm0 = vcmask 654912  }
 0x20c   :  { %v2468_v45 = vsel %vm12868_vm14, %v2467_v15, %v2466_v0  ;;  %887 = vadd.xlane.f32.xlu2 %v886_v20  ;;  %v7029_v15 = vld [vmem:[%s12829_s5 + $0x288] sm:$0xff]  ;;  %v1822_v20 = vunpack.c.l.bf16 %v8970_v12  ;;  %2720 = vmatpush.msrb.mxu3 %v1547_v55  ;;  %v2292_v0 = vperm.slane %v950_v61, %v8251_v44  ;;  %v1823_v53 = vunpack.c.h.bf16 %v8970_v12  ;;  %v7032_v55 = vld [vmem:[%s12829_s5 + $0x240] sm:$0xff]  ;;  %v9023_v29 = vld [vmem:[%s12829_s5 + $0x690] sm:$0xff] }
 0x20d   :  { %v2470_v9 = vsel %vm12867_vm15, %v2469_v54, %v2468_v45  ;;  %v1541_v27 = vunpack.c.h.bf16 %v7029_v15  ;;  %v13028_v54 = vld [vmem:[#allocation35_spill] sm:$0xff]  ;;  %v1816_v45 = vunpack.c.l.bf16 %v8985_v35  ;;  %v1523_v19 = vunpack.c.h.bf16 %v7032_v55  ;;  %vm13039_vm9 = vmmov %vm13035_vm0 }
 0x20e   :  { %v759_v23 = vpop.xlane.xlu1 %758  ;;  %v756_v60 = vpop.xlane.xlu0 %755  ;;  %v8954_v28 = vsel %vm12866_vm13, %v2470_v9, %v2284_v24  ;;  %v951_v51 = vmul.f32 0.03125, %v13028_v54  ;;  %2662 = vmatpush.msrb.mxu0 %v1822_v20  ;;  %v1529_v24 = vunpack.c.h.bf16 %v7031_v3  ;;  %v1817_v43 = vunpack.c.h.bf16 %v8985_v35  ;;  %v9077_v55 = vld [vmem:[%s12829_s5 + $0x630] sm:$0xff] }
 0x20f   :  { %v762_v49 = vpop.xlane.xlu2 %761  ;;  %2633 = vmatmul.f32.vlgmr.msra.gmra.mxu2 %v8954_v28  ;;  %v1043_v8 = vmul.f32 0.03125, %v759_v23  ;;  %v1042_v48 = vmul.f32 0.03125, %v756_v60  ;;  %2721 = vmatpush.msrb.mxu3 %v1541_v27  ;;  %v1810_v23 = vunpack.c.l.bf16 %v8995_v42  ;;  %v1804_v61 = vunpack.c.l.bf16 %v9009_v39 }
 0x210   :  { %2777 = vmatpush.msra.mxu2 %v1853_v33  ;;  %v2291_v33 = vsel %vm12870_vm3, %v2290_v41, %v2289_v18  ;;  %v2294_v40 = vperm.slane %v951_v51, %v8256_v62  ;;  %v1044_v9 = vmul.f32 0.03125, %v762_v49  ;;  %v13030_v49 = vld [vmem:[#allocation36_spill] sm:$0xff]  ;;  %2663 = vmatpush.msrb.mxu0 %v1816_v45  ;;  %v1811_v27 = vunpack.c.h.bf16 %v8995_v42 }
 0x211   :  { %v2472_v60 = vperm.slane %v1043_v8, %v8199_v22  ;;  %v2471_v10 = vperm.slane %v1042_v48, %v8186_v4  ;;  %2722 = vmatpush.msrb.mxu3 %v1535_v26  ;;  %v2293_v63 = vsel %vm2177_vm4, %v2292_v0, %v2291_v33  ;;  %v953_v12 = vmul.f32 0.03125, %v13030_v49  ;;  %v9036_v41 = vld [vmem:[%s12829_s5 + $0x678] sm:$0xff]  ;;  %v9050_v48 = vld [vmem:[%s12829_s5 + $0x660] sm:$0xff]  ;;  %v13031_v26 = vld [vmem:[#allocation38_spill] sm:$0xff] }
 0x212   :  { %2778 = vmatpush.msra.mxu2 %v1847_v6  ;;  %2664 = vmatpush.msrb.mxu0 %v1810_v23  ;;  %v1798_v20 = vunpack.c.l.bf16 %v9023_v29  ;;  %v2295_v35 = vsel %vm2181_vm5, %v2294_v40, %v2293_v63  ;;  %v954_v42 = vmul.f32 0.03125, %v13031_v26  ;;  %v1805_v18 = vunpack.c.h.bf16 %v9009_v39  ;;  %v7035_v33 = vld [vmem:[%s12829_s5 + $0x1f8] sm:$0xff] }
 0x213   :  { %890 = vadd.xlane.f32.xlu0 %v889_v58  ;;  %893 = vadd.xlane.f32.xlu1 %v892_v21  ;;  %v2296_v58 = vperm.slane %v952_v56, %v8269_v31  ;;  %v7033_v21 = vld [vmem:[%s12829_s5 + $0x228] sm:$0xff]  ;;  %v2473_v54 = vsel %vm2165_vm1, %v2472_v60, %v2471_v10  ;;  %v2298_v13 = vperm.slane %v953_v12, %v8289_v34  ;;  %v1792_v0 = vunpack.c.l.bf16 %v9036_v41  ;;  %v13033_v12 = vld [vmem:[#allocation39_spill] sm:$0xff] }
 0x214   :  { %896 = vadd.xlane.f32.xlu2 %v895_v36  ;;  %2779 = vmatpush.msra.mxu2 %v1841_v5  ;;  %v1517_v5 = vunpack.c.h.bf16 %v7033_v21  ;;  %v2474_v36 = vperm.slane %v1044_v9, %v8224_v7  ;;  %v1505_v16 = vunpack.c.h.bf16 %v7035_v33  ;;  %v9063_v56 = vld [vmem:[%s12829_s5 + $0x648] sm:$0xff]  ;;  %v1799_v9 = vunpack.c.h.bf16 %v9023_v29 }
 0x215   :  { %2723 = vmatpush.msrb.mxu3 %v1529_v24  ;;  %2665 = vmatpush.msrb.mxu0 %v1804_v61  ;;  %v2300_v29 = vperm.slane %v954_v42, %v8299_v11  ;;  %v1793_v63 = vunpack.c.h.bf16 %v9036_v41  ;;  %v1780_v49 = vunpack.c.l.bf16 %v9063_v56  ;;  %v7037_v21 = vld [vmem:[%s12829_s5 + $0x1c8] sm:$0xff] }
 0x216   :  { %v765_v17 = vpop.xlane.xlu0 %764  ;;  %v768_v38 = vpop.xlane.xlu1 %767  ;;  %2780 = vmatpush.msra.mxu2 %v1835_v1  ;;  %v7034_v1 = vld [vmem:[%s12829_s5 + $0x210] sm:$0xff]  ;;  %v2475_v3 = vsel %vm12871_vm2, %v2474_v36, %v2473_v54  ;;  %v9091_v36 = vld [vmem:[%s12829_s5 + $0x618] sm:$0xff]  ;;  %v13034_v42 = vld [vmem:[#allocation41_spill] sm:$0xff] }
 0x217   :  { %v1045_v6 = vmul.f32 0.03125, %v765_v17  ;;  %v771_v57 = vpop.xlane.xlu2 %770  ;;  %2713 = vmatmul.f32.vlgmr.msrb.gmra.mxu2 %v8488_v52  ;;  %v1046_v15 = vmul.f32 0.03125, %v768_v38  ;;  %2724 = vmatpush.msrb.mxu3 %v1523_v19  ;;  %v1511_v8 = vunpack.c.h.bf16 %v7034_v1  ;;  %v1786_v17 = vunpack.c.l.bf16 %v9050_v48  ;;  %v13032_v38 = vld [vmem:[#allocation40_spill] sm:$0xff]  ;;  %v7038_v54 = vld [vmem:[%s12829_s5 + $0x1b0] sm:$0xff] }
 0x218   :  { %2781 = vmatpush.msra.mxu2 %v1829_v30  ;;  %v2297_v30 = vsel %vm2185_vm6, %v2296_v58, %v2295_v35  ;;  %v1047_v45 = vmul.f32 0.03125, %v771_v57  ;;  %2666 = vmatpush.msrb.mxu0 %v1798_v20  ;;  %v1774_v20 = vunpack.c.l.bf16 %v9077_v55  ;;  %v9104_v1 = vld [vmem:[%s12829_s5 + $0x600] sm:$0xff]  ;;  %v1768_v26 = vunpack.c.l.bf16 %v9091_v36 }
 0x219   :  { %v2476_v51 = vperm.slane %v1045_v6, %v8232_v14  ;;  %2725 = vmatpush.msrb.mxu3 %v1517_v5  ;;  %v2478_v24 = vperm.slane %v1046_v15, %v8251_v44  ;;  %v7036_v6 = vld [vmem:[%s12829_s5 + $0x1e0] sm:$0xff]  ;;  %v2299_v19 = vsel %vm2189_vm7, %v2298_v13, %v2297_v30  ;;  %v1493_v5 = vunpack.c.h.bf16 %v7037_v21 }
 0x21a   :  { %2782 = vmatpush.msra.mxu2 %v1823_v53  ;;  %v955_v53 = vmul.f32 0.03125, %v13032_v38  ;;  %v1499_v57 = vunpack.c.h.bf16 %v7036_v6  ;;  %2667 = vmatpush.msrb.mxu0 %v1792_v0  ;;  %v2480_v61 = vperm.slane %v1047_v45, %v8256_v62  ;;  %v7039_v45 = vld [vmem:[%s12829_s5 + $0x198] sm:$0xff] }
 0x21b   :  { %v2477_v23 = vsel %vm12870_vm3, %v2476_v51, %v2475_v3  ;;  %2726 = vmatpush.msrb.mxu3 %v1511_v8  ;;  %v1487_v51 = vunpack.c.h.bf16 %v7038_v54  ;;  %v2301_v8 = vsel %vm2193_vm8, %v2300_v29, %v2299_v19  ;;  %v1481_v33 = vunpack.c.h.bf16 %v7039_v45  ;;  %v13036_v6 = vld [vmem:[#allocation43_spill] sm:$0xff] }
 0x21c   :  { %2783 = vmatpush.msra.mxu2 %v1817_v43  ;;  %v956_v43 = vmul.f32 0.03125, %v13033_v12  ;;  %v2479_v41 = vsel %vm2177_vm4, %v2478_v24, %v2477_v23  ;;  %2668 = vmatpush.msrb.mxu0 %v1786_v17  ;;  %v2302_v35 = vperm.slane %v955_v53, %v8302_v50  ;;  %v7040_v17 = vld [vmem:[%s12829_s5 + $0x468] sm:$0xff]  ;;  %v1769_v29 = vunpack.c.h.bf16 %v9091_v36  ;;  %v7042_v12 = vld [vmem:[%s12829_s5 + $0x450] sm:$0xff] }
 0x21d   :  { %2727 = vmatpush.msrb.mxu3 %v1505_v16  ;;  %v2481_v0 = vsel %vm2181_vm5, %v2480_v61, %v2479_v41  ;;  %v1661_v38 = vunpack.c.h.bf16 %v7040_v17  ;;  %v13038_v41 = vld [vmem:[#allocation44_spill] sm:$0xff]  ;;  %v9176_v17 = vld [vmem:[%s12829_s5 + $0x8e8] sm:$0xff] }
 0x21e   :  { %v774_v39 = vpop.xlane.xlu0 %773  ;;  %v777_v40 = vpop.xlane.xlu1 %776  ;;  %2784 = vmatpush.msra.mxu2 %v1811_v27  ;;  %v1787_v27 = vunpack.c.h.bf16 %v9050_v48  ;;  %v1781_v48 = vunpack.c.h.bf16 %v9063_v56  ;;  %2669 = vmatpush.msrb.mxu0 %v1780_v49  ;;  %v2304_v16 = vperm.slane %v956_v43, %v8324_v59  ;;  %v1655_v43 = vunpack.c.h.bf16 %v7042_v12  ;;  %v9190_v12 = vld [vmem:[%s12829_s5 + $0x8d0] sm:$0xff] }
 0x21f   :  { %v1048_v60 = vmul.f32 0.03125, %v774_v39  ;;  %v780_v10 = vpop.xlane.xlu2 %779  ;;  %v1049_v58 = vmul.f32 0.03125, %v777_v40  ;;  %2728 = vmatpush.msrb.mxu3 %v1499_v57  ;;  %v1775_v39 = vunpack.c.h.bf16 %v9077_v55  ;;  %v1762_v40 = vunpack.c.l.bf16 %v9104_v1 }
 0x220   :  { %2785 = vmatpush.msra.mxu2 %v1805_v18  ;;  %v1050_v13 = vmul.f32 0.03125, %v780_v10  ;;  %v957_v18 = vmul.f32 0.03125, %v13034_v42  ;;  %2670 = vmatpush.msrb.mxu0 %v1774_v20  ;;  %v958_v57 = vmul.f32 0.03125, %v13036_v6  ;;  %v1229_v20 = vld [vmem:[%s12829_s5 + $0x458] sm:$0xff] }
 0x221   :  { %v2482_v15 = vperm.slane %v1048_v60, %v8269_v31  ;;  %v2484_v30 = vperm.slane %v1049_v58, %v8289_v34  ;;  %2729 = vmatpush.msrb.mxu3 %v1493_v5  ;;  %v7041_v60 = vld [vmem:[%s12829_s5 + $0x180] sm:$0xff]  ;;  %v13037_v5 = vld [vmem:[#allocation42_spill] sm:$0xff]  ;;  %v1656_v45 = vunpack.c.l.bf16 %v1229_v20 }
 0x222   :  { %2786 = vmatpush.msra.mxu2 %v1799_v9  ;;  %v2303_v9 = vsel %vm13035_vm0, %v2302_v35, %v2301_v8  ;;  %v1475_v10 = vunpack.c.h.bf16 %v7041_v60  ;;  %v2486_v55 = vperm.slane %v1050_v13, %v8299_v11  ;;  %2671 = vmatpush.msrb.mxu0 %v1768_v26  ;;  %v2306_v49 = vperm.slane %v957_v18, %v8335_v32  ;;  %v7043_v35 = vld [vmem:[%s12829_s5 + $0x438] sm:$0xff]  ;;  %v1226_v13 = vld [vmem:[%s12829_s5 + $0x440] sm:$0xff] }
 0x223   :  { %v2483_v3 = vsel %vm2185_vm6, %v2482_v15, %v2481_v0  ;;  %2730 = vmatpush.msrb.mxu3 %v1487_v51  ;;  %v2305_v21 = vsel %vm2201_vm10, %v2304_v16, %v2303_v9  ;;  %v9140_v36 = vmul.f32 0.03125, %v13037_v5  ;;  %v9143_v15 = vmul.f32 0.03125, %v13038_v41  ;;  %v7044_v18 = vld [vmem:[%s12829_s5 + $0x420] sm:$0xff]  ;;  %v1223_v9 = vld [vmem:[%s12829_s5 + $0x428] sm:$0xff] }
 0x224   :  { %2787 = vmatpush.msra.mxu2 %v1793_v63  ;;  %v1232_v63 = vld [vmem:[%s12829_s5 + $0x470] sm:$0xff]  ;;  %v2485_v61 = vsel %vm2189_vm7, %v2484_v30, %v2483_v3  ;;  %2672 = vmatpush.msrb.mxu0 %v1762_v40  ;;  %v1649_v54 = vunpack.c.h.bf16 %v7043_v35  ;;  %v2307_v42 = vsel %vm2205_vm11, %v2306_v49, %v2305_v21  ;;  %v1643_v0 = vunpack.c.h.bf16 %v7044_v18  ;;  %v7045_v3 = vld [vmem:[%s12829_s5 + $0x408] sm:$0xff]  ;;  %v7047_v35 = vld [vmem:[%s12829_s5 + $0x3d8] sm:$0xff] }
 0x225   :  { %2731 = vmatpush.msrb.mxu3 %v1481_v33  ;;  %v1662_v8 = vunpack.c.l.bf16 %v1232_v63  ;;  %v2310_v33 = vperm.slane %v9140_v36, %v8375_v2  ;;  %v2312_v16 = vperm.slane %v9143_v15, %v8383_v47  ;;  %v1650_v40 = vunpack.c.l.bf16 %v1226_v13  ;;  %v1220_v49 = vld [vmem:[%s12829_s5 + $0x410] sm:$0xff]  ;;  %v9210_v13 = vld [vmem:[%s12829_s5 + $0x8b8] sm:$0xff] }
 0x226   :  { %v783_v56 = vpop.xlane.xlu0 %782  ;;  %v786_v24 = vpop.xlane.xlu1 %785  ;;  %2788 = vmatpush.msra.mxu2 %v1787_v27  ;;  %v1763_v27 = vunpack.c.h.bf16 %v9104_v1  ;;  %2737 = vmatpush.msra.mxu0 %v1661_v38  ;;  %v2308_v1 = vperm.slane %v958_v57, %v8342_v37  ;;  %v13040_v57 = vld [vmem:[#allocation45_spill] sm:$0xff]  ;;  %v1644_v21 = vunpack.c.l.bf16 %v1223_v9  ;;  %v1942_v5 = vunpack.c.l.bf16 %v9190_v12  ;;  %v13042_v36 = vld [vmem:[#allocation46_spill] sm:$0xff] }
 0x227   :  { %v1051_v53 = vmul.f32 0.03125, %v783_v56  ;;  %v789_v23 = vpop.xlane.xlu2 %788  ;;  %v1052_v19 = vmul.f32 0.03125, %v786_v24  ;;  %2732 = vmatpush.msrb.mxu3 %v1475_v10  ;;  %v1637_v56 = vunpack.c.h.bf16 %v7045_v3  ;;  %v1948_v10 = vunpack.c.l.bf16 %v9176_v17  ;;  %v1214_v3 = vld [vmem:[%s12829_s5 + $0x3e0] sm:$0xff] }
 0x228   :  { %2789 = vmatpush.msra.mxu2 %v1781_v48  ;;  %v1053_v51 = vmul.f32 0.03125, %v789_v23  ;;  %v2487_v48 = vsel %vm2193_vm8, %v2486_v55, %v2485_v61  ;;  %2738 = vmatpush.msra.mxu0 %v1655_v43  ;;  %v2309_v6 = vsel %vm12869_vm12, %v2308_v1, %v2307_v42  ;;  %v962_v55 = vmul.f32 0.03125, %v13040_v57  ;;  %v7046_v43 = vld [vmem:[%s12829_s5 + $0x3f0] sm:$0xff] }
 0x229   :  { %v2488_v58 = vperm.slane %v1051_v53, %v8302_v50  ;;  %v2490_v26 = vperm.slane %v1052_v19, %v8324_v59  ;;  %v13041_v19 = vld [vmem:[#allocation47_spill] sm:$0xff]  ;;  %v1631_v61 = vunpack.c.h.bf16 %v7046_v43  ;;  %v9198_v41 = vmul.f32 0.03125, %v13042_v36  ;;  %2677 = vmatpush.msrb.mxu1 %v1948_v10  ;;  %v13047_v36 = vld [vmem:[#allocation50_spill] sm:$0xff] }
 0x22a   :  { %2790 = vmatpush.msra.mxu2 %v1775_v39  ;;  %v2492_v38 = vperm.slane %v1053_v51, %v8335_v32  ;;  %2739 = vmatpush.msra.mxu0 %v1649_v54  ;;  %v1625_v54 = vunpack.c.h.bf16 %v7047_v35  ;;  %v1936_v42 = vunpack.c.l.bf16 %v9210_v13  ;;  %vm13044_vm0 = vcmask 917312  }
 0x22b   :  { %v2489_v30 = vsel %vm13039_vm9, %v2488_v58, %v2487_v48  ;;  %v2311_v18 = vsel %vm13044_vm0, %v2310_v33, %v2309_v6  ;;  %2678 = vmatpush.msrb.mxu1 %v1942_v5  ;;  %v7048_v33 = vld [vmem:[%s12829_s5 + $0x3c0] sm:$0xff]  ;;  %vm13046_vm9 = vmmov %vm13044_vm0  ;;  %vm13056_vm0 = vcmask 654912  }
 0x22c   :  { %2791 = vmatpush.msra.mxu2 %v1769_v29  ;;  %v963_v29 = vmul.f32 0.03125, %v13041_v19  ;;  %v2491_v63 = vsel %vm2201_vm10, %v2490_v26, %v2489_v30  ;;  %2740 = vmatpush.msra.mxu0 %v1643_v0  ;;  %v1638_v26 = vunpack.c.l.bf16 %v1220_v49  ;;  %v2316_v0 = vperm.slane %v962_v55, %v8186_v4  ;;  %v1211_v19 = vld [vmem:[%s12829_s5 + $0x3c8] sm:$0xff] }
 0x22d   :  { %v2493_v1 = vsel %vm2205_vm11, %v2492_v38, %v2491_v63  ;;  %2679 = vmatpush.msrb.mxu1 %v1936_v42  ;;  %v1205_v42 = vld [vmem:[%s12829_s5 + $0x398] sm:$0xff] }
 0x22e   :  { %v792_v24 = vpop.xlane.xlu0 %791  ;;  %v795_v39 = vpop.xlane.xlu1 %794  ;;  %2792 = vmatpush.msra.mxu2 %v1763_v27  ;;  %v13043_v27 = vld [vmem:[#allocation49_spill] sm:$0xff]  ;;  %2741 = vmatpush.msra.mxu0 %v1637_v56  ;;  %v2317_v30 = vperm.slane %v963_v29, %v8199_v22 }
 0x22f   :  { %v1054_v53 = vmul.f32 0.03125, %v792_v24  ;;  %v798_v23 = vpop.xlane.xlu2 %797  ;;  %v1055_v60 = vmul.f32 0.03125, %v795_v39  ;;  %v964_v20 = vmul.f32 0.03125, %v13043_v27  ;;  %v9225_v56 = vld [vmem:[%s12829_s5 + $0x8a0] sm:$0xff]  ;;  %v9245_v29 = vld [vmem:[%s12829_s5 + $0x888] sm:$0xff]  ;;  %v1208_v27 = vld [vmem:[%s12829_s5 + $0x3b0] sm:$0xff] }
 0x230   :  { %2857 = vmatpush.msrb.mxu2 %v1662_v8  ;;  %v1056_v51 = vmul.f32 0.03125, %v798_v23  ;;  %v1217_v8 = vld [vmem:[%s12829_s5 + $0x3f8] sm:$0xff]  ;;  %2742 = vmatpush.msra.mxu0 %v1631_v61  ;;  %v1930_v38 = vunpack.c.l.bf16 %v9225_v56  ;;  %v1626_v61 = vunpack.c.l.bf16 %v1214_v3  ;;  %v2318_v5 = vsel %vm2165_vm1, %v2317_v30, %v2316_v0 }
 0x231   :  { %v2494_v58 = vperm.slane %v1054_v53, %v8342_v37  ;;  %v2496_v48 = vperm.slane %v1055_v60, %v8375_v2  ;;  %v13045_v24 = vld [vmem:[#allocation48_spill] sm:$0xff]  ;;  %v1632_v9 = vunpack.c.l.bf16 %v1217_v8  ;;  %v2314_v53 = vperm.slane %v9198_v41, %v8402_v25  ;;  %v7049_v60 = vld [vmem:[%s12829_s5 + $0x3a8] sm:$0xff]  ;;  %v7050_v8 = vld [vmem:[%s12829_s5 + $0x390] sm:$0xff] }
 0x232   :  { %2858 = vmatpush.msrb.mxu2 %v1656_v45  ;;  %v965_v39 = vmul.f32 0.03125, %v13045_v24  ;;  %v2319_v23 = vperm.slane %v964_v20, %v8224_v7  ;;  %v1613_v10 = vunpack.c.h.bf16 %v7049_v60  ;;  %v2498_v6 = vperm.slane %v1056_v51, %v8383_v47  ;;  %2743 = vmatpush.msra.mxu0 %v1625_v54  ;;  %v9263_v20 = vld [vmem:[%s12829_s5 + $0x870] sm:$0xff] }
 0x233   :  { %v2495_v45 = vsel %vm12869_vm12, %v2494_v58, %v2493_v1  ;;  %v1924_v58 = vunpack.c.l.bf16 %v9245_v29  ;;  %v9255_v41 = vmul.f32 0.03125, %v13047_v36  ;;  %2680 = vmatpush.msrb.mxu1 %v1930_v38  ;;  %v1918_v54 = vunpack.c.l.bf16 %v9263_v20  ;;  %v1202_v38 = vld [vmem:[%s12829_s5 + $0x380] sm:$0xff] }
 0x234   :  { %2859 = vmatpush.msrb.mxu2 %v1650_v40  ;;  %v1619_v40 = vunpack.c.h.bf16 %v7048_v33  ;;  %v2497_v63 = vsel %vm13046_vm9, %v2496_v48, %v2495_v45  ;;  %v2321_v35 = vperm.slane %v965_v39, %v8232_v14  ;;  %v2320_v51 = vsel %vm12871_vm2, %v2319_v23, %v2318_v5  ;;  %v7051_v39 = vld [vmem:[%s12829_s5 + $0x378] sm:$0xff]  ;;  %v9320_v5 = vld [vmem:[%s12829_s5 + $0x828] sm:$0xff]  ;;  %vm13059_vm9 = vmmov %vm13056_vm0 }
 0x235   :  { %v1607_v1 = vunpack.c.h.bf16 %v7050_v8  ;;  %v2499_v48 = vsel %vm12868_vm14, %v2498_v6, %v2497_v63  ;;  %2681 = vmatpush.msrb.mxu1 %v1924_v58  ;;  %v1614_v45 = vunpack.c.l.bf16 %v1208_v27  ;;  %v1601_v33 = vunpack.c.h.bf16 %v7051_v39  ;;  %v7052_v6 = vld [vmem:[%s12829_s5 + $0x360] sm:$0xff]  ;;  %v13049_v27 = vld [vmem:[#allocation51_spill] sm:$0xff] }
 0x236   :  { %2860 = vmatpush.msrb.mxu2 %v1644_v21  ;;  %v801_v57 = vpop.xlane.xlu0 %800  ;;  %v804_v55 = vpop.xlane.xlu1 %803  ;;  %v2313_v21 = vsel %vm12868_vm14, %v2312_v16, %v2311_v18  ;;  %2744 = vmatpush.msra.mxu0 %v1619_v40  ;;  %v1620_v16 = vunpack.c.l.bf16 %v1211_v19  ;;  %v9280_v18 = vld [vmem:[%s12829_s5 + $0x858] sm:$0xff]  ;;  %v2322_v23 = vsel %vm12870_vm3, %v2321_v35, %v2320_v51  ;;  %v2323_v60 = vperm.slane %v9255_v41, %v8251_v44  ;;  %v1196_v51 = vld [vmem:[%s12829_s5 + $0x350] sm:$0xff] }
 0x237   :  { %v1057_v49 = vmul.f32 0.03125, %v801_v57  ;;  %v807_v43 = vpop.xlane.xlu2 %806  ;;  %v2315_v0 = vsel %vm12867_vm15, %v2314_v53, %v2313_v21  ;;  %v1912_v3 = vunpack.c.l.bf16 %v9280_v18  ;;  %2682 = vmatpush.msrb.mxu1 %v1918_v54  ;;  %v9301_v53 = vld [vmem:[%s12829_s5 + $0x840] sm:$0xff]  ;;  %v1595_v57 = vunpack.c.h.bf16 %v7052_v6  ;;  %v1199_v21 = vld [vmem:[%s12829_s5 + $0x368] sm:$0xff]  ;;  %v9338_v8 = vld [vmem:[%s12829_s5 + $0x810] sm:$0xff] }
 0x238   :  { %2861 = vmatpush.msrb.mxu2 %v1638_v26  ;;  %v1949_v26 = vunpack.c.h.bf16 %v9176_v17  ;;  %2745 = vmatpush.msra.mxu0 %v1613_v10  ;;  %v13048_v17 = vld [vmem:[#allocation52_spill] sm:$0xff]  ;;  %v1608_v10 = vunpack.c.l.bf16 %v1205_v42  ;;  %v9311_v19 = vmul.f32 0.03125, %v807_v43  ;;  %v1058_v63 = vmul.f32 0.03125, %v804_v55 }
 0x239   :  { %v2500_v15 = vperm.slane %v1057_v49, %v8402_v25  ;;  %v9286_v24 = vmul.f32 0.03125, %v13048_v17  ;;  %v1937_v58 = vunpack.c.h.bf16 %v9210_v13  ;;  %v1602_v43 = vunpack.c.l.bf16 %v1202_v38  ;;  %2683 = vmatpush.msrb.mxu1 %v1912_v3  ;;  %v1193_v3 = vld [vmem:[%s12829_s5 + $0x338] sm:$0xff]  ;;  %v1190_v6 = vld [vmem:[%s12829_s5 + $0x320] sm:$0xff] }
 0x23a   :  { %2862 = vmatpush.msrb.mxu2 %v1632_v9  ;;  %v1943_v9 = vunpack.c.h.bf16 %v9190_v12  ;;  %v1906_v12 = vunpack.c.l.bf16 %v9301_v53  ;;  %2746 = vmatpush.msra.mxu0 %v1607_v1  ;;  %v1900_v55 = vunpack.c.l.bf16 %v9320_v5  ;;  %v9324_v35 = vmul.f32 0.03125, %v13049_v27  ;;  %v9354_v17 = vld [vmem:[%s12829_s5 + $0x7f8] sm:$0xff] }
 0x23b   :  { %v2501_v30 = vsel %vm12867_vm15, %v2500_v15, %v2499_v48  ;;  %v2325_v13 = vperm.slane %v9286_v24, %v8256_v62  ;;  %v7053_v15 = vld [vmem:[%s12829_s5 + $0x348] sm:$0xff]  ;;  %v1931_v54 = vunpack.c.h.bf16 %v9225_v56  ;;  %v2324_v1 = vsel %vm2177_vm4, %v2323_v60, %v2322_v23  ;;  %v7054_v48 = vld [vmem:[%s12829_s5 + $0x330] sm:$0xff]  ;;  %v7055_v60 = vld [vmem:[%s12829_s5 + $0x318] sm:$0xff] }
 0x23c   :  { %2863 = vmatpush.msrb.mxu2 %v1626_v61  ;;  %v9292_v40 = vsel %vm12866_vm13, %v2501_v30, %v2315_v0  ;;  %2747 = vmatpush.msra.mxu0 %v1601_v33  ;;  %v1596_v42 = vunpack.c.l.bf16 %v1199_v21  ;;  %v2503_v56 = vperm.slane %v9311_v19, %v8199_v22  ;;  %v2502_v0 = vperm.slane %v1058_v63, %v8186_v4  ;;  %v13050_v24 = vld [vmem:[#allocation53_spill] sm:$0xff] }
 0x23d   :  { %2653 = vmatmul.f32.vlgmr.msra.gmra.mxu3 %v9292_v40  ;;  %2684 = vmatpush.msrb.mxu1 %v1906_v12  ;;  %v9357_v39 = vmul.f32 0.03125, %v13050_v24  ;;  %v2327_v38 = vperm.slane %v9324_v35, %v8269_v31  ;;  %v2326_v23 = vsel %vm2181_vm5, %v2325_v13, %v2324_v1  ;;  %v1919_v12 = vunpack.c.h.bf16 %v9263_v20  ;;  %v7056_v20 = vld [vmem:[%s12829_s5 + $0x300] sm:$0xff]  ;;  %v1187_v35 = vld [vmem:[%s12829_s5 + $0x308] sm:$0xff] }
 0x23e   :  { %2864 = vmatpush.msrb.mxu2 %v1620_v16  ;;  %v810_v49 = vpop.xlane.xlu0 %809  ;;  %v813_v61 = vpop.xlane.xlu1 %812  ;;  %2797 = vmatpush.msra.mxu3 %v1949_v26  ;;  %v1589_v16 = vunpack.c.h.bf16 %v7053_v15  ;;  %v1583_v26 = vunpack.c.h.bf16 %v7054_v48  ;;  %v1571_v21 = vunpack.c.h.bf16 %v7056_v20  ;;  %v1913_v27 = vunpack.c.h.bf16 %v9280_v18  ;;  %v9395_v1 = vld [vmem:[%s12829_s5 + $0x7c8] sm:$0xff] }
 0x23f   :  { %v1060_v36 = vmul.f32 0.03125, %v810_v49  ;;  %v816_v41 = vpop.xlane.xlu2 %815  ;;  %v1061_v30 = vmul.f32 0.03125, %v813_v61  ;;  %2748 = vmatpush.msra.mxu0 %v1595_v57  ;;  %2685 = vmatpush.msrb.mxu1 %v1900_v55  ;;  %v13051_v57 = vld [vmem:[#allocation55_spill] sm:$0xff]  ;;  %v1584_v49 = vunpack.c.l.bf16 %v1193_v3  ;;  %v1888_v61 = vunpack.c.l.bf16 %v9354_v17  ;;  %v13052_v3 = vld [vmem:[#allocation54_spill] sm:$0xff] }
 0x240   :  { %2865 = vmatpush.msrb.mxu2 %v1614_v45  ;;  %2798 = vmatpush.msra.mxu3 %v1943_v9  ;;  %v1925_v45 = vunpack.c.h.bf16 %v9245_v29  ;;  %v1590_v9 = vunpack.c.l.bf16 %v1196_v51  ;;  %v1894_v29 = vunpack.c.l.bf16 %v9338_v8  ;;  %v9372_v19 = vmul.f32 0.03125, %v13051_v57  ;;  %v9428_v57 = vld [vmem:[%s12829_s5 + $0x780] sm:$0xff] }
 0x241   :  { %v2505_v33 = vperm.slane %v1060_v36, %v8224_v7  ;;  %2749 = vmatpush.msra.mxu0 %v1589_v16  ;;  %v1062_v63 = vmul.f32 0.03125, %v816_v41  ;;  %v2504_v36 = vsel %vm2165_vm1, %v2503_v56, %v2502_v0  ;;  %v2507_v41 = vperm.slane %v1061_v30, %v8232_v14 }
 0x242   :  { %2866 = vmatpush.msrb.mxu2 %v1608_v10  ;;  %2799 = vmatpush.msra.mxu3 %v1937_v58  ;;  %v1577_v10 = vunpack.c.h.bf16 %v7055_v60  ;;  %v9379_v58 = vld [vmem:[%s12829_s5 + $0x7e0] sm:$0xff]  ;;  %v2328_v18 = vsel %vm2185_vm6, %v2327_v38, %v2326_v23  ;;  %v2329_v48 = vperm.slane %v9357_v39, %v8289_v34  ;;  %v1572_v0 = vunpack.c.l.bf16 %v1187_v35  ;;  %v9418_v38 = vld [vmem:[%s12829_s5 + $0x798] sm:$0xff] }
 0x243   :  { %2750 = vmatpush.msra.mxu0 %v1583_v26  ;;  %v2506_v13 = vsel %vm12871_vm2, %v2505_v33, %v2504_v36  ;;  %2686 = vmatpush.msrb.mxu1 %v1894_v29  ;;  %v1882_v51 = vunpack.c.l.bf16 %v9379_v58  ;;  %v1907_v26 = vunpack.c.h.bf16 %v9301_v53  ;;  %v1876_v30 = vunpack.c.l.bf16 %v9395_v1 }
 0x244   :  { %2867 = vmatpush.msrb.mxu2 %v1602_v43  ;;  %2800 = vmatpush.msra.mxu3 %v1931_v54  ;;  %v1578_v54 = vunpack.c.l.bf16 %v1190_v6  ;;  %v971_v24 = vmul.f32 0.03125, %v13052_v3  ;;  %v2508_v39 = vsel %vm12870_vm3, %v2507_v41, %v2506_v13  ;;  %v1901_v33 = vunpack.c.h.bf16 %v9320_v5  ;;  %v13054_v41 = vld [vmem:[#allocation58_spill] sm:$0xff] }
 0x245   :  { %2733 = vmatmul.f32.vlgmr.msrb.gmra.mxu3 %v8691_v46  ;;  %2751 = vmatpush.msra.mxu0 %v1577_v10  ;;  %v1895_v60 = vunpack.c.h.bf16 %v9338_v8  ;;  %v2330_v10 = vsel %vm2189_vm7, %v2329_v48, %v2328_v18  ;;  %v1864_v6 = vunpack.c.l.bf16 %v9418_v38  ;;  %v1858_v35 = vunpack.c.l.bf16 %v9428_v57  ;;  %v7057_v13 = vld [vmem:[%s12829_s5 + $0x5e8] sm:$0xff] }
 0x246   :  { %2868 = vmatpush.msrb.mxu2 %v1596_v42  ;;  %v819_v43 = vpop.xlane.xlu0 %818  ;;  %v822_v55 = vpop.xlane.xlu1 %821  ;;  %2801 = vmatpush.msra.mxu3 %v1925_v45  ;;  %v2509_v42 = vperm.slane %v1062_v63, %v8251_v44  ;;  %v9406_v45 = vld [vmem:[%s12829_s5 + $0x7b0] sm:$0xff]  ;;  %v13053_v63 = vld [vmem:[#allocation56_spill] sm:$0xff] }
 0x247   :  { %v1063_v15 = vmul.f32 0.03125, %v819_v43  ;;  %v825_v16 = vpop.xlane.xlu2 %824  ;;  %v1064_v56 = vmul.f32 0.03125, %v822_v55  ;;  %2687 = vmatpush.msrb.mxu1 %v1888_v61  ;;  %2752 = vmatpush.msra.mxu0 %v1571_v21  ;;  %v1870_v29 = vunpack.c.l.bf16 %v9406_v45  ;;  %v1889_v21 = vunpack.c.h.bf16 %v9354_v17 }
 0x248   :  { %2869 = vmatpush.msrb.mxu2 %v1590_v9  ;;  %2802 = vmatpush.msra.mxu3 %v1919_v12  ;;  %v2331_v9 = vperm.slane %v9372_v19, %v8299_v11  ;;  %v1065_v23 = vmul.f32 0.03125, %v825_v16  ;;  %v2510_v5 = vsel %vm2177_vm4, %v2509_v42, %v2508_v39  ;;  %v2333_v19 = vperm.slane %v971_v24, %v8302_v50  ;;  %v7059_v39 = vld [vmem:[%s12829_s5 + $0x5b8] sm:$0xff] }
 0x249   :  { %v2511_v53 = vperm.slane %v1063_v15, %v8256_v62  ;;  %2688 = vmatpush.msrb.mxu1 %v1882_v51  ;;  %v2513_v12 = vperm.slane %v1064_v56, %v8269_v31  ;;  %v973_v43 = vmul.f32 0.03125, %v13054_v41  ;;  %v1757_v15 = vunpack.c.h.bf16 %v7057_v13  ;;  %v7058_v56 = vld [vmem:[%s12829_s5 + $0x5d0] sm:$0xff]  ;;  %v13058_v41 = vld [vmem:[#allocation61_spill] sm:$0xff]  ;;  %v1277_v13 = vld [vmem:[%s12829_s5 + $0x5d8] sm:$0xff] }
 0x24a   :  { %2870 = vmatpush.msrb.mxu2 %v1584_v49  ;;  %2803 = vmatpush.msra.mxu3 %v1913_v27  ;;  %v972_v49 = vmul.f32 0.03125, %v13053_v63  ;;  %v2332_v36 = vsel %vm2193_vm8, %v2331_v9, %v2330_v10  ;;  %v2515_v16 = vperm.slane %v1065_v23, %v8289_v34  ;;  %v1883_v17 = vunpack.c.h.bf16 %v9379_v58 }
 0x24b   :  { %2689 = vmatpush.msrb.mxu1 %v1876_v30  ;;  %v2512_v8 = vsel %vm2181_vm5, %v2511_v53, %v2510_v5  ;;  %v1877_v30 = vunpack.c.h.bf16 %v9395_v1  ;;  %v2334_v3 = vsel %vm13056_vm0, %v2333_v19, %v2332_v36  ;;  %v2337_v58 = vperm.slane %v973_v43, %v8335_v32  ;;  %v13057_v1 = vld [vmem:[#allocation59_spill] sm:$0xff] }
 0x24c   :  { %2871 = vmatpush.msrb.mxu2 %v1578_v54  ;;  %2804 = vmatpush.msra.mxu3 %v1907_v26  ;;  %v2514_v51 = vsel %vm2185_vm6, %v2513_v12, %v2512_v8  ;;  %v2335_v48 = vperm.slane %v972_v49, %v8324_v59  ;;  %v13055_v26 = vld [vmem:[#allocation57_spill] sm:$0xff]  ;;  %v1745_v53 = vunpack.c.h.bf16 %v7059_v39  ;;  %v975_v23 = vmul.f32 0.03125, %v13057_v1  ;;  %v13062_v39 = vld [vmem:[#allocation62_spill] sm:$0xff] }
 0x24d   :  { %2690 = vmatpush.msrb.mxu1 %v1870_v29  ;;  %v974_v42 = vmul.f32 0.03125, %v13055_v26  ;;  %v1871_v29 = vunpack.c.h.bf16 %v9406_v45  ;;  %v7060_v12 = vld [vmem:[%s12829_s5 + $0x5a0] sm:$0xff]  ;;  %v1865_v49 = vunpack.c.h.bf16 %v9418_v38  ;;  %v1280_v45 = vld [vmem:[%s12829_s5 + $0x5f0] sm:$0xff]  ;;  %v976_v43 = vmul.f32 0.03125, %v13058_v41  ;;  %v1271_v1 = vld [vmem:[%s12829_s5 + $0x5a8] sm:$0xff] }
 0x24e   :  { %2872 = vmatpush.msrb.mxu2 %v1572_v0  ;;  %v828_v61 = vpop.xlane.xlu0 %827  ;;  %v831_v20 = vpop.xlane.xlu1 %830  ;;  %2805 = vmatpush.msra.mxu3 %v1901_v33  ;;  %v1751_v0 = vunpack.c.h.bf16 %v7058_v56  ;;  %v2516_v33 = vsel %vm2189_vm7, %v2515_v16, %v2514_v51  ;;  %v2336_v10 = vsel %vm2201_vm10, %v2335_v48, %v2334_v3  ;;  %v13060_v51 = vld [vmem:[#allocation64_spill] sm:$0xff]  ;;  %v7062_v48 = vld [vmem:[%s12829_s5 + $0x570] sm:$0xff]  ;;  %vm13063_vm0 = vcmask 917312  }
 0x24f   :  { %v1066_v55 = vmul.f32 0.03125, %v828_v61  ;;  %v834_v27 = vpop.xlane.xlu2 %833  ;;  %v1067_v54 = vmul.f32 0.03125, %v831_v20  ;;  %2691 = vmatpush.msrb.mxu1 %v1864_v6  ;;  %v2339_v5 = vperm.slane %v974_v42, %v8342_v37  ;;  %v1739_v6 = vunpack.c.h.bf16 %v7060_v12  ;;  %v1274_v42 = vld [vmem:[%s12829_s5 + $0x5c0] sm:$0xff] }
 0x250   :  { %2806 = vmatpush.msra.mxu3 %v1895_v60  ;;  %v1068_v24 = vmul.f32 0.03125, %v834_v27  ;;  %v2338_v8 = vsel %vm2205_vm11, %v2337_v58, %v2336_v10  ;;  %v1727_v26 = vunpack.c.h.bf16 %v7062_v48  ;;  %v13061_v56 = vld [vmem:[#allocation60_spill] sm:$0xff]  ;;  %v1752_v58 = vunpack.c.l.bf16 %v1277_v13  ;;  %v13064_v10 = vld [vmem:[#allocation63_spill] sm:$0xff] }
 0x251   :  { %v2517_v18 = vperm.slane %v1066_v55, %v8299_v11  ;;  %2692 = vmatpush.msrb.mxu1 %v1858_v35  ;;  %v2519_v9 = vperm.slane %v1067_v54, %v8302_v50  ;;  %v7061_v55 = vld [vmem:[%s12829_s5 + $0x588] sm:$0xff]  ;;  %v1859_v35 = vunpack.c.h.bf16 %v9428_v57  ;;  %v1758_v54 = vunpack.c.l.bf16 %v1280_v45  ;;  %v1136_v13 = vld [vmem:[%s12829_s5 + $0x170] sm:$0xff] }
 0x252   :  { %2807 = vmatpush.msra.mxu3 %v1889_v21  ;;  %v2521_v61 = vperm.slane %v1068_v24, %v8324_v59  ;;  %v1733_v27 = vunpack.c.h.bf16 %v7061_v55  ;;  %v2343_v24 = vperm.slane %v976_v43, %v8383_v47  ;;  %v1740_v41 = vunpack.c.l.bf16 %v1271_v1 }
 0x253   :  { %2757 = vmatpush.msra.mxu1 %v1757_v15  ;;  %v2518_v60 = vsel %vm2193_vm8, %v2517_v18, %v2516_v33  ;;  %v2341_v15 = vperm.slane %v975_v23, %v8375_v2  ;;  %v979_v18 = vmul.f32 0.03125, %v13060_v51  ;;  %v7063_v33 = vld [vmem:[%s12829_s5 + $0x558] sm:$0xff] }
 0x254   :  { %2808 = vmatpush.msra.mxu3 %v1883_v17  ;;  %v2520_v38 = vsel %vm13059_vm9, %v2519_v9, %v2518_v60  ;;  %v2340_v17 = vsel %vm12869_vm12, %v2339_v5, %v2338_v8  ;;  %v1721_v9 = vunpack.c.h.bf16 %v7063_v33  ;;  %v1746_v60 = vunpack.c.l.bf16 %v1274_v42  ;;  %v1268_v8 = vld [vmem:[%s12829_s5 + $0x590] sm:$0xff]  ;;  %vm13066_vm9 = vmmov %vm13063_vm0  ;;  %v1133_v42 = vld [vmem:[%s12829_s5 + $0x158] sm:$0xff] }
 0x255   :  { %2758 = vmatpush.msra.mxu1 %v1751_v0  ;;  %v977_v0 = vmul.f32 0.03125, %v13061_v56  ;;  %v2342_v23 = vsel %vm13063_vm0, %v2341_v15, %v2340_v17  ;;  %v980_v5 = vmul.f32 0.03125, %v13064_v10  ;;  %v2348_v12 = vperm.slane %v979_v18, %v8199_v22  ;;  %v13065_v15 = vld [vmem:[#allocation65_spill] sm:$0xff]  ;;  %v1265_v18 = vld [vmem:[%s12829_s5 + $0x578] sm:$0xff] }
 0x256   :  { %v837_v19 = vpop.xlane.xlu0 %836  ;;  %v840_v63 = vpop.xlane.xlu1 %839  ;;  %2809 = vmatpush.msra.mxu3 %v1877_v30  ;;  %v2522_v30 = vsel %vm2201_vm10, %v2521_v61, %v2520_v38  ;;  %v2344_v55 = vsel %vm12868_vm14, %v2343_v24, %v2342_v23  ;;  %v7065_v38 = vld [vmem:[%s12829_s5 + $0x528] sm:$0xff]  ;;  %v1734_v51 = vunpack.c.l.bf16 %v1268_v8  ;;  %v13067_v56 = vld [vmem:[#allocation67_spill] sm:$0xff]  ;;  %v1262_v24 = vld [vmem:[%s12829_s5 + $0x560] sm:$0xff]  ;;  %v1728_v1 = vunpack.c.l.bf16 %v1265_v18 }
 0x257   :  { %v1069_v20 = vmul.f32 0.03125, %v837_v19  ;;  %v1070_v21 = vmul.f32 0.03125, %v840_v63  ;;  %v843_v36 = vpop.xlane.xlu2 %842  ;;  %2759 = vmatpush.msra.mxu1 %v1745_v53  ;;  %v978_v53 = vmul.f32 0.03125, %v13062_v39  ;;  %v2345_v43 = vperm.slane %v977_v0, %v8402_v25 }
 0x258   :  { %2810 = vmatpush.msra.mxu3 %v1871_v29  ;;  %v1071_v57 = vmul.f32 0.03125, %v843_v36  ;;  %v2350_v48 = vperm.slane %v980_v5, %v8224_v7  ;;  %v982_v0 = vmul.f32 0.03125, %v13067_v56  ;;  %v1464_v10 = vunpack.c.l.bf16 %v1133_v42 }
 0x259   :  { %v2523_v16 = vperm.slane %v1069_v20, %v8335_v32  ;;  %2760 = vmatpush.msra.mxu1 %v1739_v6  ;;  %v2525_v3 = vperm.slane %v1070_v21, %v8342_v37  ;;  %v7064_v6 = vld [vmem:[%s12829_s5 + $0x540] sm:$0xff]  ;;  %v2346_v39 = vsel %vm12867_vm15, %v2345_v43, %v2344_v55  ;;  %v1465_v5 = vunpack.c.h.bf16 %v1133_v42 }
 0x25a   :  { %2811 = vmatpush.msra.mxu3 %v1865_v49  ;;  %v1715_v19 = vunpack.c.h.bf16 %v7064_v6  ;;  %v2527_v63 = vperm.slane %v1071_v57, %v8375_v2  ;;  %vm13075_vm0 = vcmask 654912  }
 0x25b   :  { %v2524_v29 = vsel %vm2205_vm11, %v2523_v16, %v2522_v30  ;;  %2761 = vmatpush.msra.mxu1 %v1733_v27  ;;  %v2347_v27 = vperm.slane %v978_v53, %v8186_v4  ;;  %v981_v16 = vmul.f32 0.03125, %v13065_v15  ;;  %v7066_v53 = vld [vmem:[%s12829_s5 + $0x510] sm:$0xff]  ;;  %v7068_v15 = vld [vmem:[%s12829_s5 + $0x4e0] sm:$0xff] }
 0x25c   :  { %2812 = vmatpush.msra.mxu3 %v1859_v35  ;;  %v2526_v61 = vsel %vm12869_vm12, %v2525_v3, %v2524_v29  ;;  %v1709_v35 = vunpack.c.h.bf16 %v7065_v38  ;;  %v1470_v3 = vunpack.c.l.bf16 %v1136_v13  ;;  %v1703_v33 = vunpack.c.h.bf16 %v7066_v53  ;;  %v1130_v29 = vld [vmem:[%s12829_s5 + $0x140] sm:$0xff]  ;;  %v13070_v53 = vld [vmem:[#allocation70_spill] sm:$0xff] }
 0x25d   :  { %2762 = vmatpush.msra.mxu1 %v1727_v26  ;;  %v2349_v26 = vsel %vm2165_vm1, %v2348_v12, %v2347_v27  ;;  %v2528_v57 = vsel %vm13066_vm9, %v2527_v63, %v2526_v61  ;;  %v2352_v23 = vperm.slane %v981_v16, %v8232_v14  ;;  %v1259_v12 = vld [vmem:[%s12829_s5 + $0x548] sm:$0xff]  ;;  %v1458_v27 = vunpack.c.l.bf16 %v1130_v29  ;;  %vm13079_vm9 = vmmov %vm13075_vm0 }
 0x25e   :  { %2877 = vmatpush.msrb.mxu3 %v1758_v54  ;;  %v846_v49 = vpop.xlane.xlu0 %845  ;;  %v849_v45 = vpop.xlane.xlu1 %848  ;;  %v2351_v6 = vsel %vm12871_vm2, %v2350_v48, %v2349_v26  ;;  %v1459_v38 = vunpack.c.h.bf16 %v1130_v29  ;;  %v1691_v16 = vunpack.c.h.bf16 %v7068_v15  ;;  %v1256_v26 = vld [vmem:[%s12829_s5 + $0x530] sm:$0xff]  ;;  %v13071_v15 = vld [vmem:[#allocation69_spill] sm:$0xff] }
 0x25f   :  { %v1072_v20 = vmul.f32 0.03125, %v846_v49  ;;  %v1073_v21 = vmul.f32 0.03125, %v849_v45  ;;  %v9513_v36 = vpop.xlane.xlu2 %851  ;;  %2763 = vmatpush.msra.mxu1 %v1721_v9  ;;  %v7067_v49 = vld [vmem:[%s12829_s5 + $0x4f8] sm:$0xff] }
 0x260   :  { %2878 = vmatpush.msrb.mxu3 %v1752_v58  ;;  %v1471_v58 = vunpack.c.h.bf16 %v1136_v13  ;;  %v1697_v45 = vunpack.c.h.bf16 %v7067_v49  ;;  %v7070_v49 = vld [vmem:[%s12829_s5 + $0x4b0] sm:$0xff] }
 0x261   :  { %v2529_v54 = vperm.slane %v1072_v20, %v8383_v47  ;;  %v2531_v17 = vperm.slane %v1073_v21, %v8402_v25  ;;  %2764 = vmatpush.msra.mxu1 %v1715_v19  ;;  %v13068_v19 = vld [vmem:[#allocation66_spill] sm:$0xff]  ;;  %v1722_v21 = vunpack.c.l.bf16 %v1262_v24  ;;  %v1253_v24 = vld [vmem:[%s12829_s5 + $0x518] sm:$0xff] }
 0x262   :  { %2879 = vmatpush.msrb.mxu3 %v1746_v60  ;;  %v983_v63 = vmul.f32 0.03125, %v13068_v19  ;;  %v1127_v20 = vld [vmem:[%s12829_s5 + $0x128] sm:$0xff]  ;;  %v1250_v19 = vld [vmem:[%s12829_s5 + $0x500] sm:$0xff] }
 0x263   :  { %v2530_v30 = vsel %vm12868_vm14, %v2529_v54, %v2528_v57  ;;  %2765 = vmatpush.msra.mxu1 %v1709_v35  ;;  %v13069_v35 = vld [vmem:[#allocation68_spill] sm:$0xff]  ;;  %v1124_v54 = vld [vmem:[%s12829_s5 + $0x110] sm:$0xff]  ;;  %v1452_v18 = vunpack.c.l.bf16 %v1127_v20  ;;  %v1453_v48 = vunpack.c.h.bf16 %v1127_v20  ;;  %v2353_v57 = vsel %vm12870_vm3, %v2352_v23, %v2351_v6 }
 0x264   :  { %2880 = vmatpush.msrb.mxu3 %v1740_v41  ;;  %v2532_v9 = vsel %vm12867_vm15, %v2531_v17, %v2530_v30  ;;  %v2354_v41 = vperm.slane %v982_v0, %v8251_v44  ;;  %v9568_v13 = vmul.f32 0.03125, %v13069_v35  ;;  %v1716_v17 = vunpack.c.l.bf16 %v1259_v12  ;;  %v1121_v0 = vld [vmem:[%s12829_s5 + $0xf8] sm:$0xff] }
 0x265   :  { %v9551_v60 = vsel %vm12866_vm13, %v2532_v9, %v2346_v39  ;;  %2766 = vmatpush.msra.mxu1 %v1703_v33  ;;  %v2356_v42 = vperm.slane %v983_v63, %v8256_v62  ;;  %v9595_v33 = vmul.f32 0.03125, %v13070_v53  ;;  %v7069_v9 = vld [vmem:[%s12829_s5 + $0x4c8] sm:$0xff]  ;;  %v1710_v23 = vunpack.c.l.bf16 %v1256_v26 }
 0x266   :  { %2881 = vmatpush.msrb.mxu3 %v1734_v51  ;;  %2673 = vmatmul.f32.vlgmr.msrb.gmra.mxu0 %v9551_v60  ;;  %v855_v8 = vpop.xlane.xlu0 %854  ;;  %v858_v61 = vpop.xlane.xlu1 %857  ;;  %v1074_v51 = vmul.f32 0.03125, %v9513_v36  ;;  %v2355_v36 = vsel %vm2177_vm4, %v2354_v41, %v2353_v57  ;;  %v2358_v39 = vperm.slane %v9568_v13, %v8269_v31  ;;  %v1685_v29 = vunpack.c.h.bf16 %v7069_v9  ;;  %v1247_v13 = vld [vmem:[%s12829_s5 + $0x4e8] sm:$0xff]  ;;  %v13072_v9 = vld [vmem:[#allocation71_spill] sm:$0xff] }
 0x267   :  { %2793 = vmatmul.f32.vlgmr.msra.gmra.mxu2 %v9551_v60  ;;  %2817 = vmatpush.msrb.mxu0 %v1470_v3  ;;  %v1075_v43 = vmul.f32 0.03125, %v855_v8  ;;  %v861_v55 = vpop.xlane.xlu2 %860  ;;  %v9582_v56 = vmul.f32 0.03125, %v858_v61  ;;  %v1446_v3 = vunpack.c.l.bf16 %v1124_v54  ;;  %v1440_v12 = vunpack.c.l.bf16 %v1121_v0 }
 0x268   :  { %2937 = vmatpush.msra.mxu2 %v1471_v58  ;;  %2882 = vmatpush.msrb.mxu3 %v1728_v1  ;;  %v1447_v58 = vunpack.c.h.bf16 %v1124_v54  ;;  %v1118_v1 = vld [vmem:[%s12829_s5 + $0xe0] sm:$0xff]  ;;  %v1441_v6 = vunpack.c.h.bf16 %v1121_v0  ;;  %v2357_v63 = vsel %vm2181_vm5, %v2356_v42, %v2355_v36  ;;  %v1704_v41 = vunpack.c.l.bf16 %v1253_v24  ;;  %v1244_v0 = vld [vmem:[%s12829_s5 + $0x4d0] sm:$0xff]  ;;  %v1109_v24 = vld [vmem:[%s12829_s5 + $0x98] sm:$0xff] }
 0x269   :  { %2818 = vmatpush.msrb.mxu0 %v1464_v10  ;;  %2767 = vmatpush.msra.mxu1 %v1697_v45  ;;  %v2534_v30 = vperm.slane %v1075_v43, %v8199_v22  ;;  %v2533_v10 = vperm.slane %v1074_v51, %v8186_v4  ;;  %v1679_v45 = vunpack.c.h.bf16 %v7070_v49  ;;  %v2536_v8 = vperm.slane %v9582_v56, %v8224_v7  ;;  %v7072_v36 = vld [vmem:[%s12829_s5 + $0x480] sm:$0xff] }
 0x26a   :  { %2938 = vmatpush.msra.mxu2 %v1465_v5  ;;  %2883 = vmatpush.msrb.mxu3 %v1722_v21  ;;  %v9604_v5 = vmul.f32 0.03125, %v861_v55  ;;  %v1115_v21 = vld [vmem:[%s12829_s5 + $0xc8] sm:$0xff]  ;;  %v1435_v35 = vunpack.c.h.bf16 %v1118_v1  ;;  %v2360_v54 = vperm.slane %v9595_v33, %v8289_v34  ;;  %v1692_v53 = vunpack.c.l.bf16 %v1247_v13 }
 0x26b   :  { %2819 = vmatpush.msrb.mxu0 %v1458_v27  ;;  %2768 = vmatpush.msra.mxu1 %v1691_v16  ;;  %v2535_v43 = vsel %vm2165_vm1, %v2534_v30, %v2533_v10  ;;  %v986_v16 = vmul.f32 0.03125, %v13071_v15  ;;  %v1428_v42 = vunpack.c.l.bf16 %v1115_v21  ;;  %v1429_v56 = vunpack.c.h.bf16 %v1115_v21  ;;  %v1241_v10 = vld [vmem:[%s12829_s5 + $0x4b8] sm:$0xff] }
 0x26c   :  { %2939 = vmatpush.msra.mxu2 %v1459_v38  ;;  %2884 = vmatpush.msrb.mxu3 %v1716_v17  ;;  %v1434_v38 = vunpack.c.l.bf16 %v1118_v1  ;;  %v7071_v17 = vld [vmem:[%s12829_s5 + $0x498] sm:$0xff]  ;;  %v2538_v26 = vperm.slane %v9604_v5, %v8232_v14  ;;  %v1667_v30 = vunpack.c.h.bf16 %v7072_v36  ;;  %v2359_v33 = vsel %vm2185_vm6, %v2358_v39, %v2357_v63 }
 0x26d   :  { %2820 = vmatpush.msrb.mxu0 %v1452_v18  ;;  %v1673_v51 = vunpack.c.h.bf16 %v7071_v17  ;;  %v1112_v18 = vld [vmem:[%s12829_s5 + $0xb0] sm:$0xff]  ;;  %2769 = vmatpush.msra.mxu1 %v1685_v29  ;;  %v987_v29 = vmul.f32 0.03125, %v13072_v9  ;;  %v2362_v5 = vperm.slane %v986_v16, %v8299_v11  ;;  %v1686_v39 = vunpack.c.l.bf16 %v1244_v0  ;;  %v1235_v17 = vld [vmem:[%s12829_s5 + $0x488] sm:$0xff] }
 0x26e   :  { %2940 = vmatpush.msra.mxu2 %v1453_v48  ;;  %2753 = vmatmul.f32.vlgmr.msra.gmra.mxu0 %v8954_v28  ;;  %v864_v61 = vpop.xlane.xlu0 %863  ;;  %v867_v20 = vpop.xlane.xlu1 %866  ;;  %v1698_v48 = vunpack.c.l.bf16 %v1250_v19  ;;  %v1422_v1 = vunpack.c.l.bf16 %v1112_v18  ;;  %v1106_v19 = vld [vmem:[%s12829_s5 + $0x80] sm:$0xff] }
 0x26f   :  { %2873 = vmatmul.f32.vlgmr.msrb.gmra.mxu2 %v8954_v28  ;;  %2821 = vmatpush.msrb.mxu0 %v1446_v3  ;;  %v1078_v55 = vmul.f32 0.03125, %v864_v61  ;;  %v870_v27 = vpop.xlane.xlu2 %869  ;;  %v1079_v57 = vmul.f32 0.03125, %v867_v20  ;;  %v2537_v3 = vsel %vm12871_vm2, %v2536_v8, %v2535_v43  ;;  %v1417_v8 = vunpack.c.h.bf16 %v1109_v24  ;;  %v1238_v61 = vld [vmem:[%s12829_s5 + $0x4a0] sm:$0xff] }
 0x270   :  { %2941 = vmatpush.msra.mxu2 %v1447_v58  ;;  %2885 = vmatpush.msrb.mxu3 %v1710_v23  ;;  %v1423_v23 = vunpack.c.h.bf16 %v1112_v18  ;;  %v2539_v63 = vsel %vm12870_vm3, %v2538_v26, %v2537_v3  ;;  %v13073_v20 = vld [vmem:[#allocation73_spill] sm:$0xff]  ;;  %v1410_v16 = vunpack.c.l.bf16 %v1106_v19  ;;  %v1100_v26 = vld [vmem:[%s12829_s5 + $0x50] sm:$0xff] }
 0x271   :  { %2822 = vmatpush.msrb.mxu0 %v1440_v12  ;;  %v2540_v58 = vperm.slane %v1078_v55, %v8251_v44  ;;  %2770 = vmatpush.msra.mxu1 %v1679_v45  ;;  %v2361_v12 = vsel %vm2189_vm7, %v2360_v54, %v2359_v33  ;;  %v2542_v49 = vperm.slane %v1079_v57, %v8256_v62  ;;  %v1416_v45 = vunpack.c.l.bf16 %v1109_v24  ;;  %v1097_v24 = vld [vmem:[%s12829_s5 + $0x38] sm:$0xff] }
 0x272   :  { %2942 = vmatpush.msra.mxu2 %v1441_v6  ;;  %2886 = vmatpush.msrb.mxu3 %v1704_v41  ;;  %v1080_v6 = vmul.f32 0.03125, %v870_v27  ;;  %v988_v21 = vmul.f32 0.03125, %v13073_v20  ;;  %v1103_v27 = vld [vmem:[%s12829_s5 + $0x68] sm:$0xff]  ;;  %v1411_v54 = vunpack.c.h.bf16 %v1106_v19  ;;  %v1674_v57 = vunpack.c.l.bf16 %v1238_v61 }
 0x273   :  { %2823 = vmatpush.msrb.mxu0 %v1434_v38  ;;  %2771 = vmatpush.msra.mxu1 %v1673_v51  ;;  %v2541_v41 = vsel %vm2177_vm4, %v2540_v58, %v2539_v63  ;;  %v1680_v38 = vunpack.c.l.bf16 %v1241_v10  ;;  %v2363_v51 = vsel %vm2193_vm8, %v2362_v5, %v2361_v12  ;;  %v1404_v0 = vunpack.c.l.bf16 %v1103_v27  ;;  %v13076_v12 = vld [vmem:[#allocation74_spill] sm:$0xff] }
 0x274   :  { %2943 = vmatpush.msra.mxu2 %v1435_v35  ;;  %2887 = vmatpush.msrb.mxu3 %v1698_v48  ;;  %v2364_v35 = vperm.slane %v987_v29, %v8302_v50  ;;  %v2544_v18 = vperm.slane %v1080_v6, %v8269_v31  ;;  %v1405_v36 = vunpack.c.h.bf16 %v1103_v27  ;;  %v2366_v58 = vperm.slane %v988_v21, %v8324_v59 }
 0x275   :  { %2824 = vmatpush.msrb.mxu0 %v1428_v42  ;;  %2772 = vmatpush.msra.mxu1 %v1667_v30  ;;  %v2543_v42 = vsel %vm2181_vm5, %v2542_v49, %v2541_v41  ;;  %v13074_v30 = vld [vmem:[#allocation72_spill] sm:$0xff]  ;;  %v1398_v9 = vunpack.c.l.bf16 %v1100_v26  ;;  %v1399_v29 = vunpack.c.h.bf16 %v1100_v26  ;;  %v990_v6 = vmul.f32 0.03125, %v13076_v12  ;;  %v13078_v26 = vld [vmem:[#allocation77_spill] sm:$0xff] }
 0x276   :  { %2944 = vmatpush.msra.mxu2 %v1429_v56  ;;  %v873_v43 = vpop.xlane.xlu0 %872  ;;  %v876_v55 = vpop.xlane.xlu1 %875  ;;  %2888 = vmatpush.msrb.mxu3 %v1692_v53  ;;  %v989_v3 = vmul.f32 0.03125, %v13074_v30  ;;  %v1668_v53 = vunpack.c.l.bf16 %v1235_v17  ;;  %v2545_v10 = vsel %vm2185_vm6, %v2544_v18, %v2543_v42  ;;  %v1393_v63 = vunpack.c.h.bf16 %v1097_v24 }
 0x277   :  { %2825 = vmatpush.msrb.mxu0 %v1422_v1  ;;  %v1081_v13 = vmul.f32 0.03125, %v873_v43  ;;  %v879_v15 = vpop.xlane.xlu2 %878  ;;  %v1082_v48 = vmul.f32 0.03125, %v876_v55  ;;  %v1094_v1 = vld [vmem:[%s12829_s5 + $0x20] sm:$0xff]  ;;  %v1091_v43 = vld [vmem:[%s12829_s5 + $0x8] sm:$0xff] }
 0x278   :  { %2945 = vmatpush.msra.mxu2 %v1423_v23  ;;  %2889 = vmatpush.msrb.mxu3 %v1686_v39  ;;  %v1083_v33 = vmul.f32 0.03125, %v879_v15  ;;  %v2365_v23 = vsel %vm13075_vm0, %v2364_v35, %v2363_v51  ;;  %v1392_v39 = vunpack.c.l.bf16 %v1097_v24  ;;  %v2368_v49 = vperm.slane %v989_v3, %v8335_v32  ;;  %v1322_v24 = vld [vmem:[%s12829_s5 + $0x740] sm:$0xff] }
 0x279   :  { %v2546_v56 = vperm.slane %v1081_v13, %v8289_v34  ;;  %2826 = vmatpush.msrb.mxu0 %v1416_v45  ;;  %v2548_v5 = vperm.slane %v1082_v48, %v8299_v11  ;;  %v2367_v45 = vsel %vm2201_vm10, %v2366_v58, %v2365_v23  ;;  %v1386_v41 = vunpack.c.l.bf16 %v1094_v1 }
 0x27a   :  { %2946 = vmatpush.msra.mxu2 %v1417_v8  ;;  %2890 = vmatpush.msrb.mxu3 %v1680_v38  ;;  %v13077_v8 = vld [vmem:[#allocation78_spill] sm:$0xff]  ;;  %v2550_v55 = vperm.slane %v1083_v33, %v8302_v50  ;;  %v1387_v13 = vunpack.c.h.bf16 %v1094_v1  ;;  %v1380_v51 = vunpack.c.l.bf16 %v1091_v43  ;;  %v1381_v18 = vunpack.c.h.bf16 %v1091_v43 }
 0x27b   :  { %2827 = vmatpush.msrb.mxu0 %v1410_v16  ;;  %v2547_v19 = vsel %vm2189_vm7, %v2546_v56, %v2545_v10  ;;  %v991_v61 = vmul.f32 0.03125, %v13077_v8  ;;  %v1328_v16 = vld [vmem:[%s12829_s5 + $0x770] sm:$0xff]  ;;  %v2369_v48 = vsel %vm2205_vm11, %v2368_v49, %v2367_v45  ;;  %vm13081_vm0 = vcmask 917312  }
 0x27c   :  { %2947 = vmatpush.msra.mxu2 %v1411_v54  ;;  %2891 = vmatpush.msrb.mxu3 %v1674_v57  ;;  %v2549_v15 = vsel %vm2193_vm8, %v2548_v5, %v2547_v19  ;;  %v2370_v54 = vperm.slane %v990_v6, %v8342_v37  ;;  %v992_v57 = vmul.f32 0.03125, %v13078_v26  ;;  %v1854_v3 = vunpack.c.l.bf16 %v1328_v16  ;;  %v1316_v43 = vld [vmem:[%s12829_s5 + $0x710] sm:$0xff] }
 0x27d   :  { %2828 = vmatpush.msrb.mxu0 %v1404_v0  ;;  %v2372_v42 = vperm.slane %v991_v61, %v8375_v2  ;;  %v1325_v0 = vld [vmem:[%s12829_s5 + $0x758] sm:$0xff]  ;;  %v1855_v58 = vunpack.c.h.bf16 %v1328_v16 }
 0x27e   :  { %2948 = vmatpush.msra.mxu2 %v1405_v36  ;;  %v882_v20 = vpop.xlane.xlu0 %881  ;;  %v885_v21 = vpop.xlane.xlu1 %884  ;;  %2892 = vmatpush.msrb.mxu3 %v1668_v53  ;;  %v2551_v36 = vsel %vm13079_vm9, %v2550_v55, %v2549_v15  ;;  %v13080_v53 = vld [vmem:[#allocation80_spill] sm:$0xff]  ;;  %v1848_v1 = vunpack.c.l.bf16 %v1325_v0  ;;  %v1849_v23 = vunpack.c.h.bf16 %v1325_v0  ;;  %v2374_v10 = vperm.slane %v992_v57, %v8383_v47  ;;  %vm13082_vm9 = vmmov %vm13081_vm0 }
 0x27f   :  { %2829 = vmatpush.msrb.mxu0 %v1398_v9  ;;  %v1084_v27 = vmul.f32 0.03125, %v882_v20  ;;  %v1085_v38 = vmul.f32 0.03125, %v885_v21  ;;  %v888_v35 = vpop.xlane.xlu2 %887  ;;  %v993_v33 = vmul.f32 0.03125, %v13080_v53  ;;  %v1843_v20 = vunpack.c.h.bf16 %v1322_v24  ;;  %v1181_v57 = vld [vmem:[%s12829_s5 + $0x2d8] sm:$0xff]  ;;  %v1178_v53 = vld [vmem:[%s12829_s5 + $0x2c0] sm:$0xff] }
 0x280   :  { %2949 = vmatpush.msra.mxu2 %v1399_v29  ;;  %v1086_v56 = vmul.f32 0.03125, %v888_v35  ;;  %v2371_v29 = vsel %vm12869_vm12, %v2370_v54, %v2369_v48  ;;  %v1184_v54 = vld [vmem:[%s12829_s5 + $0x2f0] sm:$0xff]  ;;  %v1831_v48 = vunpack.c.h.bf16 %v1316_v43 }
 0x281   :  { %v2552_v17 = vperm.slane %v1084_v27, %v8324_v59  ;;  %2830 = vmatpush.msrb.mxu0 %v1392_v39  ;;  %v2554_v30 = vperm.slane %v1085_v38, %v8335_v32  ;;  %v2373_v5 = vsel %vm13081_vm0, %v2372_v42, %v2371_v29  ;;  %v1842_v39 = vunpack.c.l.bf16 %v1322_v24  ;;  %v1310_v42 = vld [vmem:[%s12829_s5 + $0x6e0] sm:$0xff] }
 0x282   :  { %2950 = vmatpush.msra.mxu2 %v1393_v63  ;;  %v2556_v12 = vperm.slane %v1086_v56, %v8342_v37  ;;  %v1319_v63 = vld [vmem:[%s12829_s5 + $0x728] sm:$0xff]  ;;  %v2376_v21 = vperm.slane %v993_v33, %v8402_v25  ;;  %v1818_v29 = vunpack.c.l.bf16 %v1310_v42  ;;  %vm3484_vm0 = vcmask 523264  }
 0x283   :  { %2831 = vmatpush.msrb.mxu0 %v1386_v41  ;;  %v2553_v9 = vsel %vm2201_vm10, %v2552_v17, %v2551_v36  ;;  %v1836_v38 = vunpack.c.l.bf16 %v1319_v63  ;;  %v1837_v35 = vunpack.c.h.bf16 %v1319_v63  ;;  %v1313_v17 = vld [vmem:[%s12829_s5 + $0x6f8] sm:$0xff]  ;;  %v1566_v36 = vunpack.c.l.bf16 %v1184_v54  ;;  %v1307_v33 = vld [vmem:[%s12829_s5 + $0x6c8] sm:$0xff] }
 0x284   :  { %2951 = vmatpush.msra.mxu2 %v1387_v13  ;;  %v2555_v49 = vsel %vm2205_vm11, %v2554_v30, %v2553_v9  ;;  %v2375_v13 = vsel %vm12868_vm14, %v2374_v10, %v2373_v5  ;;  %v1824_v30 = vunpack.c.l.bf16 %v1313_v17  ;;  %v1825_v24 = vunpack.c.h.bf16 %v1313_v17  ;;  %v1175_v10 = vld [vmem:[%s12829_s5 + $0x2a8] sm:$0xff]  ;;  %v1304_v5 = vld [vmem:[%s12829_s5 + $0x6b0] sm:$0xff] }
 0x285   :  { %2832 = vmatpush.msrb.mxu0 %v1380_v51  ;;  %v2557_v15 = vsel %vm12869_vm12, %v2556_v12, %v2555_v49  ;;  %v2377_v56 = vsel %vm12867_vm15, %v2376_v21, %v2375_v13  ;;  %v1560_v9 = vunpack.c.l.bf16 %v1181_v57  ;;  %v1554_v12 = vunpack.c.l.bf16 %v1178_v53  ;;  %v1169_v21 = vld [vmem:[%s12829_s5 + $0x278] sm:$0xff]  ;;  %v1295_v13 = vld [vmem:[%s12829_s5 + $0x668] sm:$0xff] }
 0x286   :  { %2952 = vmatpush.msra.mxu2 %v1381_v18  ;;  %2833 = vmatmul.f32.vlgmr.msrb.gmra.mxu0 %v8488_v52  ;;  %v891_v6 = vpop.xlane.xlu0 %890  ;;  %v894_v19 = vpop.xlane.xlu1 %893  ;;  %v1830_v18 = vunpack.c.l.bf16 %v1316_v43  ;;  %v1548_v63 = vunpack.c.l.bf16 %v1175_v10  ;;  %v1806_v49 = vunpack.c.l.bf16 %v1304_v5  ;;  %vm12899_vm12 = vcmask 1043456  }
 0x287   :  { %2953 = vmatmul.f32.vlgmr.msra.gmra.mxu2 %v8488_v52  ;;  %2897 = vmatpush.msra.mxu0 %v1854_v3  ;;  %v1087_v45 = vmul.f32 0.03125, %v891_v6  ;;  %v1088_v8 = vmul.f32 0.03125, %v894_v19  ;;  %v897_v61 = vpop.xlane.xlu2 %896  ;;  %v1812_v6 = vunpack.c.l.bf16 %v1307_v33  ;;  %v1555_v19 = vunpack.c.h.bf16 %v1178_v53  ;;  %v1157_v53 = vld [vmem:[%s12829_s5 + $0x218] sm:$0xff] }
 0x288   :  { %3017 = vmatpush.msrb.mxu2 %v1855_v58  ;;  %v1089_v41 = vmul.f32 0.03125, %v897_v61  ;;  %v1567_v58 = vunpack.c.h.bf16 %v1184_v54  ;;  %v1549_v61 = vunpack.c.h.bf16 %v1175_v10  ;;  %v1537_v54 = vunpack.c.h.bf16 %v1169_v21  ;;  %v1154_v10 = vld [vmem:[%s12829_s5 + $0x200] sm:$0xff] }
 0x289   :  { %v2558_v55 = vperm.slane %v1087_v45, %v8375_v2  ;;  %v2560_v27 = vperm.slane %v1088_v8, %v8383_v47  ;;  %2898 = vmatpush.msra.mxu0 %v1848_v1  ;;  %v1561_v1 = vunpack.c.h.bf16 %v1181_v57  ;;  %v1172_v45 = vld [vmem:[%s12829_s5 + $0x290] sm:$0xff]  ;;  %v1301_v8 = vld [vmem:[%s12829_s5 + $0x698] sm:$0xff]  ;;  %v10214_v47 = vld [vmem:[%s12829_s5 + $0x4a8] sm:$0xff] }
 0x28a   :  { %3018 = vmatpush.msrb.mxu2 %v1849_v23  ;;  %v2562_v16 = vperm.slane %v1089_v41, %v8402_v25  ;;  %v1819_v23 = vunpack.c.h.bf16 %v1310_v42  ;;  %v1298_v41 = vld [vmem:[%s12829_s5 + $0x680] sm:$0xff]  ;;  %v1542_v43 = vunpack.c.l.bf16 %v1172_v45  ;;  %v1789_v42 = vunpack.c.h.bf16 %v1295_v13 }
 0x28b   :  { %v2559_v51 = vsel %vm13082_vm9, %v2558_v55, %v2557_v15  ;;  %2899 = vmatpush.msra.mxu0 %v1842_v39  ;;  %v1813_v39 = vunpack.c.h.bf16 %v1307_v33  ;;  %v1800_v55 = vunpack.c.l.bf16 %v1301_v8  ;;  %v1536_v15 = vunpack.c.l.bf16 %v1169_v21  ;;  %v1286_v33 = vld [vmem:[%s12829_s5 + $0x620] sm:$0xff] }
 0x28c   :  { %3019 = vmatpush.msrb.mxu2 %v1843_v20  ;;  %v2561_v26 = vsel %vm12868_vm14, %v2560_v27, %v2559_v51  ;;  %v1807_v20 = vunpack.c.h.bf16 %v1304_v5  ;;  %v1543_v27 = vunpack.c.h.bf16 %v1172_v45  ;;  %v1795_v17 = vunpack.c.h.bf16 %v1298_v41  ;;  %v1163_v51 = vld [vmem:[%s12829_s5 + $0x248] sm:$0xff]  ;;  %v9815_v45 = vld [vmem:[%s12829_s5 + $0x478] sm:$0xff]  ;;  %v9823_v21 = vld [vmem:[%s12829_s5 + $0x460] sm:$0xff] }
 0x28d   :  { %v2563_v0 = vsel %vm12867_vm15, %v2562_v16, %v2561_v26  ;;  %2900 = vmatpush.msra.mxu0 %v1836_v38  ;;  %v1801_v38 = vunpack.c.h.bf16 %v1301_v8  ;;  %v1794_v16 = vunpack.c.l.bf16 %v1298_v41  ;;  %v1788_v26 = vunpack.c.l.bf16 %v1295_v13  ;;  %v1283_v5 = vld [vmem:[%s12829_s5 + $0x608] sm:$0xff]  ;;  %v7073_v41 = vld [vmem:[%s12829_s5 + $0x470] sm:$0xff] }
 0x28e   :  { %3020 = vmatpush.msrb.mxu2 %v1837_v35  ;;  %v9752_v3 = vsel %vm12866_vm13, %v2563_v0, %v2377_v56  ;;  %v1166_v35 = vld [vmem:[%s12829_s5 + $0x260] sm:$0xff]  ;;  %v1160_v56 = vld [vmem:[%s12829_s5 + $0x230] sm:$0xff]  ;;  %v1289_v0 = vld [vmem:[%s12829_s5 + $0x638] sm:$0xff]  ;;  %v1507_v8 = vunpack.c.h.bf16 %v1154_v10  ;;  %v1676_v32 = vunpack.c.l.bf16 %v10214_v47  ;;  %vm3297_vm9 = vcmask 1041408  }
 0x28f   :  { %2901 = vmatpush.msra.mxu0 %v1830_v18  ;;  %2693 = vmatmul.f32.vlgmr.msrb.gmra.mxu1 %v9752_v3  ;;  %v1292_v18 = vld [vmem:[%s12829_s5 + $0x650] sm:$0xff]  ;;  %v1531_v57 = vunpack.c.h.bf16 %v1166_v35  ;;  %v9835_v13 = vld [vmem:[%s12829_s5 + $0x448] sm:$0xff]  ;;  %vm3379_vm15 = vcmask 1045508  }
 0x290   :  { %3021 = vmatpush.msrb.mxu2 %v1831_v48  ;;  %2813 = vmatmul.f32.vlgmr.msra.gmra.mxu3 %v9752_v3  ;;  %v1530_v48 = vunpack.c.l.bf16 %v1166_v35 }
 0x291   :  { %2837 = vmatpush.msrb.mxu1 %v1566_v36  ;;  %2902 = vmatpush.msra.mxu0 %v1824_v30  ;;  %v1524_v36 = vunpack.c.l.bf16 %v1163_v51  ;;  %v1782_v30 = vunpack.c.l.bf16 %v1292_v18 }
 0x292   :  { %2957 = vmatpush.msra.mxu3 %v1567_v58  ;;  %3022 = vmatpush.msrb.mxu2 %v1825_v24  ;;  %v1525_v58 = vunpack.c.h.bf16 %v1163_v51  ;;  %v1783_v24 = vunpack.c.h.bf16 %v1292_v18 }
 0x293   :  { %2838 = vmatpush.msrb.mxu1 %v1560_v9  ;;  %2903 = vmatpush.msra.mxu0 %v1818_v29  ;;  %v1518_v9 = vunpack.c.l.bf16 %v1160_v56  ;;  %v1776_v29 = vunpack.c.l.bf16 %v1289_v0 }
 0x294   :  { %2958 = vmatpush.msra.mxu3 %v1561_v1  ;;  %3023 = vmatpush.msrb.mxu2 %v1819_v23  ;;  %v1519_v1 = vunpack.c.h.bf16 %v1160_v56  ;;  %v1777_v23 = vunpack.c.h.bf16 %v1289_v0  ;;  %v1142_v56 = vld [vmem:[%s12829_s5 + $0x1a0] sm:$0xff] }
 0x295   :  { %2839 = vmatpush.msrb.mxu1 %v1554_v12  ;;  %2904 = vmatpush.msra.mxu0 %v1812_v6  ;;  %v1512_v12 = vunpack.c.l.bf16 %v1157_v53  ;;  %v1770_v6 = vunpack.c.l.bf16 %v1286_v33 }
 0x296   :  { %2959 = vmatpush.msra.mxu3 %v1555_v19  ;;  %3024 = vmatpush.msrb.mxu2 %v1813_v39  ;;  %v1513_v19 = vunpack.c.h.bf16 %v1157_v53  ;;  %v1771_v39 = vunpack.c.h.bf16 %v1286_v33  ;;  %v1139_v33 = vld [vmem:[%s12829_s5 + $0x188] sm:$0xff] }
 0x297   :  { %2840 = vmatpush.msrb.mxu1 %v1548_v63  ;;  %2905 = vmatpush.msra.mxu0 %v1806_v49  ;;  %v1506_v63 = vunpack.c.l.bf16 %v1154_v10  ;;  %v1764_v49 = vunpack.c.l.bf16 %v1283_v5 }
 0x298   :  { %2960 = vmatpush.msra.mxu3 %v1549_v61  ;;  %3025 = vmatpush.msrb.mxu2 %v1807_v20  ;;  %v1765_v61 = vunpack.c.h.bf16 %v1283_v5  ;;  %v1151_v20 = vld [vmem:[%s12829_s5 + $0x1e8] sm:$0xff]  ;;  %v1376_v5 = vld [vmem:[%s12829_s5 + $0x8f0] sm:$0xff] }
 0x299   :  { %2773 = vmatmul.f32.vlgmr.msra.gmra.mxu1 %v9292_v40  ;;  %2893 = vmatmul.f32.vlgmr.msrb.gmra.mxu3 %v9292_v40  ;;  %v1501_v35 = vunpack.c.h.bf16 %v1151_v20 }
 0x29a   :  { %2841 = vmatpush.msrb.mxu1 %v1542_v43  ;;  %2906 = vmatpush.msra.mxu0 %v1800_v55  ;;  %v1663_v43 = vunpack.c.h.bf16 %v7073_v41  ;;  %v1664_v55 = vunpack.c.l.bf16 %v9815_v45 }
 0x29b   :  { %2961 = vmatpush.msra.mxu3 %v1543_v27  ;;  %3026 = vmatpush.msrb.mxu2 %v1801_v38  ;;  %v1148_v27 = vld [vmem:[%s12829_s5 + $0x1d0] sm:$0xff]  ;;  %v1500_v38 = vunpack.c.l.bf16 %v1151_v20  ;;  %v1951_v20 = vunpack.c.h.bf16 %v1376_v5 }
 0x29c   :  { %2842 = vmatpush.msrb.mxu1 %v1536_v15  ;;  %2907 = vmatpush.msra.mxu0 %v1794_v16  ;;  %v7074_v15 = vld [vmem:[%s12829_s5 + $0x458] sm:$0xff]  ;;  %v1494_v51 = vunpack.c.l.bf16 %v1148_v27  ;;  %v1495_v18 = vunpack.c.h.bf16 %v1148_v27  ;;  %v7079_v27 = vld [vmem:[%s12829_s5 + $0x3e0] sm:$0xff] }
 0x29d   :  { %2962 = vmatpush.msra.mxu3 %v1537_v54  ;;  %3027 = vmatpush.msrb.mxu2 %v1795_v17  ;;  %v1657_v16 = vunpack.c.h.bf16 %v7074_v15  ;;  %v1658_v54 = vunpack.c.l.bf16 %v9823_v21  ;;  %v1145_v17 = vld [vmem:[%s12829_s5 + $0x1b8] sm:$0xff] }
 0x29e   :  { %2843 = vmatpush.msrb.mxu1 %v1530_v48  ;;  %2908 = vmatpush.msra.mxu0 %v1788_v26  ;;  %v9849_v48 = vld [vmem:[%s12829_s5 + $0x430] sm:$0xff]  ;;  %v7075_v26 = vld [vmem:[%s12829_s5 + $0x440] sm:$0xff]  ;;  %v1488_v0 = vunpack.c.l.bf16 %v1145_v17 }
 0x29f   :  { %2963 = vmatpush.msra.mxu3 %v1531_v57  ;;  %3028 = vmatpush.msrb.mxu2 %v1789_v42  ;;  %v1651_v57 = vunpack.c.h.bf16 %v7075_v26  ;;  %v1652_v42 = vunpack.c.l.bf16 %v9835_v13  ;;  %v1646_v53 = vunpack.c.l.bf16 %v9849_v48  ;;  %v9917_v26 = vld [vmem:[%s12829_s5 + $0x3b8] sm:$0xff] }
 0x2a0   :  { %2844 = vmatpush.msrb.mxu1 %v1524_v36  ;;  %2909 = vmatpush.msra.mxu0 %v1782_v30  ;;  %v1489_v36 = vunpack.c.h.bf16 %v1145_v17  ;;  %v9861_v30 = vld [vmem:[%s12829_s5 + $0x418] sm:$0xff] }
 0x2a1   :  { %2964 = vmatpush.msra.mxu3 %v1525_v58  ;;  %3029 = vmatpush.msrb.mxu2 %v1783_v24  ;;  %v7076_v58 = vld [vmem:[%s12829_s5 + $0x428] sm:$0xff]  ;;  %v1640_v10 = vunpack.c.l.bf16 %v9861_v30 }
 0x2a2   :  { %2845 = vmatpush.msrb.mxu1 %v1518_v9  ;;  %2910 = vmatpush.msra.mxu0 %v1776_v29  ;;  %v1645_v24 = vunpack.c.h.bf16 %v7076_v58  ;;  %v1482_v9 = vunpack.c.l.bf16 %v1142_v56  ;;  %v1483_v29 = vunpack.c.h.bf16 %v1142_v56  ;;  %v1364_v56 = vld [vmem:[%s12829_s5 + $0x890] sm:$0xff] }
 0x2a3   :  { %2965 = vmatpush.msra.mxu3 %v1519_v1  ;;  %3030 = vmatpush.msrb.mxu2 %v1777_v23  ;;  %v7077_v1 = vld [vmem:[%s12829_s5 + $0x410] sm:$0xff] }
 0x2a4   :  { %2846 = vmatpush.msrb.mxu1 %v1512_v12  ;;  %2911 = vmatpush.msra.mxu0 %v1770_v6  ;;  %v1639_v23 = vunpack.c.h.bf16 %v7077_v1  ;;  %v1476_v12 = vunpack.c.l.bf16 %v1139_v33  ;;  %v1477_v6 = vunpack.c.h.bf16 %v1139_v33  ;;  %v1616_v33 = vunpack.c.l.bf16 %v9917_v26  ;;  %v7082_v1 = vld [vmem:[%s12829_s5 + $0x398] sm:$0xff] }
 0x2a5   :  { %2966 = vmatpush.msra.mxu3 %v1513_v19  ;;  %3031 = vmatpush.msrb.mxu2 %v1771_v39  ;;  %v9880_v19 = vld [vmem:[%s12829_s5 + $0x400] sm:$0xff]  ;;  %v1373_v39 = vld [vmem:[%s12829_s5 + $0x8d8] sm:$0xff] }
 0x2a6   :  { %2847 = vmatpush.msrb.mxu1 %v1506_v63  ;;  %2912 = vmatpush.msra.mxu0 %v1764_v49  ;;  %v1950_v63 = vunpack.c.l.bf16 %v1376_v5  ;;  %v7078_v49 = vld [vmem:[%s12829_s5 + $0x3f8] sm:$0xff]  ;;  %v1634_v41 = vunpack.c.l.bf16 %v9880_v19  ;;  %v1945_v15 = vunpack.c.h.bf16 %v1373_v39  ;;  %v1927_v5 = vunpack.c.h.bf16 %v1364_v56 }
 0x2a7   :  { %2967 = vmatpush.msra.mxu3 %v1507_v8  ;;  %3032 = vmatpush.msrb.mxu2 %v1765_v61  ;;  %v1633_v8 = vunpack.c.h.bf16 %v7078_v49  ;;  %v9891_v61 = vld [vmem:[%s12829_s5 + $0x3e8] sm:$0xff] }
 0x2a8   :  { %2913 = vmatmul.f32.vlgmr.msra.gmra.mxu0 %v9551_v60  ;;  %3033 = vmatmul.f32.vlgmr.msrb.gmra.mxu2 %v9551_v60 }
 0x2a9   :  { %2977 = vmatpush.msrb.mxu0 %v1663_v43  ;;  %3097 = vmatpush.msra.mxu2 %v1664_v55  ;;  %v1370_v43 = vld [vmem:[%s12829_s5 + $0x8c0] sm:$0xff]  ;;  %v1944_v55 = vunpack.c.l.bf16 %v1373_v39 }
 0x2aa   :  { %2848 = vmatpush.msrb.mxu1 %v1500_v38  ;;  %2968 = vmatpush.msra.mxu3 %v1501_v35  ;;  %v1627_v38 = vunpack.c.h.bf16 %v7079_v27  ;;  %v9903_v35 = vld [vmem:[%s12829_s5 + $0x3d0] sm:$0xff]  ;;  %v1938_v17 = vunpack.c.l.bf16 %v1370_v43  ;;  %v7084_v27 = vld [vmem:[%s12829_s5 + $0x368] sm:$0xff] }
 0x2ab   :  { %2978 = vmatpush.msrb.mxu0 %v1657_v16  ;;  %3098 = vmatpush.msra.mxu2 %v1658_v54  ;;  %v1628_v16 = vunpack.c.l.bf16 %v9891_v61  ;;  %v1367_v54 = vld [vmem:[%s12829_s5 + $0x8a8] sm:$0xff] }
 0x2ac   :  { %2849 = vmatpush.msrb.mxu1 %v1494_v51  ;;  %2969 = vmatpush.msra.mxu3 %v1495_v18  ;;  %v7080_v51 = vld [vmem:[%s12829_s5 + $0x3c8] sm:$0xff] }
 0x2ad   :  { %2979 = vmatpush.msrb.mxu0 %v1651_v57  ;;  %3099 = vmatpush.msra.mxu2 %v1652_v42  ;;  %v1621_v18 = vunpack.c.h.bf16 %v7080_v51  ;;  %v1939_v57 = vunpack.c.h.bf16 %v1370_v43  ;;  %v1622_v42 = vunpack.c.l.bf16 %v9903_v35  ;;  %v1355_v43 = vld [vmem:[%s12829_s5 + $0x848] sm:$0xff] }
 0x2ae   :  { %2850 = vmatpush.msrb.mxu1 %v1488_v0  ;;  %2970 = vmatpush.msra.mxu3 %v1489_v36  ;;  %v1932_v0 = vunpack.c.l.bf16 %v1367_v54  ;;  %v7081_v36 = vld [vmem:[%s12829_s5 + $0x3b0] sm:$0xff]  ;;  %v1908_v51 = vunpack.c.l.bf16 %v1355_v43 }
 0x2af   :  { %2980 = vmatpush.msrb.mxu0 %v1645_v24  ;;  %3100 = vmatpush.msra.mxu2 %v1646_v53  ;;  %v1615_v58 = vunpack.c.h.bf16 %v7081_v36  ;;  %v9929_v24 = vld [vmem:[%s12829_s5 + $0x3a0] sm:$0xff]  ;;  %v1933_v53 = vunpack.c.h.bf16 %v1367_v54  ;;  %v1349_v36 = vld [vmem:[%s12829_s5 + $0x818] sm:$0xff] }
 0x2b0   :  { %2851 = vmatpush.msrb.mxu1 %v1482_v9  ;;  %2971 = vmatpush.msra.mxu3 %v1483_v29  ;;  %v1361_v9 = vld [vmem:[%s12829_s5 + $0x878] sm:$0xff]  ;;  %v1926_v29 = vunpack.c.l.bf16 %v1364_v56  ;;  %v1909_v56 = vunpack.c.h.bf16 %v1355_v43 }
 0x2b1   :  { %2981 = vmatpush.msrb.mxu0 %v1639_v23  ;;  %3101 = vmatpush.msra.mxu2 %v1640_v10  ;;  %v1609_v23 = vunpack.c.h.bf16 %v7082_v1  ;;  %v9941_v10 = vld [vmem:[%s12829_s5 + $0x388] sm:$0xff]  ;;  %v1920_v39 = vunpack.c.l.bf16 %v1361_v9 }
 0x2b2   :  { %2852 = vmatpush.msrb.mxu1 %v1476_v12  ;;  %2972 = vmatpush.msra.mxu3 %v1477_v6  ;;  %v1610_v12 = vunpack.c.l.bf16 %v9929_v24  ;;  %v1358_v6 = vld [vmem:[%s12829_s5 + $0x860] sm:$0xff] }
 0x2b3   :  { %2853 = vmatmul.f32.vlgmr.msrb.gmra.mxu1 %v8691_v46  ;;  %2973 = vmatmul.f32.vlgmr.msra.gmra.mxu3 %v8691_v46 }
 0x2b4   :  { %2917 = vmatpush.msra.mxu1 %v1950_v63  ;;  %2982 = vmatpush.msrb.mxu0 %v1633_v8  ;;  %v7083_v63 = vld [vmem:[%s12829_s5 + $0x380] sm:$0xff]  ;;  %v9953_v8 = vld [vmem:[%s12829_s5 + $0x370] sm:$0xff] }
 0x2b5   :  { %3037 = vmatpush.msrb.mxu3 %v1951_v20  ;;  %3102 = vmatpush.msra.mxu2 %v1634_v41  ;;  %v1603_v49 = vunpack.c.h.bf16 %v7083_v63  ;;  %v1921_v20 = vunpack.c.h.bf16 %v1361_v9  ;;  %v1604_v41 = vunpack.c.l.bf16 %v9941_v10  ;;  %v1598_v54 = vunpack.c.l.bf16 %v9953_v8  ;;  %v9989_v9 = vld [vmem:[%s12829_s5 + $0x328] sm:$0xff] }
 0x2b6   :  { %2918 = vmatpush.msra.mxu1 %v1944_v55  ;;  %2983 = vmatpush.msrb.mxu0 %v1627_v38  ;;  %v1914_v55 = vunpack.c.l.bf16 %v1358_v6  ;;  %v1597_v38 = vunpack.c.h.bf16 %v7084_v27  ;;  %v1897_v63 = vunpack.c.h.bf16 %v1349_v36 }
 0x2b7   :  { %3038 = vmatpush.msrb.mxu3 %v1945_v15  ;;  %3103 = vmatpush.msra.mxu2 %v1628_v16  ;;  %v9965_v15 = vld [vmem:[%s12829_s5 + $0x358] sm:$0xff]  ;;  %v1915_v16 = vunpack.c.h.bf16 %v1358_v6 }
 0x2b8   :  { %2919 = vmatpush.msra.mxu1 %v1938_v17  ;;  %2984 = vmatpush.msrb.mxu0 %v1621_v18  ;;  %v1352_v17 = vld [vmem:[%s12829_s5 + $0x830] sm:$0xff] }
 0x2b9   :  { %3039 = vmatpush.msrb.mxu3 %v1939_v57  ;;  %3104 = vmatpush.msra.mxu2 %v1622_v42  ;;  %v7085_v18 = vld [vmem:[%s12829_s5 + $0x350] sm:$0xff]  ;;  %v9977_v42 = vld [vmem:[%s12829_s5 + $0x340] sm:$0xff] }
 0x2ba   :  { %2920 = vmatpush.msra.mxu1 %v1932_v0  ;;  %2985 = vmatpush.msrb.mxu0 %v1615_v58  ;;  %v1591_v57 = vunpack.c.h.bf16 %v7085_v18  ;;  %v1592_v0 = vunpack.c.l.bf16 %v9965_v15  ;;  %v1902_v58 = vunpack.c.l.bf16 %v1352_v17  ;;  %v1586_v1 = vunpack.c.l.bf16 %v9977_v42  ;;  %v1340_v18 = vld [vmem:[%s12829_s5 + $0x7d0] sm:$0xff] }
 0x2bb   :  { %3040 = vmatpush.msrb.mxu3 %v1933_v53  ;;  %3105 = vmatpush.msra.mxu2 %v1616_v33  ;;  %v7086_v53 = vld [vmem:[%s12829_s5 + $0x338] sm:$0xff] }
 0x2bc   :  { %2921 = vmatpush.msra.mxu1 %v1926_v29  ;;  %2986 = vmatpush.msrb.mxu0 %v1609_v23  ;;  %v1585_v33 = vunpack.c.h.bf16 %v7086_v53  ;;  %v1903_v29 = vunpack.c.h.bf16 %v1352_v17  ;;  %v1346_v23 = vld [vmem:[%s12829_s5 + $0x800] sm:$0xff]  ;;  %v1337_v53 = vld [vmem:[%s12829_s5 + $0x7b8] sm:$0xff] }
 0x2bd   :  { %3041 = vmatpush.msrb.mxu3 %v1927_v5  ;;  %3106 = vmatpush.msra.mxu2 %v1610_v12  ;;  %v1896_v5 = vunpack.c.l.bf16 %v1349_v36  ;;  %v7087_v12 = vld [vmem:[%s12829_s5 + $0x320] sm:$0xff]  ;;  %v1891_v27 = vunpack.c.h.bf16 %v1346_v23 }
 0x2be   :  { %2922 = vmatpush.msra.mxu1 %v1920_v39  ;;  %2987 = vmatpush.msrb.mxu0 %v1603_v49  ;;  %v1579_v6 = vunpack.c.h.bf16 %v7087_v12  ;;  %v10001_v39 = vld [vmem:[%s12829_s5 + $0x310] sm:$0xff]  ;;  %v1580_v49 = vunpack.c.l.bf16 %v9989_v9  ;;  %v1334_v12 = vld [vmem:[%s12829_s5 + $0x7a0] sm:$0xff] }
 0x2bf   :  { %3042 = vmatpush.msrb.mxu3 %v1921_v20  ;;  %3107 = vmatpush.msra.mxu2 %v1604_v41  ;;  %v1890_v20 = vunpack.c.l.bf16 %v1346_v23  ;;  %v7088_v41 = vld [vmem:[%s12829_s5 + $0x308] sm:$0xff] }
 0x2c0   :  { %2923 = vmatpush.msra.mxu1 %v1914_v55  ;;  %2988 = vmatpush.msrb.mxu0 %v1597_v38  ;;  %v1573_v43 = vunpack.c.h.bf16 %v7088_v41  ;;  %v1137_v55 = vld [vmem:[%s12829_s5 + $0x178] sm:$0xff]  ;;  %v1574_v38 = vunpack.c.l.bf16 %v10001_v39 }
 0x2c1   :  { %3043 = vmatpush.msrb.mxu3 %v1915_v16  ;;  %3108 = vmatpush.msra.mxu2 %v1598_v54  ;;  %v1343_v16 = vld [vmem:[%s12829_s5 + $0x7e8] sm:$0xff]  ;;  %v1134_v54 = vld [vmem:[%s12829_s5 + $0x160] sm:$0xff]  ;;  %v1472_v17 = vunpack.c.l.bf16 %v1137_v55 }
 0x2c2   :  { %2924 = vmatpush.msra.mxu1 %v1908_v51  ;;  %2989 = vmatpush.msrb.mxu0 %v1591_v57  ;;  %v1473_v51 = vunpack.c.h.bf16 %v1137_v55  ;;  %v1884_v57 = vunpack.c.l.bf16 %v1343_v16  ;;  %v1466_v36 = vunpack.c.l.bf16 %v1134_v54  ;;  %v1866_v55 = vunpack.c.l.bf16 %v1334_v12 }
 0x2c3   :  { %3044 = vmatpush.msrb.mxu3 %v1909_v56  ;;  %3109 = vmatpush.msra.mxu2 %v1592_v0  ;;  %v1885_v56 = vunpack.c.h.bf16 %v1343_v16  ;;  %v1131_v0 = vld [vmem:[%s12829_s5 + $0x148] sm:$0xff] }
 0x2c4   :  { %2925 = vmatpush.msra.mxu1 %v1902_v58  ;;  %2990 = vmatpush.msrb.mxu0 %v1585_v33  ;;  %v1467_v58 = vunpack.c.h.bf16 %v1134_v54  ;;  %v1878_v33 = vunpack.c.l.bf16 %v1340_v18  ;;  %v1460_v23 = vunpack.c.l.bf16 %v1131_v0  ;;  %v1122_v54 = vld [vmem:[%s12829_s5 + $0x100] sm:$0xff] }
 0x2c5   :  { %3045 = vmatpush.msrb.mxu3 %v1903_v29  ;;  %3110 = vmatpush.msra.mxu2 %v1586_v1  ;;  %v1879_v29 = vunpack.c.h.bf16 %v1340_v18  ;;  %v1128_v1 = vld [vmem:[%s12829_s5 + $0x130] sm:$0xff]  ;;  %v10046_v18 = vld [vmem:[%s12829_s5 + $0x5f8] sm:$0xff] }
 0x2c6   :  { %2926 = vmatpush.msra.mxu1 %v1896_v5  ;;  %2991 = vmatpush.msrb.mxu0 %v1579_v6  ;;  %v1461_v5 = vunpack.c.h.bf16 %v1131_v0  ;;  %v1872_v6 = vunpack.c.l.bf16 %v1337_v53  ;;  %v1455_v41 = vunpack.c.h.bf16 %v1128_v1 }
 0x2c7   :  { %3046 = vmatpush.msrb.mxu3 %v1897_v63  ;;  %3111 = vmatpush.msra.mxu2 %v1580_v49  ;;  %v1873_v63 = vunpack.c.h.bf16 %v1337_v53  ;;  %v1125_v49 = vld [vmem:[%s12829_s5 + $0x118] sm:$0xff]  ;;  %v1760_v53 = vunpack.c.l.bf16 %v10046_v18 }
 0x2c8   :  { %2927 = vmatpush.msra.mxu1 %v1890_v20  ;;  %2992 = vmatpush.msrb.mxu0 %v1573_v43  ;;  %v1454_v20 = vunpack.c.l.bf16 %v1128_v1  ;;  %v1331_v43 = vld [vmem:[%s12829_s5 + $0x788] sm:$0xff]  ;;  %v1449_v16 = vunpack.c.h.bf16 %v1125_v49  ;;  %v7090_v1 = vld [vmem:[%s12829_s5 + $0x5d8] sm:$0xff] }
 0x2c9   :  { %3047 = vmatpush.msrb.mxu3 %v1891_v27  ;;  %3112 = vmatpush.msra.mxu2 %v1574_v38  ;;  %v1867_v27 = vunpack.c.h.bf16 %v1334_v12  ;;  %v1448_v38 = vunpack.c.l.bf16 %v1125_v49  ;;  %v10069_v12 = vld [vmem:[%s12829_s5 + $0x5c8] sm:$0xff]  ;;  %v1113_v49 = vld [vmem:[%s12829_s5 + $0xb8] sm:$0xff] }
 0x2ca   :  { %2993 = vmatmul.f32.vlgmr.msrb.gmra.mxu0 %v8954_v28  ;;  %3113 = vmatmul.f32.vlgmr.msra.gmra.mxu2 %v8954_v28 }
 0x2cb   :  { %3057 = vmatpush.msra.mxu0 %v1472_v17  ;;  %3177 = vmatpush.msrb.mxu2 %v1473_v51  ;;  %v1860_v17 = vunpack.c.l.bf16 %v1331_v43  ;;  %v1861_v51 = vunpack.c.h.bf16 %v1331_v43 }
 0x2cc   :  { %2928 = vmatpush.msra.mxu1 %v1884_v57  ;;  %3048 = vmatpush.msrb.mxu3 %v1885_v56  ;;  %v1119_v57 = vld [vmem:[%s12829_s5 + $0xe8] sm:$0xff]  ;;  %v7089_v56 = vld [vmem:[%s12829_s5 + $0x5f0] sm:$0xff] }
 0x2cd   :  { %3058 = vmatpush.msra.mxu0 %v1466_v36  ;;  %3178 = vmatpush.msrb.mxu2 %v1467_v58  ;;  %v1759_v0 = vunpack.c.h.bf16 %v7089_v56  ;;  %v1442_v36 = vunpack.c.l.bf16 %v1122_v54  ;;  %v10057_v58 = vld [vmem:[%s12829_s5 + $0x5e0] sm:$0xff] }
 0x2ce   :  { %2929 = vmatpush.msra.mxu1 %v1878_v33  ;;  %3049 = vmatpush.msrb.mxu3 %v1879_v29  ;;  %v1443_v33 = vunpack.c.h.bf16 %v1122_v54  ;;  %v1116_v29 = vld [vmem:[%s12829_s5 + $0xd0] sm:$0xff]  ;;  %v7092_v54 = vld [vmem:[%s12829_s5 + $0x5a8] sm:$0xff] }
 0x2cf   :  { %3059 = vmatpush.msra.mxu0 %v1460_v23  ;;  %3179 = vmatpush.msrb.mxu2 %v1461_v5  ;;  %v1753_v23 = vunpack.c.h.bf16 %v7090_v1  ;;  %v1436_v5 = vunpack.c.l.bf16 %v1119_v57  ;;  %v1430_v43 = vunpack.c.l.bf16 %v1116_v29  ;;  %v10107_v1 = vld [vmem:[%s12829_s5 + $0x580] sm:$0xff] }
 0x2d0   :  { %2930 = vmatpush.msra.mxu1 %v1872_v6  ;;  %3050 = vmatpush.msrb.mxu3 %v1873_v63  ;;  %v1754_v6 = vunpack.c.l.bf16 %v10057_v58  ;;  %v1437_v63 = vunpack.c.h.bf16 %v1119_v57  ;;  %v10095_v57 = vld [vmem:[%s12829_s5 + $0x598] sm:$0xff] }
 0x2d1   :  { %3060 = vmatpush.msra.mxu0 %v1454_v20  ;;  %3180 = vmatpush.msrb.mxu2 %v1455_v41  ;;  %v7091_v20 = vld [vmem:[%s12829_s5 + $0x5c0] sm:$0xff] }
 0x2d2   :  { %2931 = vmatpush.msra.mxu1 %v1866_v55  ;;  %3051 = vmatpush.msrb.mxu3 %v1867_v27  ;;  %v1747_v41 = vunpack.c.h.bf16 %v7091_v20  ;;  %v10083_v55 = vld [vmem:[%s12829_s5 + $0x5b0] sm:$0xff]  ;;  %v1748_v27 = vunpack.c.l.bf16 %v10069_v12 }
 0x2d3   :  { %3061 = vmatpush.msra.mxu0 %v1448_v38  ;;  %3181 = vmatpush.msrb.mxu2 %v1449_v16  ;;  %v1431_v38 = vunpack.c.h.bf16 %v1116_v29  ;;  %v1110_v16 = vld [vmem:[%s12829_s5 + $0xa0] sm:$0xff]  ;;  %v1742_v56 = vunpack.c.l.bf16 %v10083_v55 }
 0x2d4   :  { %2932 = vmatpush.msra.mxu1 %v1860_v17  ;;  %3052 = vmatpush.msrb.mxu3 %v1861_v51  ;;  %v1741_v17 = vunpack.c.h.bf16 %v7092_v54  ;;  %v1424_v51 = vunpack.c.l.bf16 %v1113_v49  ;;  %v1418_v29 = vunpack.c.l.bf16 %v1110_v16 }
 0x2d5   :  { %2933 = vmatmul.f32.vlgmr.msra.gmra.mxu1 %v9752_v3  ;;  %3053 = vmatmul.f32.vlgmr.msrb.gmra.mxu3 %v9752_v3 }
 0x2d6   :  { %2997 = vmatpush.msrb.mxu1 %v1759_v0  ;;  %3062 = vmatpush.msra.mxu0 %v1442_v36  ;;  %v1425_v0 = vunpack.c.h.bf16 %v1113_v49  ;;  %v1107_v36 = vld [vmem:[%s12829_s5 + $0x88] sm:$0xff] }
 0x2d7   :  { %3117 = vmatpush.msra.mxu3 %v1760_v53  ;;  %3182 = vmatpush.msrb.mxu2 %v1443_v33  ;;  %v7093_v53 = vld [vmem:[%s12829_s5 + $0x590] sm:$0xff]  ;;  %v1412_v20 = vunpack.c.l.bf16 %v1107_v36 }
 0x2d8   :  { %2998 = vmatpush.msrb.mxu1 %v1753_v23  ;;  %3063 = vmatpush.msra.mxu0 %v1436_v5  ;;  %v1735_v33 = vunpack.c.h.bf16 %v7093_v53  ;;  %v1736_v23 = vunpack.c.l.bf16 %v10095_v57  ;;  %v1419_v5 = vunpack.c.h.bf16 %v1110_v16  ;;  %v7095_v16 = vld [vmem:[%s12829_s5 + $0x560] sm:$0xff]  ;;  %v7096_v53 = vld [vmem:[%s12829_s5 + $0x548] sm:$0xff] }
 0x2d9   :  { %3118 = vmatpush.msra.mxu3 %v1754_v6  ;;  %3183 = vmatpush.msrb.mxu2 %v1437_v63  ;;  %v1104_v6 = vld [vmem:[%s12829_s5 + $0x70] sm:$0xff]  ;;  %v7094_v63 = vld [vmem:[%s12829_s5 + $0x578] sm:$0xff]  ;;  %v1723_v54 = vunpack.c.h.bf16 %v7095_v16 }
 0x2da   :  { %2999 = vmatpush.msrb.mxu1 %v1747_v41  ;;  %3064 = vmatpush.msra.mxu0 %v1430_v43  ;;  %v1729_v49 = vunpack.c.h.bf16 %v7094_v63  ;;  %v10119_v41 = vld [vmem:[%s12829_s5 + $0x568] sm:$0xff]  ;;  %v1730_v43 = vunpack.c.l.bf16 %v10107_v1 }
 0x2db   :  { %3119 = vmatpush.msra.mxu3 %v1748_v27  ;;  %3184 = vmatpush.msrb.mxu2 %v1431_v38  ;;  %v1413_v27 = vunpack.c.h.bf16 %v1107_v36  ;;  %v1101_v38 = vld [vmem:[%s12829_s5 + $0x58] sm:$0xff]  ;;  %v1098_v36 = vld [vmem:[%s12829_s5 + $0x40] sm:$0xff]  ;;  %v1095_v63 = vld [vmem:[%s12829_s5 + $0x28] sm:$0xff] }
 0x2dc   :  { %3000 = vmatpush.msrb.mxu1 %v1741_v17  ;;  %3065 = vmatpush.msra.mxu0 %v1424_v51  ;;  %v1406_v17 = vunpack.c.l.bf16 %v1104_v6  ;;  %v10131_v51 = vld [vmem:[%s12829_s5 + $0x550] sm:$0xff]  ;;  %v1394_v16 = vunpack.c.l.bf16 %v1098_v36 }
 0x2dd   :  { %3120 = vmatpush.msra.mxu3 %v1742_v56  ;;  %3185 = vmatpush.msrb.mxu2 %v1425_v0  ;;  %v1724_v56 = vunpack.c.l.bf16 %v10119_v41  ;;  %v1407_v0 = vunpack.c.h.bf16 %v1104_v6  ;;  %v1401_v6 = vunpack.c.h.bf16 %v1101_v38 }
 0x2de   :  { %3001 = vmatpush.msrb.mxu1 %v1735_v33  ;;  %3066 = vmatpush.msra.mxu0 %v1418_v29  ;;  %v1717_v33 = vunpack.c.h.bf16 %v7096_v53  ;;  %v1400_v29 = vunpack.c.l.bf16 %v1101_v38  ;;  %v1395_v38 = vunpack.c.h.bf16 %v1098_v36  ;;  %v1389_v36 = vunpack.c.h.bf16 %v1095_v63 }
 0x2df   :  { %3121 = vmatpush.msra.mxu3 %v1736_v23  ;;  %3186 = vmatpush.msrb.mxu2 %v1419_v5  ;;  %v10143_v23 = vld [vmem:[%s12829_s5 + $0x538] sm:$0xff]  ;;  %v1718_v5 = vunpack.c.l.bf16 %v10131_v51 }
 0x2e0   :  { %3002 = vmatpush.msrb.mxu1 %v1729_v49  ;;  %3067 = vmatpush.msra.mxu0 %v1412_v20  ;;  %v7097_v49 = vld [vmem:[%s12829_s5 + $0x530] sm:$0xff] }
 0x2e1   :  { %3122 = vmatpush.msra.mxu3 %v1730_v43  ;;  %3187 = vmatpush.msrb.mxu2 %v1413_v27  ;;  %v1711_v20 = vunpack.c.h.bf16 %v7097_v49  ;;  %v10155_v43 = vld [vmem:[%s12829_s5 + $0x520] sm:$0xff]  ;;  %v1712_v27 = vunpack.c.l.bf16 %v10143_v23  ;;  %v1388_v49 = vunpack.c.l.bf16 %v1095_v63  ;;  %v10180_v63 = vld [vmem:[%s12829_s5 + $0x4f0] sm:$0xff] }
 0x2e2   :  { %3003 = vmatpush.msrb.mxu1 %v1723_v54  ;;  %3068 = vmatpush.msra.mxu0 %v1406_v17  ;;  %v1092_v54 = vld [vmem:[%s12829_s5 + $0x10] sm:$0xff]  ;;  %v7098_v17 = vld [vmem:[%s12829_s5 + $0x518] sm:$0xff] }
 0x2e3   :  { %3123 = vmatpush.msra.mxu3 %v1724_v56  ;;  %3188 = vmatpush.msrb.mxu2 %v1407_v0  ;;  %v1705_v53 = vunpack.c.h.bf16 %v7098_v17  ;;  %v10167_v56 = vld [vmem:[%s12829_s5 + $0x508] sm:$0xff]  ;;  %v1706_v0 = vunpack.c.l.bf16 %v10155_v43  ;;  %v1382_v25 = vunpack.c.l.bf16 %v1092_v54  ;;  %v1329_v17 = vld [vmem:[%s12829_s5 + $0x778] sm:$0xff] }
 0x2e4   :  { %3004 = vmatpush.msrb.mxu1 %v1717_v33  ;;  %3069 = vmatpush.msra.mxu0 %v1400_v29  ;;  %v7099_v33 = vld [vmem:[%s12829_s5 + $0x500] sm:$0xff] }
 0x2e5   :  { %3124 = vmatpush.msra.mxu3 %v1718_v5  ;;  %3189 = vmatpush.msrb.mxu2 %v1401_v6  ;;  %v1699_v29 = vunpack.c.h.bf16 %v7099_v33  ;;  %v1700_v5 = vunpack.c.l.bf16 %v10167_v56  ;;  %v1383_v6 = vunpack.c.h.bf16 %v1092_v54  ;;  %v1857_v33 = vunpack.c.h.bf16 %v1329_v17 }
 0x2e6   :  { %3005 = vmatpush.msrb.mxu1 %v1711_v20  ;;  %3070 = vmatpush.msra.mxu0 %v1394_v16  ;;  %v1326_v20 = vld [vmem:[%s12829_s5 + $0x760] sm:$0xff]  ;;  %v1856_v16 = vunpack.c.l.bf16 %v1329_v17 }
 0x2e7   :  { %3125 = vmatpush.msra.mxu3 %v1712_v27  ;;  %3190 = vmatpush.msrb.mxu2 %v1395_v38  ;;  %v10188_v27 = vld [vmem:[%s12829_s5 + $0x4d8] sm:$0xff]  ;;  %v7100_v38 = vld [vmem:[%s12829_s5 + $0x4e8] sm:$0xff] }
 0x2e8   :  { %3006 = vmatpush.msrb.mxu1 %v1705_v53  ;;  %3071 = vmatpush.msra.mxu0 %v1388_v49  ;;  %v1693_v54 = vunpack.c.h.bf16 %v7100_v38  ;;  %v1694_v53 = vunpack.c.l.bf16 %v10180_v63  ;;  %v1323_v49 = vld [vmem:[%s12829_s5 + $0x748] sm:$0xff]  ;;  %v1688_v38 = vunpack.c.l.bf16 %v10188_v27 }
 0x2e9   :  { %3126 = vmatpush.msra.mxu3 %v1706_v0  ;;  %3191 = vmatpush.msrb.mxu2 %v1389_v36  ;;  %v1850_v0 = vunpack.c.l.bf16 %v1326_v20  ;;  %v1851_v36 = vunpack.c.h.bf16 %v1326_v20  ;;  %v1845_v20 = vunpack.c.h.bf16 %v1323_v49 }
 0x2ea   :  { %3007 = vmatpush.msrb.mxu1 %v1699_v29  ;;  %3072 = vmatpush.msra.mxu0 %v1382_v25  ;;  %v10200_v29 = vld [vmem:[%s12829_s5 + $0x4c0] sm:$0xff]  ;;  %v7101_v25 = vld [vmem:[%s12829_s5 + $0x4d0] sm:$0xff] }
 0x2eb   :  { %3127 = vmatpush.msra.mxu3 %v1700_v5  ;;  %3192 = vmatpush.msrb.mxu2 %v1383_v6  ;;  %v1687_v17 = vunpack.c.h.bf16 %v7101_v25  ;;  %v1320_v5 = vld [vmem:[%s12829_s5 + $0x730] sm:$0xff]  ;;  %v1844_v6 = vunpack.c.l.bf16 %v1323_v49  ;;  %v1682_v2 = vunpack.c.l.bf16 %v10200_v29 }
 0x2ec   :  { %3073 = vmatmul.f32.vlgmr.msra.gmra.mxu0 %v8488_v52  ;;  %3193 = vmatmul.f32.vlgmr.msrb.gmra.mxu2 %v8488_v52  ;;  %v7102_v52 = vld [vmem:[%s12829_s5 + $0x4b8] sm:$0xff]  ;;  %v1839_v49 = vunpack.c.h.bf16 %v1320_v5 }
 0x2ed   :  { %3137 = vmatpush.msrb.mxu0 %v1856_v16  ;;  %3257 = vmatpush.msra.mxu2 %v1857_v33  ;;  %v1681_v25 = vunpack.c.h.bf16 %v7102_v52  ;;  %v1317_v16 = vld [vmem:[%s12829_s5 + $0x718] sm:$0xff]  ;;  %v1838_v33 = vunpack.c.l.bf16 %v1320_v5 }
 0x2ee   :  { %3008 = vmatpush.msrb.mxu1 %v1693_v54  ;;  %3128 = vmatpush.msra.mxu3 %v1694_v53  ;;  %v10226_v54 = vld [vmem:[%s12829_s5 + $0x490] sm:$0xff]  ;;  %v7103_v53 = vld [vmem:[%s12829_s5 + $0x4a0] sm:$0xff]  ;;  %v1185_v5 = vld [vmem:[%s12829_s5 + $0x2f8] sm:$0xff] }
 0x2ef   :  { %3138 = vmatpush.msrb.mxu0 %v1850_v0  ;;  %3258 = vmatpush.msra.mxu2 %v1851_v36  ;;  %v1675_v52 = vunpack.c.h.bf16 %v7103_v53  ;;  %v1832_v0 = vunpack.c.l.bf16 %v1317_v16  ;;  %v1833_v36 = vunpack.c.h.bf16 %v1317_v16  ;;  %v1311_v16 = vld [vmem:[%s12829_s5 + $0x6e8] sm:$0xff]  ;;  %v1569_v37 = vunpack.c.h.bf16 %v1185_v5 }
 0x2f0   :  { %3009 = vmatpush.msrb.mxu1 %v1687_v17  ;;  %3129 = vmatpush.msra.mxu3 %v1688_v38  ;;  %v1314_v17 = vld [vmem:[%s12829_s5 + $0x700] sm:$0xff]  ;;  %v7104_v38 = vld [vmem:[%s12829_s5 + $0x488] sm:$0xff]  ;;  %v1820_v50 = vunpack.c.l.bf16 %v1311_v16 }
 0x2f1   :  { %3139 = vmatpush.msrb.mxu0 %v1844_v6  ;;  %3259 = vmatpush.msra.mxu2 %v1845_v20  ;;  %v1669_v53 = vunpack.c.h.bf16 %v7104_v38  ;;  %v1670_v6 = vunpack.c.l.bf16 %v10226_v54  ;;  %v1182_v20 = vld [vmem:[%s12829_s5 + $0x2e0] sm:$0xff]  ;;  %v1827_v38 = vunpack.c.h.bf16 %v1314_v17 }
 0x2f2   :  { %3010 = vmatpush.msrb.mxu1 %v1681_v25  ;;  %3130 = vmatpush.msra.mxu3 %v1682_v2  ;;  %v1568_v2 = vunpack.c.l.bf16 %v1185_v5  ;;  %v1826_v25 = vunpack.c.l.bf16 %v1314_v17  ;;  %v1562_v59 = vunpack.c.l.bf16 %v1182_v20 }
 0x2f3   :  { %3140 = vmatpush.msrb.mxu0 %v1838_v33  ;;  %3260 = vmatpush.msra.mxu2 %v1839_v49  ;;  %v1179_v33 = vld [vmem:[%s12829_s5 + $0x2c8] sm:$0xff]  ;;  %v1308_v49 = vld [vmem:[%s12829_s5 + $0x6d0] sm:$0xff] }
 0x2f4   :  { %3011 = vmatpush.msrb.mxu1 %v1675_v52  ;;  %3131 = vmatpush.msra.mxu3 %v1676_v32  ;;  %v1563_v32 = vunpack.c.h.bf16 %v1182_v20  ;;  %v1821_v52 = vunpack.c.h.bf16 %v1311_v16  ;;  %v1556_v5 = vunpack.c.l.bf16 %v1179_v33  ;;  %v1814_v17 = vunpack.c.l.bf16 %v1308_v49  ;;  %v1173_v20 = vld [vmem:[%s12829_s5 + $0x298] sm:$0xff]  ;;  %v1302_v16 = vld [vmem:[%s12829_s5 + $0x6a0] sm:$0xff] }
 0x2f5   :  { %3141 = vmatpush.msrb.mxu0 %v1832_v0  ;;  %3261 = vmatpush.msra.mxu2 %v1833_v36  ;;  %v1176_v0 = vld [vmem:[%s12829_s5 + $0x2b0] sm:$0xff]  ;;  %v1305_v36 = vld [vmem:[%s12829_s5 + $0x6b8] sm:$0xff] }
 0x2f6   :  { %3012 = vmatpush.msrb.mxu1 %v1669_v53  ;;  %3132 = vmatpush.msra.mxu3 %v1670_v6  ;;  %v1557_v53 = vunpack.c.h.bf16 %v1179_v33  ;;  %v1815_v6 = vunpack.c.h.bf16 %v1308_v49  ;;  %v1550_v11 = vunpack.c.l.bf16 %v1176_v0  ;;  %v1808_v34 = vunpack.c.l.bf16 %v1305_v36 }
 0x2f7   :  { %3013 = vmatmul.f32.vlgmr.msrb.gmra.mxu1 %v9292_v40  ;;  %3133 = vmatmul.f32.vlgmr.msra.gmra.mxu3 %v9292_v40  ;;  %v1544_v33 = vunpack.c.l.bf16 %v1173_v20  ;;  %v1802_v49 = vunpack.c.l.bf16 %v1302_v16 }
 0x2f8   :  { %3077 = vmatpush.msra.mxu1 %v1568_v2  ;;  %3142 = vmatpush.msrb.mxu0 %v1826_v25  ;;  %v1551_v2 = vunpack.c.h.bf16 %v1176_v0  ;;  %v1809_v25 = vunpack.c.h.bf16 %v1305_v36 }
 0x2f9   :  { %3197 = vmatpush.msrb.mxu3 %v1569_v37  ;;  %3262 = vmatpush.msra.mxu2 %v1827_v38  ;;  %v1170_v37 = vld [vmem:[%s12829_s5 + $0x280] sm:$0xff]  ;;  %v1299_v38 = vld [vmem:[%s12829_s5 + $0x688] sm:$0xff] }
 0x2fa   :  { %3078 = vmatpush.msra.mxu1 %v1562_v59  ;;  %3143 = vmatpush.msrb.mxu0 %v1820_v50  ;;  %v1545_v50 = vunpack.c.h.bf16 %v1173_v20  ;;  %v1803_v59 = vunpack.c.h.bf16 %v1302_v16  ;;  %v1538_v0 = vunpack.c.l.bf16 %v1170_v37  ;;  %v1796_v36 = vunpack.c.l.bf16 %v1299_v38 }
 0x2fb   :  { %3198 = vmatpush.msrb.mxu3 %v1563_v32  ;;  %3263 = vmatpush.msra.mxu2 %v1821_v52  ;;  %v1167_v32 = vld [vmem:[%s12829_s5 + $0x268] sm:$0xff]  ;;  %v1296_v52 = vld [vmem:[%s12829_s5 + $0x670] sm:$0xff] }
 0x2fc   :  { %3079 = vmatpush.msra.mxu1 %v1556_v5  ;;  %3144 = vmatpush.msrb.mxu0 %v1814_v17  ;;  %v1539_v5 = vunpack.c.h.bf16 %v1170_v37  ;;  %v1797_v17 = vunpack.c.h.bf16 %v1299_v38  ;;  %v1532_v20 = vunpack.c.l.bf16 %v1167_v32  ;;  %v1790_v16 = vunpack.c.l.bf16 %v1296_v52 }
 0x2fd   :  { %3199 = vmatpush.msrb.mxu3 %v1557_v53  ;;  %3264 = vmatpush.msra.mxu2 %v1815_v6  ;;  %v1164_v53 = vld [vmem:[%s12829_s5 + $0x250] sm:$0xff]  ;;  %v1293_v6 = vld [vmem:[%s12829_s5 + $0x658] sm:$0xff] }
 0x2fe   :  { %3080 = vmatpush.msra.mxu1 %v1550_v11  ;;  %3145 = vmatpush.msrb.mxu0 %v1808_v34  ;;  %v1533_v34 = vunpack.c.h.bf16 %v1167_v32  ;;  %v1791_v11 = vunpack.c.h.bf16 %v1296_v52  ;;  %v1526_v37 = vunpack.c.l.bf16 %v1164_v53  ;;  %v1784_v38 = vunpack.c.l.bf16 %v1293_v6 }
 0x2ff   :  { %3200 = vmatpush.msrb.mxu3 %v1551_v2  ;;  %3265 = vmatpush.msra.mxu2 %v1809_v25  ;;  %v1161_v2 = vld [vmem:[%s12829_s5 + $0x238] sm:$0xff]  ;;  %v1290_v25 = vld [vmem:[%s12829_s5 + $0x640] sm:$0xff] }
 0x300   :  { %3081 = vmatpush.msra.mxu1 %v1544_v33  ;;  %3146 = vmatpush.msrb.mxu0 %v1802_v49  ;;  %v1527_v33 = vunpack.c.h.bf16 %v1164_v53  ;;  %v1785_v49 = vunpack.c.h.bf16 %v1293_v6  ;;  %v1520_v32 = vunpack.c.l.bf16 %v1161_v2  ;;  %v1778_v52 = vunpack.c.l.bf16 %v1290_v25 }
 0x301   :  { %3201 = vmatpush.msrb.mxu3 %v1545_v50  ;;  %3266 = vmatpush.msra.mxu2 %v1803_v59  ;;  %v1158_v50 = vld [vmem:[%s12829_s5 + $0x220] sm:$0xff]  ;;  %v1287_v59 = vld [vmem:[%s12829_s5 + $0x628] sm:$0xff] }
 0x302   :  { %3082 = vmatpush.msra.mxu1 %v1538_v0  ;;  %3147 = vmatpush.msrb.mxu0 %v1796_v36  ;;  %v1521_v0 = vunpack.c.h.bf16 %v1161_v2  ;;  %v1779_v36 = vunpack.c.h.bf16 %v1290_v25  ;;  %v1514_v53 = vunpack.c.l.bf16 %v1158_v50  ;;  %v1772_v6 = vunpack.c.l.bf16 %v1287_v59  ;;  %v1152_v2 = vld [vmem:[%s12829_s5 + $0x1f0] sm:$0xff] }
 0x303   :  { %3202 = vmatpush.msrb.mxu3 %v1539_v5  ;;  %3267 = vmatpush.msra.mxu2 %v1797_v17  ;;  %v1155_v5 = vld [vmem:[%s12829_s5 + $0x208] sm:$0xff]  ;;  %v1284_v17 = vld [vmem:[%s12829_s5 + $0x610] sm:$0xff] }
 0x304   :  { %3083 = vmatpush.msra.mxu1 %v1532_v20  ;;  %3148 = vmatpush.msrb.mxu0 %v1790_v16  ;;  %v1515_v20 = vunpack.c.h.bf16 %v1158_v50  ;;  %v1773_v16 = vunpack.c.h.bf16 %v1287_v59  ;;  %v1509_v25 = vunpack.c.h.bf16 %v1155_v5  ;;  %v1767_v31 = vunpack.c.h.bf16 %v1284_v17  ;;  %v1146_v50 = vld [vmem:[%s12829_s5 + $0x1c0] sm:$0xff] }
 0x305   :  { %3203 = vmatpush.msrb.mxu3 %v1533_v34  ;;  %3268 = vmatpush.msra.mxu2 %v1791_v11  ;;  %v1508_v34 = vunpack.c.l.bf16 %v1155_v5  ;;  %v1766_v11 = vunpack.c.l.bf16 %v1284_v17  ;;  %v1659_v59 = vunpack.c.h.bf16 %v9823_v21  ;;  %v1491_v5 = vunpack.c.h.bf16 %v1146_v50 }
 0x306   :  { %3084 = vmatpush.msra.mxu1 %v1526_v37  ;;  %3149 = vmatpush.msrb.mxu0 %v1784_v38  ;;  %v1149_v37 = vld [vmem:[%s12829_s5 + $0x1d8] sm:$0xff]  ;;  %v1665_v38 = vunpack.c.h.bf16 %v9815_v45  ;;  %v1143_v45 = vld [vmem:[%s12829_s5 + $0x1a8] sm:$0xff] }
 0x307   :  { %3204 = vmatpush.msrb.mxu3 %v1527_v33  ;;  %3269 = vmatpush.msra.mxu2 %v1785_v49  ;;  %v1502_v33 = vunpack.c.l.bf16 %v1152_v2  ;;  %v1503_v49 = vunpack.c.h.bf16 %v1152_v2  ;;  %v1484_v21 = vunpack.c.l.bf16 %v1143_v45  ;;  %v1485_v17 = vunpack.c.h.bf16 %v1143_v45  ;;  %v1371_v2 = vld [vmem:[%s12829_s5 + $0x8c8] sm:$0xff] }
 0x308   :  { %3085 = vmatpush.msra.mxu1 %v1520_v32  ;;  %3150 = vmatpush.msrb.mxu0 %v1778_v52  ;;  %v1496_v32 = vunpack.c.l.bf16 %v1149_v37  ;;  %v1497_v52 = vunpack.c.h.bf16 %v1149_v37 }
 0x309   :  { %3205 = vmatpush.msrb.mxu3 %v1521_v0  ;;  %3270 = vmatpush.msra.mxu2 %v1779_v36  ;;  %v1653_v0 = vunpack.c.h.bf16 %v9835_v13  ;;  %v1490_v36 = vunpack.c.l.bf16 %v1146_v50  ;;  %v1641_v13 = vunpack.c.h.bf16 %v9861_v30  ;;  %v1365_v50 = vld [vmem:[%s12829_s5 + $0x898] sm:$0xff] }
 0x30a   :  { %3086 = vmatpush.msra.mxu1 %v1514_v53  ;;  %3151 = vmatpush.msrb.mxu0 %v1772_v6  ;;  %v1377_v53 = vld [vmem:[%s12829_s5 + $0x8f8] sm:$0xff]  ;;  %v1929_v45 = vunpack.c.h.bf16 %v1365_v50 }
 0x30b   :  { %3206 = vmatpush.msrb.mxu3 %v1515_v20  ;;  %3271 = vmatpush.msra.mxu2 %v1773_v16  ;;  %v1374_v16 = vld [vmem:[%s12829_s5 + $0x8e0] sm:$0xff] }
 0x30c   :  { %3087 = vmatpush.msra.mxu1 %v1508_v34  ;;  %3152 = vmatpush.msrb.mxu0 %v1766_v11  ;;  %v1635_v34 = vunpack.c.h.bf16 %v9880_v19  ;;  %v1953_v11 = vunpack.c.h.bf16 %v1377_v53  ;;  %v1946_v30 = vunpack.c.l.bf16 %v1374_v16  ;;  %v1947_v37 = vunpack.c.h.bf16 %v1374_v16 }
 0x30d   :  { %3207 = vmatpush.msrb.mxu3 %v1509_v25  ;;  %3272 = vmatpush.msra.mxu2 %v1767_v31  ;;  %v1140_v31 = vld [vmem:[%s12829_s5 + $0x190] sm:$0xff]  ;;  %v1629_v25 = vunpack.c.h.bf16 %v9891_v61  ;;  %v1940_v19 = vunpack.c.l.bf16 %v1371_v2 }
 0x30e   :  { %3153 = vmatmul.f32.vlgmr.msrb.gmra.mxu0 %v9551_v60  ;;  %3273 = vmatmul.f32.vlgmr.msra.gmra.mxu2 %v9551_v60  ;;  %v1647_v60 = vunpack.c.h.bf16 %v9849_v48  ;;  %v1478_v6 = vunpack.c.l.bf16 %v1140_v31  ;;  %v1479_v20 = vunpack.c.h.bf16 %v1140_v31  ;;  %v1952_v48 = vunpack.c.l.bf16 %v1377_v53  ;;  %v1356_v31 = vld [vmem:[%s12829_s5 + $0x850] sm:$0xff] }
 0x30f   :  { %3217 = vmatpush.msra.mxu0 %v1665_v38  ;;  %3088 = vmatpush.msra.mxu1 %v1502_v33  ;;  %v1368_v38 = vld [vmem:[%s12829_s5 + $0x8b0] sm:$0xff]  ;;  %v1623_v33 = vunpack.c.h.bf16 %v9903_v35  ;;  %v1611_v35 = vunpack.c.h.bf16 %v9929_v24  ;;  %v1599_v24 = vunpack.c.h.bf16 %v9953_v8  ;;  %v1910_v53 = vunpack.c.l.bf16 %v1356_v31 }
 0x310   :  { %3208 = vmatpush.msrb.mxu3 %v1503_v49  ;;  %v1941_v49 = vunpack.c.h.bf16 %v1371_v2  ;;  %v1934_v61 = vunpack.c.l.bf16 %v1368_v38  ;;  %v1587_v8 = vunpack.c.h.bf16 %v9977_v42  ;;  %v1344_v2 = vld [vmem:[%s12829_s5 + $0x7f0] sm:$0xff]  ;;  %v1575_v42 = vunpack.c.h.bf16 %v10001_v39  ;;  %v1335_v39 = vld [vmem:[%s12829_s5 + $0x7a8] sm:$0xff] }
 0x311   :  { %3218 = vmatpush.msra.mxu0 %v1659_v59  ;;  %3089 = vmatpush.msra.mxu1 %v1496_v32  ;;  %v1617_v59 = vunpack.c.h.bf16 %v9917_v26  ;;  %v1935_v32 = vunpack.c.h.bf16 %v1368_v38  ;;  %v1605_v26 = vunpack.c.h.bf16 %v9941_v10  ;;  %v1593_v10 = vunpack.c.h.bf16 %v9965_v15 }
 0x312   :  { %3209 = vmatpush.msrb.mxu3 %v1497_v52  ;;  %v1928_v52 = vunpack.c.l.bf16 %v1365_v50  ;;  %v1581_v15 = vunpack.c.h.bf16 %v9989_v9  ;;  %v1886_v38 = vunpack.c.l.bf16 %v1344_v2  ;;  %v1887_v9 = vunpack.c.h.bf16 %v1344_v2 }
 0x313   :  { %3219 = vmatpush.msra.mxu0 %v1653_v0  ;;  %3090 = vmatpush.msra.mxu1 %v1490_v36  ;;  %v1359_v0 = vld [vmem:[%s12829_s5 + $0x868] sm:$0xff] }
 0x314   :  { %3210 = vmatpush.msrb.mxu3 %v1491_v5 }
 0x315   :  { %3220 = vmatpush.msra.mxu0 %v1647_v60  ;;  %3091 = vmatpush.msra.mxu1 %v1484_v21  ;;  %v1916_v60 = vunpack.c.l.bf16 %v1359_v0  ;;  %v1917_v21 = vunpack.c.h.bf16 %v1359_v0  ;;  %v1749_v0 = vunpack.c.h.bf16 %v10069_v12  ;;  %v1707_v12 = vunpack.c.h.bf16 %v10155_v43  ;;  %v3388_v43 = vld [vmem:[%s12825_s1] sm:$0xff] }
 0x316   :  { %3211 = vmatpush.msrb.mxu3 %v1485_v17  ;;  %v1353_v17 = vld [vmem:[%s12829_s5 + $0x838] sm:$0xff] }
 0x317   :  { %3221 = vmatpush.msra.mxu0 %v1641_v13  ;;  %3092 = vmatpush.msra.mxu1 %v1478_v6  ;;  %v1911_v13 = vunpack.c.h.bf16 %v1356_v31  ;;  %v1350_v6 = vld [vmem:[%s12829_s5 + $0x820] sm:$0xff]  ;;  %v1905_v16 = vunpack.c.h.bf16 %v1353_v17  ;;  %v10423_v31 = vpop.f32.mrf.mxu0 }
 0x318   :  { %3212 = vmatpush.msrb.mxu3 %v1479_v20  ;;  %3093 = vmatmul.f32.vlgmr.msra.gmra.mxu1 %v8691_v46  ;;  %v1904_v20 = vunpack.c.l.bf16 %v1353_v17  ;;  %v3400_v17 = vld [vmem:[%s12825_s1 + $0x60] sm:$0xff] }
 0x319   :  { %3157 = vmatpush.msrb.mxu1 %v1952_v48  ;;  %3213 = vmatmul.f32.vlgmr.msrb.gmra.mxu3 %v8691_v46  ;;  %v1362_v46 = vld [vmem:[%s12829_s5 + $0x880] sm:$0xff]  ;;  %v1347_v48 = vld [vmem:[%s12829_s5 + $0x808] sm:$0xff] }
 0x31a   :  { %3222 = vmatpush.msra.mxu0 %v1635_v34  ;;  %3277 = vmatpush.msra.mxu3 %v1953_v11  ;;  %v1922_v36 = vunpack.c.l.bf16 %v1362_v46  ;;  %v1923_v5 = vunpack.c.h.bf16 %v1362_v46  ;;  %v1898_v34 = vunpack.c.l.bf16 %v1350_v6  ;;  %v1899_v11 = vunpack.c.h.bf16 %v1350_v6 }
 0x31b   :  { %3158 = vmatpush.msrb.mxu1 %v1946_v30  ;;  %v1892_v30 = vunpack.c.l.bf16 %v1347_v48  ;;  %v1869_v46 = vunpack.c.h.bf16 %v1335_v39 }
 0x31c   :  { %3223 = vmatpush.msra.mxu0 %v1629_v25  ;;  %3278 = vmatpush.msra.mxu3 %v1947_v37  ;;  %v1893_v25 = vunpack.c.h.bf16 %v1347_v48  ;;  %v1341_v37 = vld [vmem:[%s12829_s5 + $0x7d8] sm:$0xff] }
 0x31d   :  { %3159 = vmatpush.msrb.mxu1 %v1940_v19  ;;  %v1338_v19 = vld [vmem:[%s12829_s5 + $0x7c0] sm:$0xff] }
 0x31e   :  { %3224 = vmatpush.msra.mxu0 %v1623_v33  ;;  %3279 = vmatpush.msra.mxu3 %v1941_v49  ;;  %v1880_v33 = vunpack.c.l.bf16 %v1341_v37  ;;  %v1881_v49 = vunpack.c.h.bf16 %v1341_v37  ;;  %v1874_v50 = vunpack.c.l.bf16 %v1338_v19 }
 0x31f   :  { %3160 = vmatpush.msrb.mxu1 %v1934_v61  ;;  %v1875_v61 = vunpack.c.h.bf16 %v1338_v19 }
 0x320   :  { %3225 = vmatpush.msra.mxu0 %v1617_v59  ;;  %3280 = vmatpush.msra.mxu3 %v1935_v32  ;;  %v1332_v59 = vld [vmem:[%s12829_s5 + $0x790] sm:$0xff]  ;;  %v1868_v32 = vunpack.c.l.bf16 %v1335_v39 }
 0x321   :  { %3161 = vmatpush.msrb.mxu1 %v1928_v52  ;;  %v1862_v52 = vunpack.c.l.bf16 %v1332_v59 }
 0x322   :  { %3226 = vmatpush.msra.mxu0 %v1611_v35  ;;  %3281 = vmatpush.msra.mxu3 %v1929_v45  ;;  %v1863_v35 = vunpack.c.h.bf16 %v1332_v59  ;;  %v1761_v45 = vunpack.c.h.bf16 %v10046_v18  ;;  %v1731_v18 = vunpack.c.h.bf16 %v10107_v1  ;;  %v1689_v1 = vunpack.c.h.bf16 %v10188_v27  ;;  %v3394_v27 = vld [vmem:[%s12825_s1 + $0x30] sm:$0xff] }
 0x323   :  { %3162 = vmatpush.msrb.mxu1 %v1922_v36  ;;  %v1743_v36 = vunpack.c.h.bf16 %v10083_v55  ;;  %v1701_v55 = vunpack.c.h.bf16 %v10167_v56  ;;  %v3485_v56 = vsel %vm3484_vm0, %v3388_v43, 0.0 }
 0x324   :  { %3227 = vmatpush.msra.mxu0 %v1605_v26  ;;  %3282 = vmatpush.msra.mxu3 %v1923_v5  ;;  %v1737_v26 = vunpack.c.h.bf16 %v10095_v57  ;;  %v1719_v5 = vunpack.c.h.bf16 %v10131_v51  ;;  %v1695_v57 = vunpack.c.h.bf16 %v10180_v63  ;;  %v1677_v51 = vunpack.c.h.bf16 %v10214_v47  ;;  %v3391_v63 = vld [vmem:[%s12825_s1 + $0x18] sm:$0xff] }
 0x325   :  { %3163 = vmatpush.msrb.mxu1 %v1916_v60  ;;  %3486 = vadd.xlane.f32.xlu2 %v3485_v56  ;;  %v3494_v47 = vsel %vm3484_vm0, %v3391_v63, 0.0  ;;  %v10425_v60 = vpop.f32.mrf.mxu2 }
 0x326   :  { %3228 = vmatpush.msra.mxu0 %v1599_v24  ;;  %3283 = vmatpush.msra.mxu3 %v1917_v21  ;;  %v10427_v24 = vpop.f32.mrf.mxu1  ;;  %v10429_v21 = vpop.f32.mrf.mxu3 }
 0x327   :  { %3164 = vmatpush.msrb.mxu1 %v1910_v53  ;;  %v10434_v53 = vpop.f32.mrf.mxu0 }
 0x328   :  { %3229 = vmatpush.msra.mxu0 %v1593_v10  ;;  %3284 = vmatpush.msra.mxu3 %v1911_v13  ;;  %v3521_v10 = vsel %vm3484_vm0, %v3400_v17, 0.0 }
 0x329   :  { %3165 = vmatpush.msrb.mxu1 %v1904_v20  ;;  %v3403_v20 = vld [vmem:[%s12825_s1 + $0x78] sm:$0xff] }
 0x32a   :  { %3230 = vmatpush.msra.mxu0 %v1587_v8  ;;  %3285 = vmatpush.msra.mxu3 %v1905_v16  ;;  %v3530_v16 = vsel %vm3484_vm0, %v3403_v20, 0.0 }
 0x32b   :  { %3166 = vmatpush.msrb.mxu1 %v1898_v34  ;;  %v3406_v34 = vld [vmem:[%s12825_s1 + $0x90] sm:$0xff] }
 0x32c   :  { %3231 = vmatpush.msra.mxu0 %v1581_v15  ;;  %3286 = vmatpush.msra.mxu3 %v1899_v11 }
 0x32d   :  { %3167 = vmatpush.msrb.mxu1 %v1892_v30  ;;  %3495 = vadd.xlane.f32.xlu2 %v3494_v47  ;;  %v2714_v6 = vpop.f32.mrf.mxu2  ;;  %v3539_v30 = vsel %vm3484_vm0, %v3406_v34, 0.0 }
 0x32e   :  { %3232 = vmatpush.msra.mxu0 %v1575_v42  ;;  %3287 = vmatpush.msra.mxu3 %v1893_v25  ;;  %v10437_v13 = vpop.f32.mrf.mxu1  ;;  %v2734_v8 = vpop.f32.mrf.mxu3  ;;  %v3409_v25 = vld [vmem:[%s12825_s1 + $0xa8] sm:$0xff] }
 0x32f   :  { %3233 = vmatmul.f32.vlgmr.msra.gmra.mxu0 %v8954_v28  ;;  %3168 = vmatpush.msrb.mxu1 %v1886_v38  ;;  %v1755_v28 = vunpack.c.h.bf16 %v10057_v58  ;;  %v1725_v58 = vunpack.c.h.bf16 %v10119_v41  ;;  %v1683_v41 = vunpack.c.h.bf16 %v10200_v29  ;;  %v3397_v29 = vld [vmem:[%s12825_s1 + $0x48] sm:$0xff]  ;;  %v2754_v48 = vpop.f32.mrf.mxu0 }
 0x330   :  { %3288 = vmatpush.msra.mxu3 %v1887_v9  ;;  %v3548_v9 = vsel %vm3484_vm0, %v3409_v25, 0.0 }
 0x331   :  { %3169 = vmatpush.msrb.mxu1 %v1880_v33 }
 0x332   :  { %3289 = vmatpush.msra.mxu3 %v1881_v49 }
 0x333   :  { %3170 = vmatpush.msrb.mxu1 %v1874_v50  ;;  %v3412_v50 = vld [vmem:[%s12825_s1 + $0xc0] sm:$0xff] }
 0x334   :  { %3290 = vmatpush.msra.mxu3 %v1875_v61  ;;  %v3557_v59 = vsel %vm3484_vm0, %v3412_v50, 0.0 }
 0x335   :  { %3171 = vmatpush.msrb.mxu1 %v1868_v32  ;;  %v10446_v15 = vpop.f32.mrf.mxu2 }
 0x336   :  { %3291 = vmatpush.msra.mxu3 %v1869_v46  ;;  %v2774_v11 = vpop.f32.mrf.mxu1  ;;  %v10448_v2 = vpop.f32.mrf.mxu3  ;;  %v3415_v46 = vld [vmem:[%s12825_s1 + $0xd8] sm:$0xff] }
 0x337   :  { %3172 = vmatpush.msrb.mxu1 %v1862_v52  ;;  %v2834_v42 = vpop.f32.mrf.mxu0 }
 0x338   :  { %3292 = vmatpush.msra.mxu3 %v1863_v35  ;;  %3173 = vmatmul.f32.vlgmr.msrb.gmra.mxu1 %v9752_v3 }
 0x339   :  { %3237 = vmatpush.msra.mxu1 %v1761_v45  ;;  %3293 = vmatmul.f32.vlgmr.msra.gmra.mxu3 %v9752_v3  ;;  %v1713_v3 = vunpack.c.h.bf16 %v10143_v23  ;;  %v1671_v23 = vunpack.c.h.bf16 %v10226_v54  ;;  %v3512_v54 = vsel %vm3484_vm0, %v3397_v29, 0.0  ;;  %v3566_v45 = vsel %vm3484_vm0, %v3415_v46, 0.0 }
 0x33b   :  { %3238 = vmatpush.msra.mxu1 %v1755_v28 }
 0x33d   :  { %3239 = vmatpush.msra.mxu1 %v1749_v0  ;;  %v2874_v38 = vpop.f32.mrf.mxu2  ;;  %v1954_v0 = vld [vmem:[%s12834_s10] sm:$0x3f] }
 0x33e   :  { %v2854_v37 = vpop.f32.mrf.mxu1  ;;  %v10455_v19 = vpop.f32.mrf.mxu3  ;;  %v1961_v20 = vperm.slane %v1954_v0, 5 }
 0x33f   :  { %3240 = vmatpush.msra.mxu1 %v1743_v36  ;;  %v10457_v33 = vpop.f32.mrf.mxu0  ;;  %v1960_v36 = vperm.slane %v1954_v0, 4 }
 0x341   :  { %3241 = vmatpush.msra.mxu1 %v1737_v26 }
 0x343   :  { %3242 = vmatpush.msra.mxu1 %v1731_v18  ;;  %v3418_v18 = vld [vmem:[%s12825_s1 + $0xf0] sm:$0xff] }
 0x345   :  { %3243 = vmatpush.msra.mxu1 %v1725_v58  ;;  %v2954_v39 = vpop.f32.mrf.mxu2 }
 0x346   :  { %v2974_v61 = vpop.f32.mrf.mxu3 }
 0x347   :  { %3244 = vmatpush.msra.mxu1 %v1719_v5  ;;  %v2994_v32 = vpop.f32.mrf.mxu0  ;;  %v1957_v5 = vperm.slane %v1954_v0, 1 }
 0x349   :  { %3245 = vmatpush.msra.mxu1 %v1713_v3  ;;  %v1959_v3 = vperm.slane %v1954_v0, 3  ;;  %v2715_v43 = vadd.f32 %v2714_v6, %v1957_v5 }
 0x34b   :  { %3246 = vmatpush.msra.mxu1 %v1707_v12  ;;  %v2955_v56 = vadd.f32 %v2954_v39, %v1959_v3 }
 0x34d   :  { %3247 = vmatpush.msra.mxu1 %v1701_v55  ;;  %v3034_v35 = vpop.f32.mrf.mxu2 }
 0x34f   :  { %3248 = vmatpush.msra.mxu1 %v1695_v57  ;;  %v3575_v57 = vsel %vm3484_vm0, %v3418_v18, 0.0 }
 0x351   :  { %3249 = vmatpush.msra.mxu1 %v1689_v1  ;;  %v1958_v1 = vperm.slane %v1954_v0, 2 }
 0x352   :  { %v10459_v49 = vpop.f32.mrf.mxu1 }
 0x353   :  { %3250 = vmatpush.msra.mxu1 %v1683_v41  ;;  %v2835_v47 = vadd.f32 %v2834_v42, %v1958_v1 }
 0x355   :  { %3251 = vmatpush.msra.mxu1 %v1677_v51  ;;  %v3114_v12 = vpop.f32.mrf.mxu2 }
 0x357   :  { %3252 = vmatpush.msra.mxu1 %v1671_v23  ;;  %v1956_v23 = vperm.slane %v1954_v0, 0 }
 0x358   :  { %3253 = vmatmul.f32.vlgmr.msra.gmra.mxu1 %v9292_v40  ;;  %v3503_v40 = vsel %vm3484_vm0, %v3394_v27, 0.0  ;;  %v3054_v28 = vpop.f32.mrf.mxu3  ;;  %v2735_v27 = vadd.f32 %v2734_v8, %v2715_v43 }
 0x359   :  { %3504 = vadd.xlane.f32.xlu2 %v3503_v40  ;;  %v2975_v40 = vadd.f32 %v2974_v61, %v2955_v56  ;;  %v2595_v17 = vadd.f32 %v10423_v31, %v1956_v23 }
 0x35b   :  { %v2995_v34 = vadd.f32 %v2994_v32, %v2975_v40 }
 0x361   :  { %3513 = vadd.xlane.f32.xlu2 %v3512_v54  ;;  %v3421_v54 = vld [vmem:[%s12825_s1 + $0x108] sm:$0xff] }
 0x362   :  { %v3584_v6 = vsel %vm3484_vm0, %v3421_v54, 0.0 }
 0x369   :  { %3522 = vadd.xlane.f32.xlu2 %v3521_v10  ;;  %v3074_v26 = vpop.f32.mrf.mxu0  ;;  %v2855_v10 = vadd.f32 %v2854_v37, %v2835_v47 }
 0x36a   :  { %v3075_v55 = vadd.f32 %v3074_v26, %v1960_v36 }
 0x371   :  { %3531 = vadd.xlane.f32.xlu2 %v3530_v16  ;;  %v2755_v16 = vadd.f32 %v2754_v48, %v2735_v27 }
 0x373   :  { %v2775_v42 = vadd.f32 %v2774_v11, %v2755_v16 }
 0x374   :  { %v3014_v52 = vpop.f32.mrf.mxu1 }
 0x375   :  { %v3015_v8 = vadd.f32 %v3014_v52, %v2995_v34  ;;  %v2795_v32 = vadd.f32 %v10446_v15, %v2775_v42 }
 0x379   :  { %3540 = vadd.xlane.f32.xlu2 %v3539_v30  ;;  %v3194_v30 = vpop.f32.mrf.mxu2 }
 0x37a   :  { %v3134_v41 = vpop.f32.mrf.mxu3  ;;  %v3195_v46 = vadd.f32 %v3194_v30, %v1961_v20  ;;  %v3441_v30 = vld [vmem:[%s12825_s1 + $0x1a8] sm:$0xff] }
 0x381   :  { %3549 = vadd.xlane.f32.xlu2 %v3548_v9  ;;  %v2615_v9 = vadd.f32 %v10427_v24, %v2595_v17  ;;  %v3437_v24 = vld [vmem:[%s12825_s1 + $0x188] sm:$0xff] }
 0x382   :  { %v3632_v26 = vsel %vm3484_vm0, %v3437_v24, 0.0 }
 0x383   :  { %v2635_v61 = vadd.f32 %v10425_v60, %v2615_v9  ;;  %v3644_v9 = vsel %vm3484_vm0, %v3441_v30, 0.0 }
 0x385   :  { %v2655_v37 = vadd.f32 %v10429_v21, %v2635_v61  ;;  %v3393_v61 = vld [vmem:[%s12825_s1 + $0x28] sm:$0xff] }
 0x387   :  { %v2675_v11 = vadd.f32 %v10434_v53, %v2655_v37 }
 0x389   :  { %3558 = vadd.xlane.f32.xlu2 %v3557_v59  ;;  %v2875_v59 = vadd.f32 %v2874_v38, %v2855_v10  ;;  %v10494_v21 = vadd.f32 %v10437_v13, %v2675_v11 }
 0x38b   :  { %v3154_v63 = vpop.f32.mrf.mxu0  ;;  %v2895_v52 = vadd.f32 %v10455_v19, %v2875_v59  ;;  %v3298_v13 = vsel %vm3297_vm9, %v10494_v21, inf  ;;  %v3392_v59 = vld [vmem:[%s12825_s1 + $0x20] sm:$0xff] }
 0x38c   :  { %v3497_v37 = vsel %vm3484_vm0, %v3392_v59, 0.0 }
 0x38d   :  { %v2915_v53 = vadd.f32 %v10457_v33, %v2895_v52  ;;  %v3318_v33 = vsel %vm3297_vm9, %v10494_v21, -inf }
 0x391   :  { %3567 = vadd.xlane.f32.xlu2 %v3566_v45  ;;  %v3035_v45 = vadd.f32 %v3034_v35, %v3015_v8  ;;  %v10497_v35 = vadd.f32 %v10448_v2, %v2795_v32  ;;  %v3443_v32 = vld [vmem:[%s12825_s1 + $0x1b8] sm:$0xff] }
 0x392   :  { %v3650_v24 = vsel %vm3484_vm0, %v3443_v32, 0.0  ;;  %v3417_v32 = vld [vmem:[%s12825_s1 + $0xe8] sm:$0xff] }
 0x393   :  { %v10499_v18 = vadd.f32 %v3054_v28, %v3035_v45  ;;  %v3299_v1 = vsel %vm3297_vm9, %v10497_v35, inf  ;;  %v3396_v45 = vld [vmem:[%s12825_s1 + $0x40] sm:$0xff] }
 0x394   :  { %v3509_v11 = vsel %vm3484_vm0, %v3396_v45, 0.0  ;;  %v3416_v45 = vld [vmem:[%s12825_s1 + $0xe0] sm:$0xff] }
 0x395   :  { %v3094_v58 = vpop.f32.mrf.mxu1  ;;  %v3301_v23 = vsel %vm3297_vm9, %v10499_v18, inf }
 0x396   :  { %v3095_v51 = vadd.f32 %v3094_v58, %v3075_v55  ;;  %v3274_v58 = vpop.f32.mrf.mxu2  ;;  %v3319_v55 = vsel %vm3297_vm9, %v10497_v35, -inf }
 0x398   :  { %v3115_v29 = vadd.f32 %v3114_v12, %v3095_v51  ;;  %v10507_v12 = vadd.f32 %v10459_v49, %v2915_v53  ;;  %v3440_v49 = vld [vmem:[%s12825_s1 + $0x1a0] sm:$0xff] }
 0x399   :  { %3576 = vadd.xlane.f32.xlu2 %v3575_v57  ;;  %v3321_v57 = vsel %vm3297_vm9, %v10499_v18, -inf  ;;  %v3641_v27 = vsel %vm3484_vm0, %v3440_v49, 0.0  ;;  %v3446_v49 = vld [vmem:[%s12825_s1 + $0x1d0] sm:$0xff] }
 0x39a   :  { %v3135_v50 = vadd.f32 %v3134_v41, %v3115_v29  ;;  %v3300_v40 = vsel %vm3297_vm9, %v10507_v12, inf  ;;  %v3320_v29 = vsel %vm3297_vm9, %v10507_v12, -inf }
 0x39b   :  { %v3327_v17 = vmax.f32 %v3320_v29, %v3321_v57  ;;  %v3307_v20 = vmin.f32 %v3300_v40, %v3301_v23  ;;  %v3659_v23 = vsel %vm3484_vm0, %v3446_v49, 0.0  ;;  %v3407_v40 = vld [vmem:[%s12825_s1 + $0x98] sm:$0xff] }
 0x39c   :  { %v3214_v39 = vpop.f32.mrf.mxu3  ;;  %v3155_v0 = vadd.f32 %v3154_v63, %v3135_v50  ;;  %v3442_v50 = vld [vmem:[%s12825_s1 + $0x1b0] sm:$0xff]  ;;  %v3439_v49 = vld [vmem:[%s12825_s1 + $0x198] sm:$0xff] }
 0x39d   :  { %v3215_v48 = vadd.f32 %v3214_v39, %v3195_v46  ;;  %v10547_v39 = vpop.xlane.xlu2 %3486  ;;  %v3647_v46 = vsel %vm3484_vm0, %v3442_v50, 0.0  ;;  %v3413_v50 = vld [vmem:[%s12825_s1 + $0xc8] sm:$0xff] }
 0x3a1   :  { %3585 = vadd.xlane.f32.xlu2 %v3584_v6  ;;  %v3389_v6 = vld [vmem:[%s12825_s1 + $0x8] sm:$0xff] }
 0x3a2   :  { %v3488_v8 = vsel %vm3484_vm0, %v3389_v6, 0.0 }
 0x3a9   :  { %3633 = vadd.xlane.f32.xlu2 %v3632_v26  ;;  %v3399_v26 = vld [vmem:[%s12825_s1 + $0x58] sm:$0xff] }
 0x3aa   :  { %v3518_v53 = vsel %vm3484_vm0, %v3399_v26, 0.0  ;;  %v3419_v26 = vld [vmem:[%s12825_s1 + $0xf8] sm:$0xff] }
 0x3ac   :  { %v3234_v31 = vpop.f32.mrf.mxu0 }
 0x3ad   :  { %v3235_v60 = vadd.f32 %v3234_v31, %v3215_v48  ;;  %v3500_v31 = vsel %vm3484_vm0, %v3393_v61, 0.0  ;;  %v10561_v48 = vpop.xlane.xlu2 %3495 }
 0x3b1   :  { %3642 = vadd.xlane.f32.xlu2 %v3641_v27  ;;  %v3408_v27 = vld [vmem:[%s12825_s1 + $0xa0] sm:$0xff] }
 0x3b5   :  { %v3174_v25 = vpop.f32.mrf.mxu1 }
 0x3b6   :  { %v10490_v38 = vadd.f32 %v3174_v25, %v3155_v0  ;;  %v3390_v25 = vld [vmem:[%s12825_s1 + $0x10] sm:$0xff]  ;;  %v3395_v0 = vld [vmem:[%s12825_s1 + $0x38] sm:$0xff] }
 0x3b7   :  { %v3491_v42 = vsel %vm3484_vm0, %v3390_v25, 0.0  ;;  %v3506_v52 = vsel %vm3484_vm0, %v3395_v0, 0.0 }
 0x3b8   :  { %v3302_v5 = vsel %vm3297_vm9, %v10490_v38, inf  ;;  %v3322_v2 = vsel %vm3297_vm9, %v10490_v38, -inf }
 0x3b9   :  { %v3303_v41 = vmin.f32 %v3298_v13, %v3302_v5  ;;  %v3323_v56 = vmax.f32 %v3318_v33, %v3322_v2  ;;  %3645 = vadd.xlane.f32.xlu2 %v3644_v9  ;;  %v3402_v13 = vld [vmem:[%s12825_s1 + $0x70] sm:$0xff]  ;;  %v3401_v2 = vld [vmem:[%s12825_s1 + $0x68] sm:$0xff] }
 0x3ba   :  { %v3524_v57 = vsel %vm3484_vm0, %v3401_v2, 0.0  ;;  %v3422_v2 = vld [vmem:[%s12825_s1 + $0x110] sm:$0xff] }
 0x3bc   :  { %v3294_v3 = vpop.f32.mrf.mxu3 }
 0x3c1   :  { %3648 = vadd.xlane.f32.xlu2 %v3647_v46  ;;  %v3560_v46 = vsel %vm3484_vm0, %v3413_v50, 0.0 }
 0x3c9   :  { %3651 = vadd.xlane.f32.xlu2 %v3650_v24  ;;  %v3572_v24 = vsel %vm3484_vm0, %v3417_v32, 0.0 }
 0x3d5   :  { %v3254_v36 = vpop.f32.mrf.mxu1 }
 0x3d6   :  { %v3255_v15 = vadd.f32 %v3254_v36, %v3235_v60  ;;  %v10575_v60 = vpop.xlane.xlu2 %3504  ;;  %v3444_v36 = vld [vmem:[%s12825_s1 + $0x1c0] sm:$0xff] }
 0x3d8   :  { %v3275_v19 = vadd.f32 %v3274_v58, %v3255_v15  ;;  %v3398_v15 = vld [vmem:[%s12825_s1 + $0x50] sm:$0xff]  ;;  %v3653_v58 = vsel %vm3484_vm0, %v3444_v36, 0.0  ;;  %v3420_v36 = vld [vmem:[%s12825_s1 + $0x100] sm:$0xff] }
 0x3d9   :  { %3654 = vadd.xlane.f32.xlu2 %v3653_v58 }
 0x3da   :  { %v10511_v28 = vadd.f32 %v3294_v3, %v3275_v19  ;;  %v3515_v19 = vsel %vm3484_vm0, %v3398_v15, 0.0  ;;  %v3445_v3 = vld [vmem:[%s12825_s1 + $0x1c8] sm:$0xff]  ;;  %v3451_v15 = vld [vmem:[%s12825_s1 + $0x1f8] sm:$0xff] }
 0x3db   :  { %v3656_v33 = vsel %vm3484_vm0, %v3445_v3, 0.0  ;;  %v3674_v58 = vsel %vm3484_vm0, %v3451_v15, 0.0 }
 0x3dc   :  { %v3324_v51 = vsel %vm3297_vm9, %v10511_v28, -inf  ;;  %v3304_v43 = vsel %vm3297_vm9, %v10511_v28, inf }
 0x3dd   :  { %v3325_v63 = vmax.f32 %v3319_v55, %v3324_v51  ;;  %v3305_v47 = vmin.f32 %v3299_v1, %v3304_v43  ;;  %v3527_v55 = vsel %vm3484_vm0, %v3402_v13, 0.0  ;;  %v3404_v51 = vld [vmem:[%s12825_s1 + $0x80] sm:$0xff] }
 0x3de   :  { %v10589_v5 = vpop.xlane.xlu2 %3513  ;;  %v3436_v13 = vld [vmem:[%s12825_s1 + $0x180] sm:$0xff] }
 0x3df   :  { %v3326_v54 = vmax.f32 %v3323_v56, %v3325_v63  ;;  %v3306_v10 = vmin.f32 %v3303_v41, %v3305_v47  ;;  %v3405_v41 = vld [vmem:[%s12825_s1 + $0x88] sm:$0xff]  ;;  %v3533_v56 = vsel %vm3484_vm0, %v3404_v51, 0.0  ;;  %v3447_v47 = vld [vmem:[%s12825_s1 + $0x1d8] sm:$0xff]  ;;  %v3638_v51 = vsel %vm3484_vm0, %v3439_v49, 0.0 }
 0x3e0   :  { %v3536_v43 = vsel %vm3484_vm0, %v3405_v41, 0.0  ;;  %v3662_v29 = vsel %vm3484_vm0, %v3447_v47, 0.0  ;;  %v3438_v41 = vld [vmem:[%s12825_s1 + $0x190] sm:$0xff] }
 0x3e1   :  { %v3328_v16 = vmax.f32 %v3326_v54, %v3327_v17  ;;  %v3308_v34 = vmin.f32 %v3306_v10, %v3307_v20  ;;  %3657 = vadd.xlane.f32.xlu2 %v3656_v33  ;;  %v3545_v54 = vsel %vm3484_vm0, %v3408_v27, 0.0  ;;  %v3542_v17 = vsel %vm3484_vm0, %v3407_v40, 0.0  ;;  %v3448_v20 = vld [vmem:[%s12825_s1 + $0x1e0] sm:$0xff] }
 0x3e2   :  { %v3665_v30 = vsel %vm3484_vm0, %v3448_v20, 0.0  ;;  %v3629_v33 = vsel %vm3484_vm0, %v3436_v13, 0.0  ;;  %v3472_v13 = vld [vmem:[%s12825_s1 + $0x2a0] sm:$0xff] }
 0x3e3   :  { %3329 = vmax.xlane.f32.xlu1 %v3328_v16  ;;  %3309 = vmin.xlane.f32.xlu0 %v3308_v34  ;;  %v3411_v16 = vld [vmem:[%s12825_s1 + $0xb8] sm:$0xff]  ;;  %v3410_v34 = vld [vmem:[%s12825_s1 + $0xb0] sm:$0xff]  ;;  %v3737_v49 = vsel %vm3484_vm0, %v3472_v13, 0.0 }
 0x3e4   :  { %v3554_v25 = vsel %vm3484_vm0, %v3411_v16, 0.0  ;;  %v3551_v6 = vsel %vm3484_vm0, %v3410_v34, 0.0  ;;  %v3430_v13 = vld [vmem:[%s12825_s1 + $0x150] sm:$0xff] }
 0x3e6   :  { %v10603_v1 = vpop.xlane.xlu2 %3522 }
 0x3e9   :  { %3660 = vadd.xlane.f32.xlu2 %v3659_v23  ;;  %v3635_v23 = vsel %vm3484_vm0, %v3438_v41, 0.0 }
 0x3eb   :  { %3492 = vadd.xlane.f32.xlu1 %v3491_v42  ;;  %3489 = vadd.xlane.f32.xlu0 %v3488_v8  ;;  %v3449_v42 = vld [vmem:[%s12825_s1 + $0x1e8] sm:$0xff]  ;;  %v3414_v8 = vld [vmem:[%s12825_s1 + $0xd0] sm:$0xff] }
 0x3ec   :  { %v3668_v61 = vsel %vm3484_vm0, %v3449_v42, 0.0  ;;  %v3563_v59 = vsel %vm3484_vm0, %v3414_v8, 0.0 }
 0x3ee   :  { %v10617_v63 = vpop.xlane.xlu2 %3531 }
 0x3f1   :  { %3663 = vadd.xlane.f32.xlu2 %v3662_v29  ;;  %v3423_v29 = vld [vmem:[%s12825_s1 + $0x118] sm:$0xff] }
 0x3f3   :  { %3501 = vadd.xlane.f32.xlu1 %v3500_v31  ;;  %3498 = vadd.xlane.f32.xlu0 %v3497_v37  ;;  %v3450_v37 = vld [vmem:[%s12825_s1 + $0x1f0] sm:$0xff] }
 0x3f4   :  { %v3671_v0 = vsel %vm3484_vm0, %v3450_v37, 0.0 }
 0x3f6   :  { %v10631_v10 = vpop.xlane.xlu2 %3540 }
 0x3f9   :  { %3666 = vadd.xlane.f32.xlu2 %v3665_v30 }
 0x3fb   :  { %3510 = vadd.xlane.f32.xlu1 %v3509_v11  ;;  %3507 = vadd.xlane.f32.xlu0 %v3506_v52  ;;  %v3569_v11 = vsel %vm3484_vm0, %v3416_v45, 0.0 }
 0x3fe   :  { %v10645_v9 = vpop.xlane.xlu2 %3549 }
 0x3ff   :  { %13083 = vst [vmem:[#allocation16_spill] sm:$0xff] %v10645_v9 }
 0x401   :  { %3669 = vadd.xlane.f32.xlu2 %v3668_v61 }
 0x403   :  { %3519 = vadd.xlane.f32.xlu1 %v3518_v53  ;;  %3516 = vadd.xlane.f32.xlu0 %v3515_v19  ;;  %v3581_v53 = vsel %vm3484_vm0, %v3420_v36, 0.0  ;;  %v3578_v19 = vsel %vm3484_vm0, %v3419_v26, 0.0 }
 0x406   :  { %v10659_v31 = vpop.xlane.xlu2 %3558 }
 0x407   :  { %13084 = vst [vmem:[#allocation75_spill] sm:$0xff] %v10659_v31 }
 0x409   :  { %3672 = vadd.xlane.f32.xlu2 %v3671_v0 }
 0x40b   :  { %3528 = vadd.xlane.f32.xlu1 %v3527_v55  ;;  %3525 = vadd.xlane.f32.xlu0 %v3524_v57  ;;  %v3587_v55 = vsel %vm3484_vm0, %v3422_v2, 0.0 }
 0x40e   :  { %v10673_v52 = vpop.xlane.xlu2 %3567 }
 0x40f   :  { %13085 = vst [vmem:[#allocation17_spill] sm:$0xff] %v10673_v52 }
 0x411   :  { %3675 = vadd.xlane.f32.xlu2 %v3674_v58 }
 0x413   :  { %3537 = vadd.xlane.f32.xlu1 %v3536_v43  ;;  %3534 = vadd.xlane.f32.xlu0 %v3533_v56  ;;  %v3469_v43 = vld [vmem:[%s12825_s1 + $0x288] sm:$0xff]  ;;  %v3468_v56 = vld [vmem:[%s12825_s1 + $0x280] sm:$0xff] }
 0x414   :  { %v3728_v27 = vsel %vm3484_vm0, %v3469_v43, 0.0  ;;  %v3725_v40 = vsel %vm3484_vm0, %v3468_v56, 0.0 }
 0x416   :  { %v10687_v3 = vpop.xlane.xlu2 %3576 }
 0x417   :  { %13086 = vst [vmem:[#allocation76_spill] sm:$0xff] %v10687_v3 }
 0x41b   :  { %3546 = vadd.xlane.f32.xlu1 %v3545_v54  ;;  %3543 = vadd.xlane.f32.xlu0 %v3542_v17  ;;  %v3470_v54 = vld [vmem:[%s12825_s1 + $0x290] sm:$0xff] }
 0x41e   :  { %v10697_v57 = vpop.xlane.xlu2 %3585 }
 0x423   :  { %3555 = vadd.xlane.f32.xlu1 %v3554_v25  ;;  %3552 = vadd.xlane.f32.xlu0 %v3551_v6  ;;  %v3590_v25 = vsel %vm3484_vm0, %v3423_v29, 0.0  ;;  %v3731_v6 = vsel %vm3484_vm0, %v3470_v54, 0.0  ;;  %v3427_v29 = vld [vmem:[%s12825_s1 + $0x138] sm:$0xff]  ;;  %v3474_v54 = vld [vmem:[%s12825_s1 + $0x2b0] sm:$0xff] }
 0x426   :  { %v10713_v47 = vpop.xlane.xlu2 %3633 }
 0x42b   :  { %3564 = vadd.xlane.f32.xlu1 %v3563_v59  ;;  %3561 = vadd.xlane.f32.xlu0 %v3560_v46  ;;  %v3424_v59 = vld [vmem:[%s12825_s1 + $0x120] sm:$0xff]  ;;  %v3471_v46 = vld [vmem:[%s12825_s1 + $0x298] sm:$0xff] }
 0x42c   :  { %v3593_v36 = vsel %vm3484_vm0, %v3424_v59, 0.0  ;;  %v3734_v26 = vsel %vm3484_vm0, %v3471_v46, 0.0 }
 0x42e   :  { %v10723_v30 = vpop.xlane.xlu2 %3642 }
 0x433   :  { %3573 = vadd.xlane.f32.xlu1 %v3572_v24  ;;  %3570 = vadd.xlane.f32.xlu0 %v3569_v11 }
 0x43b   :  { %3582 = vadd.xlane.f32.xlu1 %v3581_v53  ;;  %3579 = vadd.xlane.f32.xlu0 %v3578_v19  ;;  %v10739_v53 = vpop.xlane.xlu2 %3645  ;;  %v3425_v19 = vld [vmem:[%s12825_s1 + $0x128] sm:$0xff] }
 0x443   :  { %3630 = vadd.xlane.f32.xlu1 %v3629_v33  ;;  %3588 = vadd.xlane.f32.xlu0 %v3587_v55  ;;  %v3596_v55 = vsel %vm3484_vm0, %v3425_v19, 0.0  ;;  %v10753_v41 = vpop.xlane.xlu2 %3648 }
 0x44b   :  { %3639 = vadd.xlane.f32.xlu1 %v3638_v51  ;;  %3636 = vadd.xlane.f32.xlu0 %v3635_v23  ;;  %v3426_v51 = vld [vmem:[%s12825_s1 + $0x130] sm:$0xff]  ;;  %v3473_v23 = vld [vmem:[%s12825_s1 + $0x2a8] sm:$0xff] }
 0x453   :  { %3729 = vadd.xlane.f32.xlu1 %v3728_v27  ;;  %3726 = vadd.xlane.f32.xlu0 %v3725_v40  ;;  %v3599_v27 = vsel %vm3484_vm0, %v3426_v51, 0.0  ;;  %v3740_v40 = vsel %vm3484_vm0, %v3473_v23, 0.0 }
 0x456   :  { %v3330_v17 = vpop.xlane.xlu1 %3329  ;;  %v3310_v20 = vpop.xlane.xlu0 %3309 }
 0x457   :  { %v3331_v16 = vrot.slane %v3330_v17, 4  ;;  %v3311_v34 = vrot.slane %v3310_v20, 4 }
 0x459   :  { %v3332_v42 = vmax.f32 %v3330_v17, %v3331_v16  ;;  %v3312_v8 = vmin.f32 %v3310_v20, %v3311_v34  ;;  %v10773_v17 = vpop.xlane.xlu2 %3651  ;;  %v3602_v34 = vsel %vm3484_vm0, %v3427_v29, 0.0 }
 0x45b   :  { %3591 = vadd.xlane.f32.xlu1 %v3590_v25  ;;  %3732 = vadd.xlane.f32.xlu0 %v3731_v6  ;;  %v3313_v50 = vrot.slane %v3312_v8, 2  ;;  %v3333_v61 = vrot.slane %v3332_v42, 2  ;;  %v3743_v25 = vsel %vm3484_vm0, %v3474_v54, 0.0  ;;  %v3428_v6 = vld [vmem:[%s12825_s1 + $0x140] sm:$0xff]  ;;  %v3773_v54 = vmul.f32 0.015625, %v10547_v39  ;;  %v3478_v39 = vld [vmem:[%s12825_s1 + $0x2d0] sm:$0xff] }
 0x45c   :  { %v3605_v59 = vsel %vm3484_vm0, %v3428_v6, 0.0 }
 0x45d   :  { %v3314_v37 = vmin.f32 %v3312_v8, %v3313_v50  ;;  %v3334_v32 = vmax.f32 %v3332_v42, %v3333_v61  ;;  %v3475_v42 = vld [vmem:[%s12825_s1 + $0x2b8] sm:$0xff] }
 0x45e   :  { %v10733_v45 = vpop.xlane.xlu1 %3492  ;;  %v10735_v0 = vpop.xlane.xlu0 %3489  ;;  %v3746_v46 = vsel %vm3484_vm0, %v3475_v42, 0.0 }
 0x45f   :  { %v3315_v24 = vrot.slane %v3314_v37, 1  ;;  %v3335_v11 = vrot.slane %v3334_v32, 1  ;;  %v3774_v6 = vmul.f32 0.015625, %v10735_v0 }
 0x461   :  { %v3316_v15 = vmin.f32 %v3314_v37, %v3315_v24  ;;  %v3336_v58 = vmax.f32 %v3334_v32, %v3335_v11  ;;  %v10791_v61 = vpop.xlane.xlu2 %3654  ;;  %v3429_v37 = vld [vmem:[%s12825_s1 + $0x148] sm:$0xff]  ;;  %v3476_v32 = vld [vmem:[%s12825_s1 + $0x2c0] sm:$0xff] }
 0x462   :  { %v3481_v24 = vld [vmem:[%s12825_s1 + $0x2e8] sm:$0xff] }
 0x463   :  { %3594 = vadd.xlane.f32.xlu1 %v3593_v36  ;;  %3735 = vadd.xlane.f32.xlu0 %v3734_v26  ;;  %6971 = vpush %v3316_v15  ;;  %v3764_v26 = vsel %vm3484_vm0, %v3481_v24, 0.0  ;;  %v3608_v15 = vsel %vm3484_vm0, %v3429_v37, 0.0  ;;  %v3453_v37 = vld [vmem:[%s12825_s1 + $0x208] sm:$0xff]  ;;  %v3911_v24 = vld [vmem:[#allocation8 + $0x150] sm:$0xff] }
 0x464   :  { %6973 = vpush %v3336_v58  ;;  %3765 = vadd.xlane.f32.xlu2 %v3764_v26  ;;  %v3749_v58 = vsel %vm3484_vm0, %v3476_v32, 0.0  ;;  %v4411_v26 = vperm.slane %v3773_v54, %v8186_v4 }
 0x466   :  { %v10747_v2 = vpop.xlane.xlu1 %3501  ;;  %v10749_v33 = vpop.xlane.xlu0 %3498 }
 0x467   :  { %v10880_v52 = vmul.f32 0.015625, %v10747_v2 }
 0x469   :  { %v10811_v19 = vpop.xlane.xlu2 %3657 }
 0x46b   :  { %3597 = vadd.xlane.f32.xlu1 %v3596_v55  ;;  %3738 = vadd.xlane.f32.xlu0 %v3737_v49  ;;  %v3477_v55 = vld [vmem:[%s12825_s1 + $0x2c8] sm:$0xff]  ;;  %v3435_v49 = vld [vmem:[%s12825_s1 + $0x178] sm:$0xff] }
 0x46c   :  { %v3752_v29 = vsel %vm3484_vm0, %v3477_v55, 0.0 }
 0x46e   :  { %v10761_v43 = vpop.xlane.xlu1 %3510  ;;  %v10763_v56 = vpop.xlane.xlu0 %3507 }
 0x473   :  { %3600 = vadd.xlane.f32.xlu1 %v3599_v27  ;;  %3741 = vadd.xlane.f32.xlu0 %v3740_v40  ;;  %v3626_v27 = vsel %vm3484_vm0, %v3435_v49, 0.0  ;;  %v3611_v40 = vsel %vm3484_vm0, %v3430_v13, 0.0  ;;  %v4412_v13 = vperm.slane %v3774_v6, %v8199_v22  ;;  %v3755_v49 = vsel %vm3484_vm0, %v3478_v39, 0.0  ;;  %v3902_v6 = vld [vmem:[#allocation8 + $0x108] sm:$0xff] }
 0x474   :  { %3627 = vadd.xlane.f32.xlu2 %v3626_v27  ;;  %v3680_v27 = vsel %vm3484_vm0, %v3453_v37, 0.0 }
 0x476   :  { %v10775_v20 = vpop.xlane.xlu1 %3519  ;;  %v10777_v16 = vpop.xlane.xlu0 %3516 }
 0x47b   :  { %3603 = vadd.xlane.f32.xlu1 %v3602_v34  ;;  %3744 = vadd.xlane.f32.xlu0 %v3743_v25  ;;  %v10830_v34 = vpop.xlane.xlu2 %3660  ;;  %v3914_v25 = vld [vmem:[#allocation8 + $0x168] sm:$0xff] }
 0x47c   :  { %v4103_v42 = vunpack.c.l.bf16 %v3914_v25  ;;  %3681 = vadd.xlane.f32.xlu2 %v3680_v27  ;;  %v4080_v27 = vunpack.c.h.bf16 %v3902_v6 }
 0x47e   :  { %v10787_v8 = vpop.xlane.xlu1 %3528  ;;  %v10789_v50 = vpop.xlane.xlu0 %3525  ;;  %4603 = vmatpush.msrb.mxu0 %v4103_v42 }
 0x483   :  { %3606 = vadd.xlane.f32.xlu1 %v3605_v59  ;;  %3747 = vadd.xlane.f32.xlu0 %v3746_v46  ;;  %v4104_v59 = vunpack.c.h.bf16 %v3914_v25  ;;  %v3431_v46 = vld [vmem:[%s12825_s1 + $0x158] sm:$0xff]  ;;  %v3905_v25 = vld [vmem:[#allocation8 + $0x120] sm:$0xff] }
 0x484   :  { %v3614_v55 = vsel %vm3484_vm0, %v3431_v46, 0.0  ;;  %v4413_v46 = vsel %vm2165_vm1, %v4412_v13, %v4411_v26  ;;  %v4085_v39 = vunpack.c.l.bf16 %v3905_v25  ;;  %v4086_v37 = vunpack.c.h.bf16 %v3905_v25 }
 0x485   :  { %4663 = vmatpush.msrb.mxu3 %v4104_v59 }
 0x486   :  { %v10804_v11 = vpop.xlane.xlu1 %3537  ;;  %v10806_v36 = vpop.xlane.xlu0 %3534 }
 0x48b   :  { %3609 = vadd.xlane.f32.xlu1 %v3608_v15  ;;  %3750 = vadd.xlane.f32.xlu0 %v3749_v58  ;;  %v3775_v15 = vmul.f32 0.015625, %v10733_v45  ;;  %v3908_v58 = vld [vmem:[#allocation8 + $0x138] sm:$0xff]  ;;  %v3776_v45 = vmul.f32 0.015625, %v10561_v48  ;;  %v3432_v48 = vld [vmem:[%s12825_s1 + $0x160] sm:$0xff] }
 0x48c   :  { %v4091_v54 = vunpack.c.l.bf16 %v3908_v58  ;;  %v4092_v3 = vunpack.c.h.bf16 %v3908_v58  ;;  %v10870_v58 = vpop.xlane.xlu2 %3663 }
 0x48d   :  { %v4414_v59 = vperm.slane %v3775_v15, %v8224_v7  ;;  %v3479_v15 = vld [vmem:[%s12825_s1 + $0x2d8] sm:$0xff] }
 0x48e   :  { %v10822_v51 = vpop.xlane.xlu1 %3546  ;;  %v10824_v23 = vpop.xlane.xlu0 %3543 }
 0x48f   :  { %13087 = vst [vmem:[#allocation19_spill] sm:$0xff] %v10822_v51  ;;  %v4415_v25 = vsel %vm12871_vm2, %v4414_v59, %v4413_v46  ;;  %v10889_v46 = vmul.f32 0.015625, %v10575_v60  ;;  %v3480_v60 = vld [vmem:[%s12825_s1 + $0x2e0] sm:$0xff] }
 0x490   :  { %13088 = vst [vmem:[#allocation81_spill] sm:$0xff] %v10824_v23  ;;  %v3761_v51 = vsel %vm3484_vm0, %v3480_v60, 0.0  ;;  %v3935_v23 = vld [vmem:[#allocation8 + $0x210] sm:$0xff] }
 0x493   :  { %3612 = vadd.xlane.f32.xlu1 %v3611_v40  ;;  %3753 = vadd.xlane.f32.xlu0 %v3752_v29  ;;  %v4097_v40 = vunpack.c.l.bf16 %v3911_v24  ;;  %v4098_v29 = vunpack.c.h.bf16 %v3911_v24  ;;  %v3456_v24 = vld [vmem:[%s12825_s1 + $0x220] sm:$0xff] }
 0x494   :  { %s10833_s27 = spop %6971  ;;  %v10924_v9 = vpop.xlane.xlu2 %3666 }
 0x495   :  { %s6974_s25 = spop %6973  ;;  %4604 = vmatpush.msrb.mxu0 %v4097_v40  ;;  %4664 = vmatpush.msrb.mxu3 %v4098_v29  ;;  %v3689_v40 = vsel %vm3484_vm0, %v3456_v24, 0.0  ;;  %v4416_v29 = vperm.slane %v3776_v45, %v8232_v14  ;;  %v3890_v24 = vld [vmem:[#allocation8 + $0xa8] sm:$0xff] }
 0x496   :  { %s3345_s4 = ssub.f32 %s6974_s25, %s10833_s27  ;;  %v10845_v0 = vpop.xlane.xlu1 %3555  ;;  %v10847_v32 = vpop.xlane.xlu0 %3552  ;;  %3690 = vadd.xlane.f32.xlu2 %v3689_v40  ;;  %v3887_v40 = vld [vmem:[#allocation8 + $0x90] sm:$0xff] }
 0x497   :  { %13089 = vst [vmem:[#allocation82_spill] sm:$0xff] %v10845_v0  ;;  %4605 = vmatpush.msrb.mxu0 %v4091_v54  ;;  %4665 = vmatpush.msrb.mxu3 %v4092_v3  ;;  %v3896_v0 = vld [vmem:[#allocation8 + $0xd8] sm:$0xff]  ;;  %v4050_v60 = vunpack.c.h.bf16 %v3887_v40 }
 0x498   :  { %13090 = vst [vmem:[#allocation18_spill] sm:$0xff] %v10847_v32  ;;  %s3346_s18 = sadd.f32 1e-05, %s3345_s4  ;;  %v3617_v32 = vsel %vm3484_vm0, %v3432_v48, 0.0  ;;  %v4067_v2 = vunpack.c.l.bf16 %v3896_v0  ;;  %v4068_v59 = vunpack.c.h.bf16 %v3896_v0  ;;  %v3433_v0 = vld [vmem:[%s12825_s1 + $0x168] sm:$0xff] }
 0x499   :  { %4606 = vmatpush.msrb.mxu0 %v4085_v39  ;;  %4666 = vmatpush.msrb.mxu3 %v4086_v37  ;;  %v10892_v39 = vsel %vm12870_vm3, %v4416_v29, %v4415_v25  ;;  %v10895_v37 = vmul.f32 0.015625, %v10749_v33  ;;  %v3620_v31 = vsel %vm3484_vm0, %v3433_v0, 0.0 }
 0x49a   :  { %v10855_v42 = vstv %s3346_s18 }
 0x49b   :  { %7007 = vrcp.f32 %v10855_v42  ;;  %3615 = vadd.xlane.f32.xlu1 %v3614_v55  ;;  %3756 = vadd.xlane.f32.xlu0 %v3755_v49  ;;  %v3899_v55 = vld [vmem:[#allocation8 + $0xf0] sm:$0xff]  ;;  %v4079_v49 = vunpack.c.l.bf16 %v3902_v6  ;;  %v3893_v6 = vld [vmem:[#allocation8 + $0xc0] sm:$0xff]  ;;  %vm3353_vm14 = vweird.f32 %v10855_v42 }
 0x49c   :  { %v4073_v54 = vunpack.c.l.bf16 %v3899_v55  ;;  %v4074_v3 = vunpack.c.h.bf16 %v3899_v55  ;;  %4667 = vmatpush.msrb.mxu3 %v4080_v27  ;;  %v4061_v55 = vunpack.c.l.bf16 %v3893_v6  ;;  %v4062_v33 = vunpack.c.h.bf16 %v3893_v6  ;;  %v3459_v27 = vld [vmem:[%s12825_s1 + $0x238] sm:$0xff] }
 0x49d   :  { %4607 = vmatpush.msrb.mxu0 %v4079_v49  ;;  %v10906_v49 = vstv %s10833_s27  ;;  %v4056_v6 = vunpack.c.h.bf16 %v3890_v24 }
 0x49e   :  { %v10872_v26 = vpop.xlane.xlu1 %3564  ;;  %v10874_v13 = vpop.xlane.xlu0 %3561  ;;  %4668 = vmatpush.msrb.mxu3 %v4074_v3  ;;  %v4055_v3 = vunpack.c.l.bf16 %v3890_v24  ;;  %v3341_v24 = vsub.f32 %v10507_v12, %v10906_v49  ;;  %v3344_v12 = vsub.f32 %v10511_v28, %v10906_v49  ;;  %v3434_v28 = vld [vmem:[%s12825_s1 + $0x170] sm:$0xff] }
 0x49f   :  { %13091 = vst [vmem:[#allocation20_spill] sm:$0xff] %v10872_v26  ;;  %v3758_v26 = vsel %vm3484_vm0, %v3479_v15, 0.0  ;;  %4608 = vmatpush.msrb.mxu0 %v4073_v54 }
 0x4a0   :  { %13092 = vst [vmem:[#allocation22_spill] sm:$0xff] %v10874_v13  ;;  %4669 = vmatpush.msrb.mxu3 %v4068_v59  ;;  %v3340_v59 = vsub.f32 %v10497_v35, %v10906_v49  ;;  %v3339_v35 = vsub.f32 %v10494_v21, %v10906_v49  ;;  %v3343_v21 = vsub.f32 %v10490_v38, %v10906_v49 }
 0x4a1   :  { %v10884_v13 = vpop.eup %7007  ;;  %4609 = vmatpush.msrb.mxu0 %v4067_v2  ;;  %v4049_v2 = vunpack.c.l.bf16 %v3887_v40  ;;  %v3878_v40 = vld [vmem:[#allocation8 + $0x48] sm:$0xff] }
 0x4a2   :  { %v3349_v45 = vmul.f32 %v10884_v13, %v10855_v42  ;;  %vm3354_vm13 = vweird.f32 %v10884_v13  ;;  %4670 = vmatpush.msrb.mxu3 %v4062_v33 }
 0x4a3   :  { %3618 = vadd.xlane.f32.xlu1 %v3617_v32  ;;  %3759 = vadd.xlane.f32.xlu0 %v3758_v26  ;;  %v3357_v32 = vand.u32 2147483647, %v10855_v42  ;;  %v3359_v26 = vand.u32 2147483648, %v10855_v42  ;;  %vm3355_vm3 = vmor %vm3353_vm14, %vm3354_vm13  ;;  %v3342_v42 = vsub.f32 %v10499_v18, %v10906_v49  ;;  %vm13107_vm13 = vcmask 261312  }
 0x4a4   :  { %v3350_v15 = vsub.f32 1.0, %v3349_v45  ;;  %v3698_v45 = vsel %vm3484_vm0, %v3459_v27, 0.0  ;;  %4610 = vmatpush.msrb.mxu0 %v4061_v55  ;;  %v3881_v27 = vld [vmem:[#allocation8 + $0x60] sm:$0xff]  ;;  %4671 = vmatpush.msrb.mxu3 %v4056_v6  ;;  %vm13108_vm14 = vcmask 851712  }
 0x4a5   :  { %v3360_v0 = vor.u32 1.1754944e-38, %v3359_v26  ;;  %3699 = vadd.xlane.f32.xlu2 %v3698_v45  ;;  %vm3358_vm2 = vcmp.eq.f32.partialorder %v3357_v32, 8.507059e+37  ;;  %v4037_v32 = vunpack.c.l.bf16 %v3881_v27 }
 0x4a6   :  { %v3351_v29 = vmul.f32 %v10884_v13, %v3350_v15  ;;  %v10915_v25 = vpop.xlane.xlu1 %3573  ;;  %v10917_v54 = vpop.xlane.xlu0 %3570  ;;  %v3884_v15 = vld [vmem:[#allocation8 + $0x78] sm:$0xff]  ;;  %4611 = vmatpush.msrb.mxu0 %v4055_v3  ;;  %4672 = vmatpush.msrb.mxu3 %v4050_v60  ;;  %v3462_v60 = vld [vmem:[%s12825_s1 + $0x250] sm:$0xff] }
 0x4a7   :  { %13093 = vst [vmem:[#allocation21_spill] sm:$0xff] %v10915_v25  ;;  %v4043_v33 = vunpack.c.l.bf16 %v3884_v15  ;;  %v4044_v26 = vunpack.c.h.bf16 %v3884_v15 }
 0x4a8   :  { %13094 = vst [vmem:[#allocation23_spill] sm:$0xff] %v10917_v54  ;;  %v3352_v25 = vadd.f32 %v10884_v13, %v3351_v29  ;;  %4612 = vmatpush.msrb.mxu0 %v4049_v2  ;;  %v4031_v2 = vunpack.c.l.bf16 %v3878_v40 }
 0x4a9   :  { %4673 = vmatpush.msrb.mxu3 %v4044_v26 }
 0x4aa   :  { %v3356_v55 = vsel %vm3355_vm3, %v10884_v13, %v3352_v25  ;;  %v3482_v13 = vld [vmem:[%s12825_s1 + $0x2f0] sm:$0xff]  ;;  %4613 = vmatpush.msrb.mxu0 %v4043_v33  ;;  %v4032_v33 = vunpack.c.h.bf16 %v3878_v40  ;;  %v3869_v40 = vld [vmem:[#allocation8] sm:$0xff]  ;;  %vm13106_vm3 = vcmask 195712  }
 0x4ab   :  { %v3361_v29 = vsel %vm3358_vm2, %v3360_v0, %v3356_v55  ;;  %3621 = vadd.xlane.f32.xlu1 %v3620_v31  ;;  %3762 = vadd.xlane.f32.xlu0 %v3761_v51  ;;  %v4038_v31 = vunpack.c.h.bf16 %v3881_v27  ;;  %v3780_v0 = vmul.f32 0.015625, %v10763_v56  ;;  %v3623_v55 = vsel %vm3484_vm0, %v3434_v28, 0.0 }
 0x4ac   :  { %v3363_v45 = vmul.f32 %v3361_v29, %v3340_v59  ;;  %v3364_v48 = vmul.f32 %v3361_v29, %v3341_v24  ;;  %v3365_v18 = vmul.f32 %v3361_v29, %v3342_v42  ;;  %v3362_v25 = vmul.f32 %v3361_v29, %v3339_v35  ;;  %4614 = vmatpush.msrb.mxu0 %v4037_v32  ;;  %v3875_v35 = vld [vmem:[#allocation8 + $0x30] sm:$0xff] }
 0x4ad   :  { %v3367_v3 = vmul.f32 %v3361_v29, %v3344_v12  ;;  %v3366_v38 = vmul.f32 %v3361_v29, %v3343_v21  ;;  %v3767_v42 = vsel %vm3484_vm0, %v3482_v13, 0.0  ;;  %v13096_v56 = vperm.slane %v10895_v37, %v8251_v44  ;;  %4674 = vmatpush.msrb.mxu3 %v4038_v31  ;;  %v13097_v32 = vld [vmem:[#allocation87_spill] sm:$0xff]  ;;  %v13099_v31 = vld [vmem:[#allocation88_spill] sm:$0xff] }
 0x4ae   :  { %v3374_v51 = vrot.slane %v3363_v45, 6  ;;  %v3375_v6 = vrot.slane %v3364_v48, 4  ;;  %v3376_v15 = vrot.slane %v3365_v18, 2  ;;  %v10949_v59 = vpop.xlane.xlu1 %3582  ;;  %v10951_v24 = vpop.xlane.xlu0 %3579  ;;  %v3872_v18 = vld [vmem:[#allocation8 + $0x18] sm:$0xff]  ;;  %4615 = vmatpush.msrb.mxu0 %v4031_v2  ;;  %v3707_v13 = vsel %vm3484_vm0, %v3462_v60, 0.0  ;;  %v13100_v60 = vld [vmem:[#allocation89_spill] sm:$0xff] }
 0x4af   :  { %13095 = vst [vmem:[#allocation25_spill] sm:$0xff] %v10951_v24  ;;  %v3377_v49 = vrot.slane %v3367_v3, 6  ;;  %v4419_v12 = vsel %vm2177_vm4, %v13096_v56, %v10892_v39  ;;  %v10968_v45 = vpop.xlane.xlu2 %3669  ;;  %v4422_v21 = vperm.slane %v10889_v46, %v13097_v32  ;;  %v3781_v37 = vmul.f32 0.015625, %v10761_v43  ;;  %4675 = vmatpush.msrb.mxu3 %v4032_v33  ;;  %3708 = vadd.xlane.f32.xlu2 %v3707_v13  ;;  %v3452_v43 = vld [vmem:[%s12825_s1 + $0x200] sm:$0xff]  ;;  %v3483_v46 = vld [vmem:[%s12825_s1 + $0x2f8] sm:$0xff] }
 0x4b0   :  { %v3378_v48 = vsel %vm3297_vm9, %v3362_v25, %v3374_v51  ;;  %v3380_v27 = vsel %vm3379_vm15, %v3375_v6, %v3376_v15  ;;  %v4025_v39 = vunpack.c.l.bf16 %v3875_v35  ;;  %v4026_v25 = vunpack.c.h.bf16 %v3875_v35  ;;  %v3897_v24 = vld [vmem:[#allocation8 + $0xe0] sm:$0xff] }
 0x4b1   :  { %v3382_v29 = vsel %vm12899_vm12, %v3378_v48, %v3380_v27  ;;  %v3383_v26 = vsel %vm3297_vm9, %v3366_v38, %v3377_v49  ;;  %v13098_v3 = vperm.slane %v10880_v52, %v8256_v62  ;;  %v4424_v51 = vperm.slane %v3780_v0, %v13099_v31 }
 0x4b2   :  { %3386 = vst [vmem:[#allocation11] sm:$0xff] %v3382_v29  ;;  %v4019_v6 = vunpack.c.l.bf16 %v3872_v18  ;;  %v4020_v15 = vunpack.c.h.bf16 %v3872_v18  ;;  %4616 = vmatpush.msrb.mxu0 %v4025_v39  ;;  %v4013_v2 = vunpack.c.l.bf16 %v3869_v40  ;;  %v3782_v52 = vmul.f32 0.015625, %v10589_v5  ;;  %4676 = vmatpush.msrb.mxu3 %v4026_v25 }
 0x4b3   :  { %3387 = vst [vmem:[#allocation11 + $0x8] sm:$0xf] %v3383_v26  ;;  %3768 = vadd.xlane.f32.xlu1 %v3767_v42  ;;  %3624 = vadd.xlane.f32.xlu0 %v3623_v55  ;;  %v4421_v28 = vsel %vm2181_vm5, %v13098_v3, %v4419_v12  ;;  %v4014_v0 = vunpack.c.h.bf16 %v3869_v40  ;;  %v3465_v42 = vld [vmem:[%s12825_s1 + $0x268] sm:$0xff]  ;;  %v4426_v48 = vperm.slane %v3781_v37, %v13100_v60  ;;  %v3783_v55 = vmul.f32 0.015625, %v10777_v16  ;;  %v13102_v37 = vld [vmem:[#allocation91_spill] sm:$0xff] }
 0x4b4   :  { %v4423_v27 = vsel %vm2185_vm6, %v4422_v21, %v4421_v28  ;;  %4617 = vmatpush.msrb.mxu0 %v4019_v6  ;;  %v3677_v5 = vsel %vm3484_vm0, %v3452_v43, 0.0  ;;  %v3770_v35 = vsel %vm3484_vm0, %v3483_v46, 0.0  ;;  %4677 = vmatpush.msrb.mxu3 %v4020_v15  ;;  %v3785_v56 = vmul.f32 0.015625, %v10603_v1  ;;  %v13101_v26 = vld [vmem:[#allocation90_spill] sm:$0xff]  ;;  %v13104_v6 = vld [vmem:[#allocation92_spill] sm:$0xff] }
 0x4b5   :  { %v4425_v33 = vsel %vm2189_vm7, %v4424_v51, %v4423_v27  ;;  %v3822_v12 = vmul.f32 0.015625, %v10713_v47  ;;  %v3716_v29 = vsel %vm3484_vm0, %v3465_v42, 0.0  ;;  %v4428_v18 = vperm.slane %v3782_v52, %v13101_v26  ;;  %v13103_v47 = vld [vmem:[#allocation93_spill] sm:$0xff] }
 0x4b6   :  { %v3631_v38 = vpop.xlane.xlu1 %3630  ;;  %v10986_v49 = vpop.xlane.xlu0 %3588  ;;  %4618 = vmatpush.msrb.mxu0 %v4013_v2  ;;  %v3825_v13 = vmul.f32 0.015625, %v10723_v30  ;;  %v3784_v16 = vmul.f32 0.015625, %v10775_v20  ;;  %4678 = vmatpush.msrb.mxu3 %v4014_v0  ;;  %v4427_v21 = vsel %vm2193_vm8, %v4426_v48, %v4425_v33  ;;  %v4430_v39 = vperm.slane %v3783_v55, %v13102_v37  ;;  %v3455_v30 = vld [vmem:[%s12825_s1 + $0x218] sm:$0xff]  ;;  %v3454_v20 = vld [vmem:[%s12825_s1 + $0x210] sm:$0xff] }
 0x4b7   :  { %v3821_v40 = vmul.f32 0.015625, %v3631_v38  ;;  %v3673_v1 = vpop.xlane.xlu2 %3672  ;;  %3717 = vadd.xlane.f32.xlu2 %v3716_v29  ;;  %v4434_v25 = vperm.slane %v3785_v56, %v13103_v47  ;;  %v4505_v3 = vperm.slane %v3822_v12, %v8199_v22  ;;  %v3826_v28 = vmul.f32 0.015625, %v10739_v53  ;;  %v5052_v29 = vld [vmem:[#allocation2] sm:$0xff] }
 0x4b8   :  { %v4511_v51 = vperm.slane %v3825_v13, %v8251_v44  ;;  %v4432_v15 = vperm.slane %v3784_v16, %v13104_v6  ;;  %vm13105_vm2 = vcmask 654912   ;;  %v3827_v38 = vmul.f32 0.015625, %v10753_v41 }
 0x4b9   :  { %v4429_v43 = vsel %vm13105_vm2, %v4428_v18, %v4427_v21  ;;  %v4504_v46 = vperm.slane %v3821_v40, %v8186_v4  ;;  %v3828_v48 = vmul.f32 0.015625, %v10773_v17  ;;  %v3829_v27 = vmul.f32 0.015625, %v10791_v61 }
 0x4ba   :  { %v4431_v53 = vsel %vm2201_vm10, %v4430_v39, %v4429_v43  ;;  %v3686_v55 = vsel %vm3484_vm0, %v3455_v30, 0.0  ;;  %v3683_v33 = vsel %vm3484_vm0, %v3454_v20, 0.0  ;;  %v3787_v18 = vmul.f32 0.015625, %v10787_v8  ;;  %v13110_v43 = vld [vmem:[#allocation95_spill] sm:$0xff] }
 0x4bb   :  { %3678 = vadd.xlane.f32.xlu1 %v3677_v5  ;;  %3771 = vadd.xlane.f32.xlu0 %v3770_v35  ;;  %v4513_v5 = vperm.slane %v3826_v28, %v8256_v62  ;;  %v3786_v35 = vmul.f32 0.015625, %v10789_v50  ;;  %v4433_v41 = vsel %vm2205_vm11, %v4432_v15, %v4431_v53  ;;  %v3830_v17 = vmul.f32 0.015625, %v10811_v19  ;;  %v13109_v28 = vld [vmem:[#allocation94_spill] sm:$0xff] }
 0x4bc   :  { %v4506_v61 = vsel %vm2165_vm1, %v4505_v3, %v4504_v46  ;;  %v4515_v13 = vperm.slane %v3827_v38, %v13097_v32  ;;  %v3831_v16 = vmul.f32 0.015625, %v10830_v34  ;;  %v3832_v40 = vmul.f32 0.015625, %v10870_v58  ;;  %v3457_v15 = vld [vmem:[%s12825_s1 + $0x228] sm:$0xff] }
 0x4bd   :  { %v3788_v21 = vmul.f32 0.015625, %v10617_v63  ;;  %v4517_v39 = vperm.slane %v3828_v48, %v13099_v31  ;;  %v4519_v8 = vperm.slane %v3829_v27, %v13100_v60  ;;  %v4435_v3 = vsel %vm13108_vm14, %v4434_v25, %v4433_v41  ;;  %v3458_v63 = vld [vmem:[%s12825_s1 + $0x230] sm:$0xff] }
 0x4be   :  { %v3640_v2 = vpop.xlane.xlu1 %3639  ;;  %v3637_v52 = vpop.xlane.xlu0 %3636  ;;  %v4436_v30 = vperm.slane %v3786_v35, %v13109_v28  ;;  %v3833_v34 = vmul.f32 0.015625, %v10924_v9  ;;  %v4438_v46 = vperm.slane %v3787_v18, %v13110_v43  ;;  %v3834_v25 = vmul.f32 0.015625, %v10968_v45  ;;  %v13113_v18 = vld [vmem:[#allocation96_spill] sm:$0xff] }
 0x4bf   :  { %v3824_v0 = vmul.f32 0.015625, %v3640_v2  ;;  %v3823_v42 = vmul.f32 0.015625, %v3637_v52  ;;  %5100 = vadd.xlane.f32.xlu2 %v5052_v29  ;;  %v3676_v20 = vpop.xlane.xlu2 %3675  ;;  %v4521_v2 = vperm.slane %v3830_v17, %v13101_v26  ;;  %v4525_v38 = vperm.slane %v3832_v40, %v13104_v6 }
 0x4c0   :  { %v3836_v27 = vmul.f32 0.015625, %v3676_v20  ;;  %vm13111_vm2 = vcmask 917312   ;;  %v4440_v17 = vperm.slane %v3788_v21, %v13113_v18  ;;  %v3460_v21 = vld [vmem:[%s12825_s1 + $0x240] sm:$0xff]  ;;  %v3806_v20 = vmul.f32 0.015625, %v10697_v57  ;;  %v5055_v57 = vld [vmem:[#allocation2 + $0x18] sm:$0xff] }
 0x4c1   :  { %v4509_v56 = vperm.slane %v3824_v0, %v8232_v14  ;;  %v4507_v12 = vperm.slane %v3823_v42, %v8224_v7  ;;  %v3835_v42 = vmul.f32 0.015625, %v3673_v1  ;;  %v4437_v45 = vsel %vm13111_vm2, %v4436_v30, %v4435_v3 }
 0x4c2   :  { %v4069_v54 = vunpack.c.l.bf16 %v3897_v24 }
 0x4c3   :  { %v4508_v50 = vsel %vm13106_vm3, %v4507_v12, %v4506_v61  ;;  %3687 = vadd.xlane.f32.xlu1 %v3686_v55  ;;  %3684 = vadd.xlane.f32.xlu0 %v3683_v33  ;;  %v3695_v55 = vsel %vm3484_vm0, %v3458_v63, 0.0  ;;  %v3692_v33 = vsel %vm3484_vm0, %v3457_v15, 0.0  ;;  %v4529_v12 = vperm.slane %v3834_v25, %v13109_v28 }
 0x4c4   :  { %v4510_v19 = vsel %vm13107_vm13, %v4509_v56, %v4508_v50  ;;  %v5077_v56 = vld [vmem:[#allocation2 + $0xc8] sm:$0xff]  ;;  %vm13112_vm3 = vcmask 654912   ;;  %vm13114_vm13 = vcmask 982912   ;;  %v4533_v50 = vperm.slane %v3836_v27, %v13113_v18 }
 0x4c5   :  { %v4512_v58 = vsel %vm2177_vm4, %v4511_v51, %v4510_v19  ;;  %v4523_v51 = vperm.slane %v3831_v16, %v13102_v37  ;;  %v4439_v16 = vsel %vm13114_vm13, %v4438_v46, %v4437_v45 }
 0x4c6   :  { %v4514_v52 = vsel %vm2181_vm5, %v4513_v5, %v4512_v58  ;;  %v3730_v9 = vpop.xlane.xlu1 %3729  ;;  %v3727_v53 = vpop.xlane.xlu0 %3726  ;;  %v4527_v5 = vperm.slane %v3833_v34, %v13103_v47 }
 0x4c7   :  { %v4516_v0 = vsel %vm2185_vm6, %v4515_v13, %v4514_v52  ;;  %v3854_v41 = vmul.f32 0.015625, %v3730_v9  ;;  %v3853_v1 = vmul.f32 0.015625, %v3727_v53  ;;  %v4531_v13 = vperm.slane %v3835_v42, %v13110_v43  ;;  %5150 = vadd.xlane.f32.xlu2 %v5077_v56 }
 0x4c8   :  { %v4518_v48 = vsel %vm2189_vm7, %v4517_v39, %v4516_v0  ;;  %v3701_v9 = vsel %vm3484_vm0, %v3460_v21, 0.0  ;;  %v3807_v53 = vmul.f32 0.015625, %v10986_v49 }
 0x4c9   :  { %v4520_v35 = vsel %vm2193_vm8, %v4519_v8, %v4518_v48  ;;  %v3461_v8 = vld [vmem:[%s12825_s1 + $0x248] sm:$0xff]  ;;  %v4567_v3 = vperm.slane %v3854_v41, %v8199_v22  ;;  %v4566_v30 = vperm.slane %v3853_v1, %v8186_v4  ;;  %v4474_v48 = vperm.slane %v3806_v20, %v8199_v22  ;;  %v3467_v20 = vld [vmem:[%s12825_s1 + $0x278] sm:$0xff] }
 0x4ca   :  { %v4522_v29 = vsel %vm13112_vm3, %v4521_v2, %v4520_v35  ;;  %vm13115_vm3 = vmmov %vm13114_vm13  ;;  %vm13116_vm13 = vcmask 1048512   ;;  %v3805_v2 = vmul.f32 0.015625, %v10949_v59  ;;  %v3704_v52 = vsel %vm3484_vm0, %v3461_v8, 0.0 }
 0x4cb   :  { %v4524_v61 = vsel %vm2201_vm10, %v4523_v51, %v4522_v29  ;;  %3696 = vadd.xlane.f32.xlu1 %v3695_v55  ;;  %3693 = vadd.xlane.f32.xlu0 %v3692_v33  ;;  %v4441_v46 = vsel %vm13116_vm13, %v4440_v17, %v4439_v16  ;;  %v4568_v0 = vsel %vm2165_vm1, %v4567_v3, %v4566_v30  ;;  %v3464_v55 = vld [vmem:[%s12825_s1 + $0x260] sm:$0xff]  ;;  %v3463_v33 = vld [vmem:[%s12825_s1 + $0x258] sm:$0xff]  ;;  %v11107_v29 = vld [vmem:[#allocation8 + $0x468] sm:$0xff] }
 0x4cc   :  { %v4526_v40 = vsel %vm2205_vm11, %v4525_v38, %v4524_v61  ;;  %v4473_v49 = vperm.slane %v3805_v2, %v8186_v4  ;;  %v4476_v27 = vperm.slane %v3807_v53, %v8224_v7  ;;  %v3713_v1 = vsel %vm3484_vm0, %v3464_v55, 0.0  ;;  %v11122_v30 = vld [vmem:[#allocation8 + $0x438] sm:$0xff]  ;;  %v11258_v4 = vld [vmem:[#allocation8 + $0x1d0] sm:$0xff] }
 0x4cd   :  { %v4528_v39 = vsel %vm13108_vm14, %v4527_v5, %v4526_v40  ;;  %vm13117_vm14 = vmmov %vm13116_vm13  ;;  %v3710_v17 = vsel %vm3484_vm0, %v3463_v33, 0.0  ;;  %v4295_v61 = vunpack.c.l.bf16 %v11107_v29  ;;  %v3722_v53 = vsel %vm3484_vm0, %v3467_v20, 0.0  ;;  %v11150_v33 = vld [vmem:[#allocation8 + $0x3d8] sm:$0xff]  ;;  %v11176_v20 = vld [vmem:[#allocation8 + $0x348] sm:$0xff]  ;;  %13142 = vst [vmem:[#allocation44_spill] sm:$0xff] %v11258_v4 }
 0x4ce   :  { %v4530_v19 = vsel %vm13111_vm2, %v4529_v12, %v4528_v39  ;;  %v3592_v34 = vpop.xlane.xlu1 %3591  ;;  %v3733_v58 = vpop.xlane.xlu0 %3732  ;;  %vm13118_vm2 = vcmask 1041409   ;;  %v4475_v41 = vsel %vm2165_vm1, %v4474_v48, %v4473_v49  ;;  %v11116_v39 = vld [vmem:[#allocation8 + $0x450] sm:$0xff]  ;;  %13129 = vst [vmem:[#allocation31_spill] sm:$0xff] %v11176_v20 }
 0x4cf   :  { %v4532_v63 = vsel %vm13115_vm3, %v4531_v13, %v4530_v19  ;;  %v3855_v15 = vmul.f32 0.015625, %v3733_v58  ;;  %v3808_v42 = vmul.f32 0.015625, %v3592_v34  ;;  %vm13120_vm3 = vcmask 195712   ;;  %5106 = vadd.xlane.f32.xlu2 %v5055_v57  ;;  %4643 = vmatpush.msrb.mxu2 %v4295_v61  ;;  %v11125_v58 = vld [vmem:[#allocation8 + $0x420] sm:$0xff]  ;;  %v11141_v48 = vld [vmem:[#allocation8 + $0x3f0] sm:$0xff] }
 0x4d0   :  { %v4534_v25 = vsel %vm13117_vm14, %v4533_v50, %v4532_v63  ;;  %vm13121_vm13 = vmmov %vm13120_vm3  ;;  %v5080_v50 = vld [vmem:[#allocation2 + $0xe0] sm:$0xff]  ;;  %vm13122_vm14 = vcmask 261312   ;;  %v4289_v21 = vunpack.c.l.bf16 %v11116_v39  ;;  %v4283_v34 = vunpack.c.l.bf16 %v11122_v30  ;;  %v3466_v63 = vld [vmem:[%s12825_s1 + $0x270] sm:$0xff] }
 0x4d1   :  { %v4569_v51 = vperm.slane %v3855_v15, %v8224_v7  ;;  %v11091_v38 = vsel %vm13118_vm2, %v4534_v25, %v4441_v46  ;;  %v4478_v45 = vperm.slane %v3808_v42, %v8232_v14  ;;  %v4477_v13 = vsel %vm13121_vm13, %v4476_v27, %v4475_v41  ;;  %vm13123_vm2 = vmmov %vm13122_vm14  ;;  %v11160_v41 = vld [vmem:[#allocation8 + $0x3a8] sm:$0xff] }
 0x4d2   :  { %13119 = vst [vmem:[#allocation24_spill] sm:$0xff] %v11091_v38  ;;  %4619 = vmatmul.f32.vlgmr.msrb.gmra.mxu0 %v11091_v38  ;;  %4679 = vmatmul.f32.vlgmr.msrb.gmra.mxu3 %v11091_v38  ;;  %v4277_v15 = vunpack.c.l.bf16 %v11125_v58  ;;  %v4265_v49 = vunpack.c.l.bf16 %v11141_v48  ;;  %v4247_v61 = vunpack.c.l.bf16 %v11160_v41  ;;  %v3953_v38 = vld [vmem:[#allocation8 + $0x2a0] sm:$0xff] }
 0x4d3   :  { %v4570_v59 = vsel %vm13120_vm3, %v4569_v51, %v4568_v0  ;;  %3705 = vadd.xlane.f32.xlu1 %v3704_v52  ;;  %3702 = vadd.xlane.f32.xlu0 %v3701_v9  ;;  %v4479_v8 = vsel %vm13122_vm14, %v4478_v45, %v4477_v13  ;;  %v11134_v9 = vld [vmem:[#allocation8 + $0x408] sm:$0xff]  ;;  %v3719_v51 = vsel %vm3484_vm0, %v3466_v63, 0.0  ;;  %v4259_v45 = vunpack.c.l.bf16 %v11150_v33  ;;  %13125 = vst [vmem:[#allocation28_spill] sm:$0xff] %v11160_v41  ;;  %v5083_v13 = vld [vmem:[#allocation2 + $0xf8] sm:$0xff]  ;;  %v5078_v63 = vld [vmem:[#allocation2 + $0xd0] sm:$0xff] }
 0x4d4   :  { %4644 = vmatpush.msrb.mxu2 %v4289_v21  ;;  %v4271_v57 = vunpack.c.l.bf16 %v11134_v9  ;;  %v11169_v21 = vld [vmem:[#allocation8 + $0x360] sm:$0xff]  ;;  %v5093_v41 = vld [vmem:[#allocation2 + $0x148] sm:$0xff]  ;;  %vm13143_vm3 = vcmask 654912   ;;  %vm13145_vm14 = vcmask 851712  }
 0x4d5   :  { %13128 = vst [vmem:[#allocation30_spill] sm:$0xff] %v11169_v21  ;;  %vm13144_vm13 = vmmov %vm13143_vm3 }
 0x4d6   :  { %v3595_v5 = vpop.xlane.xlu1 %3594  ;;  %v3736_v35 = vpop.xlane.xlu0 %3735  ;;  %4645 = vmatpush.msrb.mxu2 %v4283_v34 }
 0x4d7   :  { %v3809_v56 = vmul.f32 0.015625, %v3595_v5  ;;  %v3856_v12 = vmul.f32 0.015625, %v3736_v35  ;;  %5156 = vadd.xlane.f32.xlu2 %v5080_v50  ;;  %v11153_v5 = vld [vmem:[#allocation8 + $0x3c0] sm:$0xff]  ;;  %v11166_v50 = vld [vmem:[#allocation8 + $0x378] sm:$0xff] }
 0x4d8   :  { %4646 = vmatpush.msrb.mxu2 %v4277_v15  ;;  %13124 = vst [vmem:[#allocation26_spill] sm:$0xff] %v11153_v5  ;;  %v4253_v35 = vunpack.c.l.bf16 %v11153_v5  ;;  %v5054_v15 = vld [vmem:[#allocation2 + $0x10] sm:$0xff]  ;;  %v3876_v5 = vld [vmem:[#allocation8 + $0x38] sm:$0xff] }
 0x4d9   :  { %v4480_v16 = vperm.slane %v3809_v56, %v8251_v44  ;;  %v4571_v40 = vperm.slane %v3856_v12, %v8232_v14  ;;  %13127 = vst [vmem:[#allocation29_spill] sm:$0xff] %v11166_v50 }
 0x4da   :  { %4647 = vmatpush.msrb.mxu2 %v4271_v57  ;;  %v3965_v57 = vld [vmem:[#allocation8 + $0x300] sm:$0xff] }
 0x4db   :  { %v4481_v19 = vsel %vm2177_vm4, %v4480_v16, %v4479_v8  ;;  %v4572_v3 = vsel %vm13123_vm2, %v4571_v40, %v4570_v59  ;;  %3714 = vadd.xlane.f32.xlu1 %v3713_v1  ;;  %3711 = vadd.xlane.f32.xlu0 %v3710_v17  ;;  %v5058_v59 = vld [vmem:[#allocation2 + $0x30] sm:$0xff]  ;;  %v5076_v1 = vld [vmem:[#allocation2 + $0xc0] sm:$0xff]  ;;  %v5053_v17 = vld [vmem:[#allocation2 + $0x8] sm:$0xff]  ;;  %v4235_v8 = vunpack.c.l.bf16 %v11166_v50 }
 0x4dc   :  { %4648 = vmatpush.msrb.mxu2 %v4265_v49  ;;  %v11163_v16 = vld [vmem:[#allocation8 + $0x390] sm:$0xff]  ;;  %vm13146_vm2 = vmmov %vm13145_vm14 }
 0x4dd   :  { %13126 = vst [vmem:[#allocation27_spill] sm:$0xff] %v11163_v16  ;;  %v4241_v40 = vunpack.c.l.bf16 %v11163_v16  ;;  %v5082_v16 = vld [vmem:[#allocation2 + $0xf0] sm:$0xff] }
 0x4de   :  { %v3598_v46 = vpop.xlane.xlu1 %3597  ;;  %v3739_v2 = vpop.xlane.xlu0 %3738  ;;  %4649 = vmatpush.msrb.mxu2 %v4259_v45 }
 0x4df   :  { %v3810_v25 = vmul.f32 0.015625, %v3598_v46  ;;  %v3857_v52 = vmul.f32 0.015625, %v3739_v2  ;;  %5112 = vadd.xlane.f32.xlu2 %v5058_v59  ;;  %v4223_v46 = vunpack.c.l.bf16 %v11176_v20  ;;  %v5061_v2 = vld [vmem:[#allocation2 + $0x48] sm:$0xff]  ;;  %v11200_v20 = vld [vmem:[#allocation8 + $0x2c0] sm:$0xff] }
 0x4e0   :  { %4650 = vmatpush.msrb.mxu2 %v4253_v35  ;;  %v5056_v35 = vld [vmem:[#allocation2 + $0x20] sm:$0xff]  ;;  %13131 = vst [vmem:[#allocation34_spill] sm:$0xff] %v11200_v20  ;;  %v4189_v24 = vunpack.c.l.bf16 %v11200_v20  ;;  %v3947_v20 = vld [vmem:[#allocation8 + $0x270] sm:$0xff] }
 0x4e1   :  { %v4482_v0 = vperm.slane %v3810_v25, %v8256_v62  ;;  %v4573_v42 = vperm.slane %v3857_v52, %v8251_v44  ;;  %v11179_v25 = vld [vmem:[#allocation8 + $0x330] sm:$0xff] }
 0x4e2   :  { %4651 = vmatpush.msrb.mxu2 %v4247_v61  ;;  %13130 = vst [vmem:[#allocation32_spill] sm:$0xff] %v11179_v25  ;;  %v4217_v52 = vunpack.c.l.bf16 %v11179_v25  ;;  %v5086_v61 = vld [vmem:[#allocation2 + $0x110] sm:$0xff] }
 0x4e3   :  { %v11145_v27 = vsel %vm2181_vm5, %v4482_v0, %v4481_v19  ;;  %v11148_v55 = vsel %vm2177_vm4, %v4573_v42, %v4572_v3  ;;  %3723 = vadd.xlane.f32.xlu1 %v3722_v53  ;;  %3720 = vadd.xlane.f32.xlu0 %v3719_v51  ;;  %v4229_v19 = vunpack.c.l.bf16 %v11169_v21  ;;  %v3968_v53 = vld [vmem:[#allocation8 + $0x318] sm:$0xff]  ;;  %v3915_v0 = vld [vmem:[#allocation8 + $0x170] sm:$0xff]  ;;  %v4205_v42 = vunpack.c.l.bf16 %v3965_v57  ;;  %v5057_v57 = vld [vmem:[#allocation2 + $0x28] sm:$0xff] }
 0x4e4   :  { %4652 = vmatpush.msrb.mxu2 %v4241_v40  ;;  %v4211_v51 = vunpack.c.l.bf16 %v3968_v53  ;;  %v4105_v59 = vunpack.c.l.bf16 %v3915_v0  ;;  %v11186_v40 = vpop.xlane.xlu2 %3765  ;;  %v3962_v0 = vld [vmem:[#allocation8 + $0x2e8] sm:$0xff] }
 0x4e6   :  { %v11156_v56 = vpop.xlane.xlu1 %3600  ;;  %v11158_v12 = vpop.xlane.xlu0 %3741  ;;  %4653 = vmatpush.msrb.mxu2 %v4235_v8  ;;  %v3909_v8 = vld [vmem:[#allocation8 + $0x140] sm:$0xff] }
 0x4e7   :  { %5162 = vadd.xlane.f32.xlu2 %v5083_v13 }
 0x4e8   :  { %4654 = vmatpush.msrb.mxu2 %v4229_v19  ;;  %v4093_v19 = vunpack.c.l.bf16 %v3909_v8 }
 0x4ea   :  { %4655 = vmatpush.msrb.mxu2 %v4223_v46 }
 0x4eb   :  { %5148 = vadd.xlane.f32.xlu1 %v5076_v1  ;;  %5102 = vadd.xlane.f32.xlu0 %v5053_v17  ;;  %v5079_v1 = vld [vmem:[#allocation2 + $0xd8] sm:$0xff] }
 0x4ec   :  { %4656 = vmatpush.msrb.mxu2 %v4217_v52  ;;  %v3912_v17 = vld [vmem:[#allocation8 + $0x158] sm:$0xff] }
 0x4ed   :  { %v4099_v13 = vunpack.c.l.bf16 %v3912_v17  ;;  %v4200_v17 = vunpack.c.h.bf16 %v3962_v0 }
 0x4ee   :  { %v11172_v3 = vpop.xlane.xlu1 %3603  ;;  %v11174_v34 = vpop.xlane.xlu0 %3744  ;;  %4657 = vmatpush.msrb.mxu2 %v4211_v51  ;;  %v5081_v51 = vld [vmem:[#allocation2 + $0xe8] sm:$0xff] }
 0x4ef   :  { %5118 = vadd.xlane.f32.xlu2 %v5061_v2  ;;  %4683 = vmatpush.msra.mxu0 %v4200_v17  ;;  %v4182_v17 = vunpack.c.h.bf16 %v3953_v38 }
 0x4f0   :  { %4658 = vmatpush.msrb.mxu2 %v4205_v42  ;;  %v3900_v42 = vld [vmem:[#allocation8 + $0xf8] sm:$0xff] }
 0x4f2   :  { %4723 = vmatpush.msra.mxu2 %v4105_v59  ;;  %v11192_v59 = vld [vmem:[#allocation8 + $0x2f0] sm:$0xff] }
 0x4f3   :  { %5152 = vadd.xlane.f32.xlu1 %v5078_v63  ;;  %5104 = vadd.xlane.f32.xlu0 %v5054_v15  ;;  %v3906_v63 = vld [vmem:[#allocation8 + $0x128] sm:$0xff]  ;;  %v3903_v15 = vld [vmem:[#allocation8 + $0x110] sm:$0xff]  ;;  %v4201_v8 = vunpack.c.l.bf16 %v11192_v59 }
 0x4f4   :  { %4724 = vmatpush.msra.mxu2 %v4099_v13  ;;  %v4087_v46 = vunpack.c.l.bf16 %v3906_v63  ;;  %v4081_v53 = vunpack.c.l.bf16 %v3903_v15  ;;  %v4075_v13 = vunpack.c.l.bf16 %v3900_v42  ;;  %v3959_v63 = vld [vmem:[#allocation8 + $0x2d0] sm:$0xff] }
 0x4f5   :  { %v4193_v15 = vunpack.c.l.bf16 %v3959_v63  ;;  %4743 = vmatpush.msra.mxu3 %v4201_v8 }
 0x4f6   :  { %v11182_v49 = vpop.xlane.xlu1 %3606  ;;  %v11184_v45 = vpop.xlane.xlu0 %3747  ;;  %4725 = vmatpush.msra.mxu2 %v4093_v19  ;;  %v11197_v19 = vld [vmem:[#allocation8 + $0x2d8] sm:$0xff] }
 0x4f7   :  { %5168 = vadd.xlane.f32.xlu2 %v5086_v61  ;;  %v11194_v61 = vpop.xlane.xlu2 %3627  ;;  %v4195_v25 = vunpack.c.l.bf16 %v11197_v19 }
 0x4f8   :  { %4726 = vmatpush.msra.mxu2 %v4087_v46  ;;  %v4194_v46 = vunpack.c.h.bf16 %v3959_v63  ;;  %v5059_v63 = vld [vmem:[#allocation2 + $0x38] sm:$0xff] }
 0x4f9   :  { %4744 = vmatpush.msra.mxu3 %v4195_v25 }
 0x4fa   :  { %4727 = vmatpush.msra.mxu2 %v4081_v53  ;;  %v3894_v53 = vld [vmem:[#allocation8 + $0xc8] sm:$0xff]  ;;  %4684 = vmatpush.msra.mxu0 %v4194_v46  ;;  %v3885_v46 = vld [vmem:[#allocation8 + $0x80] sm:$0xff] }
 0x4fb   :  { %5108 = vadd.xlane.f32.xlu1 %v5056_v35  ;;  %5154 = vadd.xlane.f32.xlu0 %v5079_v1  ;;  %v5069_v35 = vld [vmem:[#allocation2 + $0x88] sm:$0xff]  ;;  %v4199_v1 = vunpack.c.l.bf16 %v3962_v0  ;;  %v3956_v0 = vld [vmem:[#allocation8 + $0x2b8] sm:$0xff]  ;;  %v4063_v50 = vunpack.c.l.bf16 %v3894_v53  ;;  %v11209_v53 = vld [vmem:[#allocation8 + $0x290] sm:$0xff] }
 0x4fc   :  { %4728 = vmatpush.msra.mxu2 %v4075_v13  ;;  %v4187_v42 = vunpack.c.l.bf16 %v3956_v0  ;;  %v4188_v21 = vunpack.c.h.bf16 %v3956_v0  ;;  %v3950_v13 = vld [vmem:[#allocation8 + $0x288] sm:$0xff]  ;;  %v3888_v0 = vld [vmem:[#allocation8 + $0x98] sm:$0xff]  ;;  %13133 = vst [vmem:[#allocation35_spill] sm:$0xff] %v11209_v53  ;;  %4745 = vmatpush.msra.mxu3 %v4189_v24  ;;  %v4177_v25 = vunpack.c.l.bf16 %v11209_v53  ;;  %v4045_v24 = vunpack.c.l.bf16 %v3885_v46  ;;  %v5084_v53 = vld [vmem:[#allocation2 + $0x100] sm:$0xff] }
 0x4fd   :  { %4623 = vmatpush.msrb.mxu1 %v4199_v1  ;;  %v11207_v1 = vld [vmem:[#allocation8 + $0x2a8] sm:$0xff]  ;;  %v4175_v14 = vunpack.c.l.bf16 %v3950_v13  ;;  %v4176_v7 = vunpack.c.h.bf16 %v3950_v13 }
 0x4fe   :  { %v11188_v2 = vpop.xlane.xlu1 %3609  ;;  %v11190_v52 = vpop.xlane.xlu0 %3750  ;;  %13132 = vst [vmem:[#allocation33_spill] sm:$0xff] %v11207_v1  ;;  %4729 = vmatpush.msra.mxu2 %v4069_v54  ;;  %4685 = vmatpush.msra.mxu0 %v4188_v21  ;;  %v11212_v54 = vld [vmem:[#allocation8 + $0x278] sm:$0xff]  ;;  %v3882_v13 = vld [vmem:[#allocation8 + $0x68] sm:$0xff] }
 0x4ff   :  { %5134 = vadd.xlane.f32.xlu2 %v5069_v35  ;;  %4624 = vmatpush.msrb.mxu1 %v4193_v15  ;;  %v3891_v35 = vld [vmem:[#allocation8 + $0xb0] sm:$0xff]  ;;  %v4183_v15 = vunpack.c.l.bf16 %v11207_v1  ;;  %13134 = vst [vmem:[#allocation37_spill] sm:$0xff] %v11212_v54  ;;  %v11215_v21 = vpop.xlane.xlu2 %3681  ;;  %v11224_v46 = vld [vmem:[#allocation8 + $0x248] sm:$0xff] }
 0x500   :  { %4730 = vmatpush.msra.mxu2 %v4063_v50  ;;  %v4057_v8 = vunpack.c.l.bf16 %v3891_v35  ;;  %4686 = vmatpush.msra.mxu0 %v4182_v17  ;;  %13135 = vst [vmem:[#allocation36_spill] sm:$0xff] %v11215_v21  ;;  %v4169_v50 = vunpack.c.l.bf16 %v3947_v20  ;;  %v3944_v35 = vld [vmem:[#allocation8 + $0x258] sm:$0xff]  ;;  %v11222_v17 = vld [vmem:[#allocation8 + $0x260] sm:$0xff] }
 0x501   :  { %4625 = vmatpush.msrb.mxu1 %v4187_v42  ;;  %v4170_v42 = vunpack.c.h.bf16 %v3947_v20  ;;  %4746 = vmatpush.msra.mxu3 %v4183_v15  ;;  %13136 = vst [vmem:[#allocation38_spill] sm:$0xff] %v11222_v17  ;;  %v3879_v20 = vld [vmem:[#allocation8 + $0x50] sm:$0xff]  ;;  %v4039_v15 = vunpack.c.l.bf16 %v3882_v13  ;;  %v3873_v13 = vld [vmem:[#allocation8 + $0x20] sm:$0xff] }
 0x502   :  { %4731 = vmatpush.msra.mxu2 %v4057_v8  ;;  %4687 = vmatpush.msra.mxu0 %v4176_v7  ;;  %v5060_v8 = vld [vmem:[#allocation2 + $0x40] sm:$0xff]  ;;  %13137 = vst [vmem:[#allocation40_spill] sm:$0xff] %v11224_v46  ;;  %v4165_v7 = vunpack.c.l.bf16 %v11222_v17  ;;  %v4027_v17 = vunpack.c.l.bf16 %v3876_v5  ;;  %v4021_v5 = vunpack.c.l.bf16 %v3873_v13  ;;  %v11250_v13 = vld [vmem:[#allocation8 + $0x1e8] sm:$0xff] }
 0x503   :  { %5158 = vadd.xlane.f32.xlu1 %v5081_v51  ;;  %5110 = vadd.xlane.f32.xlu0 %v5057_v57  ;;  %v4181_v57 = vunpack.c.l.bf16 %v3953_v38  ;;  %v4051_v38 = vunpack.c.l.bf16 %v3888_v0  ;;  %v3941_v0 = vld [vmem:[#allocation8 + $0x240] sm:$0xff]  ;;  %13141 = vst [vmem:[#allocation42_spill] sm:$0xff] %v11250_v13 }
 0x504   :  { %4747 = vmatpush.msra.mxu3 %v4177_v25  ;;  %4688 = vmatpush.msra.mxu0 %v4170_v42  ;;  %v4158_v21 = vunpack.c.h.bf16 %v3941_v0  ;;  %v11227_v25 = vld [vmem:[#allocation8 + $0x230] sm:$0xff] }
 0x505   :  { %4626 = vmatpush.msrb.mxu1 %v4181_v57  ;;  %v4171_v57 = vunpack.c.l.bf16 %v11212_v54  ;;  %4732 = vmatpush.msra.mxu2 %v4051_v38  ;;  %v3938_v54 = vld [vmem:[#allocation8 + $0x228] sm:$0xff]  ;;  %v4033_v38 = vunpack.c.l.bf16 %v3879_v20  ;;  %13138 = vst [vmem:[#allocation39_spill] sm:$0xff] %v11227_v25  ;;  %v11237_v20 = vmul.f32 0.015625, %v11158_v12  ;;  %v5062_v12 = vld [vmem:[#allocation2 + $0x50] sm:$0xff] }
 0x506   :  { %v11202_v44 = vpop.xlane.xlu1 %3612  ;;  %v11204_v51 = vpop.xlane.xlu0 %3753  ;;  %v4151_v42 = vunpack.c.l.bf16 %v3938_v54 }
 0x507   :  { %5182 = vadd.xlane.f32.xlu2 %v5093_v41  ;;  %4627 = vmatpush.msrb.mxu1 %v4175_v14  ;;  %v4164_v41 = vunpack.c.h.bf16 %v3944_v35  ;;  %v5088_v14 = vld [vmem:[#allocation2 + $0x120] sm:$0xff] }
 0x508   :  { %4733 = vmatpush.msra.mxu2 %v4045_v24  ;;  %4748 = vmatpush.msra.mxu3 %v4171_v57  ;;  %v4152_v57 = vunpack.c.h.bf16 %v3938_v54  ;;  %v4146_v54 = vunpack.c.h.bf16 %v3935_v23 }
 0x509   :  { %4628 = vmatpush.msrb.mxu1 %v4169_v50  ;;  %4689 = vmatpush.msra.mxu0 %v4164_v41  ;;  %v4159_v50 = vunpack.c.l.bf16 %v11224_v46  ;;  %v11230_v24 = vpop.xlane.xlu2 %3690  ;;  %v4145_v41 = vunpack.c.l.bf16 %v3935_v23  ;;  %v5085_v46 = vld [vmem:[#allocation2 + $0x108] sm:$0xff]  ;;  %v3813_v23 = vmul.f32 0.015625, %v11182_v49 }
 0x50a   :  { %4734 = vmatpush.msra.mxu2 %v4039_v15  ;;  %13139 = vst [vmem:[#allocation41_spill] sm:$0xff] %v11230_v24  ;;  %4749 = vmatpush.msra.mxu3 %v4165_v7  ;;  %v3932_v15 = vld [vmem:[#allocation8 + $0x1f8] sm:$0xff]  ;;  %v3812_v7 = vmul.f32 0.015625, %v11172_v3  ;;  %v3926_v49 = vld [vmem:[#allocation8 + $0x1c8] sm:$0xff] }
 0x50b   :  { %5114 = vadd.xlane.f32.xlu1 %v5059_v63  ;;  %5160 = vadd.xlane.f32.xlu0 %v5082_v16  ;;  %v4163_v16 = vunpack.c.l.bf16 %v3944_v35  ;;  %v4157_v35 = vunpack.c.l.bf16 %v3941_v0  ;;  %v11233_v0 = vld [vmem:[#allocation8 + $0x218] sm:$0xff] }
 0x50c   :  { %13140 = vst [vmem:[#allocation43_spill] sm:$0xff] %v11233_v0  ;;  %4690 = vmatpush.msra.mxu0 %v4158_v21  ;;  %4735 = vmatpush.msra.mxu2 %v4033_v38  ;;  %v4147_v24 = vunpack.c.l.bf16 %v11233_v0  ;;  %v3929_v21 = vld [vmem:[#allocation8 + $0x1e0] sm:$0xff]  ;;  %v3860_v38 = vmul.f32 0.015625, %v11184_v45  ;;  %v5071_v3 = vld [vmem:[#allocation2 + $0x98] sm:$0xff]  ;;  %v4486_v45 = vperm.slane %v3812_v7, %v13099_v31 }
 0x50d   :  { %4629 = vmatpush.msrb.mxu1 %v4163_v16  ;;  %v4153_v16 = vunpack.c.l.bf16 %v11227_v25  ;;  %4750 = vmatpush.msra.mxu3 %v4159_v50  ;;  %v11244_v25 = vld [vmem:[#allocation8 + $0x200] sm:$0xff]  ;;  %v4139_v50 = vunpack.c.l.bf16 %v3932_v15 }
 0x50e   :  { %v11218_v1 = vpop.xlane.xlu1 %3615  ;;  %v11220_v63 = vpop.xlane.xlu0 %3756  ;;  %4691 = vmatpush.msra.mxu0 %v4152_v57  ;;  %4736 = vmatpush.msra.mxu2 %v4027_v17  ;;  %v4575_v57 = vperm.slane %v11237_v20, %v8256_v62  ;;  %v4141_v0 = vunpack.c.l.bf16 %v11244_v25  ;;  %v4135_v20 = vunpack.c.l.bf16 %v11250_v13  ;;  %v11282_v13 = vld [vmem:[#allocation8 + $0x1a0] sm:$0xff] }
 0x50f   :  { %5172 = vadd.xlane.f32.xlu2 %v5088_v14  ;;  %4630 = vmatpush.msrb.mxu1 %v4157_v35  ;;  %v3870_v35 = vld [vmem:[#allocation8 + $0x8] sm:$0xff] }
 0x510   :  { %4751 = vmatpush.msra.mxu3 %v4153_v16  ;;  %4692 = vmatpush.msra.mxu0 %v4146_v54  ;;  %v4015_v17 = vunpack.c.l.bf16 %v3870_v35  ;;  %v3814_v16 = vmul.f32 0.015625, %v11188_v2  ;;  %v4488_v54 = vperm.slane %v3813_v23, %v13100_v60  ;;  %v4127_v2 = vunpack.c.l.bf16 %v3926_v49  ;;  %v3923_v35 = vld [vmem:[#allocation8 + $0x1b0] sm:$0xff] }
 0x511   :  { %4631 = vmatpush.msrb.mxu1 %v4151_v42  ;;  %v4140_v42 = vunpack.c.h.bf16 %v3932_v15  ;;  %4737 = vmatpush.msra.mxu2 %v4021_v5  ;;  %v4134_v15 = vunpack.c.h.bf16 %v3929_v21  ;;  %v4579_v5 = vperm.slane %v3860_v38, %v13099_v31  ;;  %v4129_v23 = vunpack.c.l.bf16 %v11258_v4  ;;  %v11272_v38 = vld [vmem:[#allocation8 + $0x1b8] sm:$0xff] }
 0x512   :  { %4752 = vmatpush.msra.mxu3 %v4147_v24  ;;  %v4122_v4 = vunpack.c.h.bf16 %v3923_v35 }
 0x513   :  { %5164 = vadd.xlane.f32.xlu1 %v5084_v53  ;;  %5116 = vadd.xlane.f32.xlu0 %v5060_v8  ;;  %v3811_v53 = vmul.f32 0.015625, %v11156_v56  ;;  %v3859_v56 = vmul.f32 0.015625, %v11174_v34 }
 0x514   :  { %4632 = vmatpush.msrb.mxu1 %v4145_v41  ;;  %v4133_v41 = vunpack.c.l.bf16 %v3929_v21  ;;  %4693 = vmatpush.msra.mxu0 %v4140_v42  ;;  %v4490_v42 = vperm.slane %v3814_v16, %v13101_v26  ;;  %v3917_v16 = vld [vmem:[#allocation8 + $0x180] sm:$0xff] }
 0x515   :  { %v4484_v34 = vperm.slane %v3811_v53, %v13097_v32  ;;  %v4577_v53 = vperm.slane %v3859_v56, %v13097_v32  ;;  %v3861_v56 = vmul.f32 0.015625, %v11190_v52  ;;  %4738 = vmatpush.msra.mxu2 %v4015_v17  ;;  %4753 = vmatpush.msra.mxu3 %v4141_v0  ;;  %v5068_v0 = vld [vmem:[#allocation2 + $0x80] sm:$0xff]  ;;  %v5063_v17 = vld [vmem:[#allocation2 + $0x58] sm:$0xff] }
 0x516   :  { %v11239_v8 = vpop.xlane.xlu1 %3618  ;;  %v11241_v14 = vpop.xlane.xlu0 %3759  ;;  %4633 = vmatpush.msrb.mxu1 %v4139_v50  ;;  %4694 = vmatpush.msra.mxu0 %v4134_v15  ;;  %v5066_v15 = vld [vmem:[#allocation2 + $0x70] sm:$0xff] }
 0x517   :  { %5138 = vadd.xlane.f32.xlu2 %v5071_v3  ;;  %v4576_v3 = vsel %vm2181_vm5, %v4575_v57, %v11148_v55  ;;  %4754 = vmatpush.msra.mxu3 %v4135_v20 }
 0x518   :  { %v11264_v7 = vpop.xlane.xlu2 %3699  ;;  %4634 = vmatpush.msrb.mxu1 %v4133_v41  ;;  %v4578_v52 = vsel %vm2185_vm6, %v4577_v53, %v4576_v3  ;;  %v4581_v41 = vperm.slane %v3861_v56, %v13100_v60  ;;  %v3863_v56 = vmul.f32 0.015625, %v11220_v63  ;;  %v4110_v3 = vunpack.c.h.bf16 %v3917_v16 }
 0x519   :  { %v4580_v57 = vsel %vm2189_vm7, %v4579_v5, %v4578_v52  ;;  %4755 = vmatpush.msra.mxu3 %v4129_v23  ;;  %v3862_v5 = vmul.f32 0.015625, %v11204_v51  ;;  %v4109_v23 = vunpack.c.l.bf16 %v3917_v16  ;;  %v3864_v51 = vmul.f32 0.015625, %v11241_v14  ;;  %v5092_v16 = vld [vmem:[#allocation2 + $0x140] sm:$0xff] }
 0x51a   :  { %4635 = vmatpush.msrb.mxu1 %v4127_v2  ;;  %v3816_v2 = vmul.f32 0.015625, %v11218_v1  ;;  %v4582_v52 = vsel %vm2193_vm8, %v4581_v41, %v4580_v57  ;;  %v4005_v57 = vld [vmem:[#allocation8 + $0x440] sm:$0xff]  ;;  %v5087_v41 = vld [vmem:[#allocation2 + $0x118] sm:$0xff] }
 0x51b   :  { %5120 = vadd.xlane.f32.xlu1 %v5062_v12  ;;  %5166 = vadd.xlane.f32.xlu0 %v5085_v46  ;;  %v4128_v46 = vunpack.c.h.bf16 %v3926_v49  ;;  %v4485_v12 = vsel %vm2185_vm6, %v4484_v34, %v11145_v27  ;;  %v3920_v27 = vld [vmem:[#allocation8 + $0x198] sm:$0xff]  ;;  %v11280_v34 = vmul.f32 0.015625, %v11202_v44  ;;  %v4121_v49 = vunpack.c.l.bf16 %v3923_v35  ;;  %v11291_v35 = vld [vmem:[#allocation8 + $0x188] sm:$0xff] }
 0x51c   :  { %v4487_v50 = vsel %vm2189_vm7, %v4486_v45, %v4485_v12  ;;  %v4123_v45 = vunpack.c.l.bf16 %v11272_v38  ;;  %v11289_v44 = vmul.f32 0.015625, %v11186_v40  ;;  %v4115_v53 = vunpack.c.l.bf16 %v3920_v27  ;;  %v4011_v12 = vld [vmem:[#allocation8 + $0x470] sm:$0xff] }
 0x51d   :  { %v4489_v55 = vsel %vm2193_vm8, %v4488_v54, %v4487_v50  ;;  %4695 = vmatpush.msra.mxu0 %v4128_v46  ;;  %v4116_v20 = vunpack.c.h.bf16 %v3920_v27  ;;  %v4117_v46 = vunpack.c.l.bf16 %v11282_v13  ;;  %v4492_v40 = vperm.slane %v11280_v34, %v13102_v37  ;;  %4636 = vmatpush.msrb.mxu1 %v4121_v49  ;;  %v4008_v27 = vld [vmem:[#allocation8 + $0x458] sm:$0xff] }
 0x51e   :  { %v11269_v24 = vpop.xlane.xlu1 %3621  ;;  %v3763_v21 = vpop.xlane.xlu0 %3762  ;;  %v4491_v54 = vsel %vm13143_vm3, %v4490_v42, %v4489_v55  ;;  %v3817_v50 = vmul.f32 0.015625, %v11239_v8  ;;  %4756 = vmatpush.msra.mxu3 %v4123_v45  ;;  %v4111_v1 = vunpack.c.l.bf16 %v11291_v35  ;;  %v4296_v42 = vunpack.c.h.bf16 %v11107_v29 }
 0x51f   :  { %4696 = vmatpush.msra.mxu0 %v4122_v4  ;;  %5128 = vadd.xlane.f32.xlu2 %v5066_v15  ;;  %v3865_v34 = vmul.f32 0.015625, %v3763_v21  ;;  %v4297_v4 = vunpack.c.l.bf16 %v4011_v12  ;;  %v4583_v8 = vperm.slane %v3862_v5, %v13101_v26  ;;  %v4494_v14 = vperm.slane %v3816_v2, %v13104_v6  ;;  %v4002_v2 = vld [vmem:[#allocation8 + $0x428] sm:$0xff] }
 0x520   :  { %4637 = vmatpush.msrb.mxu1 %v4115_v53  ;;  %v3818_v49 = vmul.f32 0.015625, %v11269_v24  ;;  %v11309_v55 = vmul.f32 0.015625, %v11194_v61  ;;  %4757 = vmatpush.msra.mxu3 %v4117_v46  ;;  %v4585_v21 = vperm.slane %v3863_v56, %v13102_v37  ;;  %v4290_v15 = vunpack.c.h.bf16 %v11116_v39  ;;  %v5096_v39 = vld [vmem:[#allocation2 + $0x160] sm:$0xff] }
 0x521   :  { %4697 = vmatpush.msra.mxu0 %v4116_v20  ;;  %v4291_v53 = vunpack.c.l.bf16 %v4008_v27  ;;  %v4493_v20 = vsel %vm2201_vm10, %v4492_v40, %v4491_v54  ;;  %v4496_v24 = vperm.slane %v3817_v50, %v13103_v47  ;;  %v4587_v61 = vperm.slane %v3864_v51, %v13104_v6  ;;  %v3999_v51 = vld [vmem:[#allocation8 + $0x410] sm:$0xff] }
 0x522   :  { %v11311_v29 = vpop.xlane.xlu2 %3708  ;;  %4638 = vmatpush.msrb.mxu1 %v4109_v23  ;;  %4758 = vmatpush.msra.mxu3 %v4111_v1  ;;  %v4292_v5 = vunpack.c.h.bf16 %v4008_v27  ;;  %v4589_v46 = vperm.slane %v3865_v34, %v13103_v47  ;;  %v4284_v56 = vunpack.c.h.bf16 %v11122_v30  ;;  %v4285_v23 = vunpack.c.l.bf16 %v4005_v57 }
 0x523   :  { %5132 = vadd.xlane.f32.xlu1 %v5068_v0  ;;  %5122 = vadd.xlane.f32.xlu0 %v5063_v17  ;;  %v4298_v17 = vunpack.c.h.bf16 %v4011_v12  ;;  %v4495_v54 = vsel %vm2205_vm11, %v4494_v14, %v4493_v20  ;;  %v4498_v40 = vperm.slane %v3818_v49, %v13109_v28  ;;  %v4286_v50 = vunpack.c.h.bf16 %v4005_v57  ;;  %v3996_v57 = vld [vmem:[#allocation8 + $0x3f8] sm:$0xff]  ;;  %v5064_v20 = vld [vmem:[#allocation2 + $0x60] sm:$0xff] }
 0x524   :  { %4698 = vmatpush.msra.mxu0 %v4110_v3  ;;  %4703 = vmatpush.msra.mxu1 %v4296_v42  ;;  %v4584_v3 = vsel %vm13144_vm13, %v4583_v8, %v4582_v52  ;;  %v4278_v30 = vunpack.c.h.bf16 %v11125_v58  ;;  %v4279_v27 = vunpack.c.l.bf16 %v4002_v2  ;;  %v4497_v34 = vsel %vm13145_vm14, %v4496_v24, %v4495_v54  ;;  %v3990_v54 = vld [vmem:[#allocation8 + $0x3c8] sm:$0xff] }
 0x525   :  { %4823 = vmatpush.msrb.mxu3 %v4298_v17  ;;  %v4586_v1 = vsel %vm2201_vm10, %v4585_v21, %v4584_v3  ;;  %v4272_v58 = vunpack.c.h.bf16 %v11134_v9  ;;  %v4273_v49 = vunpack.c.l.bf16 %v3999_v51  ;;  %vm13147_vm3 = vcmask 917312  }
 0x526   :  { %v3769_v0 = vpop.xlane.xlu1 %3768  ;;  %v3625_v63 = vpop.xlane.xlu0 %3624  ;;  %4763 = vmatpush.msrb.mxu0 %v4297_v4  ;;  %4704 = vmatpush.msra.mxu1 %v4290_v15  ;;  %v4588_v52 = vsel %vm2205_vm11, %v4587_v61, %v4586_v1  ;;  %v4499_v21 = vsel %vm13147_vm3, %v4498_v40, %v4497_v34  ;;  %vm13148_vm13 = vcmask 982912   ;;  %v4274_v9 = vunpack.c.h.bf16 %v3999_v51  ;;  %v3993_v61 = vld [vmem:[#allocation8 + $0x3e0] sm:$0xff]  ;;  %vm13149_vm14 = vmmov %vm13147_vm3  ;;  %v13155_v51 = vld [vmem:[#allocation79_spill] sm:$0xff] }
 0x527   :  { %v3819_v45 = vmul.f32 0.015625, %v3625_v63  ;;  %v3867_v12 = vmul.f32 0.015625, %v3769_v0  ;;  %v4591_v0 = vperm.slane %v11289_v44, %v13109_v28  ;;  %4824 = vmatpush.msrb.mxu3 %v4292_v5  ;;  %5188 = vadd.xlane.f32.xlu2 %v5096_v39  ;;  %v4280_v63 = vunpack.c.h.bf16 %v4002_v2 }
 0x528   :  { %4764 = vmatpush.msrb.mxu0 %v4291_v53  ;;  %v4590_v4 = vsel %vm13146_vm2, %v4589_v46, %v4588_v52  ;;  %4705 = vmatpush.msra.mxu1 %v4284_v56  ;;  %v4502_v44 = vperm.slane %v11309_v55, %v13113_v18  ;;  %v5070_v53 = vld [vmem:[#allocation2 + $0x90] sm:$0xff]  ;;  %v4266_v24 = vunpack.c.h.bf16 %v11141_v48  ;;  %v3789_v5 = vmul.f32 0.015625, %v10806_v36  ;;  %vm13150_vm2 = vmmov %vm13148_vm13 }
 0x529   :  { %v4500_v42 = vperm.slane %v3819_v45, %v13110_v43  ;;  %v4593_v17 = vperm.slane %v3867_v12, %v13110_v43  ;;  %4825 = vmatpush.msrb.mxu3 %v4286_v50  ;;  %v4592_v55 = vsel %vm13149_vm14, %v4591_v0, %v4590_v4  ;;  %v4267_v46 = vunpack.c.l.bf16 %v3996_v57 }
 0x52a   :  { %4765 = vmatpush.msrb.mxu0 %v4285_v23  ;;  %4706 = vmatpush.msra.mxu1 %v4278_v30  ;;  %v4202_v56 = vunpack.c.h.bf16 %v11192_v59  ;;  %v4268_v23 = vunpack.c.h.bf16 %v3996_v57  ;;  %vm13151_vm3 = vcmask 1048512   ;;  %v4260_v39 = vunpack.c.h.bf16 %v11150_v33  ;;  %v13158_v33 = vld [vmem:[#allocation26_spill] sm:$0xff] }
 0x52b   :  { %5180 = vadd.xlane.f32.xlu1 %v5092_v16  ;;  %5170 = vadd.xlane.f32.xlu0 %v5087_v41  ;;  %v11336_v16 = vpop.xlane.xlu2 %3717  ;;  %v11339_v41 = vmul.f32 0.015625, %v10804_v11  ;;  %v4501_v15 = vsel %vm13148_vm13, %v4500_v42, %v4499_v21  ;;  %v11347_v11 = vmul.f32 0.015625, %v10631_v10  ;;  %v4594_v12 = vsel %vm13150_vm2, %v4593_v17, %v4592_v55  ;;  %vm13152_vm13 = vmmov %vm13151_vm3  ;;  %v13156_v42 = vld [vmem:[#allocation81_spill] sm:$0xff]  ;;  %v13159_v17 = vld [vmem:[#allocation34_spill] sm:$0xff] }
 0x52c   :  { %4766 = vmatpush.msrb.mxu0 %v4279_v27  ;;  %4826 = vmatpush.msrb.mxu3 %v4280_v63  ;;  %v4503_v48 = vsel %vm13151_vm3, %v4502_v44, %v4501_v15  ;;  %v4261_v3 = vunpack.c.l.bf16 %v3993_v61  ;;  %vm13153_vm14 = vcmask 1041409   ;;  %v4196_v59 = vunpack.c.h.bf16 %v11197_v19  ;;  %v13157_v27 = vld [vmem:[#allocation36_spill] sm:$0xff]  ;;  %v13162_v15 = vld [vmem:[#allocation19_spill] sm:$0xff] }
 0x52d   :  { %4707 = vmatpush.msra.mxu1 %v4272_v58  ;;  %v4443_v10 = vperm.slane %v11339_v41, %v8199_v22  ;;  %v4262_v50 = vunpack.c.h.bf16 %v3993_v61  ;;  %v4442_v1 = vperm.slane %v3789_v5, %v13155_v51  ;;  %v3792_v30 = vmul.f32 0.015625, %v13156_v42  ;;  %v13161_v41 = vld [vmem:[#allocation83_spill] sm:$0xff] }
 0x52e   :  { %v3679_v8 = vpop.xlane.xlu1 %3678  ;;  %v3772_v14 = vpop.xlane.xlu0 %3771  ;;  %4767 = vmatpush.msrb.mxu0 %v4273_v49  ;;  %4827 = vmatpush.msrb.mxu3 %v4274_v9  ;;  %v3838_v34 = vmul.f32 0.015625, %v13157_v27  ;;  %v4254_v52 = vunpack.c.h.bf16 %v13158_v33  ;;  %v4190_v19 = vunpack.c.h.bf16 %v13159_v17  ;;  %v4255_v58 = vunpack.c.l.bf16 %v3990_v54  ;;  %v13160_v49 = vld [vmem:[#allocation16_spill] sm:$0xff]  ;;  %v5094_v9 = vld [vmem:[#allocation2 + $0x150] sm:$0xff]  ;;  %v13168_v27 = vld [vmem:[#allocation85_spill] sm:$0xff] }
 0x52f   :  { %v3868_v45 = vmul.f32 0.015625, %v3772_v14  ;;  %4708 = vmatpush.msra.mxu1 %v4266_v24  ;;  %v3837_v0 = vmul.f32 0.015625, %v3679_v8  ;;  %v5091_v14 = vld [vmem:[#allocation2 + $0x138] sm:$0xff]  ;;  %v11367_v57 = vmul.f32 0.015625, %v13160_v49  ;;  %v4445_v8 = vperm.slane %v11347_v11, %v13161_v41  ;;  %v13163_v24 = vld [vmem:[#allocation33_spill] sm:$0xff] }
 0x530   :  { %4768 = vmatpush.msrb.mxu0 %v4267_v46  ;;  %4828 = vmatpush.msrb.mxu3 %v4268_v23  ;;  %v4184_v61 = vunpack.c.h.bf16 %v13163_v24  ;;  %v4256_v5 = vunpack.c.h.bf16 %v3990_v54  ;;  %v4444_v55 = vsel %vm2165_vm1, %v4443_v10, %v4442_v1  ;;  %v3984_v11 = vld [vmem:[#allocation8 + $0x398] sm:$0xff]  ;;  %vm13169_vm2 = vcmask 195712   ;;  %v13172_v17 = vld [vmem:[#allocation41_spill] sm:$0xff] }
 0x531   :  { %v4595_v2 = vperm.slane %v3868_v45, %v13113_v18  ;;  %4709 = vmatpush.msra.mxu1 %v4260_v39  ;;  %v3987_v45 = vld [vmem:[#allocation8 + $0x3b0] sm:$0xff]  ;;  %5178 = vadd.xlane.f32.xlu2 %v5091_v14  ;;  %v4451_v54 = vperm.slane %v11367_v57, %v8256_v62  ;;  %v4446_v33 = vsel %vm13169_vm2, %v4445_v8, %v4444_v55  ;;  %vm13171_vm3 = vcmask 261312   ;;  %v13173_v14 = vld [vmem:[#allocation24_spill] sm:$0xff]  ;;  %v13174_v49 = vld [vmem:[#allocation29_spill] sm:$0xff] }
 0x532   :  { %4769 = vmatpush.msrb.mxu0 %v4261_v3  ;;  %4829 = vmatpush.msrb.mxu3 %v4262_v50  ;;  %v13166_v39 = vld [vmem:[#allocation35_spill] sm:$0xff]  ;;  %v4250_v50 = vunpack.c.h.bf16 %v3987_v45  ;;  %v4236_v57 = vunpack.c.h.bf16 %v13174_v49  ;;  %v3978_v24 = vld [vmem:[#allocation8 + $0x368] sm:$0xff] }
 0x533   :  { %v4596_v36 = vsel %vm13152_vm13, %v4595_v2, %v4594_v12  ;;  %5136 = vadd.xlane.f32.xlu1 %v5070_v53  ;;  %5124 = vadd.xlane.f32.xlu0 %v5064_v20  ;;  %v11369_v44 = vpop.xlane.xlu2 %5100  ;;  %v3793_v53 = vmul.f32 0.015625, %v13162_v15  ;;  %v5065_v20 = vld [vmem:[#allocation2 + $0x68] sm:$0xff]  ;;  %v13164_v2 = vld [vmem:[#allocation84_spill] sm:$0xff]  ;;  %v4536_v12 = vperm.slane %v3838_v34, %v8199_v22  ;;  %v4178_v3 = vunpack.c.h.bf16 %v13166_v39  ;;  %v13167_v1 = vld [vmem:[#allocation27_spill] sm:$0xff] }
 0x534   :  { %v11357_v40 = vsel %vm13153_vm14, %v4596_v36, %v4503_v48  ;;  %v4447_v46 = vperm.slane %v3792_v30, %v13164_v2  ;;  %4710 = vmatpush.msra.mxu1 %v4254_v52  ;;  %v4535_v48 = vperm.slane %v3837_v0, %v13155_v51  ;;  %4770 = vmatpush.msrb.mxu0 %v4255_v58  ;;  %v4242_v42 = vunpack.c.h.bf16 %v13167_v1  ;;  %v3981_v30 = vld [vmem:[#allocation8 + $0x380] sm:$0xff]  ;;  %v13177_v55 = vld [vmem:[#allocation18_spill] sm:$0xff]  ;;  %vm13178_vm13 = vmmov %vm13169_vm2 }
 0x535   :  { %13154 = vst [vmem:[#allocation45_spill] sm:$0xff] %v11357_v40  ;;  %4659 = vmatmul.f32.vlgmr.msrb.gmra.mxu2 %v11357_v40  ;;  %v4449_v34 = vperm.slane %v3793_v53, %v13168_v27  ;;  %v13170_v52 = vld [vmem:[#allocation37_spill] sm:$0xff]  ;;  %4830 = vmatpush.msrb.mxu3 %v4256_v5  ;;  %v4244_v58 = vunpack.c.h.bf16 %v3984_v11  ;;  %v13175_v53 = vld [vmem:[#allocation38_spill] sm:$0xff]  ;;  %v5095_v39 = vld [vmem:[#allocation2 + $0x158] sm:$0xff]  ;;  %v4231_v49 = vunpack.c.l.bf16 %v3978_v24  ;;  %vm13193_vm2 = vcmask 654912  }
 0x536   :  { %4803 = vmatpush.msrb.mxu2 %v4202_v56  ;;  %v3688_v63 = vpop.xlane.xlu1 %3687  ;;  %v3685_v4 = vpop.xlane.xlu0 %3684  ;;  %v13165_v56 = vld [vmem:[#allocation28_spill] sm:$0xff]  ;;  %v4172_v0 = vunpack.c.h.bf16 %v13170_v52  ;;  %v3975_v52 = vld [vmem:[#allocation8 + $0x350] sm:$0xff]  ;;  %vm13182_vm14 = vmmov %vm13171_vm3 }
 0x537   :  { %v3839_v21 = vmul.f32 0.015625, %v3685_v4  ;;  %v4248_v23 = vunpack.c.h.bf16 %v13165_v56  ;;  %v3840_v36 = vmul.f32 0.015625, %v3688_v63  ;;  %v4243_v63 = vunpack.c.l.bf16 %v3984_v11  ;;  %4831 = vmatpush.msrb.mxu3 %v4250_v50  ;;  %v13181_v50 = vld [vmem:[#allocation30_spill] sm:$0xff] }
 0x538   :  { %4804 = vmatpush.msrb.mxu2 %v4196_v59  ;;  %v4249_v59 = vunpack.c.l.bf16 %v3987_v45  ;;  %v4448_v4 = vsel %vm13171_vm3, %v4447_v46, %v4446_v33  ;;  %v3795_v46 = vmul.f32 0.015625, %v13177_v55  ;;  %v4238_v33 = vunpack.c.h.bf16 %v3981_v30  ;;  %v13186_v55 = vld [vmem:[#allocation32_spill] sm:$0xff]  ;;  %vm13195_vm3 = vmmov %vm13193_vm2 }
 0x539   :  { %v4538_v10 = vperm.slane %v3839_v21, %v13161_v41  ;;  %4711 = vmatpush.msra.mxu1 %v4248_v23  ;;  %v4537_v21 = vsel %vm2165_vm1, %v4536_v12, %v4535_v48  ;;  %v4540_v45 = vperm.slane %v3840_v36, %v13164_v2  ;;  %v4450_v11 = vsel %vm2177_vm4, %v4449_v34, %v4448_v4  ;;  %v13179_v48 = vld [vmem:[#allocation82_spill] sm:$0xff] }
 0x53a   :  { %4805 = vmatpush.msrb.mxu2 %v4190_v19  ;;  %v3841_v19 = vmul.f32 0.015625, %v13172_v17  ;;  %4771 = vmatpush.msrb.mxu0 %v4249_v59  ;;  %v11404_v36 = vmul.f32 0.015625, %v13179_v48  ;;  %v13180_v59 = vld [vmem:[#allocation40_spill] sm:$0xff] }
 0x53b   :  { %5126 = vadd.xlane.f32.xlu1 %v5065_v20  ;;  %5184 = vadd.xlane.f32.xlu0 %v5094_v9  ;;  %v4166_v20 = vunpack.c.h.bf16 %v13175_v53  ;;  %v4237_v9 = vunpack.c.l.bf16 %v3981_v30  ;;  %v4539_v56 = vsel %vm13178_vm13, %v4538_v10, %v4537_v21  ;;  %v11400_v12 = vpop.xlane.xlu2 %5150  ;;  %v4160_v1 = vunpack.c.h.bf16 %v13180_v59  ;;  %v3969_v59 = vld [vmem:[#allocation8 + $0x320] sm:$0xff] }
 0x53c   :  { %4806 = vmatpush.msrb.mxu2 %v4184_v61  ;;  %v13176_v61 = vld [vmem:[#allocation75_spill] sm:$0xff]  ;;  %4712 = vmatpush.msra.mxu1 %v4242_v42  ;;  %v4542_v10 = vperm.slane %v3841_v19, %v13168_v27  ;;  %v4230_v42 = vunpack.c.h.bf16 %v13181_v50  ;;  %v4541_v34 = vsel %vm13182_vm14, %v4540_v45, %v4539_v56  ;;  %v4452_v30 = vsel %vm2181_vm5, %v4451_v54, %v4450_v11 }
 0x53d   :  { %4739 = vmatmul.f32.vlgmr.msra.gmra.mxu2 %v13173_v14  ;;  %v11396_v5 = vmul.f32 0.015625, %v13176_v61  ;;  %4772 = vmatpush.msrb.mxu0 %v4243_v63  ;;  %v3972_v63 = vld [vmem:[#allocation8 + $0x338] sm:$0xff]  ;;  %v4453_v19 = vperm.slane %v3795_v46, %v13097_v32  ;;  %v4455_v45 = vperm.slane %v11404_v36, %v13099_v31  ;;  %v3844_v53 = vmul.f32 0.015625, %v11264_v7 }
 0x53e   :  { %4807 = vmatpush.msrb.mxu2 %v4178_v3  ;;  %v3697_v8 = vpop.xlane.xlu1 %3696  ;;  %v3694_v15 = vpop.xlane.xlu0 %3693  ;;  %v5089_v3 = vld [vmem:[#allocation2 + $0x128] sm:$0xff]  ;;  %4832 = vmatpush.msrb.mxu3 %v4244_v58  ;;  %v13184_v58 = vld [vmem:[#allocation31_spill] sm:$0xff]  ;;  %v4543_v54 = vsel %vm2177_vm4, %v4542_v10, %v4541_v34  ;;  %v4218_v46 = vunpack.c.h.bf16 %v13186_v55  ;;  %v4219_v56 = vunpack.c.l.bf16 %v3972_v63  ;;  %v5072_v34 = vld [vmem:[#allocation2 + $0xa0] sm:$0xff]  ;;  %vm13198_vm13 = vcmask 851712  }
 0x53f   :  { %v3842_v23 = vmul.f32 0.015625, %v3694_v15  ;;  %v3843_v17 = vmul.f32 0.015625, %v3697_v8  ;;  %4713 = vmatpush.msra.mxu1 %v4236_v57  ;;  %4773 = vmatpush.msrb.mxu0 %v4237_v9  ;;  %v4232_v15 = vunpack.c.h.bf16 %v3978_v24  ;;  %v4224_v57 = vunpack.c.h.bf16 %v13184_v58  ;;  %v7106_v55 = vld [vmem:[#allocation8 + $0x300] sm:$0xff]  ;;  %vm13199_vm14 = vmmov %vm13198_vm13 }
 0x540   :  { %4808 = vmatpush.msrb.mxu2 %v4172_v0  ;;  %v13183_v0 = vld [vmem:[#allocation39_spill] sm:$0xff]  ;;  %v4225_v8 = vunpack.c.l.bf16 %v3975_v52  ;;  %4833 = vmatpush.msrb.mxu3 %v4238_v33  ;;  %v4226_v9 = vunpack.c.h.bf16 %v3975_v52  ;;  %v4454_v33 = vsel %vm2185_vm6, %v4453_v19, %v4452_v30  ;;  %v4213_v58 = vunpack.c.l.bf16 %v3969_v59 }
 0x541   :  { %v4544_v4 = vperm.slane %v3842_v23, %v8256_v62  ;;  %v4154_v21 = vunpack.c.h.bf16 %v13183_v0  ;;  %v4546_v24 = vperm.slane %v3843_v17, %v13097_v32  ;;  %4714 = vmatpush.msra.mxu1 %v4230_v42  ;;  %4774 = vmatpush.msrb.mxu0 %v4231_v49  ;;  %v13187_v23 = vld [vmem:[#allocation22_spill] sm:$0xff]  ;;  %v13188_v17 = vld [vmem:[#allocation20_spill] sm:$0xff]  ;;  %v4548_v42 = vperm.slane %v3844_v53, %v13099_v31 }
 0x542   :  { %4809 = vmatpush.msrb.mxu2 %v4166_v20  ;;  %v13185_v20 = vld [vmem:[#allocation43_spill] sm:$0xff]  ;;  %v3798_v11 = vmul.f32 0.015625, %v13187_v23  ;;  %4834 = vmatpush.msrb.mxu3 %v4232_v15  ;;  %v11431_v50 = vmul.f32 0.015625, %v13188_v17  ;;  %v13190_v53 = vld [vmem:[#allocation44_spill] sm:$0xff] }
 0x543   :  { %5186 = vadd.xlane.f32.xlu1 %v5095_v39  ;;  %5174 = vadd.xlane.f32.xlu0 %v5089_v3  ;;  %v4148_v61 = vunpack.c.h.bf16 %v13185_v20  ;;  %v4545_v48 = vsel %vm2181_vm5, %v4544_v4, %v4543_v54  ;;  %v4142_v39 = vunpack.c.h.bf16 %v11244_v25  ;;  %v4220_v3 = vunpack.c.h.bf16 %v3972_v63  ;;  %v11428_v10 = vpop.xlane.xlu2 %5106  ;;  %v5090_v25 = vld [vmem:[#allocation2 + $0x130] sm:$0xff]  ;;  %v7105_v30 = vld [vmem:[#allocation8 + $0x318] sm:$0xff] }
 0x544   :  { %4810 = vmatpush.msrb.mxu2 %v4160_v1  ;;  %v4457_v1 = vperm.slane %v11396_v5, %v13100_v60  ;;  %4715 = vmatpush.msra.mxu1 %v4224_v57  ;;  %v13189_v4 = vld [vmem:[#allocation42_spill] sm:$0xff]  ;;  %v4212_v19 = vunpack.c.h.bf16 %v7105_v30  ;;  %v4456_v57 = vsel %vm2189_vm7, %v4455_v45, %v4454_v33  ;;  %v4130_v20 = vunpack.c.h.bf16 %v13190_v53 }
 0x545   :  { %4775 = vmatpush.msrb.mxu0 %v4225_v8  ;;  %v4136_v0 = vunpack.c.h.bf16 %v13189_v4  ;;  %4835 = vmatpush.msrb.mxu3 %v4226_v9  ;;  %v3966_v5 = vld [vmem:[#allocation8 + $0x308] sm:$0xff]  ;;  %v5098_v63 = vld [vmem:[#allocation2 + $0x170] sm:$0xff]  ;;  %v4459_v8 = vperm.slane %v3798_v11, %v13101_v26  ;;  %v4124_v11 = vunpack.c.h.bf16 %v11272_v38 }
 0x546   :  { %4811 = vmatpush.msrb.mxu2 %v4154_v21  ;;  %v3706_v7 = vpop.xlane.xlu1 %3705  ;;  %v3703_v36 = vpop.xlane.xlu0 %3702  ;;  %v4547_v21 = vsel %vm2185_vm6, %v4546_v24, %v4545_v48  ;;  %4716 = vmatpush.msra.mxu1 %v4218_v46  ;;  %v13191_v9 = vld [vmem:[#allocation17_spill] sm:$0xff]  ;;  %v3847_v24 = vmul.f32 0.015625, %v11311_v29  ;;  %v4206_v46 = vunpack.c.h.bf16 %v7106_v55  ;;  %v4208_v48 = vunpack.c.h.bf16 %v3966_v5  ;;  %v13192_v29 = vld [vmem:[#allocation23_spill] sm:$0xff] }
 0x547   :  { %v3845_v52 = vmul.f32 0.015625, %v3703_v36  ;;  %v3846_v49 = vmul.f32 0.015625, %v3706_v7  ;;  %4776 = vmatpush.msrb.mxu0 %v4219_v56  ;;  %4836 = vmatpush.msrb.mxu3 %v4220_v3  ;;  %v3800_v54 = vmul.f32 0.015625, %v13191_v9  ;;  %v4207_v56 = vunpack.c.l.bf16 %v3966_v5  ;;  %v5949_v33 = vld [vmem:[#allocation5 + $0x8] sm:$0xff] }
 0x548   :  { %4812 = vmatpush.msrb.mxu2 %v4148_v61  ;;  %v4214_v61 = vunpack.c.h.bf16 %v3969_v59  ;;  %v4549_v45 = vsel %vm2189_vm7, %v4548_v42, %v4547_v21  ;;  %5192 = vadd.xlane.f32.xlu2 %v5098_v63  ;;  %v4461_v7 = vperm.slane %v11431_v50, %v13102_v37  ;;  %v4458_v36 = vsel %vm2193_vm8, %v4457_v1, %v4456_v57  ;;  %v5948_v59 = vld [vmem:[#allocation5] sm:$0xff]  ;;  %v5073_v21 = vld [vmem:[#allocation2 + $0xa8] sm:$0xff] }
 0x549   :  { %v4550_v15 = vperm.slane %v3845_v52, %v13100_v60  ;;  %v4552_v23 = vperm.slane %v3846_v49, %v13101_v26  ;;  %4717 = vmatpush.msra.mxu1 %v4212_v19  ;;  %4777 = vmatpush.msrb.mxu0 %v4213_v58  ;;  %v4460_v52 = vsel %vm13193_vm2, %v4459_v8, %v4458_v36  ;;  %v4118_v42 = vunpack.c.h.bf16 %v11282_v13  ;;  %v11452_v49 = vld [vmem:[#allocation8 + $0x478] sm:$0xff]  ;;  %v13194_v4 = vld [vmem:[#allocation21_spill] sm:$0xff]  ;;  %v5974_v36 = vld [vmem:[#allocation5 + $0xd0] sm:$0xff] }
 0x54a   :  { %4813 = vmatpush.msrb.mxu2 %v4142_v39  ;;  %v3801_v39 = vmul.f32 0.015625, %v13192_v29  ;;  %4837 = vmatpush.msrb.mxu3 %v4214_v61  ;;  %v4463_v1 = vperm.slane %v3800_v54, %v13104_v6  ;;  %v4554_v50 = vperm.slane %v3847_v24, %v13102_v37  ;;  %v4112_v13 = vunpack.c.h.bf16 %v11291_v35  ;;  %v11459_v63 = vld [vmem:[#allocation8 + $0x460] sm:$0xff]  ;;  %v11469_v35 = vld [vmem:[#allocation8 + $0x448] sm:$0xff]  ;;  %v5975_v29 = vld [vmem:[#allocation5 + $0xd8] sm:$0xff] }
 0x54b   :  { %5176 = vadd.xlane.f32.xlu1 %v5090_v25  ;;  %5140 = vadd.xlane.f32.xlu0 %v5072_v34  ;;  %v4551_v3 = vsel %vm2193_vm8, %v4550_v15, %v4549_v45  ;;  %v5067_v15 = vld [vmem:[#allocation2 + $0x78] sm:$0xff]  ;;  %v5996_v30 = vadd.f32 %v5949_v33, %v5948_v59  ;;  %v4462_v19 = vsel %vm2201_vm10, %v4461_v7, %v4460_v52  ;;  %v4299_v8 = vunpack.c.l.bf16 %v11452_v49  ;;  %v11465_v53 = vpop.xlane.xlu2 %5156 }
 0x54c   :  { %4814 = vmatpush.msrb.mxu2 %v4136_v0  ;;  %4718 = vmatpush.msra.mxu1 %v4206_v46  ;;  %v3802_v0 = vmul.f32 0.015625, %v13194_v4  ;;  %v4553_v5 = vsel %vm13195_vm3, %v4552_v23, %v4551_v3  ;;  %v4465_v58 = vperm.slane %v3801_v39, %v13103_v47  ;;  %v3850_v9 = vmul.f32 0.015625, %v11336_v16  ;;  %v13197_v23 = vld [vmem:[#allocation25_spill] sm:$0xff]  ;;  %v4003_v16 = vld [vmem:[#allocation8 + $0x430] sm:$0xff]  ;;  %v4000_v52 = vld [vmem:[#allocation8 + $0x418] sm:$0xff] }
 0x54d   :  { %4778 = vmatpush.msrb.mxu0 %v4207_v56  ;;  %4838 = vmatpush.msrb.mxu3 %v4208_v48  ;;  %v4555_v24 = vsel %vm2201_vm10, %v4554_v50, %v4553_v5  ;;  %v4293_v55 = vunpack.c.l.bf16 %v11459_v63  ;;  %v4464_v56 = vsel %vm2205_vm11, %v4463_v1, %v4462_v19  ;;  %v3804_v45 = vmul.f32 0.015625, %v13197_v23 }
 0x54e   :  { %4815 = vmatpush.msrb.mxu2 %v4130_v20  ;;  %v3715_v17 = vpop.xlane.xlu1 %3714  ;;  %v3712_v38 = vpop.xlane.xlu0 %3711  ;;  %v13196_v20 = vld [vmem:[#allocation76_spill] sm:$0xff]  ;;  %v4467_v46 = vperm.slane %v3802_v0, %v13109_v28  ;;  %v4466_v48 = vsel %vm13198_vm13, %v4465_v58, %v4464_v56  ;;  %v4287_v7 = vunpack.c.l.bf16 %v11469_v35  ;;  %v4560_v3 = vperm.slane %v3850_v9, %v13109_v28  ;;  %v3994_v56 = vld [vmem:[#allocation8 + $0x3e8] sm:$0xff] }
 0x54f   :  { %v3849_v25 = vmul.f32 0.015625, %v3715_v17  ;;  %v3848_v34 = vmul.f32 0.015625, %v3712_v38  ;;  %v3803_v61 = vmul.f32 0.015625, %v13196_v20  ;;  %v4281_v1 = vunpack.c.l.bf16 %v4003_v16 }
 0x550   :  { %4816 = vmatpush.msrb.mxu2 %v4124_v11  ;;  %5997 = vadd.xlane.f32.xlu2 %v5996_v30  ;;  %vm13200_vm2 = vcmask 917312   ;;  %v6035_v4 = vadd.f32 %v5975_v29, %v5974_v36  ;;  %v5196_v30 = vmul.f32 0.0078125, %v11369_v44  ;;  %v5221_v58 = vmul.f32 0.0078125, %v11400_v12  ;;  %v7108_v29 = vld [vmem:[#allocation8 + $0x158] sm:$0xff] }
 0x551   :  { %v4556_v57 = vperm.slane %v3848_v34, %v13104_v6  ;;  %v4558_v54 = vperm.slane %v3849_v25, %v13103_v47  ;;  %v4469_v39 = vperm.slane %v3803_v61, %v13110_v43  ;;  %v4468_v50 = vsel %vm13200_vm2, %v4467_v46, %v4466_v48  ;;  %v5074_v34 = vld [vmem:[#allocation2 + $0xb0] sm:$0xff]  ;;  %vm13201_vm3 = vmmov %vm13200_vm2 }
 0x552   :  { %4817 = vmatpush.msrb.mxu2 %v4118_v42  ;;  %v4471_v25 = vperm.slane %v3804_v45, %v13113_v18  ;;  %vm13202_vm13 = vcmask 982912   ;;  %v7107_v61 = vld [vmem:[#allocation8 + $0x170] sm:$0xff]  ;;  %vm13204_vm2 = vcmask 1048512   ;;  %v5522_v16 = vperm.slane %v5196_v30, %v13155_v51  ;;  %v5099_v30 = vld [vmem:[#allocation2 + $0x178] sm:$0xff] }
 0x553   :  { %5142 = vadd.xlane.f32.xlu1 %v5073_v21  ;;  %5130 = vadd.xlane.f32.xlu0 %v5067_v15  ;;  %v4557_v11 = vsel %vm2205_vm11, %v4556_v57, %v4555_v24  ;;  %v5097_v21 = vld [vmem:[#allocation2 + $0x168] sm:$0xff]  ;;  %v4275_v15 = vunpack.c.l.bf16 %v4000_v52  ;;  %v3997_v57 = vld [vmem:[#allocation8 + $0x400] sm:$0xff]  ;;  %v4106_v9 = vunpack.c.h.bf16 %v7107_v61  ;;  %v11492_v24 = vpop.xlane.xlu2 %5112  ;;  %vm13205_vm12 = vmmov %vm13204_vm2  ;;  %v5569_v48 = vperm.slane %v5221_v58, %v8199_v22 }
 0x554   :  { %4818 = vmatpush.msrb.mxu2 %v4112_v13  ;;  %v4559_v17 = vsel %vm13199_vm14, %v4558_v54, %v4557_v11  ;;  %v3916_v13 = vld [vmem:[#allocation8 + $0x178] sm:$0xff]  ;;  %vm13203_vm14 = vmmov %vm13202_vm13  ;;  %v3913_v54 = vld [vmem:[#allocation8 + $0x160] sm:$0xff]  ;;  %v4269_v23 = vunpack.c.l.bf16 %v3997_v57 }
 0x555   :  { %v4561_v19 = vsel %vm13201_vm3, %v4560_v3, %v4559_v17  ;;  %v4107_v46 = vunpack.c.l.bf16 %v3916_v13  ;;  %vm13206_vm3 = vcmask 1041409   ;;  %v4108_v45 = vunpack.c.h.bf16 %v3916_v13  ;;  %v3910_v11 = vld [vmem:[#allocation8 + $0x148] sm:$0xff] }
 0x556   :  { %4883 = vmatpush.msra.mxu2 %v4299_v8  ;;  %v3724_v59 = vpop.xlane.xlu1 %3723  ;;  %v3721_v33 = vpop.xlane.xlu0 %3720  ;;  %v4470_v8 = vsel %vm13202_vm13, %v4469_v39, %v4468_v50  ;;  %v4100_v39 = vunpack.c.h.bf16 %v7108_v29  ;;  %v4101_v3 = vunpack.c.l.bf16 %v3913_v54  ;;  %v4263_v17 = vunpack.c.l.bf16 %v3994_v56  ;;  %v7110_v58 = vld [vmem:[#allocation8 + $0x128] sm:$0xff]  ;;  %v7111_v56 = vld [vmem:[#allocation8 + $0x110] sm:$0xff] }
 0x557   :  { %v3852_v38 = vmul.f32 0.015625, %v3724_v59  ;;  %v3851_v42 = vmul.f32 0.015625, %v3721_v33  ;;  %v3991_v59 = vld [vmem:[#allocation8 + $0x3d0] sm:$0xff]  ;;  %v4095_v50 = vunpack.c.l.bf16 %v3910_v11  ;;  %v4088_v57 = vunpack.c.h.bf16 %v7110_v58 }
 0x558   :  { %4884 = vmatpush.msra.mxu2 %v4293_v55  ;;  %v4472_v55 = vsel %vm13204_vm2, %v4471_v25, %v4470_v8  ;;  %6036 = vadd.xlane.f32.xlu2 %v6035_v4  ;;  %v3907_v25 = vld [vmem:[#allocation8 + $0x130] sm:$0xff] }
 0x559   :  { %v4564_v0 = vperm.slane %v3852_v38, %v13113_v18  ;;  %v4562_v5 = vperm.slane %v3851_v42, %v13110_v43  ;;  %v4102_v38 = vunpack.c.h.bf16 %v3913_v54  ;;  %v7109_v42 = vld [vmem:[#allocation8 + $0x140] sm:$0xff]  ;;  %v4089_v8 = vunpack.c.l.bf16 %v3907_v25  ;;  %v3904_v54 = vld [vmem:[#allocation8 + $0x118] sm:$0xff] }
 0x55a   :  { %4885 = vmatpush.msra.mxu2 %v4287_v7 }
 0x55b   :  { %v4563_v20 = vsel %vm13203_vm14, %v4562_v5, %v4561_v19  ;;  %5144 = vadd.xlane.f32.xlu1 %v5074_v34  ;;  %5190 = vadd.xlane.f32.xlu0 %v5097_v21  ;;  %v4096_v5 = vunpack.c.h.bf16 %v3910_v11  ;;  %v3988_v21 = vld [vmem:[#allocation8 + $0x3b8] sm:$0xff]  ;;  %v3901_v11 = vld [vmem:[#allocation8 + $0x100] sm:$0xff]  ;;  %vm13209_vm14 = vcmask 261312  }
 0x55c   :  { %4886 = vmatpush.msra.mxu2 %v4281_v1  ;;  %v4565_v44 = vsel %vm13205_vm12, %v4564_v0, %v4563_v20  ;;  %v4094_v1 = vunpack.c.h.bf16 %v7109_v42  ;;  %v4257_v0 = vunpack.c.l.bf16 %v3991_v59  ;;  %v5075_v19 = vld [vmem:[#allocation2 + $0xb8] sm:$0xff]  ;;  %v5199_v20 = vmul.f32 0.0078125, %v11428_v10  ;;  %vm13210_vm2 = vmmov %vm13209_vm14 }
 0x55d   :  { %v11497_v12 = vsel %vm13206_vm3, %v4565_v44, %v4472_v55  ;;  %v4251_v61 = vunpack.c.l.bf16 %v3988_v21  ;;  %v3985_v55 = vld [vmem:[#allocation8 + $0x3a0] sm:$0xff]  ;;  %v11510_v44 = vpop.xlane.xlu2 %5162  ;;  %v4077_v42 = vunpack.c.l.bf16 %v3901_v11  ;;  %v5951_v21 = vld [vmem:[#allocation5 + $0x18] sm:$0xff]  ;;  %vm13207_vm12 = vcmask 195712  }
 0x55e   :  { %4887 = vmatpush.msra.mxu2 %v4275_v15  ;;  %v5149_v7 = vpop.xlane.xlu1 %5148  ;;  %4639 = vmatmul.f32.vlgmr.msrb.gmra.mxu1 %v11497_v12  ;;  %v5103_v36 = vpop.xlane.xlu0 %5102  ;;  %v5527_v29 = vperm.slane %v5199_v20, %v13164_v2  ;;  %vm13208_vm13 = vmmov %vm13207_vm12  ;;  %v3976_v20 = vld [vmem:[#allocation8 + $0x358] sm:$0xff]  ;;  %vm13222_vm3 = vcmask 654912  }
 0x55f   :  { %4699 = vmatmul.f32.vlgmr.msra.gmra.mxu0 %v11497_v12  ;;  %v5220_v33 = vmul.f32 0.0078125, %v5149_v7  ;;  %4759 = vmatmul.f32.vlgmr.msra.gmra.mxu3 %v11497_v12  ;;  %v5197_v52 = vmul.f32 0.0078125, %v5103_v36  ;;  %v4245_v7 = vunpack.c.l.bf16 %v3985_v55 }
 0x560   :  { %4783 = vmatpush.msrb.mxu1 %v4106_v9  ;;  %4819 = vmatmul.f32.vlgmr.msrb.gmra.mxu2 %v11497_v12  ;;  %v4090_v9 = vunpack.c.h.bf16 %v3907_v25  ;;  %v5973_v25 = vld [vmem:[#allocation5 + $0xc8] sm:$0xff] }
 0x561   :  { %4843 = vmatpush.msra.mxu0 %v4107_v46  ;;  %v5568_v34 = vperm.slane %v5220_v33, %v13155_v51  ;;  %4888 = vmatpush.msra.mxu2 %v4269_v23  ;;  %v5523_v4 = vperm.slane %v5197_v52, %v8199_v22  ;;  %v4082_v23 = vunpack.c.h.bf16 %v7111_v56  ;;  %v3898_v33 = vld [vmem:[#allocation8 + $0xe8] sm:$0xff]  ;;  %v3979_v52 = vld [vmem:[#allocation8 + $0x370] sm:$0xff] }
 0x562   :  { %4903 = vmatpush.msra.mxu3 %v4108_v45  ;;  %4784 = vmatpush.msrb.mxu1 %v4100_v39  ;;  %v4084_v39 = vunpack.c.h.bf16 %v3904_v54  ;;  %v4071_v58 = vunpack.c.l.bf16 %v3898_v33  ;;  %v3919_v51 = vld [vmem:[#allocation8 + $0x190] sm:$0xff] }
 0x563   :  { %4844 = vmatpush.msra.mxu0 %v4101_v3  ;;  %v5570_v15 = vsel %vm2165_vm1, %v5569_v48, %v5568_v34  ;;  %v5524_v13 = vsel %vm2165_vm1, %v5523_v4, %v5522_v16  ;;  %4889 = vmatpush.msra.mxu2 %v4263_v17  ;;  %v3982_v16 = vld [vmem:[#allocation8 + $0x388] sm:$0xff]  ;;  %v4083_v48 = vunpack.c.l.bf16 %v3904_v54  ;;  %v7112_v3 = vld [vmem:[#allocation8 + $0xf8] sm:$0xff]  ;;  %v4078_v34 = vunpack.c.h.bf16 %v3901_v11  ;;  %v7113_v4 = vld [vmem:[#allocation8 + $0xe0] sm:$0xff] }
 0x564   :  { %4904 = vmatpush.msra.mxu3 %v4102_v38  ;;  %4785 = vmatpush.msrb.mxu1 %v4094_v1  ;;  %v4076_v59 = vunpack.c.h.bf16 %v7112_v3  ;;  %v4239_v1 = vunpack.c.l.bf16 %v3982_v16  ;;  %v4227_v11 = vunpack.c.l.bf16 %v3976_v20  ;;  %v3970_v3 = vld [vmem:[#allocation8 + $0x328] sm:$0xff] }
 0x565   :  { %4845 = vmatpush.msra.mxu0 %v4095_v50  ;;  %4890 = vmatpush.msra.mxu2 %v4257_v0  ;;  %v5972_v50 = vld [vmem:[#allocation5 + $0xc0] sm:$0xff]  ;;  %v4070_v0 = vunpack.c.h.bf16 %v7113_v4  ;;  %v3967_v4 = vld [vmem:[#allocation8 + $0x310] sm:$0xff] }
 0x566   :  { %4905 = vmatpush.msra.mxu3 %v4096_v5  ;;  %5194 = vadd.xlane.f32.xlu1 %v5099_v30  ;;  %v5153_v46 = vpop.xlane.xlu1 %5152  ;;  %v5105_v45 = vpop.xlane.xlu0 %5104  ;;  %v5950_v5 = vld [vmem:[#allocation5 + $0x10] sm:$0xff]  ;;  %v6032_v54 = vadd.f32 %v5973_v25, %v5972_v50  ;;  %v7116_v50 = vld [vmem:[#allocation8 + $0x98] sm:$0xff] }
 0x567   :  { %5146 = vadd.xlane.f32.xlu0 %v5075_v19  ;;  %4786 = vmatpush.msrb.mxu1 %v4088_v57  ;;  %v5222_v10 = vmul.f32 0.0078125, %v5153_v46  ;;  %v5198_v36 = vmul.f32 0.0078125, %v5105_v45  ;;  %v4233_v57 = vunpack.c.l.bf16 %v3979_v52  ;;  %v7114_v46 = vld [vmem:[#allocation8 + $0xc8] sm:$0xff]  ;;  %v4052_v25 = vunpack.c.h.bf16 %v7116_v50  ;;  %v3877_v50 = vld [vmem:[#allocation8 + $0x40] sm:$0xff] }
 0x568   :  { %4846 = vmatpush.msra.mxu0 %v4089_v8  ;;  %4891 = vmatpush.msra.mxu2 %v4251_v61  ;;  %v3895_v8 = vld [vmem:[#allocation8 + $0xd0] sm:$0xff]  ;;  %v11521_v61 = vmul.f32 0.0078125, %v11465_v53  ;;  %v4064_v56 = vunpack.c.h.bf16 %v7114_v46  ;;  %v5953_v46 = vld [vmem:[#allocation5 + $0x28] sm:$0xff] }
 0x569   :  { %4906 = vmatpush.msra.mxu3 %v4090_v9  ;;  %v5571_v17 = vperm.slane %v5222_v10, %v13161_v41  ;;  %4719 = vmatmul.f32.vlgmr.msra.gmra.mxu1 %v11357_v40  ;;  %v5525_v38 = vperm.slane %v5198_v36, %v13161_v41  ;;  %v4072_v9 = vunpack.c.h.bf16 %v3898_v33  ;;  %v4065_v45 = vunpack.c.l.bf16 %v3895_v8 }
 0x56a   :  { %4779 = vmatmul.f32.vlgmr.msrb.gmra.mxu0 %v11357_v40  ;;  %4787 = vmatpush.msrb.mxu1 %v4082_v23  ;;  %v3892_v23 = vld [vmem:[#allocation8 + $0xb8] sm:$0xff]  ;;  %v4066_v53 = vunpack.c.h.bf16 %v3895_v8  ;;  %v5575_v33 = vperm.slane %v11521_v61, %v13168_v27  ;;  %v7117_v61 = vld [vmem:[#allocation8 + $0x80] sm:$0xff] }
 0x56b   :  { %4839 = vmatmul.f32.vlgmr.msrb.gmra.mxu3 %v11357_v40  ;;  %v5572_v30 = vsel %vm13207_vm12, %v5571_v17, %v5570_v15  ;;  %4847 = vmatpush.msra.mxu0 %v4083_v48  ;;  %v5526_v19 = vsel %vm13208_vm13, %v5525_v38, %v5524_v13  ;;  %v5999_v15 = vadd.f32 %v5951_v21, %v5950_v5  ;;  %v3973_v13 = vld [vmem:[#allocation8 + $0x340] sm:$0xff]  ;;  %v4059_v52 = vunpack.c.l.bf16 %v3892_v23  ;;  %v5954_v21 = vld [vmem:[#allocation5 + $0x30] sm:$0xff]  ;;  %vm13223_vm12 = vmmov %vm13222_vm3 }
 0x56c   :  { %4892 = vmatpush.msra.mxu2 %v4245_v7  ;;  %4907 = vmatpush.msra.mxu3 %v4084_v39  ;;  %v5528_v55 = vsel %vm13209_vm14, %v5527_v29, %v5526_v19  ;;  %v7115_v7 = vld [vmem:[#allocation8 + $0xb0] sm:$0xff]  ;;  %v3889_v39 = vld [vmem:[#allocation8 + $0xa0] sm:$0xff]  ;;  %v4221_v17 = vunpack.c.l.bf16 %v3973_v13  ;;  %v4215_v5 = vunpack.c.l.bf16 %v3970_v3  ;;  %v5955_v19 = vld [vmem:[#allocation5 + $0x38] sm:$0xff]  ;;  %v4209_v13 = vunpack.c.l.bf16 %v3967_v4 }
 0x56d   :  { %4788 = vmatpush.msrb.mxu1 %v4076_v59  ;;  %4848 = vmatpush.msra.mxu0 %v4077_v42  ;;  %v4058_v36 = vunpack.c.h.bf16 %v7115_v7  ;;  %v11524_v59 = vpop.xlane.xlu2 %5118  ;;  %v4060_v42 = vunpack.c.h.bf16 %v3892_v23  ;;  %v4054_v20 = vunpack.c.h.bf16 %v3889_v39  ;;  %v7118_v7 = vld [vmem:[#allocation8 + $0x68] sm:$0xff]  ;;  %vm13226_vm13 = vcmask 851712  }
 0x56e   :  { %4893 = vmatpush.msra.mxu2 %v4239_v1  ;;  %4908 = vmatpush.msra.mxu3 %v4078_v34  ;;  %v5109_v16 = vpop.xlane.xlu1 %5108  ;;  %v5155_v10 = vpop.xlane.xlu0 %5154  ;;  %v3886_v34 = vld [vmem:[#allocation8 + $0x88] sm:$0xff]  ;;  %vm13229_vm14 = vmmov %vm13226_vm13 }
 0x56f   :  { %4789 = vmatpush.msrb.mxu1 %v4070_v0  ;;  %4849 = vmatpush.msra.mxu0 %v4071_v58  ;;  %v5200_v48 = vmul.f32 0.0078125, %v5109_v16  ;;  %v5223_v29 = vmul.f32 0.0078125, %v5155_v10  ;;  %v4053_v0 = vunpack.c.l.bf16 %v3889_v39  ;;  %v5976_v58 = vld [vmem:[#allocation5 + $0xe0] sm:$0xff]  ;;  %v4047_v23 = vunpack.c.l.bf16 %v3886_v34  ;;  %v3883_v16 = vld [vmem:[#allocation8 + $0x70] sm:$0xff] }
 0x570   :  { %4894 = vmatpush.msra.mxu2 %v4233_v57  ;;  %4909 = vmatpush.msra.mxu3 %v4072_v9  ;;  %v4046_v9 = vunpack.c.h.bf16 %v7117_v61  ;;  %v5956_v61 = vld [vmem:[#allocation5 + $0x40] sm:$0xff] }
 0x571   :  { %6033 = vadd.xlane.f32.xlu1 %v6032_v54  ;;  %6000 = vadd.xlane.f32.xlu0 %v5999_v15  ;;  %v5529_v38 = vperm.slane %v5200_v48, %v13168_v27  ;;  %v5573_v1 = vperm.slane %v5223_v29, %v13164_v2  ;;  %v5977_v54 = vld [vmem:[#allocation5 + $0xe8] sm:$0xff]  ;;  %v5952_v15 = vld [vmem:[#allocation5 + $0x20] sm:$0xff]  ;;  %v3880_v29 = vld [vmem:[#allocation8 + $0x58] sm:$0xff] }
 0x572   :  { %4790 = vmatpush.msrb.mxu1 %v4064_v56  ;;  %4850 = vmatpush.msra.mxu0 %v4065_v45  ;;  %v5202_v56 = vmul.f32 0.0078125, %v11492_v24  ;;  %v6002_v10 = vadd.f32 %v5953_v46, %v5952_v15  ;;  %v4036_v4 = vunpack.c.h.bf16 %v3880_v29  ;;  %v4030_v15 = vunpack.c.h.bf16 %v3877_v50  ;;  %v5957_v46 = vld [vmem:[#allocation5 + $0x48] sm:$0xff]  ;;  %v5968_v27 = vld [vmem:[#allocation5 + $0xa0] sm:$0xff] }
 0x573   :  { %4895 = vmatpush.msra.mxu2 %v4227_v11  ;;  %4910 = vmatpush.msra.mxu3 %v4066_v53  ;;  %v5530_v57 = vsel %vm2177_vm4, %v5529_v38, %v5528_v55  ;;  %v5574_v8 = vsel %vm13210_vm2, %v5573_v1, %v5572_v30  ;;  %v4048_v55 = vunpack.c.h.bf16 %v3886_v34  ;;  %v6005_v11 = vadd.f32 %v5955_v19, %v5954_v21  ;;  %v7119_v38 = vld [vmem:[#allocation8 + $0x50] sm:$0xff]  ;;  %v5969_v2 = vld [vmem:[#allocation5 + $0xa8] sm:$0xff] }
 0x574   :  { %4791 = vmatpush.msrb.mxu1 %v4058_v36  ;;  %4851 = vmatpush.msra.mxu0 %v4059_v52  ;;  %v5576_v45 = vsel %vm2177_vm4, %v5575_v33, %v5574_v8  ;;  %v6038_v30 = vadd.f32 %v5977_v54, %v5976_v58  ;;  %v4040_v36 = vunpack.c.h.bf16 %v7118_v7  ;;  %v5533_v3 = vperm.slane %v5202_v56, %v13097_v32  ;;  %v7120_v58 = vld [vmem:[#allocation8 + $0x38] sm:$0xff]  ;;  %v5978_v56 = vld [vmem:[#allocation5 + $0xf0] sm:$0xff] }
 0x575   :  { %4896 = vmatpush.msra.mxu2 %v4221_v17  ;;  %4911 = vmatpush.msra.mxu3 %v4060_v42  ;;  %v4041_v33 = vunpack.c.l.bf16 %v3883_v16  ;;  %v4042_v52 = vunpack.c.h.bf16 %v3883_v16  ;;  %v4034_v42 = vunpack.c.h.bf16 %v7119_v38  ;;  %v4035_v34 = vunpack.c.l.bf16 %v3880_v29  ;;  %v3964_v7 = vld [vmem:[#allocation8 + $0x2f8] sm:$0xff]  ;;  %v7122_v29 = vld [vmem:[#allocation8 + $0x8] sm:$0xff] }
 0x576   :  { %4792 = vmatpush.msrb.mxu1 %v4052_v25  ;;  %4852 = vmatpush.msra.mxu0 %v4053_v0  ;;  %v5159_v53 = vpop.xlane.xlu1 %5158  ;;  %v5111_v48 = vpop.xlane.xlu0 %5110  ;;  %v5980_v0 = vld [vmem:[#allocation5 + $0x100] sm:$0xff]  ;;  %v4028_v8 = vunpack.c.h.bf16 %v7120_v58  ;;  %v4029_v54 = vunpack.c.l.bf16 %v3877_v50  ;;  %v4203_v38 = vunpack.c.l.bf16 %v3964_v7  ;;  %v4204_v50 = vunpack.c.h.bf16 %v3964_v7  ;;  %v5983_v58 = vld [vmem:[#allocation5 + $0x118] sm:$0xff]  ;;  %v5986_v7 = vld [vmem:[#allocation5 + $0x130] sm:$0xff] }
 0x577   :  { %4897 = vmatpush.msra.mxu2 %v4215_v5  ;;  %4912 = vmatpush.msra.mxu3 %v4054_v20  ;;  %v5225_v24 = vmul.f32 0.0078125, %v5159_v53  ;;  %v5201_v39 = vmul.f32 0.0078125, %v5111_v48  ;;  %v11537_v25 = vpop.xlane.xlu2 %5168  ;;  %v5981_v5 = vld [vmem:[#allocation5 + $0x108] sm:$0xff]  ;;  %v6008_v53 = vadd.f32 %v5957_v46, %v5956_v61  ;;  %vm13231_vm2 = vcmask 917312  }
 0x578   :  { %4793 = vmatpush.msrb.mxu1 %v4046_v9  ;;  %4853 = vmatpush.msra.mxu0 %v4047_v23  ;;  %v3874_v20 = vld [vmem:[#allocation8 + $0x28] sm:$0xff]  ;;  %v5227_v9 = vmul.f32 0.0078125, %v11510_v44  ;;  %v5979_v23 = vld [vmem:[#allocation5 + $0xf8] sm:$0xff] }
 0x579   :  { %4898 = vmatpush.msra.mxu2 %v4209_v13  ;;  %4913 = vmatpush.msra.mxu3 %v4048_v55  ;;  %v5577_v17 = vperm.slane %v5225_v24, %v8256_v62  ;;  %v5531_v1 = vperm.slane %v5201_v39, %v8256_v62  ;;  %v4023_v16 = vunpack.c.l.bf16 %v3874_v20  ;;  %v6041_v48 = vadd.f32 %v5979_v23, %v5978_v56  ;;  %v11643_v62 = vld [vmem:[%s12831_s7 + $0x90] sm:$0xff] }
 0x57a   :  { %6006 = vadd.xlane.f32.xlu2 %v6005_v11  ;;  %6039 = vadd.xlane.f32.xlu1 %v6038_v30  ;;  %v3871_v11 = vld [vmem:[#allocation8 + $0x10] sm:$0xff]  ;;  %v4024_v30 = vunpack.c.h.bf16 %v3874_v20  ;;  %v5581_v24 = vperm.slane %v5227_v9, %v13099_v31  ;;  %v4016_v39 = vunpack.c.h.bf16 %v7122_v29  ;;  %13214 = vst [vmem:[#allocation48_spill] sm:$0xff] %v11643_v62 }
 0x57b   :  { %6003 = vadd.xlane.f32.xlu0 %v6002_v10  ;;  %4899 = vmatmul.f32.vlgmr.msra.gmra.mxu2 %v11357_v40  ;;  %v5578_v21 = vsel %vm2181_vm5, %v5577_v17, %v5576_v45  ;;  %v5532_v19 = vsel %vm2181_vm5, %v5531_v1, %v5530_v57  ;;  %v7121_v45 = vld [vmem:[#allocation8 + $0x20] sm:$0xff]  ;;  %v6044_v57 = vadd.f32 %v5981_v5, %v5980_v0  ;;  %v5961_v1 = vld [vmem:[#allocation5 + $0x68] sm:$0xff]  ;;  %v5958_v9 = vld [vmem:[#allocation5 + $0x50] sm:$0xff] }
 0x57c   :  { %4794 = vmatpush.msrb.mxu1 %v4040_v36  ;;  %4854 = vmatpush.msra.mxu0 %v4041_v33  ;;  %v11544_v13 = vsel %vm2185_vm6, %v5533_v3, %v5532_v19  ;;  %v4022_v55 = vunpack.c.h.bf16 %v7121_v45  ;;  %v4017_v3 = vunpack.c.l.bf16 %v3871_v11  ;;  %v4018_v33 = vunpack.c.h.bf16 %v3871_v11  ;;  %v3961_v17 = vld [vmem:[#allocation8 + $0x2e0] sm:$0xff]  ;;  %v5982_v19 = vld [vmem:[#allocation5 + $0x110] sm:$0xff] }
 0x57d   :  { %4914 = vmatpush.msra.mxu3 %v4042_v52  ;;  %v4197_v5 = vunpack.c.l.bf16 %v3961_v17  ;;  %v4198_v20 = vunpack.c.h.bf16 %v3961_v17  ;;  %v6047_v45 = vadd.f32 %v5983_v58, %v5982_v19  ;;  %v5963_v17 = vld [vmem:[#allocation5 + $0x78] sm:$0xff]  ;;  %v11586_v19 = vld [vmem:[%s12831_s7 + $0x120] sm:$0xff] }
 0x57e   :  { %4795 = vmatpush.msrb.mxu1 %v4034_v42  ;;  %4855 = vmatpush.msra.mxu0 %v4035_v34  ;;  %v11546_v10 = vpop.xlane.xlu1 %5114  ;;  %v5161_v44 = vpop.xlane.xlu0 %5160  ;;  %v5960_v42 = vld [vmem:[#allocation5 + $0x60] sm:$0xff] }
 0x57f   :  { %4915 = vmatpush.msra.mxu3 %v4036_v4  ;;  %v5226_v36 = vmul.f32 0.0078125, %v5161_v44  ;;  %v3958_v4 = vld [vmem:[#allocation8 + $0x2c8] sm:$0xff]  ;;  %v11551_v0 = vpop.xlane.xlu2 %5134  ;;  %v6014_v61 = vadd.f32 %v5961_v1, %v5960_v42 }
 0x580   :  { %4796 = vmatpush.msrb.mxu1 %v4028_v8  ;;  %4856 = vmatpush.msra.mxu0 %v4029_v54  ;;  %v5959_v54 = vld [vmem:[#allocation5 + $0x58] sm:$0xff]  ;;  %v4192_v23 = vunpack.c.h.bf16 %v3958_v4 }
 0x581   :  { %4916 = vmatpush.msra.mxu3 %v4030_v15  ;;  %v5579_v52 = vperm.slane %v5226_v36, %v13097_v32  ;;  %v3955_v15 = vld [vmem:[#allocation8 + $0x2b0] sm:$0xff]  ;;  %v6011_v11 = vadd.f32 %v5959_v54, %v5958_v9  ;;  %v5987_v36 = vld [vmem:[#allocation5 + $0x138] sm:$0xff]  ;;  %v5388_v9 = vunpack.c.l.bf16 %v11586_v19 }
 0x582   :  { %4797 = vmatpush.msrb.mxu1 %v4022_v55  ;;  %6045 = vadd.xlane.f32.xlu2 %v6044_v57  ;;  %v3952_v55 = vld [vmem:[#allocation8 + $0x298] sm:$0xff]  ;;  %v11566_v57 = vld [vmem:[%s12831_s7 + $0x168] sm:$0xff]  ;;  %v4186_v44 = vunpack.c.h.bf16 %v3955_v15  ;;  %v6053_v1 = vadd.f32 %v5987_v36, %v5986_v7 }
 0x583   :  { %4857 = vmatpush.msra.mxu0 %v4023_v16  ;;  %4917 = vmatpush.msra.mxu3 %v4024_v30  ;;  %v5580_v34 = vsel %vm2185_vm6, %v5579_v52, %v5578_v21  ;;  %v4191_v21 = vunpack.c.l.bf16 %v3958_v4  ;;  %v4185_v16 = vunpack.c.l.bf16 %v3955_v15  ;;  %v5406_v30 = vunpack.c.l.bf16 %v11566_v57  ;;  %v5962_v52 = vld [vmem:[#allocation5 + $0x70] sm:$0xff]  ;;  %v5967_v7 = vld [vmem:[#allocation5 + $0x98] sm:$0xff] }
 0x584   :  { %6009 = vadd.xlane.f32.xlu1 %v6008_v53  ;;  %6042 = vadd.xlane.f32.xlu0 %v6041_v48  ;;  %v11554_v8 = vsel %vm2189_vm7, %v5581_v24, %v5580_v34  ;;  %v3949_v53 = vld [vmem:[#allocation8 + $0x280] sm:$0xff]  ;;  %v4179_v48 = vunpack.c.l.bf16 %v3952_v55  ;;  %v4180_v29 = vunpack.c.h.bf16 %v3952_v55  ;;  %v3943_v34 = vld [vmem:[#allocation8 + $0x250] sm:$0xff]  ;;  %v6017_v15 = vadd.f32 %v5963_v17, %v5962_v52  ;;  %v5989_v17 = vld [vmem:[#allocation5 + $0x148] sm:$0xff] }
 0x585   :  { %4798 = vmatpush.msrb.mxu1 %v4016_v39  ;;  %4858 = vmatpush.msra.mxu0 %v4017_v3  ;;  %v3946_v39 = vld [vmem:[#allocation8 + $0x268] sm:$0xff]  ;;  %v11578_v3 = vld [vmem:[%s12831_s7 + $0x138] sm:$0xff]  ;;  %v4174_v42 = vunpack.c.h.bf16 %v3949_v53  ;;  %v4161_v55 = vunpack.c.l.bf16 %v3943_v34  ;;  %v5988_v52 = vld [vmem:[#allocation5 + $0x140] sm:$0xff] }
 0x586   :  { %4918 = vmatpush.msra.mxu3 %v4018_v33  ;;  %4799 = vmatmul.f32.vlgmr.msrb.gmra.mxu1 %v13173_v14  ;;  %v11558_v46 = vpop.xlane.xlu1 %5164  ;;  %v11560_v56 = vpop.xlane.xlu0 %5116  ;;  %v4173_v33 = vunpack.c.l.bf16 %v3949_v53  ;;  %v4167_v58 = vunpack.c.l.bf16 %v3946_v39  ;;  %v4168_v54 = vunpack.c.h.bf16 %v3946_v39  ;;  %v11608_v39 = vld [vmem:[%s12831_s7 + $0xd8] sm:$0xff] }
 0x587   :  { %4859 = vmatmul.f32.vlgmr.msra.gmra.mxu0 %v13173_v14  ;;  %4863 = vmatpush.msra.mxu1 %v4203_v38  ;;  %v5984_v38 = vld [vmem:[#allocation5 + $0x120] sm:$0xff]  ;;  %v11580_v4 = vpop.xlane.xlu2 %5182  ;;  %13211 = vst [vmem:[#allocation47_spill] sm:$0xff] %v11608_v39 }
 0x588   :  { %4919 = vmatmul.f32.vlgmr.msra.gmra.mxu3 %v13173_v14  ;;  %4923 = vmatpush.msrb.mxu0 %v4204_v50  ;;  %v11572_v14 = vld [vmem:[%s12831_s7 + $0x150] sm:$0xff]  ;;  %v5985_v50 = vld [vmem:[#allocation5 + $0x128] sm:$0xff] }
 0x589   :  { %4864 = vmatpush.msra.mxu1 %v4197_v5  ;;  %5619 = vmatpush.msrb.mxu2 %v5406_v30  ;;  %v5400_v24 = vunpack.c.l.bf16 %v11572_v14  ;;  %v5394_v5 = vunpack.c.l.bf16 %v11578_v3 }
 0x58a   :  { %4924 = vmatpush.msrb.mxu0 %v4198_v20  ;;  %6015 = vadd.xlane.f32.xlu2 %v6014_v61 }
 0x58b   :  { %4865 = vmatpush.msra.mxu1 %v4191_v21  ;;  %5620 = vmatpush.msrb.mxu2 %v5400_v24  ;;  %v3940_v21 = vld [vmem:[#allocation8 + $0x238] sm:$0xff]  ;;  %v3934_v24 = vld [vmem:[#allocation8 + $0x208] sm:$0xff] }
 0x58c   :  { %4925 = vmatpush.msrb.mxu0 %v4192_v23  ;;  %6048 = vadd.xlane.f32.xlu1 %v6047_v45  ;;  %v11596_v23 = vld [vmem:[%s12831_s7 + $0x108] sm:$0xff]  ;;  %v6050_v45 = vadd.f32 %v5985_v50, %v5984_v38  ;;  %v4155_v53 = vunpack.c.l.bf16 %v3940_v21  ;;  %v4156_v36 = vunpack.c.h.bf16 %v3940_v21  ;;  %v4144_v21 = vunpack.c.h.bf16 %v3934_v24 }
 0x58d   :  { %6012 = vadd.xlane.f32.xlu0 %v6011_v11  ;;  %4866 = vmatpush.msra.mxu1 %v4185_v16  ;;  %v4162_v11 = vunpack.c.h.bf16 %v3943_v34  ;;  %v3937_v16 = vld [vmem:[#allocation8 + $0x220] sm:$0xff]  ;;  %v5382_v30 = vunpack.c.l.bf16 %v11596_v23  ;;  %v5965_v50 = vld [vmem:[#allocation5 + $0x88] sm:$0xff]  ;;  %v3931_v34 = vld [vmem:[#allocation8 + $0x1f0] sm:$0xff] }
 0x58e   :  { %4926 = vmatpush.msrb.mxu0 %v4186_v44  ;;  %v11588_v20 = vpop.xlane.xlu1 %5120  ;;  %v11590_v61 = vpop.xlane.xlu0 %5166  ;;  %5621 = vmatpush.msrb.mxu2 %v5394_v5  ;;  %v11602_v44 = vld [vmem:[%s12831_s7 + $0xf0] sm:$0xff]  ;;  %v4150_v38 = vunpack.c.h.bf16 %v3937_v16  ;;  %v4143_v5 = vunpack.c.l.bf16 %v3934_v24  ;;  %v5992_v24 = vld [vmem:[#allocation5 + $0x160] sm:$0xff] }
 0x58f   :  { %4867 = vmatpush.msra.mxu1 %v4179_v48  ;;  %v5966_v48 = vld [vmem:[#allocation5 + $0x90] sm:$0xff] }
 0x590   :  { %4927 = vmatpush.msrb.mxu0 %v4180_v29  ;;  %5622 = vmatpush.msrb.mxu2 %v5388_v9  ;;  %v5376_v29 = vunpack.c.l.bf16 %v11602_v44 }
 0x591   :  { %4868 = vmatpush.msra.mxu1 %v4173_v33  ;;  %v4149_v33 = vunpack.c.l.bf16 %v3937_v16  ;;  %v11625_v16 = vld [vmem:[%s12831_s7 + $0x228] sm:$0xff] }
 0x592   :  { %4928 = vmatpush.msrb.mxu0 %v4174_v42  ;;  %6054 = vadd.xlane.f32.xlu2 %v6053_v1  ;;  %v6023_v42 = vadd.f32 %v5967_v7, %v5966_v48  ;;  %v5964_v1 = vld [vmem:[#allocation5 + $0x80] sm:$0xff]  ;;  %v11630_v48 = vld [vmem:[%s12831_s7 + $0xa8] sm:$0xff]  ;;  %v4138_v7 = vunpack.c.h.bf16 %v3931_v34  ;;  %v5454_v32 = vunpack.c.l.bf16 %v11625_v16 }
 0x593   :  { %4869 = vmatpush.msra.mxu1 %v4167_v58  ;;  %5623 = vmatpush.msrb.mxu2 %v5382_v30  ;;  %v6020_v30 = vadd.f32 %v5965_v50, %v5964_v1  ;;  %13213 = vst [vmem:[#allocation49_spill] sm:$0xff] %v11630_v48  ;;  %v6497_v1 = vld [vmem:[#allocation7] sm:$0xff]  ;;  %v6498_v50 = vld [vmem:[#allocation7 + $0x8] sm:$0xff] }
 0x594   :  { %4929 = vmatpush.msrb.mxu0 %v4168_v54  ;;  %6018 = vadd.xlane.f32.xlu1 %v6017_v15  ;;  %v5370_v54 = vunpack.c.l.bf16 %v11608_v39  ;;  %v11618_v15 = vld [vmem:[%s12831_s7 + $0xc0] sm:$0xff] }
 0x595   :  { %6051 = vadd.xlane.f32.xlu0 %v6050_v45  ;;  %4870 = vmatpush.msra.mxu1 %v4161_v55  ;;  %13212 = vst [vmem:[#allocation46_spill] sm:$0xff] %v11618_v15  ;;  %v6056_v45 = vadd.f32 %v5989_v17, %v5988_v52  ;;  %v3928_v55 = vld [vmem:[#allocation8 + $0x1d8] sm:$0xff]  ;;  %v11636_v52 = vld [vmem:[%s12831_s7 + $0x210] sm:$0xff]  ;;  %v5993_v17 = vld [vmem:[#allocation5 + $0x168] sm:$0xff] }
 0x596   :  { %4930 = vmatpush.msrb.mxu0 %v4162_v11  ;;  %v11610_v58 = vpop.xlane.xlu1 %5132  ;;  %v11612_v9 = vpop.xlane.xlu0 %5122  ;;  %5624 = vmatpush.msrb.mxu2 %v5376_v29  ;;  %v5364_v29 = vunpack.c.l.bf16 %v11618_v15  ;;  %v6545_v15 = vadd.f32 %v6498_v50, %v6497_v1  ;;  %v4300_v1 = vunpack.c.h.bf16 %v11452_v49  ;;  %v6500_v50 = vld [vmem:[#allocation7 + $0x18] sm:$0xff]  ;;  %v7123_v49 = vld [vmem:[#allocation8 + $0x430] sm:$0xff] }
 0x597   :  { %4871 = vmatpush.msra.mxu1 %v4155_v53  ;;  %v11620_v11 = vpop.xlane.xlu2 %5172  ;;  %v4137_v53 = vunpack.c.l.bf16 %v3931_v34  ;;  %v5358_v34 = vunpack.c.l.bf16 %v11630_v48  ;;  %5647 = vmatpush.msrb.mxu3 %v5454_v32  ;;  %v11660_v32 = vmul.f32 0.0078125, %v11537_v25  ;;  %v5995_v25 = vld [vmem:[#allocation5 + $0x178] sm:$0xff] }
 0x598   :  { %4931 = vmatpush.msrb.mxu0 %v4156_v36  ;;  %v3925_v36 = vld [vmem:[#allocation8 + $0x1c0] sm:$0xff]  ;;  %5625 = vmatpush.msrb.mxu2 %v5370_v54  ;;  %v5448_v54 = vunpack.c.l.bf16 %v11636_v52 }
 0x599   :  { %4872 = vmatpush.msra.mxu1 %v4149_v33  ;;  %v4131_v33 = vunpack.c.l.bf16 %v3928_v55  ;;  %v4126_v41 = vunpack.c.h.bf16 %v3925_v36 }
 0x59a   :  { %4932 = vmatpush.msrb.mxu0 %v4150_v38  ;;  %6024 = vadd.xlane.f32.xlu2 %v6023_v42  ;;  %v4132_v38 = vunpack.c.h.bf16 %v3928_v55  ;;  %v3922_v42 = vld [vmem:[#allocation8 + $0x1a8] sm:$0xff]  ;;  %v5991_v55 = vld [vmem:[#allocation5 + $0x158] sm:$0xff] }
 0x59b   :  { %4873 = vmatpush.msra.mxu1 %v4143_v5  ;;  %v4125_v5 = vunpack.c.l.bf16 %v3925_v36  ;;  %5626 = vmatpush.msrb.mxu2 %v5364_v29  ;;  %v4119_v48 = vunpack.c.l.bf16 %v3922_v42  ;;  %v4120_v40 = vunpack.c.h.bf16 %v3922_v42  ;;  %v11652_v36 = vmul.f32 0.0078125, %v11524_v59  ;;  %v11667_v59 = vld [vmem:[%s12831_s7 + $0x78] sm:$0xff]  ;;  %v6526_v42 = vld [vmem:[#allocation7 + $0xe8] sm:$0xff] }
 0x59c   :  { %4933 = vmatpush.msrb.mxu0 %v4144_v21  ;;  %6057 = vadd.xlane.f32.xlu1 %v6056_v45  ;;  %v6062_v21 = vadd.f32 %v5993_v17, %v5992_v24  ;;  %v5990_v45 = vld [vmem:[#allocation5 + $0x150] sm:$0xff]  ;;  %v4113_v29 = vunpack.c.l.bf16 %v3919_v51  ;;  %v4114_v17 = vunpack.c.h.bf16 %v3919_v51  ;;  %13215 = vst [vmem:[#allocation50_spill] sm:$0xff] %v11667_v59  ;;  %v5455_v51 = vunpack.c.h.bf16 %v11625_v16 }
 0x59d   :  { %6021 = vadd.xlane.f32.xlu0 %v6020_v30  ;;  %4874 = vmatpush.msra.mxu1 %v4137_v53  ;;  %v6499_v30 = vld [vmem:[#allocation7 + $0x10] sm:$0xff]  ;;  %v5352_v53 = vunpack.c.l.bf16 %v11643_v62  ;;  %v6059_v24 = vadd.f32 %v5991_v55, %v5990_v45  ;;  %v5971_v55 = vld [vmem:[#allocation5 + $0xb8] sm:$0xff] }
 0x59e   :  { %4934 = vmatpush.msrb.mxu0 %v4138_v7  ;;  %v11646_v18 = vpop.xlane.xlu1 %5180  ;;  %v11648_v39 = vpop.xlane.xlu0 %5170  ;;  %v6026_v7 = vadd.f32 %v5969_v2, %v5968_v27  ;;  %5627 = vmatpush.msrb.mxu2 %v5358_v34  ;;  %v6546_v2 = vadd.f32 %v6545_v15, %v6499_v30  ;;  %v11675_v34 = vld [vmem:[%s12831_s7 + $0x1e0] sm:$0xff] }
 0x59f   :  { %4875 = vmatpush.msra.mxu1 %v4131_v33  ;;  %5648 = vmatpush.msrb.mxu3 %v5448_v54  ;;  %v11657_v33 = vld [vmem:[%s12831_s7 + $0x1f8] sm:$0xff]  ;;  %v11662_v27 = vpop.xlane.xlu2 %5138  ;;  %v6522_v54 = vld [vmem:[#allocation7 + $0xc8] sm:$0xff] }
 0x5a0   :  { %4935 = vmatpush.msrb.mxu0 %v4132_v38  ;;  %v6525_v38 = vld [vmem:[#allocation7 + $0xe0] sm:$0xff]  ;;  %5628 = vmatpush.msrb.mxu2 %v5352_v53  ;;  %v5442_v15 = vunpack.c.l.bf16 %v11657_v33  ;;  %v6547_v45 = vadd.f32 %v6546_v2, %v6500_v50  ;;  %v6527_v50 = vld [vmem:[#allocation7 + $0xf0] sm:$0xff] }
 0x5a1   :  { %4876 = vmatpush.msra.mxu1 %v4125_v5  ;;  %v6521_v5 = vld [vmem:[#allocation7 + $0xc0] sm:$0xff]  ;;  %v6580_v30 = vadd.f32 %v6526_v42, %v6525_v38  ;;  %v5436_v38 = vunpack.c.l.bf16 %v11675_v34  ;;  %v11713_v42 = vmul.f32 0.0078125, %v11558_v46  ;;  %v6503_v46 = vld [vmem:[#allocation7 + $0x30] sm:$0xff] }
 0x5a2   :  { %4936 = vmatpush.msrb.mxu0 %v4126_v41  ;;  %6063 = vadd.xlane.f32.xlu2 %v6062_v21  ;;  %v5994_v41 = vld [vmem:[#allocation5 + $0x170] sm:$0xff]  ;;  %v5346_v21 = vunpack.c.l.bf16 %v11667_v59  ;;  %v6501_v53 = vld [vmem:[#allocation7 + $0x20] sm:$0xff]  ;;  %v4282_v59 = vunpack.c.h.bf16 %v7123_v49  ;;  %v5437_v49 = vunpack.c.h.bf16 %v11675_v34 }
 0x5a3   :  { %4877 = vmatpush.msra.mxu1 %v4119_v48  ;;  %v4294_v48 = vunpack.c.h.bf16 %v11459_v63  ;;  %v11686_v63 = vmul.f32 0.0078125, %v11546_v10  ;;  %v11701_v10 = vld [vmem:[%s12831_s7 + $0x60] sm:$0xff]  ;;  %5649 = vmatpush.msrb.mxu3 %v5442_v15  ;;  %v11738_v34 = vld [vmem:[%s12831_s7 + $0x30] sm:$0xff] }
 0x5a4   :  { %4937 = vmatpush.msrb.mxu0 %v4120_v40  ;;  %6027 = vadd.xlane.f32.xlu1 %v6026_v7  ;;  %v5970_v40 = vld [vmem:[#allocation5 + $0xb0] sm:$0xff]  ;;  %v6502_v7 = vld [vmem:[#allocation7 + $0x28] sm:$0xff]  ;;  %13217 = vst [vmem:[#allocation51_spill] sm:$0xff] %v11701_v10  ;;  %v5340_v15 = vunpack.c.l.bf16 %v11701_v10 }
 0x5a5   :  { %6060 = vadd.xlane.f32.xlu0 %v6059_v24  ;;  %4878 = vmatpush.msra.mxu1 %v4113_v29  ;;  %v5449_v24 = vunpack.c.h.bf16 %v11636_v52  ;;  %v11689_v29 = vmul.f32 0.0078125, %v11551_v0  ;;  %v11704_v0 = vmul.f32 0.0078125, %v11580_v4  ;;  %v6065_v52 = vadd.f32 %v5995_v25, %v5994_v41  ;;  %v6523_v4 = vld [vmem:[#allocation7 + $0xd0] sm:$0xff]  ;;  %v11718_v41 = vld [vmem:[%s12831_s7 + $0x48] sm:$0xff]  ;;  %v6528_v25 = vld [vmem:[#allocation7 + $0xf8] sm:$0xff] }
 0x5a6   :  { %4938 = vmatpush.msrb.mxu0 %v4114_v17  ;;  %4879 = vmatmul.f32.vlgmr.msra.gmra.mxu1 %v11497_v12  ;;  %v4288_v17 = vunpack.c.h.bf16 %v11469_v35  ;;  %v11693_v16 = vpop.xlane.xlu1 %5136  ;;  %v11695_v2 = vpop.xlane.xlu0 %5124  ;;  %v5443_v35 = vunpack.c.h.bf16 %v11657_v33  ;;  %v6029_v62 = vadd.f32 %v5971_v55, %v5970_v40  ;;  %13219 = vst [vmem:[#allocation55_spill] sm:$0xff] %v11718_v41  ;;  %v11721_v33 = vmul.f32 0.0078125, %v11560_v56 }
 0x5a7   :  { %4939 = vmatmul.f32.vlgmr.msrb.gmra.mxu0 %v11497_v12  ;;  %4943 = vmatpush.msrb.mxu1 %v4300_v1  ;;  %13216 = vst [vmem:[#allocation52_spill] sm:$0xff] %v11693_v16  ;;  %v6575_v12 = vadd.f32 %v6522_v54, %v6521_v5  ;;  %v11710_v1 = vld [vmem:[%s12831_s7 + $0x1c8] sm:$0xff]  ;;  %v6550_v16 = vadd.f32 %v6502_v7, %v6501_v53  ;;  %v7124_v5 = vld [vmem:[#allocation8 + $0x418] sm:$0xff] }
 0x5a8   :  { %13218 = vst [vmem:[#allocation53_spill] sm:$0xff] %v11704_v0  ;;  %5687 = vmatpush.msra.mxu0 %v5455_v51  ;;  %5629 = vmatpush.msrb.mxu2 %v5346_v21  ;;  %v6581_v51 = vadd.f32 %v6580_v30, %v6527_v50  ;;  %v5535_v40 = vperm.slane %v11686_v63, %v13099_v31  ;;  %v4276_v54 = vunpack.c.h.bf16 %v7124_v5  ;;  %v6509_v21 = vld [vmem:[#allocation7 + $0x60] sm:$0xff]  ;;  %v5430_v55 = vunpack.c.l.bf16 %v11710_v1  ;;  %v6524_v53 = vld [vmem:[#allocation7 + $0xd8] sm:$0xff]  ;;  %v6530_v30 = vld [vmem:[#allocation7 + $0x108] sm:$0xff] }
 0x5a9   :  { %4944 = vmatpush.msrb.mxu1 %v4294_v48  ;;  %v11728_v48 = vld [vmem:[%s12831_s7 + $0x1b0] sm:$0xff]  ;;  %5650 = vmatpush.msrb.mxu3 %v5436_v38  ;;  %v6576_v7 = vadd.f32 %v6575_v12, %v6523_v4  ;;  %v5334_v63 = vunpack.c.l.bf16 %v11718_v41  ;;  %v5583_v50 = vperm.slane %v11713_v42, %v13100_v60  ;;  %v7125_v38 = vld [vmem:[#allocation8 + $0x400] sm:$0xff]  ;;  %v6551_v56 = vadd.f32 %v6550_v16, %v6503_v46  ;;  %v11752_v12 = vld [vmem:[%s12831_s7 + $0x198] sm:$0xff] }
 0x5aa   :  { %6548 = vadd.xlane.f32.xlu2 %v6547_v45  ;;  %5688 = vmatpush.msra.mxu0 %v5449_v24  ;;  %v6510_v45 = vld [vmem:[#allocation7 + $0x68] sm:$0xff]  ;;  %v11742_v24 = vpop.xlane.xlu2 %5128  ;;  %v4270_v5 = vunpack.c.h.bf16 %v7125_v38  ;;  %v6529_v31 = vld [vmem:[#allocation7 + $0x100] sm:$0xff]  ;;  %v6504_v4 = vld [vmem:[#allocation7 + $0x38] sm:$0xff]  ;;  %v5328_v16 = vunpack.c.l.bf16 %v11738_v34  ;;  %v5536_v46 = vsel %vm2189_vm7, %v5535_v40, %v11544_v13  ;;  %v11760_v38 = vmul.f32 0.0078125, %v11620_v11 }
 0x5ab   :  { %4945 = vmatpush.msrb.mxu1 %v4288_v17  ;;  %v5431_v17 = vunpack.c.h.bf16 %v11710_v1  ;;  %v6582_v1 = vadd.f32 %v6581_v51, %v6528_v25  ;;  %v6505_v42 = vld [vmem:[#allocation7 + $0x40] sm:$0xff]  ;;  %5630 = vmatpush.msrb.mxu2 %v5340_v15  ;;  %v7126_v41 = vld [vmem:[#allocation8 + $0x3e8] sm:$0xff]  ;;  %v6511_v25 = vld [vmem:[#allocation7 + $0x70] sm:$0xff]  ;;  %v5425_v51 = vunpack.c.h.bf16 %v11728_v48  ;;  %v11773_v13 = vmul.f32 0.0078125, %v11590_v61 }
 0x5ac   :  { %6066 = vadd.xlane.f32.xlu1 %v6065_v52  ;;  %5689 = vmatpush.msra.mxu0 %v5443_v35  ;;  %v5424_v52 = vunpack.c.l.bf16 %v11728_v48  ;;  %v5537_v35 = vperm.slane %v11721_v33, %v13100_v60  ;;  %v4264_v10 = vunpack.c.h.bf16 %v7126_v41  ;;  %v11770_v15 = vld [vmem:[%s12831_s7 + $0x18] sm:$0xff]  ;;  %v6577_v11 = vadd.f32 %v6576_v7, %v6524_v53  ;;  %v11779_v40 = vld [vmem:[%s12831_s7 + $0x180] sm:$0xff]  ;;  %v6507_v53 = vld [vmem:[#allocation7 + $0x50] sm:$0xff] }
 0x5ad   :  { %4946 = vmatpush.msrb.mxu1 %v4282_v59  ;;  %6030 = vadd.xlane.f32.xlu0 %v6029_v62  ;;  %v6506_v59 = vld [vmem:[#allocation7 + $0x48] sm:$0xff]  ;;  %v6560_v62 = vadd.f32 %v6510_v45, %v6509_v21  ;;  %v5418_v41 = vunpack.c.l.bf16 %v11752_v12  ;;  %v11783_v48 = vsel %vm2193_vm8, %v5583_v50, %v11554_v8  ;;  %v6552_v61 = vadd.f32 %v6551_v56, %v6504_v4  ;;  %v6531_v45 = vld [vmem:[#allocation7 + $0x110] sm:$0xff]  ;;  %v6512_v7 = vld [vmem:[#allocation7 + $0x78] sm:$0xff] }
 0x5ae   :  { %5690 = vmatpush.msra.mxu0 %v5437_v49  ;;  %v11762_v0 = vpop.xlane.xlu1 %5126  ;;  %v11764_v33 = vpop.xlane.xlu0 %5184  ;;  %5651 = vmatpush.msrb.mxu3 %v5430_v55  ;;  %v6585_v49 = vadd.f32 %v6530_v30, %v6529_v31  ;;  %v6555_v55 = vadd.f32 %v6506_v59, %v6505_v42  ;;  %v11788_v31 = vld [vmem:[%s12831_s7] sm:$0xff]  ;;  %v5538_v30 = vsel %vm2193_vm8, %v5537_v35, %v5536_v46  ;;  %v5322_v8 = vunpack.c.l.bf16 %v11770_v15  ;;  %v11802_v42 = vld [vmem:[%s12831_s7 + $0x230] sm:$0xff]  ;;  %v6514_v50 = vld [vmem:[#allocation7 + $0x88] sm:$0xff] }
 0x5af   :  { %4947 = vmatpush.msrb.mxu1 %v4276_v54  ;;  %5631 = vmatpush.msrb.mxu2 %v5334_v63  ;;  %v7127_v54 = vld [vmem:[#allocation8 + $0x3d0] sm:$0xff]  ;;  %13220 = vst [vmem:[#allocation54_spill] sm:$0xff] %v11788_v31  ;;  %v6561_v63 = vadd.f32 %v6560_v62, %v6511_v25  ;;  %v11794_v56 = vmul.f32 0.0078125, %v11588_v20  ;;  %v6537_v35 = vld [vmem:[#allocation7 + $0x140] sm:$0xff]  ;;  %v5412_v4 = vunpack.c.l.bf16 %v11779_v40  ;;  %v5585_v20 = vperm.slane %v11773_v13, %v13101_v26 }
 0x5b0   :  { %5691 = vmatpush.msra.mxu0 %v5431_v17  ;;  %v4258_v21 = vunpack.c.h.bf16 %v7127_v54  ;;  %5652 = vmatpush.msrb.mxu3 %v5424_v52  ;;  %v5419_v17 = vunpack.c.h.bf16 %v11752_v12  ;;  %v6532_v12 = vld [vmem:[#allocation7 + $0x118] sm:$0xff]  ;;  %v6586_v59 = vadd.f32 %v6585_v49, %v6531_v45  ;;  %v5407_v62 = vunpack.c.h.bf16 %v11566_v57  ;;  %v7129_v46 = vld [vmem:[#allocation8 + $0x3a0] sm:$0xff]  ;;  %v6534_v45 = vld [vmem:[#allocation7 + $0x128] sm:$0xff] }
 0x5b1   :  { %4948 = vmatpush.msrb.mxu1 %v4270_v5  ;;  %5632 = vmatpush.msrb.mxu2 %v5328_v16  ;;  %v7128_v5 = vld [vmem:[#allocation8 + $0x3b8] sm:$0xff]  ;;  %v11809_v16 = vmul.f32 0.0078125, %v11612_v9  ;;  %v4246_v25 = vunpack.c.h.bf16 %v7129_v46  ;;  %v6556_v54 = vadd.f32 %v6555_v55, %v6507_v53  ;;  %v5413_v13 = vunpack.c.h.bf16 %v11779_v40  ;;  %v6533_v9 = vld [vmem:[#allocation7 + $0x120] sm:$0xff]  ;;  %v6539_v46 = vld [vmem:[#allocation7 + $0x150] sm:$0xff] }
 0x5b2   :  { %6583 = vadd.xlane.f32.xlu2 %v6582_v1  ;;  %v4252_v52 = vunpack.c.h.bf16 %v7128_v5  ;;  %5692 = vmatpush.msra.mxu0 %v5425_v51  ;;  %v6538_v1 = vld [vmem:[#allocation7 + $0x148] sm:$0xff]  ;;  %v6508_v51 = vld [vmem:[#allocation7 + $0x58] sm:$0xff]  ;;  %v6513_v5 = vld [vmem:[#allocation7 + $0x80] sm:$0xff]  ;;  %v11816_v57 = vpop.xlane.xlu2 %5188  ;;  %v5456_v40 = vunpack.c.l.bf16 %v11802_v42  ;;  %v11827_v55 = vmul.f32 0.0078125, %v11662_v27  ;;  %v5586_v27 = vsel %vm13223_vm12, %v5585_v20, %v11783_v48 }
 0x5b3   :  { %4949 = vmatpush.msrb.mxu1 %v4264_v10  ;;  %5653 = vmatpush.msrb.mxu3 %v5418_v41  ;;  %v5316_v10 = vunpack.c.l.bf16 %v11788_v31  ;;  %v6562_v41 = vadd.f32 %v6561_v63, %v6512_v7  ;;  %v6590_v60 = vadd.f32 %v6534_v45, %v6533_v9  ;;  %v11847_v31 = vld [vmem:[%s12831_s7 + $0x158] sm:$0xff]  ;;  %v11852_v48 = vld [vmem:[%s12831_s7 + $0x200] sm:$0xff]  ;;  %v6542_v9 = vld [vmem:[#allocation7 + $0x168] sm:$0xff]  ;;  %vm13235_vm12 = vcmask 982912  }
 0x5b4   :  { %6578 = vadd.xlane.f32.xlu1 %v6577_v11  ;;  %v13221_v11 = vperm.slane %v11652_v36, %v13101_v26  ;;  %5633 = vmatpush.msrb.mxu2 %v5322_v8  ;;  %v5541_v36 = vperm.slane %v11794_v56, %v13102_v37  ;;  %v6587_v56 = vadd.f32 %v6586_v59, %v6532_v12  ;;  %v6515_v26 = vld [vmem:[#allocation7 + $0x90] sm:$0xff]  ;;  %v5403_v59 = vunpack.c.h.bf16 %v11847_v31 }
 0x5b5   :  { %4950 = vmatpush.msrb.mxu1 %v4258_v21  ;;  %6553 = vadd.xlane.f32.xlu0 %v6552_v61  ;;  %v11821_v21 = vld [vmem:[%s12831_s7 + $0x170] sm:$0xff]  ;;  %v6595_v61 = vadd.f32 %v6538_v1, %v6537_v35  ;;  %v5401_v35 = vunpack.c.h.bf16 %v11572_v14  ;;  %v5543_v1 = vperm.slane %v11809_v16, %v13104_v6  ;;  %v11855_v14 = vmul.f32 0.0078125, %v11648_v39  ;;  %v6540_v39 = vld [vmem:[#allocation7 + $0x158] sm:$0xff] }
 0x5b6   :  { %v5540_v49 = vsel %vm13222_vm3, %v13221_v11, %v5538_v30  ;;  %5693 = vmatpush.msra.mxu0 %v5419_v17  ;;  %v7130_v30 = vld [vmem:[#allocation8 + $0x388] sm:$0xff]  ;;  %v11829_v7 = vpop.xlane.xlu1 %5186  ;;  %v11831_v63 = vpop.xlane.xlu0 %5174  ;;  %5654 = vmatpush.msrb.mxu3 %v5412_v4  ;;  %v5409_v8 = vunpack.c.h.bf16 %v11821_v21  ;;  %v11837_v17 = vld [vmem:[%s12831_s7 + $0x218] sm:$0xff]  ;;  %v7131_v4 = vld [vmem:[#allocation8 + $0x370] sm:$0xff]  ;;  %v5444_v45 = vunpack.c.l.bf16 %v11852_v48 }
 0x5b7   :  { %4951 = vmatpush.msrb.mxu1 %v4252_v52  ;;  %v4240_v53 = vunpack.c.h.bf16 %v7130_v30  ;;  %v6565_v52 = vadd.f32 %v6514_v50, %v6513_v5  ;;  %5634 = vmatpush.msrb.mxu2 %v5316_v10  ;;  %v4234_v11 = vunpack.c.h.bf16 %v7131_v4  ;;  %v6557_v30 = vadd.f32 %v6556_v54, %v6508_v51  ;;  %v6535_v50 = vld [vmem:[#allocation7 + $0x130] sm:$0xff]  ;;  %v11867_v54 = vld [vmem:[%s12831_s7 + $0x140] sm:$0xff]  ;;  %vm13232_vm3 = vmmov %vm13231_vm2 }
 0x5b8   :  { %5659 = vmatpush.msra.mxu3 %v5407_v62  ;;  %5694 = vmatpush.msra.mxu0 %v5413_v13  ;;  %v6596_v20 = vadd.f32 %v6595_v61, %v6539_v46  ;;  %v5450_v12 = vunpack.c.l.bf16 %v11837_v17  ;;  %v5542_v10 = vsel %vm2201_vm10, %v5541_v36, %v5540_v49  ;;  %v13224_v62 = vperm.slane %v11660_v32, %v13102_v37  ;;  %v11873_v13 = vld [vmem:[%s12831_s7 + $0x1e8] sm:$0xff]  ;;  %v6536_v46 = vld [vmem:[#allocation7 + $0x138] sm:$0xff] }
 0x5b9   :  { %4952 = vmatpush.msrb.mxu1 %v4246_v25  ;;  %5727 = vmatpush.msra.mxu2 %v5456_v40  ;;  %v7132_v25 = vld [vmem:[#allocation8 + $0x358] sm:$0xff]  ;;  %v5395_v5 = vunpack.c.h.bf16 %v11578_v3  ;;  %v11876_v32 = vmul.f32 0.0078125, %v11610_v58  ;;  %v6566_v49 = vadd.f32 %v6565_v52, %v6515_v26  ;;  %v5397_v61 = vunpack.c.h.bf16 %v11867_v54  ;;  %v7133_v3 = vld [vmem:[#allocation8 + $0x340] sm:$0xff] }
 0x5ba   :  { %6563 = vadd.xlane.f32.xlu2 %v6562_v41  ;;  %v5588_v16 = vsel %vm2201_vm10, %v13224_v62, %v5586_v27  ;;  %v4228_v51 = vunpack.c.h.bf16 %v7132_v25  ;;  %5739 = vmatpush.msrb.mxu0 %v5409_v8  ;;  %v6541_v41 = vld [vmem:[#allocation7 + $0x160] sm:$0xff]  ;;  %v11881_v40 = vmul.f32 0.0078125, %v11742_v24  ;;  %v4222_v36 = vunpack.c.h.bf16 %v7133_v3  ;;  %v11892_v24 = vld [vmem:[%s12831_s7 + $0x128] sm:$0xff]  ;;  %v6543_v62 = vld [vmem:[#allocation7 + $0x170] sm:$0xff] }
 0x5bb   :  { %4953 = vmatpush.msrb.mxu1 %v4240_v53  ;;  %5660 = vmatpush.msra.mxu3 %v5401_v35  ;;  %v6516_v53 = vld [vmem:[#allocation7 + $0x98] sm:$0xff]  ;;  %v6591_v58 = vadd.f32 %v6590_v60, %v6535_v50  ;;  %v5389_v8 = vunpack.c.h.bf16 %v11586_v19  ;;  %v11885_v26 = vsel %vm2205_vm11, %v5543_v1, %v5542_v10  ;;  %v5589_v27 = vperm.slane %v11855_v14, %v13104_v6  ;;  %v6517_v52 = vld [vmem:[#allocation7 + $0xa0] sm:$0xff]  ;;  %v6518_v35 = vld [vmem:[#allocation7 + $0xa8] sm:$0xff]  ;;  %v5179_v10 = vpop.xlane.xlu2 %5178 }
 0x5bc   :  { %6588 = vadd.xlane.f32.xlu1 %v6587_v56  ;;  %v6597_v56 = vadd.f32 %v6596_v20, %v6540_v39  ;;  %5728 = vmatpush.msra.mxu2 %v5450_v12  ;;  %v5438_v60 = vunpack.c.l.bf16 %v11873_v13  ;;  %v11896_v19 = vmul.f32 0.0078125, %v11695_v2  ;;  %v7134_v1 = vld [vmem:[#allocation8 + $0x328] sm:$0xff]  ;;  %v6600_v14 = vadd.f32 %v6542_v9, %v6541_v41  ;;  %v11904_v20 = vld [vmem:[%s12831_s7 + $0x1d0] sm:$0xff] }
 0x5bd   :  { %4954 = vmatpush.msrb.mxu1 %v4234_v11  ;;  %6558 = vadd.xlane.f32.xlu0 %v6557_v30  ;;  %v4216_v4 = vunpack.c.h.bf16 %v7134_v1  ;;  %v5391_v50 = vunpack.c.h.bf16 %v11892_v24  ;;  %v11907_v12 = vmul.f32 0.0078125, %v11762_v0  ;;  %v11910_v2 = vmul.f32 0.0078125, %v11831_v63  ;;  %v11916_v0 = vld [vmem:[%s12831_s7 + $0x1b8] sm:$0xff] }
 0x5be   :  { %5740 = vmatpush.msrb.mxu0 %v5403_v59  ;;  %v5177_v11 = vpop.xlane.xlu1 %5176  ;;  %v11898_v30 = vpop.xlane.xlu0 %5140  ;;  %5661 = vmatpush.msra.mxu3 %v5395_v5  ;;  %v6567_v59 = vadd.f32 %v6566_v49, %v6516_v53  ;;  %v5383_v25 = vunpack.c.h.bf16 %v11596_v23  ;;  %v6592_v5 = vadd.f32 %v6591_v58, %v6536_v46  ;;  %v6570_v9 = vadd.f32 %v6518_v35, %v6517_v52  ;;  %v6519_v23 = vld [vmem:[#allocation7 + $0xb0] sm:$0xff]  ;;  %v11936_v46 = vld [vmem:[%s12831_s7 + $0x1a0] sm:$0xff] }
 0x5bf   :  { %4955 = vmatpush.msrb.mxu1 %v4228_v51  ;;  %5729 = vmatpush.msra.mxu2 %v5444_v45  ;;  %v7135_v51 = vld [vmem:[#allocation8 + $0x310] sm:$0xff]  ;;  %v5234_v41 = vmul.f32 0.0078125, %v5177_v11  ;;  %v5590_v63 = vsel %vm2205_vm11, %v5589_v27, %v5588_v16  ;;  %v5549_v49 = vperm.slane %v11881_v40, %v13110_v43  ;;  %v5408_v45 = vunpack.c.l.bf16 %v11821_v21  ;;  %v6544_v27 = vld [vmem:[#allocation7 + $0x178] sm:$0xff] }
 0x5c0   :  { %5741 = vmatpush.msrb.mxu0 %v5397_v61  ;;  %v4210_v39 = vunpack.c.h.bf16 %v7135_v51  ;;  %5662 = vmatpush.msra.mxu3 %v5389_v8  ;;  %v11925_v61 = vld [vmem:[%s12831_s7 + $0x110] sm:$0xff]  ;;  %v5432_v3 = vunpack.c.l.bf16 %v11904_v20  ;;  %v11930_v16 = vmul.f32 0.0078125, %v5179_v10  ;;  %v6601_v53 = vadd.f32 %v6600_v14, %v6543_v62  ;;  %v13227_v14 = vld [vmem:[#allocation45_spill] sm:$0xff] }
 0x5c1   :  { %4956 = vmatpush.msrb.mxu1 %v4222_v36  ;;  %5730 = vmatpush.msra.mxu2 %v5438_v60  ;;  %v5545_v36 = vperm.slane %v11896_v19, %v13103_v47  ;;  %v5385_v21 = vunpack.c.h.bf16 %v11925_v61  ;;  %v5547_v58 = vperm.slane %v11907_v12, %v13109_v28  ;;  %v5593_v8 = vperm.slane %v11910_v2, %v13109_v28  ;;  %v11961_v12 = vld [vmem:[%s12831_s7 + $0xe0] sm:$0xff] }
 0x5c2   :  { %6598 = vadd.xlane.f32.xlu2 %v6597_v56  ;;  %5742 = vmatpush.msrb.mxu0 %v5391_v50  ;;  %v11945_v56 = vld [vmem:[%s12831_s7 + $0xf8] sm:$0xff]  ;;  %v5377_v52 = vunpack.c.h.bf16 %v11602_v44  ;;  %v5426_v35 = vunpack.c.l.bf16 %v11916_v0  ;;  %v5402_v60 = vunpack.c.l.bf16 %v11847_v31  ;;  %v5595_v19 = vperm.slane %v5234_v41, %v13110_v43  ;;  %v13240_v43 = vld [vmem:[#allocation49_spill] sm:$0xff] }
 0x5c3   :  { %4957 = vmatpush.msrb.mxu1 %v4216_v4  ;;  %5663 = vmatpush.msra.mxu3 %v5383_v25  ;;  %v6571_v1 = vadd.f32 %v6570_v9, %v6519_v23  ;;  %v5379_v28 = vunpack.c.h.bf16 %v11945_v56  ;;  %v13225_v4 = vperm.slane %v11760_v38, %v13103_v47  ;;  %v5396_v44 = vunpack.c.l.bf16 %v11867_v54  ;;  %v6520_v50 = vld [vmem:[#allocation7 + $0xb8] sm:$0xff]  ;;  %v13233_v9 = vld [vmem:[#allocation46_spill] sm:$0xff] }
 0x5c4   :  { %6568 = vadd.xlane.f32.xlu1 %v6567_v59  ;;  %5731 = vmatpush.msra.mxu2 %v5432_v3  ;;  %v13228_v31 = vld [vmem:[#allocation47_spill] sm:$0xff]  ;;  %v5420_v59 = vunpack.c.l.bf16 %v11936_v46  ;;  %v5546_v47 = vsel %vm13229_vm14, %v5545_v36, %v11885_v26  ;;  %v13230_v38 = vld [vmem:[#allocation96_spill] sm:$0xff]  ;;  %v6602_v62 = vadd.f32 %v6601_v53, %v6544_v27  ;;  %v5373_v51 = vunpack.c.h.bf16 %v11961_v12  ;;  %v11987_v53 = vld [vmem:[%s12831_s7 + $0xc8] sm:$0xff] }
 0x5c5   :  { %4958 = vmatpush.msrb.mxu1 %v4210_v39  ;;  %6593 = vadd.xlane.f32.xlu0 %v6592_v5  ;;  %v5592_v11 = vsel %vm13226_vm13, %v13225_v4, %v5590_v63  ;;  %v5371_v2 = vunpack.c.h.bf16 %v13228_v31  ;;  %v5597_v10 = vperm.slane %v11930_v16, %v13230_v38  ;;  %v5548_v39 = vsel %vm13231_vm2, %v5547_v58, %v5546_v47  ;;  %v11978_v63 = vld [vmem:[%s12831_s7 + $0x188] sm:$0xff]  ;;  %v13236_v58 = vld [vmem:[#allocation52_spill] sm:$0xff]  ;;  %vm13237_vm13 = vmmov %vm13235_vm12 }
 0x5c6   :  { %4959 = vmatmul.f32.vlgmr.msrb.gmra.mxu1 %v13227_v14  ;;  %v11969_v54 = vpop.xlane.xlu1 %5142  ;;  %v5131_v25 = vpop.xlane.xlu0 %5130  ;;  %5743 = vmatpush.msrb.mxu0 %v5385_v21  ;;  %v5594_v5 = vsel %vm13232_vm3, %v5593_v8, %v5592_v11  ;;  %v5365_v26 = vunpack.c.h.bf16 %v13233_v9  ;;  %v5390_v36 = vunpack.c.l.bf16 %v11892_v24  ;;  %v6572_v16 = vadd.f32 %v6571_v1, %v6520_v50  ;;  %v13243_v50 = vld [vmem:[#allocation83_spill] sm:$0xff]  ;;  %v13244_v47 = vld [vmem:[#allocation84_spill] sm:$0xff] }
 0x5c7   :  { %5699 = vmatpush.msra.mxu1 %v5408_v45  ;;  %v5211_v41 = vmul.f32 0.0078125, %v5131_v25  ;;  %5664 = vmatpush.msra.mxu3 %v5377_v52  ;;  %v13234_v45 = vld [vmem:[#allocation79_spill] sm:$0xff]  ;;  %v5596_v3 = vsel %vm13235_vm12, %v5595_v19, %v5594_v5  ;;  %v5236_v21 = vmul.f32 0.0078125, %v11646_v18  ;;  %v5214_v8 = vmul.f32 0.0078125, %v13236_v58 }
 0x5c8   :  { %5732 = vmatpush.msra.mxu2 %v5426_v35  ;;  %v5553_v23 = vperm.slane %v11876_v32, %v13234_v45  ;;  %5744 = vmatpush.msrb.mxu0 %v5379_v28  ;;  %v5367_v32 = vunpack.c.h.bf16 %v11987_v53  ;;  %v5238_v52 = vmul.f32 0.0078125, %v11764_v33  ;;  %v5550_v24 = vsel %vm13237_vm13, %v5549_v49, %v5548_v39  ;;  %v12005_v33 = vld [vmem:[%s12831_s7 + $0xb0] sm:$0xff] }
 0x5c9   :  { %5700 = vmatpush.msra.mxu1 %v5402_v60  ;;  %v5551_v27 = vperm.slane %v5211_v41, %v13230_v38  ;;  %5665 = vmatpush.msra.mxu3 %v5371_v2  ;;  %v5384_v35 = vunpack.c.l.bf16 %v11925_v61  ;;  %v5414_v18 = vunpack.c.l.bf16 %v11978_v63  ;;  %vm13238_vm14 = vcmask 1048512  }
 0x5ca   :  { %5733 = vmatpush.msra.mxu2 %v5420_v59  ;;  %5745 = vmatpush.msrb.mxu0 %v5373_v51  ;;  %v5598_v60 = vsel %vm13238_vm14, %v5597_v10, %v5596_v3  ;;  %vm13239_vm2 = vmmov %vm13238_vm14  ;;  %v5359_v40 = vunpack.c.h.bf16 %v13240_v43  ;;  %v5457_v49 = vunpack.c.h.bf16 %v11802_v42  ;;  %v5239_v61 = vmul.f32 0.0078125, %v11829_v7  ;;  %v12023_v42 = vld [vmem:[%s12831_s7 + $0x98] sm:$0xff]  ;;  %v13245_v51 = vld [vmem:[#allocation50_spill] sm:$0xff] }
 0x5cb   :  { %5701 = vmatpush.msra.mxu1 %v5396_v44  ;;  %v5552_v19 = vsel %vm13239_vm2, %v5551_v27, %v5550_v24  ;;  %5666 = vmatpush.msra.mxu3 %v5365_v26  ;;  %v5378_v1 = vunpack.c.l.bf16 %v11945_v56  ;;  %vm13241_vm3 = vcmask 1041409   ;;  %v5361_v4 = vunpack.c.h.bf16 %v12005_v33  ;;  %v13242_v7 = vld [vmem:[#allocation48_spill] sm:$0xff]  ;;  %v13247_v3 = vld [vmem:[#allocation53_spill] sm:$0xff] }
 0x5cc   :  { %6603 = vadd.xlane.f32.xlu1 %v6602_v62  ;;  %v12012_v28 = vsel %vm13241_vm3, %v5598_v60, %v5552_v19  ;;  %v5599_v11 = vperm.slane %v5236_v21, %v13234_v45  ;;  %v12017_v14 = vmul.f32 0.0078125, %v11816_v57  ;;  %5746 = vmatpush.msrb.mxu0 %v5367_v32  ;;  %v5353_v56 = vunpack.c.h.bf16 %v13242_v7  ;;  %v5193_v57 = vpop.xlane.xlu2 %5192  ;;  %v13249_v21 = vld [vmem:[#allocation85_spill] sm:$0xff] }
 0x5cd   :  { %5702 = vmatpush.msra.mxu1 %v5390_v36  ;;  %6573 = vadd.xlane.f32.xlu0 %v6572_v16  ;;  %v5451_v44 = vunpack.c.h.bf16 %v11837_v17  ;;  %v5556_v31 = vperm.slane %v5214_v8, %v13243_v50  ;;  %v5372_v2 = vunpack.c.l.bf16 %v11961_v12  ;;  %v5355_v59 = vunpack.c.h.bf16 %v12023_v42  ;;  %v12036_v17 = vld [vmem:[%s12831_s7 + $0x80] sm:$0xff] }
 0x5ce   :  { %5635 = vmatmul.f32.vlgmr.msrb.gmra.mxu2 %v12012_v28  ;;  %v5558_v38 = vperm.slane %v11827_v55, %v13244_v47  ;;  %v5602_v10 = vperm.slane %v5238_v52, %v13243_v50  ;;  %v5145_v62 = vpop.xlane.xlu1 %5144  ;;  %5667 = vmatpush.msra.mxu3 %v5359_v40  ;;  %v5191_v25 = vpop.xlane.xlu0 %5190  ;;  %v5347_v12 = vunpack.c.h.bf16 %v13245_v51  ;;  %v5445_v39 = vunpack.c.h.bf16 %v11852_v48  ;;  %v13258_v51 = vld [vmem:[#allocation54_spill] sm:$0xff] }
 0x5cf   :  { %5703 = vmatpush.msra.mxu1 %v5384_v35  ;;  %5734 = vmatpush.msra.mxu2 %v5414_v18  ;;  %v13246_v5 = vperm.slane %v11689_v29, %v8199_v22  ;;  %v5604_v41 = vperm.slane %v5239_v61, %v13244_v47  ;;  %v5366_v9 = vunpack.c.l.bf16 %v11987_v53  ;;  %v5349_v26 = vunpack.c.h.bf16 %v12036_v17  ;;  %v12056_v29 = vld [vmem:[%s12831_s7 + $0x68] sm:$0xff]  ;;  %v12068_v18 = vld [vmem:[%s12831_s7 + $0x50] sm:$0xff] }
 0x5d0   :  { %5747 = vmatpush.msrb.mxu0 %v5361_v4  ;;  %v13248_v36 = vperm.slane %v13247_v3, %v8199_v22  ;;  %v5606_v48 = vperm.slane %v12017_v14, %v13249_v21  ;;  %5668 = vmatpush.msra.mxu3 %v5353_v56  ;;  %v5439_v58 = vunpack.c.h.bf16 %v11873_v13  ;;  %vm13251_vm12 = vcmask 195712   ;;  %v13253_v13 = vld [vmem:[#allocation55_spill] sm:$0xff] }
 0x5d1   :  { %5767 = vmatpush.msrb.mxu2 %v5457_v49  ;;  %v5555_v55 = vsel %vm2165_vm1, %v13246_v5, %v5553_v23  ;;  %5704 = vmatpush.msra.mxu1 %v5378_v1  ;;  %v13250_v23 = vld [vmem:[#allocation51_spill] sm:$0xff]  ;;  %v5360_v27 = vunpack.c.l.bf16 %v12005_v33  ;;  %v5241_v32 = vmul.f32 0.0078125, %v5191_v25  ;;  %v5343_v52 = vunpack.c.h.bf16 %v12056_v29  ;;  %vm13252_vm13 = vmmov %vm13251_vm12 }
 0x5d2   :  { %v5601_v16 = vsel %vm2165_vm1, %v13248_v36, %v5599_v11  ;;  %v5341_v53 = vunpack.c.h.bf16 %v13250_v23  ;;  %v5557_v8 = vsel %vm13251_vm12, %v5556_v31, %v5555_v55  ;;  %5748 = vmatpush.msrb.mxu0 %v5355_v59  ;;  %v5216_v35 = vmul.f32 0.0078125, %v11898_v30  ;;  %5669 = vmatpush.msra.mxu3 %v5347_v12  ;;  %v12079_v1 = vld [vmem:[%s12831_s7 + $0x38] sm:$0xff] }
 0x5d3   :  { %5768 = vmatpush.msrb.mxu2 %v5451_v44  ;;  %5705 = vmatpush.msra.mxu1 %v5372_v2  ;;  %v5603_v24 = vsel %vm13252_vm13, %v5602_v10, %v5601_v16  ;;  %v5335_v60 = vunpack.c.h.bf16 %v13253_v13  ;;  %v5433_v19 = vunpack.c.h.bf16 %v11904_v20  ;;  %vm13254_vm14 = vcmask 261312   ;;  %v13257_v10 = vld [vmem:[#allocation87_spill] sm:$0xff] }
 0x5d4   :  { %v5605_v33 = vsel %vm13254_vm14, %v5604_v41, %v5603_v24  ;;  %v5217_v43 = vmul.f32 0.0078125, %v11969_v54  ;;  %v5354_v40 = vunpack.c.l.bf16 %v12023_v42  ;;  %5749 = vmatpush.msrb.mxu0 %v5349_v26  ;;  %v5337_v30 = vunpack.c.h.bf16 %v12068_v18  ;;  %5670 = vmatpush.msra.mxu3 %v5341_v53  ;;  %v13255_v54 = vld [vmem:[#allocation86_spill] sm:$0xff]  ;;  %vm13256_vm2 = vmmov %vm13254_vm14  ;;  %v12094_v59 = vpop.xlane.xlu2 %5997  ;;  %v5291_v36 = vld [vmem:[%s12831_s7 + $0x178] sm:$0xff] }
 0x5d5   :  { %5769 = vmatpush.msrb.mxu2 %v5445_v39  ;;  %5706 = vmatpush.msra.mxu1 %v5366_v9  ;;  %v5242_v49 = vmul.f32 0.0078125, %v5193_v57  ;;  %v5218_v61 = vmul.f32 0.0078125, %v5145_v62  ;;  %v5329_v20 = vunpack.c.h.bf16 %v11738_v34  ;;  %v5427_v4 = vunpack.c.h.bf16 %v11916_v0  ;;  %v5245_v41 = vld [vmem:[%s12831_s7 + $0x8] sm:$0xff]  ;;  %v5315_v24 = vld [vmem:[%s12831_s7 + $0x238] sm:$0xff]  ;;  %vm13262_vm13 = vmmov %vm13256_vm2 }
 0x5d6   :  { %v5608_v11 = vperm.slane %v5241_v32, %v13255_v54  ;;  %v5348_v14 = vunpack.c.l.bf16 %v12036_v17  ;;  %5750 = vmatpush.msrb.mxu0 %v5343_v52  ;;  %v5331_v42 = vunpack.c.h.bf16 %v12079_v1  ;;  %v5559_v7 = vsel %vm13256_vm2, %v5558_v38, %v5557_v8  ;;  %5671 = vmatpush.msra.mxu3 %v5335_v60  ;;  %v5248_v38 = vld [vmem:[%s12831_s7 + $0x20] sm:$0xff]  ;;  %vm13263_vm14 = vmmov %vm13256_vm2 }
 0x5d7   :  { %5770 = vmatpush.msrb.mxu2 %v5439_v58  ;;  %5707 = vmatpush.msra.mxu1 %v5360_v27  ;;  %v5560_v56 = vperm.slane %v5216_v35, %v13249_v21  ;;  %v5323_v44 = vunpack.c.h.bf16 %v11770_v15  ;;  %v5421_v34 = vunpack.c.h.bf16 %v11936_v46  ;;  %v5607_v0 = vsel %vm2177_vm4, %v5606_v48, %v5605_v33  ;;  %v5288_v8 = vld [vmem:[%s12831_s7 + $0x160] sm:$0xff] }
 0x5d8   :  { %v5562_v31 = vperm.slane %v5217_v43, %v13255_v54  ;;  %v5342_v2 = vunpack.c.l.bf16 %v12056_v29  ;;  %v5336_v57 = vunpack.c.l.bf16 %v12068_v18  ;;  %5751 = vmatpush.msrb.mxu0 %v5337_v30  ;;  %v5610_v15 = vperm.slane %v5242_v49, %v13257_v10  ;;  %5672 = vmatpush.msra.mxu3 %v5329_v20  ;;  %v13259_v29 = vld [vmem:[#allocation88_spill] sm:$0xff]  ;;  %v5285_v43 = vld [vmem:[%s12831_s7 + $0x148] sm:$0xff]  ;;  %v5282_v20 = vld [vmem:[%s12831_s7 + $0x130] sm:$0xff] }
 0x5d9   :  { %5771 = vmatpush.msrb.mxu2 %v5433_v19  ;;  %5708 = vmatpush.msra.mxu1 %v5354_v40  ;;  %v5564_v46 = vperm.slane %v5218_v61, %v13257_v10  ;;  %v5195_v62 = vpop.xlane.xlu1 %5194  ;;  %v5325_v17 = vunpack.c.h.bf16 %v5248_v38  ;;  %v5317_v12 = vunpack.c.h.bf16 %v13258_v51  ;;  %v5609_v39 = vsel %vm2181_vm5, %v5608_v11, %v5607_v0  ;;  %v5312_v40 = vld [vmem:[%s12831_s7 + $0x220] sm:$0xff]  ;;  %v5309_v11 = vld [vmem:[%s12831_s7 + $0x208] sm:$0xff] }
 0x5da   :  { %v5147_v25 = vpop.xlane.xlu0 %5146  ;;  %v5243_v5 = vmul.f32 0.0078125, %v5195_v62  ;;  %5752 = vmatpush.msrb.mxu0 %v5331_v42  ;;  %v5415_v9 = vunpack.c.h.bf16 %v11978_v63  ;;  %v5561_v26 = vsel %vm2177_vm4, %v5560_v56, %v5559_v7  ;;  %5673 = vmatpush.msra.mxu3 %v5323_v44  ;;  %v5319_v3 = vunpack.c.h.bf16 %v5245_v41  ;;  %v5276_v62 = vld [vmem:[%s12831_s7 + $0x100] sm:$0xff] }
 0x5db   :  { %5772 = vmatpush.msrb.mxu2 %v5427_v4  ;;  %5709 = vmatpush.msra.mxu1 %v5348_v14  ;;  %v5219_v55 = vmul.f32 0.0078125, %v5147_v25  ;;  %v5563_v16 = vsel %vm2181_vm5, %v5562_v31, %v5561_v26  ;;  %v5330_v48 = vunpack.c.l.bf16 %v12079_v1  ;;  %v5611_v58 = vsel %vm2185_vm6, %v5610_v15, %v5609_v39  ;;  %v5303_v15 = vld [vmem:[%s12831_s7 + $0x1d8] sm:$0xff]  ;;  %v5300_v25 = vld [vmem:[%s12831_s7 + $0x1c0] sm:$0xff] }
 0x5dc   :  { %v5612_v23 = vperm.slane %v5243_v5, %v13259_v29  ;;  %v5565_v63 = vsel %vm2185_vm6, %v5564_v46, %v5563_v16  ;;  %5753 = vmatpush.msrb.mxu0 %v5325_v17  ;;  %5674 = vmatpush.msra.mxu3 %v5317_v12  ;;  %v5324_v52 = vunpack.c.l.bf16 %v5248_v38  ;;  %v5410_v35 = vunpack.c.l.bf16 %v5291_v36  ;;  %v12140_v61 = vpop.xlane.xlu2 %6036  ;;  %v5279_v38 = vld [vmem:[%s12831_s7 + $0x118] sm:$0xff]  ;;  %v5273_v5 = vld [vmem:[%s12831_s7 + $0xe8] sm:$0xff]  ;;  %v5270_v16 = vld [vmem:[%s12831_s7 + $0xd0] sm:$0xff] }
 0x5dd   :  { %5773 = vmatpush.msrb.mxu2 %v5421_v34  ;;  %5710 = vmatpush.msra.mxu1 %v5342_v2  ;;  %v5566_v53 = vperm.slane %v5219_v55, %v13259_v29  ;;  %v5411_v13 = vunpack.c.h.bf16 %v5291_v36  ;;  %v5459_v60 = vunpack.c.h.bf16 %v5315_v24  ;;  %v5318_v19 = vunpack.c.l.bf16 %v5245_v41  ;;  %v5306_v34 = vld [vmem:[%s12831_s7 + $0x1f0] sm:$0xff]  ;;  %v5297_v55 = vld [vmem:[%s12831_s7 + $0x1a8] sm:$0xff] }
 0x5de   :  { %v5613_v27 = vsel %vm2189_vm7, %v5612_v23, %v5611_v58  ;;  %5754 = vmatpush.msrb.mxu0 %v5319_v3  ;;  %v5404_v33 = vunpack.c.l.bf16 %v5288_v8  ;;  %v5405_v30 = vunpack.c.h.bf16 %v5288_v8  ;;  %v5458_v49 = vunpack.c.l.bf16 %v5315_v24 }
 0x5df   :  { %5711 = vmatpush.msra.mxu1 %v5336_v57  ;;  %v5567_v32 = vsel %vm2189_vm7, %v5566_v53, %v5565_v63  ;;  %5774 = vmatpush.msrb.mxu2 %v5415_v9  ;;  %v5453_v1 = vunpack.c.h.bf16 %v5312_v40  ;;  %v5398_v14 = vunpack.c.l.bf16 %v5285_v43  ;;  %v5399_v42 = vunpack.c.h.bf16 %v5285_v43  ;;  %v5294_v53 = vld [vmem:[%s12831_s7 + $0x190] sm:$0xff] }
 0x5e0   :  { %v12126_v18 = vsel %vm13241_vm3, %v5613_v27, %v5567_v32  ;;  %v5452_v7 = vunpack.c.l.bf16 %v5312_v40  ;;  %v5447_v44 = vunpack.c.h.bf16 %v5309_v11  ;;  %v5392_v0 = vunpack.c.l.bf16 %v5282_v20  ;;  %v5267_v32 = vld [vmem:[%s12831_s7 + $0xb8] sm:$0xff]  ;;  %v12198_v43 = vld [vmem:[#allocation10 + $0x110] sm:$0xff] }
 0x5e1   :  { %5712 = vmatpush.msra.mxu1 %v5330_v48  ;;  %6953 = vmatmul.msk.f32.vlgmr.msrb.gmra.mxu3 %vm3484_vm0, %v12126_v18  ;;  %v5393_v31 = vunpack.c.h.bf16 %v5282_v20  ;;  %v5446_v2 = vunpack.c.l.bf16 %v5309_v11  ;;  %v5441_v57 = vunpack.c.h.bf16 %v5306_v34  ;;  %v5440_v46 = vunpack.c.l.bf16 %v5306_v34  ;;  %v12206_v11 = vld [vmem:[#allocation10 + $0xf8] sm:$0xff] }
 0x5e2   :  { %6954 = vmatmul.msk.f32.vlgmr.msra.gmra.mxu0 %vm3484_vm0, %v12126_v18  ;;  %6955 = vmatmul.msk.f32.vlgmr.msra.gmra.mxu2 %vm3484_vm0, %v12126_v18  ;;  %v5386_v17 = vunpack.c.l.bf16 %v5279_v38  ;;  %v5387_v51 = vunpack.c.h.bf16 %v5279_v38  ;;  %v5434_v12 = vunpack.c.l.bf16 %v5303_v15  ;;  %v5435_v39 = vunpack.c.h.bf16 %v5303_v15 }
 0x5e3   :  { %5713 = vmatpush.msra.mxu1 %v5324_v52  ;;  %5779 = vmatpush.msrb.mxu3 %v5410_v35  ;;  %v5380_v41 = vunpack.c.l.bf16 %v5276_v62  ;;  %v5381_v9 = vunpack.c.h.bf16 %v5276_v62  ;;  %v5428_v26 = vunpack.c.l.bf16 %v5300_v25  ;;  %v5429_v36 = vunpack.c.h.bf16 %v5300_v25  ;;  %v12230_v62 = vld [vmem:[#allocation10 + $0xc0] sm:$0xff] }
 0x5e4   :  { %5819 = vmatpush.msra.mxu2 %v5411_v13  ;;  %v12145_v4 = vpop.xlane.xlu1 %6033  ;;  %5847 = vmatpush.msra.mxu0 %v5459_v60  ;;  %v12150_v56 = vpop.xlane.xlu0 %6000  ;;  %v5374_v63 = vunpack.c.l.bf16 %v5273_v5  ;;  %v5375_v58 = vunpack.c.h.bf16 %v5273_v5  ;;  %v5422_v8 = vunpack.c.l.bf16 %v5297_v55  ;;  %v5423_v27 = vunpack.c.h.bf16 %v5297_v55  ;;  %v5264_v60 = vld [vmem:[%s12831_s7 + $0xa0] sm:$0xff]  ;;  %v12239_v5 = vld [vmem:[#allocation10 + $0xa8] sm:$0xff] }
 0x5e5   :  { %5714 = vmatpush.msra.mxu1 %v5318_v19  ;;  %5780 = vmatpush.msrb.mxu3 %v5404_v33  ;;  %v5368_v52 = vunpack.c.l.bf16 %v5270_v16  ;;  %v5369_v24 = vunpack.c.h.bf16 %v5270_v16  ;;  %v5416_v35 = vunpack.c.l.bf16 %v5294_v53  ;;  %v5417_v13 = vunpack.c.h.bf16 %v5294_v53  ;;  %v12196_v19 = vld [vmem:[#allocation10 + $0x108] sm:$0xff]  ;;  %v12248_v53 = vld [vmem:[#allocation10 + $0x90] sm:$0xff] }
 0x5e6   :  { %5715 = vmatmul.f32.vlgmr.msra.gmra.mxu1 %v12012_v28  ;;  %5820 = vmatpush.msra.mxu2 %v5405_v30  ;;  %v5362_v33 = vunpack.c.l.bf16 %v5267_v32  ;;  %v5363_v40 = vunpack.c.h.bf16 %v5267_v32  ;;  %v5261_v30 = vld [vmem:[%s12831_s7 + $0x88] sm:$0xff]  ;;  %v6194_v20 = vunpack.c.l.bf16 %v12196_v19  ;;  %v6196_v34 = vunpack.c.l.bf16 %v12198_v43 }
 0x5e7   :  { %5807 = vmatpush.msrb.mxu1 %v5458_v49  ;;  %5848 = vmatpush.msra.mxu0 %v5453_v1  ;;  %v12203_v49 = vld [vmem:[#allocation10 + $0xf0] sm:$0xff]  ;;  %v5356_v1 = vunpack.c.l.bf16 %v5264_v60  ;;  %v5351_v15 = vunpack.c.h.bf16 %v5261_v30  ;;  %v6190_v25 = vunpack.c.l.bf16 %v12206_v11  ;;  %v5249_v16 = vld [vmem:[%s12831_s7 + $0x28] sm:$0xff] }
 0x5e8   :  { %5781 = vmatpush.msrb.mxu3 %v5398_v14  ;;  %5821 = vmatpush.msra.mxu2 %v5399_v42  ;;  %v5357_v42 = vunpack.c.h.bf16 %v5264_v60  ;;  %v5326_v60 = vunpack.c.l.bf16 %v5249_v16 }
 0x5e9   :  { %5808 = vmatpush.msrb.mxu1 %v5452_v7  ;;  %5849 = vmatpush.msra.mxu0 %v5447_v44  ;;  %v5258_v7 = vld [vmem:[%s12831_s7 + $0x70] sm:$0xff]  ;;  %v12213_v44 = vld [vmem:[#allocation10 + $0xd8] sm:$0xff] }
 0x5ea   :  { %5782 = vmatpush.msrb.mxu3 %v5392_v0  ;;  %5822 = vmatpush.msra.mxu2 %v5393_v31  ;;  %v5350_v0 = vunpack.c.l.bf16 %v5261_v30  ;;  %v6188_v31 = vunpack.c.l.bf16 %v12203_v49  ;;  %v5327_v30 = vunpack.c.h.bf16 %v5249_v16  ;;  %v12295_v16 = vld [vmem:[#allocation10 + $0x50] sm:$0xff] }
 0x5eb   :  { %5809 = vmatpush.msrb.mxu1 %v5446_v2  ;;  %5850 = vmatpush.msra.mxu0 %v5441_v57  ;;  %v12219_v2 = vld [vmem:[#allocation10 + $0xe0] sm:$0xff] }
 0x5ec   :  { %5675 = vmatmul.f32.vlgmr.msra.gmra.mxu3 %v12012_v28  ;;  %5755 = vmatmul.f32.vlgmr.msrb.gmra.mxu0 %v12012_v28  ;;  %v6184_v55 = vunpack.c.l.bf16 %v12219_v2 }
 0x5ed   :  { %5810 = vmatpush.msrb.mxu1 %v5440_v46  ;;  %6956 = vmatmul.msk.f32.vlgmr.msrb.gmra.mxu2 %vm3484_vm0, %v12126_v18  ;;  %v12178_v3 = vpop.xlane.xlu2 %6006  ;;  %v12183_v48 = vpop.xlane.xlu1 %6039  ;;  %v5255_v46 = vld [vmem:[%s12831_s7 + $0x58] sm:$0xff] }
 0x5ee   :  { %5783 = vmatpush.msrb.mxu3 %v5386_v17  ;;  %5823 = vmatpush.msra.mxu2 %v5387_v51  ;;  %v12185_v23 = vpop.xlane.xlu0 %6003  ;;  %v5344_v17 = vunpack.c.l.bf16 %v5258_v7  ;;  %v6182_v51 = vunpack.c.l.bf16 %v12213_v44 }
 0x5ef   :  { %5811 = vmatpush.msrb.mxu1 %v5434_v12  ;;  %5851 = vmatpush.msra.mxu0 %v5435_v39  ;;  %v12234_v12 = vld [vmem:[#allocation10 + $0xc8] sm:$0xff]  ;;  %v5252_v39 = vld [vmem:[%s12831_s7 + $0x40] sm:$0xff] }
 0x5f0   :  { %5784 = vmatpush.msrb.mxu3 %v5380_v41  ;;  %5824 = vmatpush.msra.mxu2 %v5381_v9  ;;  %v5338_v41 = vunpack.c.l.bf16 %v5255_v46  ;;  %v6176_v9 = vunpack.c.l.bf16 %v12230_v62 }
 0x5f1   :  { %5812 = vmatpush.msrb.mxu1 %v5428_v26  ;;  %5852 = vmatpush.msra.mxu0 %v5429_v36  ;;  %v12243_v26 = vld [vmem:[#allocation10 + $0xb0] sm:$0xff]  ;;  %v5339_v36 = vunpack.c.h.bf16 %v5255_v46  ;;  %v12273_v46 = vld [vmem:[#allocation10 + $0x80] sm:$0xff] }
 0x5f2   :  { %5785 = vmatpush.msrb.mxu3 %v5374_v63  ;;  %5825 = vmatpush.msra.mxu2 %v5375_v58  ;;  %v6178_v63 = vunpack.c.l.bf16 %v12234_v12  ;;  %v5332_v58 = vunpack.c.l.bf16 %v5252_v39 }
 0x5f3   :  { %5813 = vmatpush.msrb.mxu1 %v5422_v8  ;;  %5853 = vmatpush.msra.mxu0 %v5423_v27  ;;  %v6170_v8 = vunpack.c.l.bf16 %v12239_v5  ;;  %v12252_v27 = vld [vmem:[#allocation10 + $0x98] sm:$0xff] }
 0x5f4   :  { %5786 = vmatpush.msrb.mxu3 %v5368_v52  ;;  %5826 = vmatpush.msra.mxu2 %v5369_v24  ;;  %v5333_v52 = vunpack.c.h.bf16 %v5252_v39  ;;  %v5246_v24 = vld [vmem:[%s12831_s7 + $0x10] sm:$0xff]  ;;  %v12282_v39 = vld [vmem:[#allocation10 + $0x68] sm:$0xff] }
 0x5f5   :  { %5814 = vmatpush.msrb.mxu1 %v5416_v35  ;;  %5854 = vmatpush.msra.mxu0 %v5417_v13  ;;  %v12208_v14 = vpop.xlane.xlu2 %6045  ;;  %v12259_v35 = vld [vmem:[#allocation10 + $0x78] sm:$0xff]  ;;  %v6172_v13 = vunpack.c.l.bf16 %v12243_v26 }
 0x5f6   :  { %6957 = vmatmul.msk.f32.vlgmr.msrb.gmra.mxu1 %vm3484_vm0, %v12126_v18  ;;  %5787 = vmatpush.msrb.mxu3 %v5362_v33  ;;  %v6164_v33 = vunpack.c.l.bf16 %v12248_v53 }
 0x5f7   :  { %5827 = vmatpush.msra.mxu2 %v5363_v40  ;;  %6958 = vmatmul.msk.f32.vlgmr.msra.gmra.mxu0 %vm3484_vm0, %v12126_v18  ;;  %v12223_v57 = vpop.xlane.xlu1 %6009  ;;  %v12225_v38 = vpop.xlane.xlu0 %6042  ;;  %v5345_v18 = vunpack.c.h.bf16 %v5258_v7  ;;  %v6158_v7 = vunpack.c.l.bf16 %v12259_v35  ;;  %vm13260_vm0 = vmmov %vm13251_vm12 }
 0x5f8   :  { %5788 = vmatpush.msrb.mxu3 %v5356_v1  ;;  %6292 = vmatpush.msra.mxu1 %v6194_v20  ;;  %v6166_v1 = vunpack.c.l.bf16 %v12252_v27  ;;  %vm13261_vm12 = vmmov %vm13260_vm0 }
 0x5f9   :  { %5828 = vmatpush.msra.mxu2 %v5357_v42  ;;  %6332 = vmatpush.msrb.mxu0 %v6196_v34  ;;  %v5320_v42 = vunpack.c.l.bf16 %v5246_v24  ;;  %v12269_v34 = vld [vmem:[#allocation10 + $0x60] sm:$0xff]  ;;  %vm13270_vm2 = vmmov %vm13260_vm0 }
 0x5fa   :  { %5789 = vmatpush.msrb.mxu3 %v5350_v0  ;;  %6293 = vmatpush.msra.mxu1 %v6188_v31  ;;  %v6081_v0 = vmul.f32 0.00390625, %v12140_v61  ;;  %v6080_v31 = vmul.f32 0.00390625, %v12145_v4  ;;  %v6152_v61 = vunpack.c.l.bf16 %v12269_v34  ;;  %v6197_v4 = vunpack.c.h.bf16 %v12198_v43 }
 0x5fb   :  { %5829 = vmatpush.msra.mxu2 %v5351_v15  ;;  %6333 = vmatpush.msrb.mxu0 %v6190_v25  ;;  %v5321_v15 = vunpack.c.h.bf16 %v5246_v24  ;;  %v6195_v25 = vunpack.c.h.bf16 %v12196_v19  ;;  %v12285_v19 = vld [vmem:[#allocation10 + $0x30] sm:$0xff] }
 0x5fc   :  { %5790 = vmatpush.msrb.mxu3 %v5344_v17  ;;  %6294 = vmatpush.msra.mxu1 %v6182_v51  ;;  %v12276_v17 = vld [vmem:[#allocation10 + $0x48] sm:$0xff]  ;;  %v6068_v51 = vmul.f32 0.00390625, %v12094_v59  ;;  %v6262_v59 = vperm.slane %v6081_v0, %v8199_v22  ;;  %v12325_v0 = vld [vmem:[#allocation10 + $0x118] sm:$0xff] }
 0x5fd   :  { %5830 = vmatpush.msra.mxu2 %v5345_v18  ;;  %v12254_v32 = vpop.xlane.xlu2 %6015  ;;  %6334 = vmatpush.msrb.mxu0 %v6184_v55  ;;  %v6069_v18 = vmul.f32 0.00390625, %v12150_v56  ;;  %v6189_v55 = vunpack.c.h.bf16 %v12203_v49  ;;  %v6261_v56 = vperm.slane %v6080_v31, %v13234_v45  ;;  %v6146_v43 = vunpack.c.l.bf16 %v12276_v17 }
 0x5fe   :  { %5791 = vmatpush.msrb.mxu3 %v5338_v41  ;;  %6295 = vmatpush.msra.mxu1 %v6176_v9  ;;  %v6160_v41 = vunpack.c.l.bf16 %v12273_v46  ;;  %v6082_v49 = vmul.f32 0.00390625, %v12183_v48  ;;  %v6238_v24 = vperm.slane %v6068_v51, %v13234_v45  ;;  %v6140_v48 = vunpack.c.l.bf16 %v12285_v19  ;;  %v12331_v51 = vld [vmem:[#allocation10 + $0x20] sm:$0xff] }
 0x5ff   :  { %5831 = vmatpush.msra.mxu2 %v5339_v36  ;;  %v12263_v40 = vpop.xlane.xlu1 %6048  ;;  %6335 = vmatpush.msrb.mxu0 %v6178_v63  ;;  %v6191_v36 = vunpack.c.h.bf16 %v12206_v11  ;;  %v6070_v63 = vmul.f32 0.00390625, %v12185_v23  ;;  %v6185_v23 = vunpack.c.h.bf16 %v12219_v2 }
 0x600   :  { %v12266_v20 = vpop.xlane.xlu0 %6012  ;;  %5792 = vmatpush.msrb.mxu3 %v5332_v58  ;;  %6296 = vmatpush.msra.mxu1 %v6170_v8  ;;  %v6183_v58 = vunpack.c.h.bf16 %v12213_v44  ;;  %v12301_v8 = vld [vmem:[#allocation10 + $0x18] sm:$0xff]  ;;  %v12313_v44 = vmul.f32 0.00390625, %v12178_v3  ;;  %v6179_v3 = vunpack.c.h.bf16 %v12234_v12  ;;  %v6264_v31 = vperm.slane %v6082_v49, %v13243_v50  ;;  %v12351_v49 = vld [vmem:[#allocation10 + $0xe8] sm:$0xff] }
 0x601   :  { %5832 = vmatpush.msra.mxu2 %v5333_v52  ;;  %6336 = vmatpush.msrb.mxu0 %v6172_v13  ;;  %v6154_v52 = vunpack.c.l.bf16 %v12282_v39  ;;  %v6239_v13 = vperm.slane %v6069_v18, %v8199_v22  ;;  %v6134_v2 = vunpack.c.l.bf16 %v12301_v8  ;;  %v6072_v18 = vmul.f32 0.00390625, %v12223_v57  ;;  %v12344_v57 = vld [vmem:[#allocation10 + $0x8] sm:$0xff] }
 0x602   :  { %5793 = vmatpush.msrb.mxu3 %v5326_v60  ;;  %6297 = vmatpush.msra.mxu1 %v6164_v33  ;;  %v6177_v33 = vunpack.c.h.bf16 %v12230_v62  ;;  %v6241_v62 = vperm.slane %v6070_v63, %v13243_v50 }
 0x603   :  { %5833 = vmatpush.msra.mxu2 %v5327_v30  ;;  %6337 = vmatpush.msrb.mxu0 %v6166_v1  ;;  %v12318_v30 = vld [vmem:[#allocation10] sm:$0xff]  ;;  %v6148_v1 = vunpack.c.l.bf16 %v12295_v16 }
 0x604   :  { %5794 = vmatpush.msrb.mxu3 %v5320_v42  ;;  %6298 = vmatpush.msra.mxu1 %v6158_v7  ;;  %v6263_v42 = vsel %vm2165_vm1, %v6262_v59, %v6261_v56  ;;  %v6083_v7 = vmul.f32 0.00390625, %v12225_v38  ;;  %v6240_v38 = vsel %vm2165_vm1, %v6239_v13, %v6238_v24  ;;  %v6128_v12 = vunpack.c.l.bf16 %v12318_v30 }
 0x605   :  { %5834 = vmatpush.msra.mxu2 %v5321_v15  ;;  %5795 = vmatmul.f32.vlgmr.msrb.gmra.mxu3 %v12012_v28  ;;  %v12291_v9 = vpop.xlane.xlu2 %6054  ;;  %v6171_v15 = vunpack.c.h.bf16 %v12239_v5  ;;  %v6243_v5 = vperm.slane %v12313_v44, %v13244_v47  ;;  %v6198_v59 = vunpack.c.l.bf16 %v12325_v0  ;;  %v6242_v63 = vsel %vm13261_vm12, %v6241_v62, %v6240_v38  ;;  %v12381_v38 = vld [vmem:[#allocation10 + $0xa0] sm:$0xff] }
 0x606   :  { %5835 = vmatmul.f32.vlgmr.msra.gmra.mxu2 %v12012_v28  ;;  %6312 = vmatpush.msra.mxu3 %v6195_v25  ;;  %v12310_v28 = vld [vmem:[#allocation10 + $0x38] sm:$0xff]  ;;  %v6266_v56 = vperm.slane %v6083_v7, %v13244_v47  ;;  %v6153_v13 = vunpack.c.h.bf16 %v12269_v34 }
 0x607   :  { %v12306_v11 = vpop.xlane.xlu1 %6018  ;;  %6299 = vmatpush.msra.mxu1 %v6152_v61  ;;  %6352 = vmatpush.msrb.mxu2 %v6197_v4  ;;  %v6142_v25 = vunpack.c.l.bf16 %v12310_v28  ;;  %v6173_v61 = vunpack.c.h.bf16 %v12243_v26  ;;  %v12337_v4 = vld [vmem:[#allocation10 + $0x100] sm:$0xff] }
 0x608   :  { %6313 = vmatpush.msra.mxu3 %v6189_v55  ;;  %v12315_v60 = vpop.xlane.xlu0 %6051  ;;  %6338 = vmatpush.msrb.mxu0 %v6160_v41  ;;  %v6084_v55 = vmul.f32 0.00390625, %v12208_v14  ;;  %v6165_v41 = vunpack.c.h.bf16 %v12248_v53  ;;  %v6136_v14 = vunpack.c.l.bf16 %v12331_v51  ;;  %v6265_v53 = vsel %vm13260_vm0, %v6264_v31, %v6263_v42 }
 0x609   :  { %6300 = vmatpush.msra.mxu1 %v6146_v43  ;;  %6353 = vmatpush.msrb.mxu2 %v6191_v36  ;;  %v6073_v43 = vmul.f32 0.00390625, %v12266_v20  ;;  %v6167_v36 = vunpack.c.h.bf16 %v12252_v27  ;;  %v6245_v20 = vperm.slane %v6072_v18, %v13249_v21  ;;  %v6161_v27 = vunpack.c.h.bf16 %v12273_v46 }
 0x60a   :  { %6314 = vmatpush.msra.mxu3 %v6183_v58  ;;  %6339 = vmatpush.msrb.mxu0 %v6154_v52  ;;  %v6159_v58 = vunpack.c.h.bf16 %v12259_v35  ;;  %v6192_v52 = vunpack.c.l.bf16 %v12337_v4  ;;  %v6268_v44 = vperm.slane %v6084_v55, %v13249_v21  ;;  %v6074_v35 = vmul.f32 0.00390625, %v12254_v32  ;;  %v12391_v55 = vld [vmem:[#allocation10 + $0x88] sm:$0xff] }
 0x60b   :  { %6301 = vmatpush.msra.mxu1 %v6140_v48  ;;  %6354 = vmatpush.msrb.mxu2 %v6185_v23  ;;  %v12361_v48 = vld [vmem:[#allocation10 + $0xd0] sm:$0xff]  ;;  %v6130_v23 = vunpack.c.l.bf16 %v12344_v57  ;;  %v6186_v42 = vunpack.c.l.bf16 %v12351_v49  ;;  %v6267_v34 = vsel %vm13262_vm13, %v6266_v56, %v6265_v53  ;;  %v6247_v7 = vperm.slane %v6073_v43, %v13255_v54 }
 0x60c   :  { %6315 = vmatpush.msra.mxu3 %v6177_v33  ;;  %6340 = vmatpush.msrb.mxu0 %v6148_v1  ;;  %v6085_v33 = vmul.f32 0.00390625, %v12263_v40  ;;  %v6155_v46 = vunpack.c.h.bf16 %v12282_v39  ;;  %v6086_v32 = vmul.f32 0.00390625, %v12315_v60  ;;  %v6147_v40 = vunpack.c.h.bf16 %v12276_v17 }
 0x60d   :  { %v12348_v26 = vpop.xlane.xlu2 %6024  ;;  %6302 = vmatpush.msra.mxu1 %v6134_v2  ;;  %6355 = vmatpush.msrb.mxu2 %v6179_v3  ;;  %v12371_v2 = vld [vmem:[#allocation10 + $0xb8] sm:$0xff]  ;;  %v6244_v3 = vsel %vm13263_vm14, %v6243_v5, %v6242_v63  ;;  %v6180_v31 = vunpack.c.l.bf16 %v12361_v48  ;;  %v6149_v39 = vunpack.c.h.bf16 %v12295_v16  ;;  %v6249_v60 = vperm.slane %v6074_v35, %v13257_v10  ;;  %v12420_v35 = vpop.f32.mrf.mxu0 }
 0x60e   :  { %6316 = vmatpush.msra.mxu3 %v6171_v15  ;;  %6341 = vmatpush.msrb.mxu0 %v6142_v25  ;;  %v6246_v62 = vsel %vm2177_vm4, %v6245_v20, %v6244_v3  ;;  %v6141_v15 = vunpack.c.h.bf16 %v12285_v19  ;;  %v6135_v25 = vunpack.c.h.bf16 %v12301_v8  ;;  %v6269_v18 = vsel %vm2177_vm4, %v6268_v44, %v6267_v34  ;;  %v12418_v44 = vld [vmem:[#allocation10 + $0x40] sm:$0xff]  ;;  %v13265_v3 = vld [vmem:[#allocation90_spill] sm:$0xff] }
 0x60f   :  { %v6058_v24 = vpop.xlane.xlu1 %6057  ;;  %6303 = vmatpush.msra.mxu1 %v6128_v12  ;;  %6356 = vmatpush.msrb.mxu2 %v6173_v61  ;;  %v6270_v17 = vperm.slane %v6085_v33, %v13255_v54  ;;  %v6174_v12 = vunpack.c.l.bf16 %v12371_v2  ;;  %v6248_v19 = vsel %vm2181_vm5, %v6247_v7, %v6246_v62  ;;  %v6075_v8 = vmul.f32 0.00390625, %v12306_v11  ;;  %v13264_v33 = vld [vmem:[#allocation89_spill] sm:$0xff]  ;;  %v12431_v62 = vpop.f32.mrf.mxu1 }
 0x610   :  { %6317 = vmatpush.msra.mxu3 %v6165_v41  ;;  %v6022_v1 = vpop.xlane.xlu0 %6021  ;;  %6342 = vmatpush.msrb.mxu0 %v6136_v14  ;;  %v6129_v16 = vunpack.c.h.bf16 %v12318_v30  ;;  %v6143_v5 = vunpack.c.h.bf16 %v12310_v28  ;;  %v6087_v41 = vmul.f32 0.00390625, %v12291_v9  ;;  %v6199_v56 = vunpack.c.h.bf16 %v12325_v0  ;;  %v12424_v7 = vld [vmem:[#allocation10 + $0x28] sm:$0xff] }
 0x611   :  { %6372 = vmatpush.msrb.mxu1 %v6198_v59  ;;  %6357 = vmatpush.msrb.mxu2 %v6167_v36  ;;  %v6272_v59 = vperm.slane %v6086_v32, %v13257_v10  ;;  %v6168_v43 = vunpack.c.l.bf16 %v12381_v38  ;;  %v12397_v36 = vld [vmem:[#allocation10 + $0x70] sm:$0xff]  ;;  %v6088_v11 = vmul.f32 0.00390625, %v6058_v24  ;;  %v6076_v14 = vmul.f32 0.00390625, %v6022_v1 }
 0x612   :  { %6318 = vmatpush.msra.mxu3 %v6159_v58  ;;  %6343 = vmatpush.msrb.mxu0 %v6130_v23  ;;  %v6193_v53 = vunpack.c.h.bf16 %v12337_v4  ;;  %v6137_v28 = vunpack.c.h.bf16 %v12331_v51  ;;  %v6271_v9 = vsel %vm2181_vm5, %v6270_v17, %v6269_v18  ;;  %v6250_v10 = vsel %vm2185_vm6, %v6249_v60, %v6248_v19  ;;  %v12408_v51 = vld [vmem:[#allocation10 + $0x58] sm:$0xff]  ;;  %v6626_v17 = vld [vmem:[%s12833_s9 + $0x48] sm:$0xff] }
 0x613   :  { %6373 = vmatpush.msrb.mxu1 %v6192_v52  ;;  %6358 = vmatpush.msrb.mxu2 %v6161_v27  ;;  %v6187_v0 = vunpack.c.h.bf16 %v12351_v49  ;;  %v6162_v58 = vunpack.c.l.bf16 %v12391_v55  ;;  %v6251_v52 = vperm.slane %v6075_v8, %v13259_v29  ;;  %v6131_v4 = vunpack.c.h.bf16 %v12344_v57 }
 0x614   :  { %6319 = vmatpush.msra.mxu3 %v6153_v13  ;;  %v6156_v24 = vunpack.c.l.bf16 %v12397_v36  ;;  %v6632_v13 = vld [vmem:[%s12833_s9 + $0x78] sm:$0xff]  ;;  %v6274_v27 = vperm.slane %v6087_v41, %v13259_v29  ;;  %v6273_v49 = vsel %vm2185_vm6, %v6272_v59, %v6271_v9  ;;  %v12416_v23 = vmul.f32 0.00390625, %v12348_v26  ;;  %v6629_v26 = vld [vmem:[%s12833_s9 + $0x60] sm:$0xff] }
 0x615   :  { %6374 = vmatpush.msrb.mxu1 %v6186_v42  ;;  %v6064_v61 = vpop.xlane.xlu2 %6063  ;;  %6359 = vmatpush.msrb.mxu2 %v6155_v46  ;;  %v6665_v57 = vunpack.c.l.bf16 %v6632_v13  ;;  %v6276_v1 = vperm.slane %v6088_v11, %v13264_v33  ;;  %v6253_v42 = vperm.slane %v6076_v14, %v13264_v33  ;;  %v6666_v29 = vunpack.c.h.bf16 %v6632_v13 }
 0x616   :  { %6320 = vmatpush.msra.mxu3 %v6147_v40  ;;  %v6090_v34 = vmul.f32 0.00390625, %v6064_v61  ;;  %v6150_v40 = vunpack.c.l.bf16 %v12408_v51  ;;  %v6144_v60 = vunpack.c.l.bf16 %v12418_v44  ;;  %v6660_v18 = vunpack.c.h.bf16 %v6629_v26 }
 0x617   :  { %6375 = vmatpush.msrb.mxu1 %v6180_v31  ;;  %v6028_v30 = vpop.xlane.xlu1 %6027  ;;  %6360 = vmatpush.msrb.mxu2 %v6149_v39  ;;  %v6659_v31 = vunpack.c.l.bf16 %v6629_v26  ;;  %v6181_v39 = vunpack.c.h.bf16 %v12361_v48  ;;  %v6275_v19 = vsel %vm2189_vm7, %v6274_v27, %v6273_v49  ;;  %v6138_v8 = vunpack.c.l.bf16 %v12424_v7  ;;  %v6623_v48 = vld [vmem:[%s12833_s9 + $0x30] sm:$0xff]  ;;  %v6634_v26 = vld [vmem:[%s12833_s9 + $0x88] sm:$0xff] }
 0x618   :  { %6321 = vmatpush.msra.mxu3 %v6141_v15  ;;  %v6061_v63 = vpop.xlane.xlu0 %6060  ;;  %v6078_v46 = vmul.f32 0.00390625, %v6028_v30  ;;  %v6252_v15 = vsel %vm2189_vm7, %v6251_v52, %v6250_v10  ;;  %6733 = vmatpush.msra.mxu0 %v6665_v57  ;;  %v6653_v61 = vunpack.c.l.bf16 %v6626_v17  ;;  %v6280_v41 = vperm.slane %v6090_v34, %v13102_v37  ;;  %v12455_v10 = vpop.f32.mrf.mxu3  ;;  %v6620_v52 = vld [vmem:[%s12833_s9 + $0x18] sm:$0xff] }
 0x619   :  { %6376 = vmatpush.msrb.mxu1 %v6174_v12  ;;  %v6089_v20 = vmul.f32 0.00390625, %v6061_v63  ;;  %6361 = vmatpush.msrb.mxu2 %v6143_v5  ;;  %v6255_v12 = vperm.slane %v12416_v23, %v13265_v3  ;;  %v6254_v5 = vsel %vm2193_vm8, %v6253_v42, %v6252_v15  ;;  %vm13266_vm6 = vcmask 654912   ;;  %v6617_v23 = vld [vmem:[%s12833_s9] sm:$0xff] }
 0x61a   :  { %6322 = vmatpush.msra.mxu3 %v6135_v25  ;;  %v6257_v11 = vperm.slane %v6078_v46, %v13102_v37  ;;  %6734 = vmatpush.msra.mxu0 %v6659_v31  ;;  %v6647_v9 = vunpack.c.l.bf16 %v6623_v48  ;;  %vm13267_vm7 = vmmov %vm13266_vm6  ;;  %v6169_v42 = vunpack.c.h.bf16 %v12381_v38  ;;  %v6642_v38 = vunpack.c.h.bf16 %v6620_v52 }
 0x61b   :  { %6377 = vmatpush.msrb.mxu1 %v6168_v43  ;;  %6362 = vmatpush.msrb.mxu2 %v6137_v28  ;;  %v6278_v32 = vperm.slane %v6089_v20, %v13265_v3  ;;  %v6654_v43 = vunpack.c.h.bf16 %v6626_v17  ;;  %v6256_v13 = vsel %vm13267_vm7, %v6255_v12, %v6254_v5  ;;  %v12499_v3 = vld [vmem:[%s12833_s9 + $0x50] sm:$0xff]  ;;  %v6163_v15 = vunpack.c.h.bf16 %v12391_v55  ;;  %v6628_v5 = vld [vmem:[%s12833_s9 + $0x58] sm:$0xff] }
 0x61c   :  { %6323 = vmatpush.msra.mxu3 %v6129_v16  ;;  %v6277_v16 = vsel %vm2193_vm8, %v6276_v1, %v6275_v19  ;;  %6735 = vmatpush.msra.mxu0 %v6653_v61  ;;  %v6258_v57 = vsel %vm2201_vm10, %v6257_v11, %v6256_v13  ;;  %vm6285_vm8 = vcmask 785408   ;;  %v12483_v1 = vld [vmem:[%s12833_s9 + $0x68] sm:$0xff]  ;;  %v6636_v17 = vunpack.c.h.bf16 %v6617_v23  ;;  %v12527_v61 = vld [vmem:[%s12833_s9 + $0x38] sm:$0xff] }
 0x61d   :  { %6378 = vmatpush.msrb.mxu1 %v6162_v58  ;;  %v12434_v25 = vpop.xlane.xlu2 %6548  ;;  %6363 = vmatpush.msrb.mxu2 %v6131_v4  ;;  %v6279_v14 = vsel %vm13266_vm6, %v6278_v32, %v6277_v16  ;;  %v6648_v58 = vunpack.c.h.bf16 %v6623_v48  ;;  %v12466_v4 = vld [vmem:[%s12833_s9 + $0x80] sm:$0xff]  ;;  %v6635_v32 = vunpack.c.l.bf16 %v6617_v23  ;;  %v6669_v12 = vunpack.c.l.bf16 %v6634_v26 }
 0x61e   :  { %6392 = vmatpush.msrb.mxu3 %v6199_v56  ;;  %v12451_v56 = vld [vmem:[#allocation10 + $0x10] sm:$0xff]  ;;  %v6281_v27 = vsel %vm2201_vm10, %v6280_v41, %v6279_v14  ;;  %6736 = vmatpush.msra.mxu0 %v6647_v9  ;;  %vm13268_vm10 = vmmov %vm13241_vm3  ;;  %v6157_v55 = vunpack.c.h.bf16 %v12397_v36  ;;  %v6670_v48 = vunpack.c.h.bf16 %v6634_v26  ;;  %v12535_v36 = vld [vmem:[%s12835_s11] sm:$0x3f]  ;;  %v6151_v41 = vunpack.c.h.bf16 %v12408_v51 }
 0x61f   :  { %6379 = vmatpush.msrb.mxu1 %v6156_v24  ;;  %v6067_v59 = vpop.xlane.xlu1 %6066  ;;  %6753 = vmatpush.msra.mxu2 %v6666_v29  ;;  %v6132_v20 = vunpack.c.l.bf16 %v12451_v56  ;;  %v12468_v24 = vpop.f32.mrf.mxu2  ;;  %v6667_v29 = vunpack.c.l.bf16 %v12466_v4  ;;  %v6625_v14 = vld [vmem:[%s12833_s9 + $0x40] sm:$0xff]  ;;  %v6145_v51 = vunpack.c.h.bf16 %v12418_v44  ;;  %v12553_v9 = vld [vmem:[%s12833_s9 + $0x8] sm:$0xff]  ;;  %v6139_v13 = vunpack.c.h.bf16 %v12424_v7  ;;  %vm13271_vm3 = vmmov %vm13262_vm13 }
 0x620   :  { %6393 = vmatpush.msrb.mxu3 %v6193_v53  ;;  %v6091_v30 = vmul.f32 0.00390625, %v6067_v59  ;;  %v6031_v28 = vpop.xlane.xlu0 %6030  ;;  %v6175_v53 = vunpack.c.h.bf16 %v12371_v2  ;;  %v12470_v2 = vpop.f32.mrf.mxu0  ;;  %v12541_v59 = vld [vmem:[%s12833_s9 + $0x20] sm:$0xff]  ;;  %v6622_v44 = vld [vmem:[%s12833_s9 + $0x28] sm:$0xff]  ;;  %v6637_v23 = vunpack.c.l.bf16 %v12553_v9  ;;  %v4304_v7 = vperm.slane %v12535_v36, 1 }
 0x621   :  { %6380 = vmatpush.msrb.mxu1 %v6150_v40  ;;  %v6079_v63 = vmul.f32 0.00390625, %v6031_v28  ;;  %6754 = vmatpush.msra.mxu2 %v6660_v18  ;;  %v12501_v40 = vpop.f32.mrf.mxu1  ;;  %v12520_v19 = vpop.f32.mrf.mxu3  ;;  %v6646_v26 = vunpack.c.h.bf16 %v6622_v44  ;;  %vm13274_vm6 = vcmask 1043456  }
 0x622   :  { %6394 = vmatpush.msrb.mxu3 %v6187_v0  ;;  %v6282_v37 = vperm.slane %v6091_v30, %v13104_v6  ;;  %v6641_v0 = vunpack.c.l.bf16 %v6620_v52  ;;  %v6643_v52 = vunpack.c.l.bf16 %v12541_v59 }
 0x623   :  { %6381 = vmatpush.msrb.mxu1 %v6144_v60  ;;  %v6259_v49 = vperm.slane %v6079_v63, %v13104_v6  ;;  %6755 = vmatpush.msra.mxu2 %v6654_v43  ;;  %v6631_v60 = vld [vmem:[%s12833_s9 + $0x70] sm:$0xff]  ;;  %v6649_v43 = vunpack.c.l.bf16 %v12527_v61  ;;  %v6657_v63 = vunpack.c.l.bf16 %v6628_v5 }
 0x624   :  { %6395 = vmatpush.msrb.mxu3 %v6181_v39  ;;  %v6283_v33 = vsel %vm2205_vm11, %v6282_v37, %v6281_v27  ;;  %6737 = vmatpush.msra.mxu0 %v6641_v0  ;;  %v6661_v39 = vunpack.c.l.bf16 %v12483_v1  ;;  %v6663_v16 = vunpack.c.l.bf16 %v6631_v60  ;;  %v6664_v11 = vunpack.c.h.bf16 %v6631_v60 }
 0x625   :  { %6382 = vmatpush.msrb.mxu1 %v6138_v8  ;;  %v6260_v6 = vsel %vm2205_vm11, %v6259_v49, %v6258_v57  ;;  %v12487_v34 = vpop.xlane.xlu2 %6583  ;;  %6756 = vmatpush.msra.mxu2 %v6648_v58  ;;  %v6655_v8 = vunpack.c.l.bf16 %v12499_v3  ;;  %v6658_v37 = vunpack.c.h.bf16 %v6628_v5  ;;  %v6651_v27 = vunpack.c.l.bf16 %v6625_v14  ;;  %vm13269_vm11 = vmmov %vm13260_vm0 }
 0x626   :  { %6396 = vmatpush.msrb.mxu3 %v6175_v53  ;;  %v12494_v46 = vsel %vm13268_vm10, %v6283_v33, %v6260_v6  ;;  %6738 = vmatpush.msra.mxu0 %v6635_v32  ;;  %v4303_v53 = vperm.slane %v12535_v36, 0  ;;  %v6652_v57 = vunpack.c.h.bf16 %v6625_v14  ;;  %v6619_v33 = vld [vmem:[%s12833_s9 + $0x10] sm:$0xff]  ;;  %v6133_v6 = vunpack.c.h.bf16 %v12451_v56 }
 0x627   :  { %6383 = vmatpush.msrb.mxu1 %v6132_v20  ;;  %6960 = vmatmul.msk.f32.vlgmr.msra.gmra.mxu3 %vm6285_vm8, %v12494_v46  ;;  %v12507_v31 = vpop.xlane.xlu1 %6578  ;;  %v4740_v30 = vpop.f32.mrf.mxu2  ;;  %v4307_v60 = vperm.slane %v12535_v36, 4  ;;  %vm6720_vm0 = vcmask 392192  }
 0x628   :  { %6959 = vmatmul.msk.f32.vlgmr.msra.gmra.mxu1 %vm6285_vm8, %v12494_v46  ;;  %6961 = vmatmul.msk.f32.vlgmr.msrb.gmra.mxu0 %vm6285_vm8, %v12494_v46  ;;  %v12518_v18 = vpop.xlane.xlu0 %6553  ;;  %v12547_v28 = vpop.f32.mrf.mxu0 }
 0x629   :  { %6962 = vmatmul.msk.f32.vlgmr.msrb.gmra.mxu2 %vm6285_vm8, %v12494_v46  ;;  %6397 = vmatpush.msrb.mxu3 %v6169_v42  ;;  %v4800_v20 = vpop.f32.mrf.mxu1  ;;  %v6645_v42 = vunpack.c.l.bf16 %v6622_v44  ;;  %v12573_v32 = vpop.f32.mrf.mxu3 }
 0x62a   :  { %6773 = vmatpush.msra.mxu1 %v6667_v29  ;;  %6757 = vmatpush.msra.mxu2 %v6642_v38  ;;  %v4621_v29 = vadd.f32 %v12420_v35, %v4303_v53  ;;  %v4305_v38 = vperm.slane %v12535_v36, 2  ;;  %v6640_v35 = vunpack.c.h.bf16 %v6619_v33  ;;  %v6650_v53 = vunpack.c.h.bf16 %v12527_v61 }
 0x62b   :  { %6398 = vmatpush.msrb.mxu3 %v6163_v15  ;;  %6813 = vmatpush.msrb.mxu0 %v6669_v12  ;;  %v6668_v15 = vunpack.c.h.bf16 %v12466_v4  ;;  %v4306_v12 = vperm.slane %v12535_v36, 3  ;;  %v4681_v4 = vadd.f32 %v12455_v10, %v4304_v7 }
 0x62c   :  { %6774 = vmatpush.msra.mxu1 %v6661_v39  ;;  %6758 = vmatpush.msra.mxu2 %v6636_v17  ;;  %v6639_v39 = vunpack.c.l.bf16 %v6619_v33  ;;  %v4641_v56 = vadd.f32 %v12431_v62, %v4621_v29  ;;  %v6611_v62 = vmul.f32 0.001953125, %v12507_v31  ;;  %v4741_v5 = vadd.f32 %v4740_v30, %v4305_v38 }
 0x62d   :  { %6399 = vmatpush.msrb.mxu3 %v6157_v55  ;;  %v12556_v58 = vpop.xlane.xlu2 %6563  ;;  %6814 = vmatpush.msrb.mxu0 %v6663_v16  ;;  %v6612_v16 = vmul.f32 0.001953125, %v12487_v34  ;;  %v4308_v31 = vperm.slane %v12535_v36, 5  ;;  %v4801_v30 = vadd.f32 %v4800_v20, %v4306_v12  ;;  %v6638_v33 = vunpack.c.h.bf16 %v12553_v9 }
 0x62e   :  { %6775 = vmatpush.msra.mxu1 %v6655_v8  ;;  %6833 = vmatpush.msrb.mxu2 %v6670_v48  ;;  %v6605_v8 = vmul.f32 0.001953125, %v12434_v25  ;;  %v6662_v48 = vunpack.c.h.bf16 %v12483_v1  ;;  %v6656_v1 = vunpack.c.h.bf16 %v12499_v3  ;;  %v12589_v10 = vadd.f32 %v12468_v24, %v4641_v56 }
 0x62f   :  { %6400 = vmatpush.msrb.mxu3 %v6151_v41  ;;  %v6589_v0 = vpop.xlane.xlu1 %6588  ;;  %6815 = vmatpush.msrb.mxu0 %v6657_v63  ;;  %v4820_v17 = vpop.f32.mrf.mxu2  ;;  %v6709_v3 = vperm.slane %v6612_v16, %v8199_v22  ;;  %v6708_v24 = vperm.slane %v6611_v62, %v13234_v45  ;;  %v6608_v20 = vmul.f32 0.001953125, %v12556_v58 }
 0x630   :  { %6963 = vmatmul.msk.f32.vlgmr.msrb.gmra.mxu1 %vm6285_vm8, %v12494_v46  ;;  %v6559_v49 = vpop.xlane.xlu0 %6558  ;;  %6834 = vmatpush.msrb.mxu2 %v6664_v11  ;;  %v4860_v55 = vpop.f32.mrf.mxu0  ;;  %v6613_v11 = vmul.f32 0.001953125, %v6589_v0  ;;  %v6697_v63 = vperm.slane %v6605_v8, %v13234_v45  ;;  %v4963_v45 = vsel %vm3297_vm9, %v12589_v10, inf }
 0x631   :  { %6776 = vmatpush.msra.mxu1 %v6649_v43  ;;  %6401 = vmatpush.msrb.mxu3 %v6145_v51  ;;  %v4880_v41 = vpop.f32.mrf.mxu1  ;;  %v6606_v43 = vmul.f32 0.001953125, %v12518_v18  ;;  %v4861_v34 = vadd.f32 %v4860_v55, %v4307_v60  ;;  %v6607_v14 = vmul.f32 0.001953125, %v6559_v49  ;;  %v4920_v44 = vpop.f32.mrf.mxu3  ;;  %v4983_v60 = vsel %vm3297_vm9, %v12589_v10, -inf }
 0x632   :  { %6835 = vmatpush.msrb.mxu2 %v6658_v37  ;;  %6816 = vmatpush.msrb.mxu0 %v6651_v27  ;;  %v6644_v37 = vunpack.c.h.bf16 %v12541_v59  ;;  %v6711_v0 = vperm.slane %v6613_v11, %v13243_v50  ;;  %v4701_v27 = vadd.f32 %v12470_v2, %v4681_v4  ;;  %v4761_v59 = vadd.f32 %v12520_v19, %v4741_v5 }
 0x633   :  { %6777 = vmatpush.msra.mxu1 %v6643_v52  ;;  %6402 = vmatpush.msrb.mxu3 %v6139_v13  ;;  %v4881_v52 = vadd.f32 %v4880_v41, %v4861_v34  ;;  %v6698_v36 = vperm.slane %v6606_v43, %v8199_v22  ;;  %v6700_v61 = vperm.slane %v6607_v14, %v13243_v50 }
 0x634   :  { %6836 = vmatpush.msrb.mxu2 %v6652_v57  ;;  %6817 = vmatpush.msrb.mxu0 %v6645_v42  ;;  %v4821_v22 = vadd.f32 %v4820_v17, %v4801_v30  ;;  %v12608_v58 = vadd.f32 %v12501_v40, %v4701_v27  ;;  %v6710_v50 = vsel %vm2165_vm1, %v6709_v3, %v6708_v24  ;;  %v5460_v27 = vld [vmem:[%s12836_s12] sm:$0x3f] }
 0x635   :  { %6778 = vmatpush.msra.mxu1 %v6637_v23  ;;  %6403 = vmatpush.msrb.mxu3 %v6133_v6  ;;  %v4921_v6 = vadd.f32 %v4920_v44, %v4308_v31  ;;  %v6699_v29 = vsel %vm2165_vm1, %v6698_v36, %v6697_v63  ;;  %v6712_v7 = vsel %vm13269_vm11, %v6711_v0, %v6710_v50  ;;  %vm13272_vm1 = vmmov %vm13271_vm3 }
 0x636   :  { %6964 = vmatmul.msk.f32.vlgmr.msrb.gmra.mxu3 %vm6285_vm8, %v12494_v46  ;;  %6837 = vmatpush.msrb.mxu2 %v6646_v26  ;;  %v6599_v46 = vpop.xlane.xlu2 %6598  ;;  %v6702_v19 = vperm.slane %v6608_v20, %v13244_v47  ;;  %v6701_v9 = vsel %vm13270_vm2, %v6700_v61, %v6699_v29  ;;  %v4964_v12 = vsel %vm3297_vm9, %v12608_v58, inf  ;;  %v4984_v43 = vsel %vm3297_vm9, %v12608_v58, -inf  ;;  %vm13275_vm2 = vmmov %vm13274_vm6 }
 0x637   :  { %v6569_v25 = vpop.xlane.xlu1 %6568  ;;  %6793 = vmatpush.msra.mxu3 %v6668_v15  ;;  %6818 = vmatpush.msrb.mxu0 %v6639_v39  ;;  %v6615_v13 = vmul.f32 0.001953125, %v6599_v46  ;;  %v4900_v57 = vpop.f32.mrf.mxu2 }
 0x638   :  { %v6594_v51 = vpop.xlane.xlu0 %6593  ;;  %6838 = vmatpush.msrb.mxu2 %v6640_v35  ;;  %v6609_v49 = vmul.f32 0.001953125, %v6569_v25  ;;  %v12610_v2 = vadd.f32 %v4900_v57, %v4881_v52  ;;  %v4940_v42 = vpop.f32.mrf.mxu0  ;;  %v12623_v35 = vadd.f32 %v12547_v28, %v4761_v59  ;;  %v6703_v28 = vsel %vm13272_vm1, %v6702_v19, %v6701_v9 }
 0x639   :  { %v6614_v18 = vmul.f32 0.001953125, %v6594_v51  ;;  %6794 = vmatpush.msra.mxu3 %v6662_v48  ;;  %v6715_v26 = vperm.slane %v6615_v13, %v13249_v21  ;;  %v4941_v55 = vadd.f32 %v4940_v42, %v4921_v6  ;;  %v5464_v6 = vperm.slane %v5460_v27, 2 }
 0x63a   :  { %v6704_v40 = vperm.slane %v6609_v49, %v13249_v21  ;;  %v4967_v21 = vsel %vm3297_vm9, %v12610_v2, inf  ;;  %v4987_v48 = vsel %vm3297_vm9, %v12610_v2, -inf  ;;  %v4965_v63 = vsel %vm3297_vm9, %v12623_v35, inf }
 0x63b   :  { %6795 = vmatpush.msra.mxu3 %v6656_v1  ;;  %v6713_v23 = vperm.slane %v6614_v18, %v13244_v47  ;;  %v12626_v47 = vadd.f32 %v12573_v32, %v4821_v22  ;;  %v4988_v14 = vmax.f32 %v4983_v60, %v4987_v48  ;;  %v4968_v30 = vmin.f32 %v4963_v45, %v4967_v21 }
 0x63c   :  { %v6705_v62 = vsel %vm2177_vm4, %v6704_v40, %v6703_v28  ;;  %v4985_v18 = vsel %vm3297_vm9, %v12623_v35, -inf  ;;  %v5462_v49 = vperm.slane %v5460_v27, 0  ;;  %v5463_v45 = vperm.slane %v5460_v27, 1 }
 0x63d   :  { %6796 = vmatpush.msra.mxu3 %v6650_v53  ;;  %v6714_v15 = vsel %vm13271_vm3, %v6713_v23, %v6712_v7  ;;  %v4986_v25 = vsel %vm3297_vm9, %v12626_v47, -inf  ;;  %v4966_v1 = vsel %vm3297_vm9, %v12626_v47, inf  ;;  %v5465_v22 = vperm.slane %v5460_v27, 3 }
 0x63e   :  { %v6716_v4 = vsel %vm2177_vm4, %v6715_v26, %v6714_v15  ;;  %vm13273_vm4 = vmmov %vm13268_vm10  ;;  %v4992_v52 = vmax.f32 %v4985_v18, %v4986_v25  ;;  %v4972_v24 = vmin.f32 %v4965_v63, %v4966_v1  ;;  %v5466_v42 = vperm.slane %v5460_v27, 4 }
 0x63f   :  { %v6604_v38 = vpop.xlane.xlu1 %6603  ;;  %6797 = vmatpush.msra.mxu3 %v6644_v37  ;;  %v5467_v7 = vperm.slane %v5460_v27, 5 }
 0x640   :  { %v6616_v39 = vmul.f32 0.001953125, %v6604_v38  ;;  %v6574_v56 = vpop.xlane.xlu0 %6573 }
 0x641   :  { %v6610_v17 = vmul.f32 0.001953125, %v6574_v56  ;;  %6798 = vmatpush.msra.mxu3 %v6638_v33 }
 0x642   :  { %v6717_v8 = vperm.slane %v6616_v39, %v13255_v54 }
 0x643   :  { %v6706_v32 = vperm.slane %v6610_v17, %v13255_v54  ;;  %v4960_v16 = vpop.f32.mrf.mxu1 }
 0x644   :  { %v6718_v5 = vsel %vm2181_vm5, %v6717_v8, %v6716_v4  ;;  %v12640_v41 = vadd.f32 %v4960_v16, %v4941_v55 }
 0x645   :  { %v6707_v11 = vsel %vm2181_vm5, %v6706_v32, %v6705_v62 }
 0x646   :  { %v4969_v54 = vsel %vm3297_vm9, %v12640_v41, inf  ;;  %v4989_v34 = vsel %vm3297_vm9, %v12640_v41, -inf  ;;  %v6719_v31 = vsel %vm13273_vm4, %v6718_v5, %v6707_v11 }
 0x647   :  { %v4970_v51 = vmin.f32 %v4964_v12, %v4969_v54  ;;  %v4990_v46 = vmax.f32 %v4984_v43, %v4989_v34  ;;  %6965 = vmatmul.msk.f32.vlgmr.msra.gmra.mxu0 %vm6720_vm0, %v6719_v31  ;;  %6966 = vmatmul.msk.f32.vlgmr.msra.gmra.mxu2 %vm6720_vm0, %v6719_v31 }
 0x648   :  { %6967 = vmatmul.msk.f32.vlgmr.msra.gmra.mxu1 %vm6720_vm0, %v6719_v31  ;;  %6968 = vmatmul.msk.f32.vlgmr.msra.gmra.mxu3 %vm6720_vm0, %v6719_v31 }
 0x649   :  { %v4991_v53 = vmax.f32 %v4988_v14, %v4990_v46  ;;  %v4971_v3 = vmin.f32 %v4968_v30, %v4970_v51 }
 0x64b   :  { %v4993_v37 = vmax.f32 %v4991_v53, %v4992_v52  ;;  %v4973_v44 = vmin.f32 %v4971_v3, %v4972_v24  ;;  %v6200_v3 = vld [vmem:[%s12837_s13] sm:$0x3f] }
 0x64c   :  { %v6204_v27 = vperm.slane %v6200_v3, 2 }
 0x64d   :  { %4994 = vmax.xlane.f32.xlu0 %v4993_v37  ;;  %4974 = vmin.xlane.f32.xlu2 %v4973_v44  ;;  %v6206_v37 = vperm.slane %v6200_v3, 4  ;;  %v6202_v44 = vperm.slane %v6200_v3, 0 }
 0x64f   :  { %6969 = vmatmul.msk.f32.vlgmr.msrb.gmra.mxu0 %vm6720_vm0, %v6719_v31  ;;  %6970 = vmatmul.msk.f32.vlgmr.msrb.gmra.mxu2 %vm6720_vm0, %v6719_v31 }
 0x651   :  { %v5636_v36 = vpop.f32.mrf.mxu2 }
 0x652   :  { %v5637_v33 = vadd.f32 %v5636_v36, %v5462_v49  ;;  %v6203_v36 = vperm.slane %v6200_v3, 1  ;;  %v6207_v49 = vperm.slane %v6200_v3, 5 }
 0x65f   :  { %v5696_v20 = vpop.f32.mrf.mxu0 }
 0x663   :  { %v5716_v57 = vpop.f32.mrf.mxu1 }
 0x664   :  { %v5656_v0 = vpop.f32.mrf.mxu3  ;;  %v5717_v9 = vadd.f32 %v5716_v57, %v5464_v6 }
 0x665   :  { %v5736_v13 = vpop.f32.mrf.mxu2  ;;  %v12667_v19 = vadd.f32 %v5656_v0, %v5637_v33 }
 0x666   :  { %v12675_v12 = vadd.f32 %v5736_v13, %v5717_v9 }
 0x667   :  { %v5859_v17 = vsel %vm3297_vm9, %v12667_v19, inf  ;;  %v5879_v8 = vsel %vm3297_vm9, %v12667_v19, -inf }
 0x668   :  { %v5861_v31 = vsel %vm3297_vm9, %v12675_v12, inf  ;;  %v5881_v14 = vsel %vm3297_vm9, %v12675_v12, -inf }
 0x669   :  { %v5756_v23 = vpop.f32.mrf.mxu0 }
 0x66a   :  { %v5757_v29 = vadd.f32 %v5756_v23, %v5465_v22 }
 0x66f   :  { %v5676_v61 = vpop.f32.mrf.mxu3 }
 0x670   :  { %v5776_v59 = vpop.f32.mrf.mxu2  ;;  %v5677_v50 = vadd.f32 %v5676_v61, %v5463_v45 }
 0x671   :  { %v12669_v26 = vadd.f32 %v5776_v59, %v5757_v29 }
 0x672   :  { %v12671_v40 = vadd.f32 %v5696_v20, %v5677_v50  ;;  %v6205_v20 = vperm.slane %v6200_v3, 3 }
 0x673   :  { %v5816_v56 = vpop.f32.mrf.mxu1  ;;  %v5862_v48 = vsel %vm3297_vm9, %v12669_v26, inf  ;;  %v5882_v28 = vsel %vm3297_vm9, %v12669_v26, -inf }
 0x674   :  { %v5856_v21 = vpop.f32.mrf.mxu0  ;;  %v5860_v32 = vsel %vm3297_vm9, %v12671_v40, inf  ;;  %v5880_v16 = vsel %vm3297_vm9, %v12671_v40, -inf  ;;  %v5888_v46 = vmax.f32 %v5881_v14, %v5882_v28  ;;  %v5868_v63 = vmin.f32 %v5861_v31, %v5862_v48 }
 0x688   :  { %v5796_v38 = vpop.f32.mrf.mxu3 }
 0x689   :  { %v5797_v15 = vadd.f32 %v5796_v38, %v5466_v42  ;;  %v5836_v39 = vpop.f32.mrf.mxu2 }
 0x68a   :  { %v5837_v60 = vadd.f32 %v5836_v39, %v5467_v7 }
 0x68b   :  { %v12677_v55 = vadd.f32 %v5816_v56, %v5797_v15 }
 0x68c   :  { %v12685_v4 = vadd.f32 %v5856_v21, %v5837_v60 }
 0x68d   :  { %v5863_v62 = vsel %vm3297_vm9, %v12677_v55, inf  ;;  %v5883_v5 = vsel %vm3297_vm9, %v12677_v55, -inf }
 0x68e   :  { %v5865_v43 = vsel %vm3297_vm9, %v12685_v4, inf  ;;  %v5885_v11 = vsel %vm3297_vm9, %v12685_v4, -inf  ;;  %v5884_v25 = vmax.f32 %v5879_v8, %v5883_v5  ;;  %v5864_v1 = vmin.f32 %v5859_v17, %v5863_v62 }
 0x68f   :  { %v5886_v54 = vmax.f32 %v5880_v16, %v5885_v11  ;;  %v5866_v34 = vmin.f32 %v5860_v32, %v5865_v43 }
 0x691   :  { %v5887_v51 = vmax.f32 %v5884_v25, %v5886_v54  ;;  %v5867_v30 = vmin.f32 %v5864_v1, %v5866_v34 }
 0x693   :  { %v5889_v18 = vmax.f32 %v5887_v51, %v5888_v46  ;;  %v5869_v53 = vmin.f32 %v5867_v30, %v5868_v63 }
 0x695   :  { %5890 = vmax.xlane.f32.xlu2 %v5889_v18  ;;  %5870 = vmin.xlane.f32.xlu1 %v5869_v53 }
 0x6a5   :  { %v6305_v52 = vpop.f32.mrf.mxu1  ;;  %v6345_v45 = vpop.f32.mrf.mxu0 }
 0x6a6   :  { %v12708_v23 = vadd.f32 %v6305_v52, %v6202_v44  ;;  %v12714_v33 = vadd.f32 %v6345_v45, %v6204_v27  ;;  %v6671_v52 = vld [vmem:[%s12838_s14] sm:$0x3f] }
 0x6a8   :  { %v6408_v29 = vsel %vm3297_vm9, %v12708_v23, inf  ;;  %v6428_v7 = vsel %vm3297_vm9, %v12708_v23, -inf  ;;  %v6410_v28 = vsel %vm3297_vm9, %v12714_v33, inf  ;;  %v6430_v32 = vsel %vm3297_vm9, %v12714_v33, -inf }
 0x6aa   :  { %v6325_v24 = vpop.f32.mrf.mxu3 }
 0x6ab   :  { %v12710_v59 = vadd.f32 %v6325_v24, %v6203_v36 }
 0x6ac   :  { %v6365_v13 = vpop.f32.mrf.mxu2 }
 0x6ad   :  { %v6385_v0 = vpop.f32.mrf.mxu1  ;;  %v12712_v57 = vadd.f32 %v6365_v13, %v6205_v20  ;;  %v6409_v38 = vsel %vm3297_vm9, %v12710_v59, inf  ;;  %v6429_v9 = vsel %vm3297_vm9, %v12710_v59, -inf  ;;  %v6673_v20 = vperm.slane %v6671_v52, 0 }
 0x6ae   :  { %v12706_v61 = vadd.f32 %v6385_v0, %v6206_v37  ;;  %v6677_v0 = vperm.slane %v6671_v52, 4  ;;  %v6674_v13 = vperm.slane %v6671_v52, 1 }
 0x6af   :  { %v6411_v15 = vsel %vm3297_vm9, %v12712_v57, inf  ;;  %v6431_v39 = vsel %vm3297_vm9, %v12712_v57, -inf }
 0x6b0   :  { %v6412_v6 = vsel %vm3297_vm9, %v12706_v61, inf  ;;  %v6432_v50 = vsel %vm3297_vm9, %v12706_v61, -inf  ;;  %v6437_v62 = vmax.f32 %v6430_v32, %v6431_v39  ;;  %v6417_v43 = vmin.f32 %v6410_v28, %v6411_v15 }
 0x6b1   :  { %v6413_v17 = vmin.f32 %v6408_v29, %v6412_v6  ;;  %v6433_v21 = vmax.f32 %v6428_v7, %v6432_v50  ;;  %v6678_v50 = vperm.slane %v6671_v52, 5 }
 0x6b9   :  { %v6405_v22 = vpop.f32.mrf.mxu3 }
 0x6ba   :  { %v12720_v42 = vadd.f32 %v6405_v22, %v6207_v49  ;;  %v6676_v49 = vperm.slane %v6671_v52, 3  ;;  %v6675_v22 = vperm.slane %v6671_v52, 2 }
 0x6bc   :  { %v6414_v56 = vsel %vm3297_vm9, %v12720_v42, inf  ;;  %v6434_v60 = vsel %vm3297_vm9, %v12720_v42, -inf }
 0x6bd   :  { %v6415_v8 = vmin.f32 %v6409_v38, %v6414_v56  ;;  %v6435_v48 = vmax.f32 %v6429_v9, %v6434_v60 }
 0x6bf   :  { %v6436_v16 = vmax.f32 %v6433_v21, %v6435_v48  ;;  %v6416_v5 = vmin.f32 %v6413_v17, %v6415_v8 }
 0x6c0   :  { %v4975_v11 = vpop.xlane.xlu2 %4974  ;;  %v4995_v25 = vpop.xlane.xlu0 %4994 }
 0x6c1   :  { %v4976_v1 = vrot.slane %v4975_v11, 4  ;;  %v4996_v54 = vrot.slane %v4995_v25, 4  ;;  %v6438_v34 = vmax.f32 %v6436_v16, %v6437_v62  ;;  %v6418_v31 = vmin.f32 %v6416_v5, %v6417_v43 }
 0x6c3   :  { %v4977_v14 = vmin.f32 %v4975_v11, %v4976_v1  ;;  %v4997_v51 = vmax.f32 %v4995_v25, %v4996_v54  ;;  %6439 = vmax.xlane.f32.xlu1 %v6438_v34  ;;  %6419 = vmin.xlane.f32.xlu0 %v6418_v31 }
 0x6c4   :  { %v6740_v46 = vpop.f32.mrf.mxu0 }
 0x6c5   :  { %v4978_v30 = vrot.slane %v4977_v14, 2  ;;  %v4998_v63 = vrot.slane %v4997_v51, 2  ;;  %v12747_v29 = vadd.f32 %v6740_v46, %v6673_v20  ;;  %v6780_v7 = vpop.f32.mrf.mxu1 }
 0x6c6   :  { %v12753_v39 = vadd.f32 %v6780_v7, %v6675_v22 }
 0x6c7   :  { %v4979_v18 = vmin.f32 %v4977_v14, %v4978_v30  ;;  %v4999_v53 = vmax.f32 %v4997_v51, %v4998_v63  ;;  %v6843_v21 = vsel %vm3297_vm9, %v12747_v29, inf  ;;  %v6863_v8 = vsel %vm3297_vm9, %v12747_v29, -inf }
 0x6c8   :  { %v6845_v54 = vsel %vm3297_vm9, %v12753_v39, inf  ;;  %v6865_v34 = vsel %vm3297_vm9, %v12753_v39, -inf }
 0x6c9   :  { %v4980_v3 = vrot.slane %v4979_v18, 1  ;;  %v5000_v24 = vrot.slane %v4999_v53, 1 }
 0x6ca   :  { %v6760_v37 = vpop.f32.mrf.mxu2 }
 0x6cb   :  { %v4981_v44 = vmin.f32 %v4979_v18, %v4980_v3  ;;  %v5001_v36 = vmax.f32 %v4999_v53, %v5000_v24  ;;  %v6800_v45 = vpop.f32.mrf.mxu3  ;;  %v12749_v38 = vadd.f32 %v6760_v37, %v6674_v13 }
 0x6cc   :  { %v6820_v27 = vpop.f32.mrf.mxu0  ;;  %v12751_v9 = vadd.f32 %v6800_v45, %v6676_v49 }
 0x6cd   :  { %6975 = vpush %v4981_v44  ;;  %v12745_v6 = vadd.f32 %v6820_v27, %v6677_v0  ;;  %v6844_v48 = vsel %vm3297_vm9, %v12749_v38, inf  ;;  %v6864_v28 = vsel %vm3297_vm9, %v12749_v38, -inf }
 0x6ce   :  { %6977 = vpush %v5001_v36  ;;  %v6846_v32 = vsel %vm3297_vm9, %v12751_v9, inf  ;;  %v6866_v16 = vsel %vm3297_vm9, %v12751_v9, -inf }
 0x6cf   :  { %v6847_v56 = vsel %vm3297_vm9, %v12745_v6, inf  ;;  %v6867_v60 = vsel %vm3297_vm9, %v12745_v6, -inf  ;;  %v6872_v14 = vmax.f32 %v6865_v34, %v6866_v16  ;;  %v6852_v46 = vmin.f32 %v6845_v54, %v6846_v32 }
 0x6d0   :  { %v6848_v43 = vmin.f32 %v6843_v21, %v6847_v56  ;;  %v6868_v11 = vmax.f32 %v6863_v8, %v6867_v60 }
 0x6d2   :  { %v6840_v15 = vpop.f32.mrf.mxu2 }
 0x6d3   :  { %v12759_v17 = vadd.f32 %v6840_v15, %v6678_v50 }
 0x6d5   :  { %v6849_v62 = vsel %vm3297_vm9, %v12759_v17, inf  ;;  %v6869_v5 = vsel %vm3297_vm9, %v12759_v17, -inf }
 0x6d6   :  { %v6850_v25 = vmin.f32 %v6844_v48, %v6849_v62  ;;  %v6870_v1 = vmax.f32 %v6864_v28, %v6869_v5 }
 0x6d8   :  { %v6871_v31 = vmax.f32 %v6868_v11, %v6870_v1  ;;  %v6851_v51 = vmin.f32 %v6848_v43, %v6850_v25 }
 0x6da   :  { %v6873_v30 = vmax.f32 %v6871_v31, %v6872_v14  ;;  %v6853_v63 = vmin.f32 %v6851_v51, %v6852_v46 }
 0x6dc   :  { %6874 = vmax.xlane.f32.xlu0 %v6873_v30  ;;  %6854 = vmin.xlane.f32.xlu2 %v6853_v63 }
 0x6fe   :  { %s6976_s14 = spop %6975 }
 0x6ff   :  { %s6978_s22 = spop %6977  ;;  %v5003_v50 = vstv %s6976_s14 }
 0x700   :  { %s5010_s26 = ssub.f32 %s6978_s22, %s6976_s14  ;;  %v5005_v8 = vsub.f32 %v12608_v58, %v5003_v50  ;;  %v5006_v16 = vsub.f32 %v12623_v35, %v5003_v50  ;;  %v5007_v62 = vsub.f32 %v12626_v47, %v5003_v50  ;;  %v5009_v43 = vsub.f32 %v12640_v41, %v5003_v50 }
 0x701   :  { %v5004_v25 = vsub.f32 %v12589_v10, %v5003_v50  ;;  %v5008_v58 = vsub.f32 %v12610_v2, %v5003_v50 }
 0x702   :  { %s5011_s27 = sadd.f32 1e-05, %s5010_s26 }
 0x704   :  { %v5012_v18 = vstv %s5011_s27 }
 0x705   :  { %7009 = vrcp.f32 %v5012_v18  ;;  %v5024_v49 = vand.u32 2147483648, %v5012_v18  ;;  %v5022_v15 = vand.u32 2147483647, %v5012_v18  ;;  %vm5018_vm12 = vweird.f32 %v5012_v18 }
 0x707   :  { %v5025_v48 = vor.u32 1.1754944e-38, %v5024_v49  ;;  %vm5023_vm14 = vcmp.eq.f32.partialorder %v5022_v15, 8.507059e+37 }
 0x708   :  { %v5891_v53 = vpop.xlane.xlu2 %5890  ;;  %v5871_v52 = vpop.xlane.xlu1 %5870 }
 0x709   :  { %v5892_v3 = vrot.slane %v5891_v53, 4  ;;  %v5872_v24 = vrot.slane %v5871_v52, 4 }
 0x70b   :  { %v7010_v37 = vpop.eup %7009  ;;  %v5893_v44 = vmax.f32 %v5891_v53, %v5892_v3  ;;  %v5873_v36 = vmin.f32 %v5871_v52, %v5872_v24 }
 0x70c   :  { %v5014_v0 = vmul.f32 %v7010_v37, %v5012_v18  ;;  %vm5019_vm5 = vweird.f32 %v7010_v37 }
 0x70d   :  { %v5894_v20 = vrot.slane %v5893_v44, 2  ;;  %v5874_v13 = vrot.slane %v5873_v36, 2  ;;  %vm5020_vm13 = vmor %vm5018_vm12, %vm5019_vm5 }
 0x70e   :  { %v5015_v27 = vsub.f32 1.0, %v5014_v0  ;;  %vm13276_vm5 = vmmov %vm13275_vm2 }
 0x70f   :  { %v5875_v45 = vmin.f32 %v5873_v36, %v5874_v13  ;;  %v5895_v22 = vmax.f32 %v5893_v44, %v5894_v20 }
 0x710   :  { %v5016_v7 = vmul.f32 %v7010_v37, %v5015_v27 }
 0x711   :  { %v5876_v56 = vrot.slane %v5875_v45, 1  ;;  %v5896_v60 = vrot.slane %v5895_v22, 1 }
 0x712   :  { %v5017_v21 = vadd.f32 %v7010_v37, %v5016_v7 }
 0x713   :  { %v5877_v28 = vmin.f32 %v5875_v45, %v5876_v56  ;;  %v5897_v32 = vmax.f32 %v5895_v22, %v5896_v60 }
 0x714   :  { %v5021_v5 = vsel %vm5020_vm13, %v7010_v37, %v5017_v21 }
 0x715   :  { %v5026_v11 = vsel %vm5023_vm14, %v5025_v48, %v5021_v5  ;;  %6979 = vpush %v5877_v28 }
 0x716   :  { %v5028_v1 = vmul.f32 %v5026_v11, %v5005_v8  ;;  %v5029_v54 = vmul.f32 %v5026_v11, %v5006_v16  ;;  %v5030_v34 = vmul.f32 %v5026_v11, %v5007_v62  ;;  %6981 = vpush %v5897_v32  ;;  %v5032_v31 = vmul.f32 %v5026_v11, %v5009_v43 }
 0x717   :  { %v5027_v14 = vmul.f32 %v5026_v11, %v5004_v25  ;;  %v5031_v47 = vmul.f32 %v5026_v11, %v5008_v58 }
 0x718   :  { %v5039_v51 = vrot.slane %v5028_v1, 6  ;;  %v5040_v35 = vrot.slane %v5029_v54, 4  ;;  %v5041_v46 = vrot.slane %v5030_v34, 2  ;;  %v5042_v30 = vrot.slane %v5032_v31, 6 }
 0x71a   :  { %v5043_v63 = vsel %vm3297_vm9, %v5027_v14, %v5039_v51  ;;  %v5044_v41 = vsel %vm3379_vm15, %v5040_v35, %v5041_v46  ;;  %v5046_v10 = vsel %vm3297_vm9, %v5031_v47, %v5042_v30 }
 0x71b   :  { %v5045_v18 = vsel %vm13274_vm6, %v5043_v63, %v5044_v41  ;;  %5051 = vst [vmem:[#allocation11 + $0x14] sm:$0xf] %v5046_v10 }
 0x71c   :  { %5050 = vst [vmem:[#allocation11 + $0xc] sm:$0xff] %v5045_v18 }
 0x736   :  { %v6440_v53 = vpop.xlane.xlu1 %6439  ;;  %v6420_v52 = vpop.xlane.xlu0 %6419 }
 0x737   :  { %v6441_v2 = vrot.slane %v6440_v53, 4  ;;  %v6421_v3 = vrot.slane %v6420_v52, 4 }
 0x739   :  { %v6442_v24 = vmax.f32 %v6440_v53, %v6441_v2  ;;  %v6422_v37 = vmin.f32 %v6420_v52, %v6421_v3 }
 0x73b   :  { %v6443_v44 = vrot.slane %v6442_v24, 2  ;;  %v6423_v36 = vrot.slane %v6422_v37, 2 }
 0x73d   :  { %v6444_v0 = vmax.f32 %v6442_v24, %v6443_v44  ;;  %v6424_v20 = vmin.f32 %v6422_v37, %v6423_v36 }
 0x73f   :  { %v6425_v13 = vrot.slane %v6424_v20, 1  ;;  %v6445_v27 = vrot.slane %v6444_v0, 1 }
 0x741   :  { %v6426_v49 = vmin.f32 %v6424_v20, %v6425_v13  ;;  %v6446_v45 = vmax.f32 %v6444_v0, %v6445_v27 }
 0x743   :  { %6983 = vpush %v6426_v49 }
 0x744   :  { %6985 = vpush %v6446_v45 }
 0x746   :  { %s6980_s25 = spop %6979 }
 0x747   :  { %s6982_s28 = spop %6981  ;;  %v5899_v43 = vstv %s6980_s25 }
 0x748   :  { %s5906_s29 = ssub.f32 %s6982_s28, %s6980_s25  ;;  %v5901_v51 = vsub.f32 %v12671_v40, %v5899_v43  ;;  %v5902_v46 = vsub.f32 %v12675_v12, %v5899_v43  ;;  %v5903_v47 = vsub.f32 %v12669_v26, %v5899_v43  ;;  %v5905_v63 = vsub.f32 %v12685_v4, %v5899_v43 }
 0x749   :  { %v5900_v18 = vsub.f32 %v12667_v19, %v5899_v43  ;;  %v5904_v40 = vsub.f32 %v12677_v55, %v5899_v43 }
 0x74a   :  { %s5907_s2 = sadd.f32 1e-05, %s5906_s29 }
 0x74c   :  { %v5908_v22 = vstv %s5907_s2 }
 0x74d   :  { %7011 = vrcp.f32 %v5908_v22  ;;  %v5918_v11 = vand.u32 2147483647, %v5908_v22  ;;  %v5920_v25 = vand.u32 2147483648, %v5908_v22  ;;  %vm5914_vm8 = vweird.f32 %v5908_v22 }
 0x74f   :  { %v6855_v50 = vpop.xlane.xlu2 %6854  ;;  %v6875_v7 = vpop.xlane.xlu0 %6874  ;;  %v5921_v35 = vor.u32 1.1754944e-38, %v5920_v25  ;;  %vm5919_vm11 = vcmp.eq.f32.partialorder %v5918_v11, 8.507059e+37 }
 0x750   :  { %v6856_v15 = vrot.slane %v6855_v50, 4  ;;  %v6876_v56 = vrot.slane %v6875_v7, 4 }
 0x752   :  { %v6857_v60 = vmin.f32 %v6855_v50, %v6856_v15  ;;  %v6877_v21 = vmax.f32 %v6875_v7, %v6876_v56 }
 0x753   :  { %v7012_v8 = vpop.eup %7011 }
 0x754   :  { %v5910_v48 = vmul.f32 %v7012_v8, %v5908_v22  ;;  %v6858_v28 = vrot.slane %v6857_v60, 2  ;;  %v6878_v32 = vrot.slane %v6877_v21, 2  ;;  %vm5915_vm7 = vweird.f32 %v7012_v8 }
 0x755   :  { %vm5916_vm10 = vmor %vm5914_vm8, %vm5915_vm7 }
 0x756   :  { %v5911_v16 = vsub.f32 1.0, %v5910_v48  ;;  %v6859_v62 = vmin.f32 %v6857_v60, %v6858_v28  ;;  %v6879_v5 = vmax.f32 %v6877_v21, %v6878_v32  ;;  %vm13277_vm7 = vmmov %vm13275_vm2 }
 0x758   :  { %v5912_v1 = vmul.f32 %v7012_v8, %v5911_v16  ;;  %v6860_v54 = vrot.slane %v6859_v62, 1  ;;  %v6880_v34 = vrot.slane %v6879_v5, 1 }
 0x75a   :  { %v5913_v58 = vadd.f32 %v7012_v8, %v5912_v1  ;;  %v6861_v31 = vmin.f32 %v6859_v62, %v6860_v54  ;;  %v6881_v14 = vmax.f32 %v6879_v5, %v6880_v34 }
 0x75c   :  { %v5917_v30 = vsel %vm5916_vm10, %v7012_v8, %v5913_v58  ;;  %6987 = vpush %v6861_v31 }
 0x75d   :  { %v5922_v41 = vsel %vm5919_vm11, %v5921_v35, %v5917_v30  ;;  %6989 = vpush %v6881_v14 }
 0x75e   :  { %v5924_v10 = vmul.f32 %v5922_v41, %v5901_v51  ;;  %v5925_v53 = vmul.f32 %v5922_v41, %v5902_v46  ;;  %v5926_v52 = vmul.f32 %v5922_v41, %v5903_v47  ;;  %v5928_v2 = vmul.f32 %v5922_v41, %v5905_v63 }
 0x75f   :  { %v5923_v3 = vmul.f32 %v5922_v41, %v5900_v18  ;;  %v5927_v26 = vmul.f32 %v5922_v41, %v5904_v40 }
 0x760   :  { %v5935_v24 = vrot.slane %v5924_v10, 6  ;;  %v5936_v12 = vrot.slane %v5925_v53, 4  ;;  %v5937_v37 = vrot.slane %v5926_v52, 2  ;;  %v5938_v44 = vrot.slane %v5928_v2, 6 }
 0x762   :  { %v5939_v36 = vsel %vm3297_vm9, %v5923_v3, %v5935_v24  ;;  %v5940_v4 = vsel %vm3379_vm15, %v5936_v12, %v5937_v37  ;;  %v5942_v19 = vsel %vm3297_vm9, %v5927_v26, %v5938_v44 }
 0x763   :  { %v5941_v0 = vsel %vm13275_vm2, %v5939_v36, %v5940_v4  ;;  %5947 = vst [vmem:[#allocation11 + $0x20] sm:$0xf] %v5942_v19 }
 0x764   :  { %5946 = vst [vmem:[#allocation11 + $0x18] sm:$0xff] %v5941_v0 }
 0x774   :  { %s6984_s3 = spop %6983 }
 0x775   :  { %s6986_s17 = spop %6985  ;;  %v6448_v45 = vstv %s6984_s3 }
 0x776   :  { %s6455_s19 = ssub.f32 %s6986_s17, %s6984_s3  ;;  %v6450_v15 = vsub.f32 %v12710_v59, %v6448_v45  ;;  %v6451_v60 = vsub.f32 %v12714_v33, %v6448_v45  ;;  %v6452_v21 = vsub.f32 %v12712_v57, %v6448_v45  ;;  %v6454_v48 = vsub.f32 %v12720_v42, %v6448_v45 }
 0x777   :  { %v6449_v32 = vsub.f32 %v12708_v23, %v6448_v45  ;;  %v6453_v43 = vsub.f32 %v12706_v61, %v6448_v45 }
 0x778   :  { %s6456_s7 = sadd.f32 1e-05, %s6455_s19 }
 0x77a   :  { %v6457_v55 = vstv %s6456_s7 }
 0x77b   :  { %7013 = vrcp.f32 %v6457_v55  ;;  %v6469_v49 = vand.u32 2147483648, %v6457_v55  ;;  %v6467_v50 = vand.u32 2147483647, %v6457_v55  ;;  %vm6463_vm1 = vweird.f32 %v6457_v55 }
 0x77d   :  { %v6470_v56 = vor.u32 1.1754944e-38, %v6469_v49  ;;  %vm6468_vm4 = vcmp.eq.f32.partialorder %v6467_v50, 8.507059e+37 }
 0x781   :  { %v7014_v20 = vpop.eup %7013 }
 0x782   :  { %v6459_v13 = vmul.f32 %v7014_v20, %v6457_v55  ;;  %vm6464_vm3 = vweird.f32 %v7014_v20 }
 0x783   :  { %vm6465_vm0 = vmor %vm6463_vm1, %vm6464_vm3 }
 0x784   :  { %v6460_v27 = vsub.f32 1.0, %v6459_v13 }
 0x786   :  { %v6461_v22 = vmul.f32 %v7014_v20, %v6460_v27 }
 0x788   :  { %v6462_v7 = vadd.f32 %v7014_v20, %v6461_v22 }
 0x78a   :  { %v6466_v8 = vsel %vm6465_vm0, %v7014_v20, %v6462_v7 }
 0x78b   :  { %v6471_v28 = vsel %vm6468_vm4, %v6470_v56, %v6466_v8 }
 0x78c   :  { %v6473_v16 = vmul.f32 %v6471_v28, %v6450_v15  ;;  %v6474_v62 = vmul.f32 %v6471_v28, %v6451_v60  ;;  %v6475_v5 = vmul.f32 %v6471_v28, %v6452_v21  ;;  %v6477_v11 = vmul.f32 %v6471_v28, %v6454_v48 }
 0x78d   :  { %s6988_s1 = spop %6987  ;;  %v6472_v59 = vmul.f32 %v6471_v28, %v6449_v32  ;;  %v6476_v57 = vmul.f32 %v6471_v28, %v6453_v43 }
 0x78e   :  { %v6484_v25 = vrot.slane %v6473_v16, 6  ;;  %v6485_v1 = vrot.slane %v6474_v62, 4  ;;  %v6486_v33 = vrot.slane %v6475_v5, 2  ;;  %s6990_s4 = spop %6989  ;;  %v6487_v54 = vrot.slane %v6477_v11, 6 }
 0x78f   :  { %s6890_s18 = ssub.f32 %s6990_s4, %s6988_s1  ;;  %v6883_v46 = vstv %s6988_s1 }
 0x790   :  { %v6488_v42 = vsel %vm3297_vm9, %v6472_v59, %v6484_v25  ;;  %v6489_v34 = vsel %vm3379_vm15, %v6485_v1, %v6486_v33  ;;  %v6491_v58 = vsel %vm3297_vm9, %v6476_v57, %v6487_v54  ;;  %v6885_v41 = vsub.f32 %v12749_v38, %v6883_v46 }
 0x791   :  { %v6490_v23 = vsel %vm13276_vm5, %v6488_v42, %v6489_v34  ;;  %s6891_s21 = sadd.f32 1e-05, %s6890_s18  ;;  %6496 = vst [vmem:[#allocation11 + $0x2c] sm:$0xf] %v6491_v58  ;;  %v6886_v10 = vsub.f32 %v12753_v39, %v6883_v46  ;;  %v6887_v53 = vsub.f32 %v12751_v9, %v6883_v46  ;;  %v6889_v40 = vsub.f32 %v12759_v17, %v6883_v46 }
 0x792   :  { %6495 = vst [vmem:[#allocation11 + $0x24] sm:$0xff] %v6490_v23  ;;  %v6884_v3 = vsub.f32 %v12747_v29, %v6883_v46  ;;  %v6888_v26 = vsub.f32 %v12745_v6, %v6883_v46 }
 0x793   :  { %v6892_v61 = vstv %s6891_s21 }
 0x794   :  { %7015 = vrcp.f32 %v6892_v61  ;;  %v6904_v35 = vand.u32 2147483648, %v6892_v61  ;;  %v6902_v30 = vand.u32 2147483647, %v6892_v61  ;;  %vm6898_vm13 = vweird.f32 %v6892_v61 }
 0x796   :  { %v6905_v18 = vor.u32 1.1754944e-38, %v6904_v35  ;;  %vm6903_vm6 = vcmp.eq.f32.partialorder %v6902_v30, 8.507059e+37 }
 0x79a   :  { %v7016_v31 = vpop.eup %7015 }
 0x79b   :  { %v6894_v14 = vmul.f32 %v7016_v31, %v6892_v61  ;;  %vm6899_vm12 = vweird.f32 %v7016_v31 }
 0x79c   :  { %vm6900_vm14 = vmor %vm6898_vm13, %vm6899_vm12 }
 0x79d   :  { %v6895_v51 = vsub.f32 1.0, %v6894_v14 }
 0x79f   :  { %v6896_v47 = vmul.f32 %v7016_v31, %v6895_v51 }
 0x7a1   :  { %v6897_v63 = vadd.f32 %v7016_v31, %v6896_v47 }
 0x7a3   :  { %v6901_v52 = vsel %vm6900_vm14, %v7016_v31, %v6897_v63 }
 0x7a4   :  { %v6906_v2 = vsel %vm6903_vm6, %v6905_v18, %v6901_v52 }
 0x7a5   :  { %v6908_v24 = vmul.f32 %v6906_v2, %v6885_v41  ;;  %v6909_v12 = vmul.f32 %v6906_v2, %v6886_v10  ;;  %v6910_v37 = vmul.f32 %v6906_v2, %v6887_v53  ;;  %v6912_v44 = vmul.f32 %v6906_v2, %v6889_v40 }
 0x7a6   :  { %v6907_v38 = vmul.f32 %v6906_v2, %v6884_v3  ;;  %v6911_v17 = vmul.f32 %v6906_v2, %v6888_v26 }
 0x7a7   :  { %v6919_v9 = vrot.slane %v6908_v24, 6  ;;  %v6920_v39 = vrot.slane %v6909_v12, 4  ;;  %v6921_v36 = vrot.slane %v6910_v37, 2  ;;  %v6922_v4 = vrot.slane %v6912_v44, 6 }
 0x7a9   :  { %v6923_v29 = vsel %vm3297_vm9, %v6907_v38, %v6919_v9  ;;  %v6924_v0 = vsel %vm3379_vm15, %v6920_v39, %v6921_v36  ;;  %v6926_v19 = vsel %vm3297_vm9, %v6911_v17, %v6922_v4 }
 0x7aa   :  { %v6925_v6 = vsel %vm13277_vm7, %v6923_v29, %v6924_v0  ;;  %6931 = vst [vmem:[#allocation11 + $0x38] sm:$0xf] %v6926_v19 }
 0x7ab   :  { %6930 = vst [vmem:[#allocation11 + $0x30] sm:$0xff] %v6925_v6 }
 0x7ac   :  { %6944 = dma.vmem_to_hbm [thread:$0]  %s6937_s8, 960, %s6939_s30, [#allocation4], %s7302_s0, %s7302_s0, %s7303_s15  }
 0x7ad   :  { %7286 = dma.done.wait [#allocation4], 960  }
 0x7ae   :  { %7287 = vsyncadd [#allocation4], 4294966336 }
 0x7af   :  { %6949 = vsyncpa [#allocation3], 1 }
 0x7b0   :  { %6950 = vsyncpa [#allocation6], 1 }
 0x7b1   :  { %6951 = vsyncpa [#allocation9], 1 }
 0x7b2   :  { %6952 = vsyncpa [#allocation4], 1 }

</bundles_post_ra>
